<compile_context>
chip_gen: v5e
topology: v5e:2x2
jax: 0.10.0
libtpu: 0.0.40
codegen_flags: <defaults>
</compile_context>

<pallas_src>
import numpy as np
import jax
import jax.numpy as jnp
from jax.experimental import pallas as pl
from jax.experimental.pallas import tpu as pltpu

# ---------------- hyperparameters (small, consistent with the module) -------
LATENT_DIM = 8
N_CLASSES = 4
CODE_DIM = 2
IMG_SIZE = 16
CHANNELS = 1
BATCH = 2
INIT_SIZE = IMG_SIZE // 4                        # 4
INPUT_DIM = LATENT_DIM + N_CLASSES + CODE_DIM    # 14

C0 = 64                    # channels after l1 / bn0 / conv1
C2 = 32                    # channels after conv2
H1 = 2 * INIT_SIZE         # 8   (after first upsample)
H2 = 4 * INIT_SIZE         # 16  (after second upsample) == IMG_SIZE
M1 = BATCH * H1 * H1       # 128 lanes  (conv1 stage)
M2 = BATCH * H2 * H2       # 512 lanes  (conv2 / conv3 stage)

# 3x3 tap offsets (dy, dx), row-major; shared by weights, masks and the kernel.
OFFS = tuple((dy, dx) for dy in (-1, 0, 1) for dx in (-1, 0, 1))


# ---------------- in-kernel helpers ------------------------------------------
def _bn_act(x, gamma, beta, eps, slope=None):
    """BatchNorm2d (batch stats, biased var) on a channel-major (C, N*H*W) slab."""
    mean = jnp.mean(x, axis=1, keepdims=True)                    # lane reduction
    var = jnp.mean((x - mean) ** 2, axis=1, keepdims=True)       # biased variance
    y = (x - mean) * jax.lax.rsqrt(var + eps) * gamma + beta
    if slope is not None:
        y = jnp.where(y > 0, y, slope * y)                       # LeakyReLU
    return y


def _conv3x3(x, w_ref, mask_ref, width, bias):
    """3x3 / stride-1 / pad-1 conv on a channel-major (Cin, B*width*width) slab.

    9 accumulating MXU matmuls; each tap's spatial shift is an XLU lane roll
    and the zero padding is a per-lane 0/1 mask.  The mask is constant along
    the contraction dim, so masking the (Cout, M) partial product is exact.
    """
    m = x.shape[-1]
    acc = None
    for t, (dy, dx) in enumerate(OFFS):
        off = dy * width + dx
        tap = x if off == 0 else pltpu.roll(x, shift=(-off) % m, axis=1)
        part = jnp.dot(w_ref[t], tap, preferred_element_type=jnp.float32)
        if not (dy == 0 and dx == 0):
            part = part * mask_ref[t]                            # zero padding
        acc = part if acc is None else acc + part
    return acc + bias


# ---------------- fused Pallas kernel ----------------------------------------
def _generator_kernel(
    xin_ref,                 # (224, 128) input scattered per spatial tap
    w1_ref, b1_ref,          # (64, 224) re-laid-out Linear weight, (64, 128) bias
    g0_ref, be0_ref,         # (64, 1)  BatchNorm2d(64, eps=1e-5)
    w2_ref, cb1_ref,         # (9, 64, 64), (64, 1)  Conv2d(64->64, 3x3)
    g1_ref, be1_ref,         # (64, 1)  BatchNorm2d(64, eps=0.8)
    u2_ref,                  # (128, 512) 0/1 nearest-upsample matrix
    w3_ref, cb2_ref,         # (9, 32, 64), (32, 1)  Conv2d(64->32, 3x3)
    g2_ref, be2_ref,         # (32, 1)  BatchNorm2d(32, eps=0.8)
    w4_ref, cb3_ref,         # (9, C, 32), (C, 1)    Conv2d(32->C, 3x3)
    m1_ref, m2_ref,          # (9, 1, 128), (9, 1, 512) conv-tap validity masks
    o_ref,                   # (C, 512) output, lane-dense
):
    # 1. Linear.  The NCHW->channel-major relayout and the first nearest-2x
    #    upsample are folded into (w1, xin): this single matmul yields the
    #    upsampled pre-BN activation (64, B*8*8).
    pre0 = jnp.dot(w1_ref[...], xin_ref[...],
                   preferred_element_type=jnp.float32) + b1_ref[...]

    # 2. BatchNorm2d(64, eps=1e-5).  Nearest upsampling duplicates each value
    #    exactly 4x, so stats over the 128 lanes equal the reference stats
    #    over the (B,4,4) pre-upsample tensor.
    a0 = _bn_act(pre0, g0_ref[...], be0_ref[...], 1e-5)

    # 3. Conv(64->64) -> BN(eps=0.8) -> LeakyReLU(0.2)
    h1 = _conv3x3(a0, w2_ref, m1_ref, H1, cb1_ref[...])
    a1 = _bn_act(h1, g1_ref[...], be1_ref[...], 0.8, slope=0.2)

    # 4. Upsample(x2 nearest): one MXU matmul with a 0/1 replication matrix.
    a1u = jnp.dot(a1, u2_ref[...], preferred_element_type=jnp.float32)

    # 5. Conv(64->32) -> BN(eps=0.8) -> LeakyReLU(0.2)
    h2 = _conv3x3(a1u, w3_ref, m2_ref, H2, cb2_ref[...])
    a2 = _bn_act(h2, g2_ref[...], be2_ref[...], 0.8, slope=0.2)

    # 6. Conv(32->channels) -> Tanh; output stays lane-dense (C, 512).
    h3 = _conv3x3(a2, w4_ref, m2_ref, H2, cb3_ref[...])
    o_ref[...] = jnp.tanh(h3)


# ---------------- parameter construction (deterministic) ---------------------
def init_params(key):
    """Parameters in the layout of the reference PyTorch module."""
    ks = jax.random.split(key, 8)
    p = {}
    # Linear, used as x @ W + b; column index = c*16 + y*4 + x (NCHW view order).
    p["l1_w"] = 0.05 * jax.random.normal(
        ks[0], (INPUT_DIM, C0 * INIT_SIZE ** 2), jnp.float32)
    p["l1_b"] = 0.01 * jax.random.normal(ks[1], (C0 * INIT_SIZE ** 2,), jnp.float32)
    p["bn0_g"] = jnp.ones((C0,), jnp.float32)
    p["bn0_b"] = jnp.zeros((C0,), jnp.float32)
    p["conv1_w"] = 0.05 * jax.random.normal(ks[2], (3, 3, C0, C0), jnp.float32)   # HWIO
    p["conv1_b"] = 0.01 * jax.random.normal(ks[3], (C0,), jnp.float32)
    p["bn1_g"] = jnp.ones((C0,), jnp.float32)
    p["bn1_b"] = jnp.zeros((C0,), jnp.float32)
    p["conv2_w"] = 0.05 * jax.random.normal(ks[4], (3, 3, C0, C2), jnp.float32)
    p["conv2_b"] = 0.01 * jax.random.normal(ks[5], (C2,), jnp.float32)
    p["bn2_g"] = jnp.ones((C2,), jnp.float32)
    p["bn2_b"] = jnp.zeros((C2,), jnp.float32)
    p["conv3_w"] = 0.05 * jax.random.normal(ks[6], (3, 3, C2, CHANNELS), jnp.float32)
    p["conv3_b"] = 0.01 * jax.random.normal(ks[7], (CHANNELS,), jnp.float32)
    return p


def _up1_select_and_src():
    """G[p, l] = 1 iff nearest-2x source of lane l (l = b*64 + y*8 + x) is the
    4x4 spatial position p = (y//2)*4 + (x//2); src[l] = that p."""
    g = np.zeros((INIT_SIZE * INIT_SIZE, M1), np.float32)
    src = np.zeros((M1,), np.int32)
    for b in range(BATCH):
        for y in range(H1):
            for x in range(H1):
                l = b * H1 * H1 + y * H1 + x
                p = (y // 2) * INIT_SIZE + (x // 2)
                g[p, l] = 1.0
                src[l] = p
    return g, src


def _upsample2_matrix():
    """(128, 512) 0/1 matrix: out[:, l2] = in[:, source(l2)] (nearest x2)."""
    u = np.zeros((M1, M2), np.float32)
    for b in range(BATCH):
        for y in range(H2):
            for x in range(H2):
                s = b * H1 * H1 + (y // 2) * H1 + (x // 2)
                u[s, b * H2 * H2 + y * H2 + x] = 1.0
    return u


def _conv_masks(width):
    """(9, 1, B*width*width) validity masks for the 9 conv taps (zero padding)."""
    m = BATCH * width * width
    masks = np.zeros((len(OFFS), 1, m), np.float32)
    for t, (dy, dx) in enumerate(OFFS):
        for b in range(BATCH):
            for y in range(width):
                for x in range(width):
                    if 0 <= y + dy < width and 0 <= x + dx < width:
                        masks[t, 0, b * width * width + y * width + x] = 1.0
    return masks


def _conv_tap_weights(w_hwio):
    """(3,3,Cin,Cout) HWIO -> (9, Cout, Cin) tap slabs, in OFFS order."""
    slabs = [jnp.transpose(w_hwio[dy + 1, dx + 1]) for (dy, dx) in OFFS]
    return jnp.stack(slabs, axis=0)


def prepare_params(p):
    """One-time, layout-only preprocessing (outside the forward pass)."""
    g_up1, src = _up1_select_and_src()
    # Linear weight channel-major: w1[c, k*16 + p] = l1_w[k, c*16 + p].
    w1 = (p["l1_w"].reshape(INPUT_DIM, C0, INIT_SIZE ** 2)
          .transpose(1, 0, 2).reshape(C0, INPUT_DIM * INIT_SIZE ** 2))
    # Linear bias, pre-upsampled into the (64, 128) channel-major layout.
    b1 = p["l1_b"].reshape(C0, INIT_SIZE ** 2)[:, src]
    return {
        "g_up1": jnp.asarray(g_up1),
        "w1": w1, "b1": b1,
        "g0": p["bn0_g"].reshape(C0, 1), "be0": p["bn0_b"].reshape(C0, 1),
        "w2": _conv_tap_weights(p["conv1_w"]), "cb1": p["conv1_b"].reshape(C0, 1),
        "g1": p["bn1_g"].reshape(C0, 1), "be1": p["bn1_b"].reshape(C0, 1),
        "u2": jnp.asarray(_upsample2_matrix()),
        "w3": _conv_tap_weights(p["conv2_w"]), "cb2": p["conv2_b"].reshape(C2, 1),
        "g2": p["bn2_g"].reshape(C2, 1), "be2": p["bn2_b"].reshape(C2, 1),
        "w4": _conv_tap_weights(p["conv3_w"]), "cb3": p["conv3_b"].reshape(CHANNELS, 1),
        "m1": jnp.asarray(_conv_masks(H1)),
        "m2": jnp.asarray(_conv_masks(H2)),
    }


# ---------------- forward pass (single fused pallas_call) --------------------
@jax.jit
def generator_forward(prep, noise, labels, code):
    gen_input = jnp.concatenate([noise, labels, code], axis=-1)          # (B, 14)
    # Scatter the tiny input into the (224, 128) matrix that folds the
    # NCHW->channel-major relayout and the first nearest-2x upsample into the
    # kernel's first matmul: xin[k*16+p, l] = gen_input[b(l), k] * G[p, l].
    xrep = jnp.repeat(gen_input.T, H1 * H1, axis=1)                      # (14, 128)
    xin = (xrep[:, None, :] * prep["g_up1"][None, :, :]
           ).reshape(INPUT_DIM * INIT_SIZE ** 2, M1)                     # (224, 128)

    out = pl.pallas_call(
        _generator_kernel,
        out_shape=jax.ShapeDtypeStruct((CHANNELS, M2), jnp.float32),
        in_specs=[pl.BlockSpec(memory_space=pltpu.MemorySpace.VMEM)] * 18,
        out_specs=pl.BlockSpec(memory_space=pltpu.MemorySpace.VMEM),
    )(xin, prep["w1"], prep["b1"], prep["g0"], prep["be0"],
      prep["w2"], prep["cb1"], prep["g1"], prep["be1"], prep["u2"],
      prep["w3"], prep["cb2"], prep["g2"], prep["be2"],
      prep["w4"], prep["cb3"], prep["m1"], prep["m2"])

    # (C, B*H*W) -> NCHW.  Free reinterpretation for CHANNELS == 1.
    return out.reshape(CHANNELS, BATCH, IMG_SIZE, IMG_SIZE).transpose(1, 0, 2, 3)


# ---------------- pure-JAX reference (for in-script validation) --------------
def reference_forward(p, noise, labels, code):
    x = jnp.concatenate([noise, labels, code], axis=-1)
    out = (x @ p["l1_w"] + p["l1_b"]).reshape(BATCH, C0, INIT_SIZE, INIT_SIZE)

    def bn(t, g, b, eps):
        m = jnp.mean(t, axis=(0, 2, 3), keepdims=True)
        v = jnp.mean((t - m) ** 2, axis=(0, 2, 3), keepdims=True)
        return ((t - m) * jax.lax.rsqrt(v + eps) * g.reshape(1, -1, 1, 1)
                + b.reshape(1, -1, 1, 1))

    def up2(t):
        return jnp.repeat(jnp.repeat(t, 2, axis=2), 2, axis=3)

    def conv3x3(t, w_hwio, b):
        hh, ww = t.shape[2], t.shape[3]
        tp = jnp.pad(t, ((0, 0), (0, 0), (1, 1), (1, 1)))
        acc = 0.0
        for ky in range(3):
            for kx in range(3):
                acc = acc + jnp.einsum("bchw,co->bohw",
                                       tp[:, :, ky:ky + hh, kx:kx + ww],
                                       w_hwio[ky, kx])
        return acc + b.reshape(1, -1, 1, 1)

    def lrelu(t):
        return jnp.where(t > 0, t, 0.2 * t)

    out = up2(bn(out, p["bn0_g"], p["bn0_b"], 1e-5))
    out = lrelu(bn(conv3x3(out, p["conv1_w"], p["conv1_b"]),
                   p["bn1_g"], p["bn1_b"], 0.8))
    out = up2(out)
    out = lrelu(bn(conv3x3(out, p["conv2_w"], p["conv2_b"]),
                   p["bn2_g"], p["bn2_b"], 0.8))
    return jnp.tanh(conv3x3(out, p["conv3_w"], p["conv3_b"]))


# ---------------- main --------------------------------------------------------
if __name__ == "__main__":
    key = jax.random.PRNGKey(0)
    k_noise, k_lab, k_code, k_params = jax.random.split(key, 4)

    noise = jax.random.normal(k_noise, (BATCH, LATENT_DIM), jnp.float32)
    label_idx = jax.random.randint(k_lab, (BATCH,), 0, N_CLASSES)
    labels = jax.nn.one_hot(label_idx, N_CLASSES, dtype=jnp.float32)
    code = jax.random.uniform(k_code, (BATCH, CODE_DIM), jnp.float32, -1.0, 1.0)

    raw = init_params(k_params)
    prep = prepare_params(raw)

    img = jax.block_until_ready(generator_forward(prep, noise, labels, code))

    assert img.shape == (BATCH, CHANNELS, IMG_SIZE, IMG_SIZE), img.shape
    assert bool(jnp.all(jnp.isfinite(img)))
    assert bool(jnp.all(jnp.abs(img) <= 1.0))        # tanh output range

    # Self-check against a pure-JAX/XLA reference of the PyTorch module.
    ref = jax.block_until_ready(reference_forward(raw, noise, labels, code))
    err = float(jnp.max(jnp.abs(img - ref)))
    assert err < 2e-3, f"kernel vs reference max |err| = {err}"

    print("KERNEL_OK")
</pallas_src>

<mosaic_0001>
module attributes {stable_mosaic.version = 11 : i64} {
  func.func @_generator_kernel(%arg0: memref<224x128xf32, #tpu.memory_space<vmem>>, %arg1: memref<64x224xf32, #tpu.memory_space<vmem>>, %arg2: memref<64x128xf32, #tpu.memory_space<vmem>>, %arg3: memref<64x1xf32, #tpu.memory_space<vmem>>, %arg4: memref<64x1xf32, #tpu.memory_space<vmem>>, %arg5: memref<9x64x64xf32, #tpu.memory_space<vmem>>, %arg6: memref<64x1xf32, #tpu.memory_space<vmem>>, %arg7: memref<64x1xf32, #tpu.memory_space<vmem>>, %arg8: memref<64x1xf32, #tpu.memory_space<vmem>>, %arg9: memref<128x512xf32, #tpu.memory_space<vmem>>, %arg10: memref<9x32x64xf32, #tpu.memory_space<vmem>>, %arg11: memref<32x1xf32, #tpu.memory_space<vmem>>, %arg12: memref<32x1xf32, #tpu.memory_space<vmem>>, %arg13: memref<32x1xf32, #tpu.memory_space<vmem>>, %arg14: memref<9x1x32xf32, #tpu.memory_space<vmem>>, %arg15: memref<1x1xf32, #tpu.memory_space<vmem>>, %arg16: memref<9x1x128xf32, #tpu.memory_space<vmem>>, %arg17: memref<9x1x512xf32, #tpu.memory_space<vmem>>, %arg18: memref<1x512xf32, #tpu.memory_space<vmem>>) attributes {dimension_semantics = [], scalar_prefetch = 0 : i64, scratch_operands = 0 : i64, tpu.core_type = #tpu.core_type<tc>} {
    %c0 = arith.constant 0 : index
    %c0_0 = arith.constant 0 : index
    %0 = vector.load %arg1[%c0, %c0_0] : memref<64x224xf32, #tpu.memory_space<vmem>>, vector<64x224xf32>
    %c0_1 = arith.constant 0 : index
    %c0_2 = arith.constant 0 : index
    %1 = vector.load %arg0[%c0_1, %c0_2] : memref<224x128xf32, #tpu.memory_space<vmem>>, vector<224x128xf32>
    %cst = arith.constant dense<0.000000e+00> : vector<64x128xf32>
    %2 = tpu.matmul %0, %1, %cst {dimension_numbers = #tpu.dot_dimension_numbers<[1], [0], [0], [1], [0, 0, 1, 1], [], []>} : vector<64x224xf32>, vector<224x128xf32>, vector<64x128xf32> -> vector<64x128xf32>
    %c0_3 = arith.constant 0 : index
    %c0_4 = arith.constant 0 : index
    %3 = vector.load %arg2[%c0_3, %c0_4] : memref<64x128xf32, #tpu.memory_space<vmem>>, vector<64x128xf32>
    %4 = arith.addf %2, %3 : vector<64x128xf32>
    %c0_5 = arith.constant 0 : index
    %c0_6 = arith.constant 0 : index
    %5 = vector.load %arg3[%c0_5, %c0_6] : memref<64x1xf32, #tpu.memory_space<vmem>>, vector<64x1xf32>
    %c0_7 = arith.constant 0 : index
    %c0_8 = arith.constant 0 : index
    %6 = vector.load %arg4[%c0_7, %c0_8] : memref<64x1xf32, #tpu.memory_space<vmem>>, vector<64x1xf32>
    %cst_9 = arith.constant dense<0.000000e+00> : vector<64xf32>
    %7 = vector.multi_reduction <add>, %4, %cst_9 [1] : vector<64x128xf32> to vector<64xf32>
    %8 = vector.shape_cast %7 : vector<64xf32> to vector<64x1xf32>
    %cst_10 = arith.constant 1.280000e+02 : f32
    %9 = vector.broadcast %cst_10 : f32 to vector<64x1xf32>
    %10 = arith.divf %8, %9 : vector<64x1xf32>
    %11 = vector.broadcast %10 : vector<64x1xf32> to vector<64x128xf32>
    %12 = arith.subf %4, %11 : vector<64x128xf32>
    %13 = arith.mulf %12, %12 : vector<64x128xf32>
    %cst_11 = arith.constant dense<0.000000e+00> : vector<64xf32>
    %14 = vector.multi_reduction <add>, %13, %cst_11 [1] : vector<64x128xf32> to vector<64xf32>
    %15 = vector.shape_cast %14 : vector<64xf32> to vector<64x1xf32>
    %cst_12 = arith.constant 1.280000e+02 : f32
    %16 = vector.broadcast %cst_12 : f32 to vector<64x1xf32>
    %17 = arith.divf %15, %16 : vector<64x1xf32>
    %18 = vector.broadcast %10 : vector<64x1xf32> to vector<64x128xf32>
    %19 = arith.subf %4, %18 : vector<64x128xf32>
    %cst_13 = arith.constant 9.99999974E-6 : f32
    %20 = vector.broadcast %cst_13 : f32 to vector<64x1xf32>
    %21 = arith.addf %17, %20 : vector<64x1xf32>
    %22 = math.rsqrt %21 : vector<64x1xf32>
    %23 = vector.broadcast %22 : vector<64x1xf32> to vector<64x128xf32>
    %24 = arith.mulf %19, %23 : vector<64x128xf32>
    %25 = vector.broadcast %5 : vector<64x1xf32> to vector<64x128xf32>
    %26 = arith.mulf %24, %25 : vector<64x128xf32>
    %27 = vector.broadcast %6 : vector<64x1xf32> to vector<64x128xf32>
    %28 = arith.addf %26, %27 : vector<64x128xf32>
    %c0_14 = arith.constant 0 : index
    %c0_15 = arith.constant 0 : index
    %29 = vector.load %arg6[%c0_14, %c0_15] : memref<64x1xf32, #tpu.memory_space<vmem>>, vector<64x1xf32>
    %c9_i32 = arith.constant 9 : i32
    %30 = tpu.dynamic_rotate %28 by %c9_i32 dim 1 : vector<64x128xf32>, i32 -> vector<64x128xf32>
    %c0_16 = arith.constant 0 : index
    %c0_17 = arith.constant 0 : index
    %c0_18 = arith.constant 0 : index
    %31 = vector.load %arg5[%c0_16, %c0_17, %c0_18] : memref<9x64x64xf32, #tpu.memory_space<vmem>>, vector<1x64x64xf32>
    %32 = vector.shape_cast %31 : vector<1x64x64xf32> to vector<64x64xf32>
    %cst_19 = arith.constant dense<0.000000e+00> : vector<64x128xf32>
    %33 = tpu.matmul %32, %30, %cst_19 {dimension_numbers = #tpu.dot_dimension_numbers<[1], [0], [0], [1], [0, 0, 1, 1], [], []>} : vector<64x64xf32>, vector<64x128xf32>, vector<64x128xf32> -> vector<64x128xf32>
    %c0_20 = arith.constant 0 : index
    %c0_21 = arith.constant 0 : index
    %c0_22 = arith.constant 0 : index
    %34 = vector.load %arg16[%c0_20, %c0_21, %c0_22] : memref<9x1x128xf32, #tpu.memory_space<vmem>>, vector<1x1x128xf32>
    %35 = vector.shape_cast %34 : vector<1x1x128xf32> to vector<1x128xf32>
    %36 = vector.broadcast %35 : vector<1x128xf32> to vector<64x128xf32>
    %37 = arith.mulf %33, %36 : vector<64x128xf32>
    %c8_i32 = arith.constant 8 : i32
    %38 = tpu.dynamic_rotate %28 by %c8_i32 dim 1 : vector<64x128xf32>, i32 -> vector<64x128xf32>
    %c1 = arith.constant 1 : index
    %c0_23 = arith.constant 0 : index
    %c0_24 = arith.constant 0 : index
    %39 = vector.load %arg5[%c1, %c0_23, %c0_24] : memref<9x64x64xf32, #tpu.memory_space<vmem>>, vector<1x64x64xf32>
    %40 = vector.shape_cast %39 : vector<1x64x64xf32> to vector<64x64xf32>
    %cst_25 = arith.constant dense<0.000000e+00> : vector<64x128xf32>
    %41 = tpu.matmul %40, %38, %cst_25 {dimension_numbers = #tpu.dot_dimension_numbers<[1], [0], [0], [1], [0, 0, 1, 1], [], []>} : vector<64x64xf32>, vector<64x128xf32>, vector<64x128xf32> -> vector<64x128xf32>
    %c1_26 = arith.constant 1 : index
    %c0_27 = arith.constant 0 : index
    %c0_28 = arith.constant 0 : index
    %42 = vector.load %arg16[%c1_26, %c0_27, %c0_28] : memref<9x1x128xf32, #tpu.memory_space<vmem>>, vector<1x1x128xf32>
    %43 = vector.shape_cast %42 : vector<1x1x128xf32> to vector<1x128xf32>
    %44 = vector.broadcast %43 : vector<1x128xf32> to vector<64x128xf32>
    %45 = arith.mulf %41, %44 : vector<64x128xf32>
    %46 = arith.addf %37, %45 : vector<64x128xf32>
    %c7_i32 = arith.constant 7 : i32
    %47 = tpu.dynamic_rotate %28 by %c7_i32 dim 1 : vector<64x128xf32>, i32 -> vector<64x128xf32>
    %c2 = arith.constant 2 : index
    %c0_29 = arith.constant 0 : index
    %c0_30 = arith.constant 0 : index
    %48 = vector.load %arg5[%c2, %c0_29, %c0_30] : memref<9x64x64xf32, #tpu.memory_space<vmem>>, vector<1x64x64xf32>
    %49 = vector.shape_cast %48 : vector<1x64x64xf32> to vector<64x64xf32>
    %cst_31 = arith.constant dense<0.000000e+00> : vector<64x128xf32>
    %50 = tpu.matmul %49, %47, %cst_31 {dimension_numbers = #tpu.dot_dimension_numbers<[1], [0], [0], [1], [0, 0, 1, 1], [], []>} : vector<64x64xf32>, vector<64x128xf32>, vector<64x128xf32> -> vector<64x128xf32>
    %c2_32 = arith.constant 2 : index
    %c0_33 = arith.constant 0 : index
    %c0_34 = arith.constant 0 : index
    %51 = vector.load %arg16[%c2_32, %c0_33, %c0_34] : memref<9x1x128xf32, #tpu.memory_space<vmem>>, vector<1x1x128xf32>
    %52 = vector.shape_cast %51 : vector<1x1x128xf32> to vector<1x128xf32>
    %53 = vector.broadcast %52 : vector<1x128xf32> to vector<64x128xf32>
    %54 = arith.mulf %50, %53 : vector<64x128xf32>
    %55 = arith.addf %46, %54 : vector<64x128xf32>
    %c1_i32 = arith.constant 1 : i32
    %56 = tpu.dynamic_rotate %28 by %c1_i32 dim 1 : vector<64x128xf32>, i32 -> vector<64x128xf32>
    %c3 = arith.constant 3 : index
    %c0_35 = arith.constant 0 : index
    %c0_36 = arith.constant 0 : index
    %57 = vector.load %arg5[%c3, %c0_35, %c0_36] : memref<9x64x64xf32, #tpu.memory_space<vmem>>, vector<1x64x64xf32>
    %58 = vector.shape_cast %57 : vector<1x64x64xf32> to vector<64x64xf32>
    %cst_37 = arith.constant dense<0.000000e+00> : vector<64x128xf32>
    %59 = tpu.matmul %58, %56, %cst_37 {dimension_numbers = #tpu.dot_dimension_numbers<[1], [0], [0], [1], [0, 0, 1, 1], [], []>} : vector<64x64xf32>, vector<64x128xf32>, vector<64x128xf32> -> vector<64x128xf32>
    %c3_38 = arith.constant 3 : index
    %c0_39 = arith.constant 0 : index
    %c0_40 = arith.constant 0 : index
    %60 = vector.load %arg16[%c3_38, %c0_39, %c0_40] : memref<9x1x128xf32, #tpu.memory_space<vmem>>, vector<1x1x128xf32>
    %61 = vector.shape_cast %60 : vector<1x1x128xf32> to vector<1x128xf32>
    %62 = vector.broadcast %61 : vector<1x128xf32> to vector<64x128xf32>
    %63 = arith.mulf %59, %62 : vector<64x128xf32>
    %64 = arith.addf %55, %63 : vector<64x128xf32>
    %c4 = arith.constant 4 : index
    %c0_41 = arith.constant 0 : index
    %c0_42 = arith.constant 0 : index
    %65 = vector.load %arg5[%c4, %c0_41, %c0_42] : memref<9x64x64xf32, #tpu.memory_space<vmem>>, vector<1x64x64xf32>
    %66 = vector.shape_cast %65 : vector<1x64x64xf32> to vector<64x64xf32>
    %cst_43 = arith.constant dense<0.000000e+00> : vector<64x128xf32>
    %67 = tpu.matmul %66, %28, %cst_43 {dimension_numbers = #tpu.dot_dimension_numbers<[1], [0], [0], [1], [0, 0, 1, 1], [], []>} : vector<64x64xf32>, vector<64x128xf32>, vector<64x128xf32> -> vector<64x128xf32>
    %68 = arith.addf %64, %67 : vector<64x128xf32>
    %c127_i32 = arith.constant 127 : i32
    %69 = tpu.dynamic_rotate %28 by %c127_i32 dim 1 : vector<64x128xf32>, i32 -> vector<64x128xf32>
    %c5 = arith.constant 5 : index
    %c0_44 = arith.constant 0 : index
    %c0_45 = arith.constant 0 : index
    %70 = vector.load %arg5[%c5, %c0_44, %c0_45] : memref<9x64x64xf32, #tpu.memory_space<vmem>>, vector<1x64x64xf32>
    %71 = vector.shape_cast %70 : vector<1x64x64xf32> to vector<64x64xf32>
    %cst_46 = arith.constant dense<0.000000e+00> : vector<64x128xf32>
    %72 = tpu.matmul %71, %69, %cst_46 {dimension_numbers = #tpu.dot_dimension_numbers<[1], [0], [0], [1], [0, 0, 1, 1], [], []>} : vector<64x64xf32>, vector<64x128xf32>, vector<64x128xf32> -> vector<64x128xf32>
    %c5_47 = arith.constant 5 : index
    %c0_48 = arith.constant 0 : index
    %c0_49 = arith.constant 0 : index
    %73 = vector.load %arg16[%c5_47, %c0_48, %c0_49] : memref<9x1x128xf32, #tpu.memory_space<vmem>>, vector<1x1x128xf32>
    %74 = vector.shape_cast %73 : vector<1x1x128xf32> to vector<1x128xf32>
    %75 = vector.broadcast %74 : vector<1x128xf32> to vector<64x128xf32>
    %76 = arith.mulf %72, %75 : vector<64x128xf32>
    %77 = arith.addf %68, %76 : vector<64x128xf32>
    %c121_i32 = arith.constant 121 : i32
    %78 = tpu.dynamic_rotate %28 by %c121_i32 dim 1 : vector<64x128xf32>, i32 -> vector<64x128xf32>
    %c6 = arith.constant 6 : index
    %c0_50 = arith.constant 0 : index
    %c0_51 = arith.constant 0 : index
    %79 = vector.load %arg5[%c6, %c0_50, %c0_51] : memref<9x64x64xf32, #tpu.memory_space<vmem>>, vector<1x64x64xf32>
    %80 = vector.shape_cast %79 : vector<1x64x64xf32> to vector<64x64xf32>
    %cst_52 = arith.constant dense<0.000000e+00> : vector<64x128xf32>
    %81 = tpu.matmul %80, %78, %cst_52 {dimension_numbers = #tpu.dot_dimension_numbers<[1], [0], [0], [1], [0, 0, 1, 1], [], []>} : vector<64x64xf32>, vector<64x128xf32>, vector<64x128xf32> -> vector<64x128xf32>
    %c6_53 = arith.constant 6 : index
    %c0_54 = arith.constant 0 : index
    %c0_55 = arith.constant 0 : index
    %82 = vector.load %arg16[%c6_53, %c0_54, %c0_55] : memref<9x1x128xf32, #tpu.memory_space<vmem>>, vector<1x1x128xf32>
    %83 = vector.shape_cast %82 : vector<1x1x128xf32> to vector<1x128xf32>
    %84 = vector.broadcast %83 : vector<1x128xf32> to vector<64x128xf32>
    %85 = arith.mulf %81, %84 : vector<64x128xf32>
    %86 = arith.addf %77, %85 : vector<64x128xf32>
    %c120_i32 = arith.constant 120 : i32
    %87 = tpu.dynamic_rotate %28 by %c120_i32 dim 1 : vector<64x128xf32>, i32 -> vector<64x128xf32>
    %c7 = arith.constant 7 : index
    %c0_56 = arith.constant 0 : index
    %c0_57 = arith.constant 0 : index
    %88 = vector.load %arg5[%c7, %c0_56, %c0_57] : memref<9x64x64xf32, #tpu.memory_space<vmem>>, vector<1x64x64xf32>
    %89 = vector.shape_cast %88 : vector<1x64x64xf32> to vector<64x64xf32>
    %cst_58 = arith.constant dense<0.000000e+00> : vector<64x128xf32>
    %90 = tpu.matmul %89, %87, %cst_58 {dimension_numbers = #tpu.dot_dimension_numbers<[1], [0], [0], [1], [0, 0, 1, 1], [], []>} : vector<64x64xf32>, vector<64x128xf32>, vector<64x128xf32> -> vector<64x128xf32>
    %c7_59 = arith.constant 7 : index
    %c0_60 = arith.constant 0 : index
    %c0_61 = arith.constant 0 : index
    %91 = vector.load %arg16[%c7_59, %c0_60, %c0_61] : memref<9x1x128xf32, #tpu.memory_space<vmem>>, vector<1x1x128xf32>
    %92 = vector.shape_cast %91 : vector<1x1x128xf32> to vector<1x128xf32>
    %93 = vector.broadcast %92 : vector<1x128xf32> to vector<64x128xf32>
    %94 = arith.mulf %90, %93 : vector<64x128xf32>
    %95 = arith.addf %86, %94 : vector<64x128xf32>
    %c119_i32 = arith.constant 119 : i32
    %96 = tpu.dynamic_rotate %28 by %c119_i32 dim 1 : vector<64x128xf32>, i32 -> vector<64x128xf32>
    %c8 = arith.constant 8 : index
    %c0_62 = arith.constant 0 : index
    %c0_63 = arith.constant 0 : index
    %97 = vector.load %arg5[%c8, %c0_62, %c0_63] : memref<9x64x64xf32, #tpu.memory_space<vmem>>, vector<1x64x64xf32>
    %98 = vector.shape_cast %97 : vector<1x64x64xf32> to vector<64x64xf32>
    %cst_64 = arith.constant dense<0.000000e+00> : vector<64x128xf32>
    %99 = tpu.matmul %98, %96, %cst_64 {dimension_numbers = #tpu.dot_dimension_numbers<[1], [0], [0], [1], [0, 0, 1, 1], [], []>} : vector<64x64xf32>, vector<64x128xf32>, vector<64x128xf32> -> vector<64x128xf32>
    %c8_65 = arith.constant 8 : index
    %c0_66 = arith.constant 0 : index
    %c0_67 = arith.constant 0 : index
    %100 = vector.load %arg16[%c8_65, %c0_66, %c0_67] : memref<9x1x128xf32, #tpu.memory_space<vmem>>, vector<1x1x128xf32>
    %101 = vector.shape_cast %100 : vector<1x1x128xf32> to vector<1x128xf32>
    %102 = vector.broadcast %101 : vector<1x128xf32> to vector<64x128xf32>
    %103 = arith.mulf %99, %102 : vector<64x128xf32>
    %104 = arith.addf %95, %103 : vector<64x128xf32>
    %105 = vector.broadcast %29 : vector<64x1xf32> to vector<64x128xf32>
    %106 = arith.addf %104, %105 : vector<64x128xf32>
    %c0_68 = arith.constant 0 : index
    %c0_69 = arith.constant 0 : index
    %107 = vector.load %arg7[%c0_68, %c0_69] : memref<64x1xf32, #tpu.memory_space<vmem>>, vector<64x1xf32>
    %c0_70 = arith.constant 0 : index
    %c0_71 = arith.constant 0 : index
    %108 = vector.load %arg8[%c0_70, %c0_71] : memref<64x1xf32, #tpu.memory_space<vmem>>, vector<64x1xf32>
    %cst_72 = arith.constant dense<0.000000e+00> : vector<64xf32>
    %109 = vector.multi_reduction <add>, %106, %cst_72 [1] : vector<64x128xf32> to vector<64xf32>
    %110 = vector.shape_cast %109 : vector<64xf32> to vector<64x1xf32>
    %cst_73 = arith.constant 1.280000e+02 : f32
    %111 = vector.broadcast %cst_73 : f32 to vector<64x1xf32>
    %112 = arith.divf %110, %111 : vector<64x1xf32>
    %113 = vector.broadcast %112 : vector<64x1xf32> to vector<64x128xf32>
    %114 = arith.subf %106, %113 : vector<64x128xf32>
    %115 = arith.mulf %114, %114 : vector<64x128xf32>
    %cst_74 = arith.constant dense<0.000000e+00> : vector<64xf32>
    %116 = vector.multi_reduction <add>, %115, %cst_74 [1] : vector<64x128xf32> to vector<64xf32>
    %117 = vector.shape_cast %116 : vector<64xf32> to vector<64x1xf32>
    %cst_75 = arith.constant 1.280000e+02 : f32
    %118 = vector.broadcast %cst_75 : f32 to vector<64x1xf32>
    %119 = arith.divf %117, %118 : vector<64x1xf32>
    %120 = vector.broadcast %112 : vector<64x1xf32> to vector<64x128xf32>
    %121 = arith.subf %106, %120 : vector<64x128xf32>
    %cst_76 = arith.constant 8.000000e-01 : f32
    %122 = vector.broadcast %cst_76 : f32 to vector<64x1xf32>
    %123 = arith.addf %119, %122 : vector<64x1xf32>
    %124 = math.rsqrt %123 : vector<64x1xf32>
    %125 = vector.broadcast %124 : vector<64x1xf32> to vector<64x128xf32>
    %126 = arith.mulf %121, %125 : vector<64x128xf32>
    %127 = vector.broadcast %107 : vector<64x1xf32> to vector<64x128xf32>
    %128 = arith.mulf %126, %127 : vector<64x128xf32>
    %129 = vector.broadcast %108 : vector<64x1xf32> to vector<64x128xf32>
    %130 = arith.addf %128, %129 : vector<64x128xf32>
    %cst_77 = arith.constant 0.000000e+00 : f32
    %131 = vector.broadcast %cst_77 : f32 to vector<64x128xf32>
    %132 = arith.cmpf ogt, %130, %131 : vector<64x128xf32>
    %cst_78 = arith.constant 2.000000e-01 : f32
    %133 = vector.broadcast %cst_78 : f32 to vector<64x128xf32>
    %134 = arith.mulf %133, %130 : vector<64x128xf32>
    %135 = arith.select %132, %130, %134 : vector<64x128xi1>, vector<64x128xf32>
    %c0_79 = arith.constant 0 : index
    %c0_80 = arith.constant 0 : index
    %136 = vector.load %arg9[%c0_79, %c0_80] : memref<128x512xf32, #tpu.memory_space<vmem>>, vector<128x512xf32>
    %cst_81 = arith.constant dense<0.000000e+00> : vector<64x512xf32>
    %137 = tpu.matmul %135, %136, %cst_81 {dimension_numbers = #tpu.dot_dimension_numbers<[1], [0], [0], [1], [0, 0, 1, 1], [], []>} : vector<64x128xf32>, vector<128x512xf32>, vector<64x512xf32> -> vector<64x512xf32>
    %c0_82 = arith.constant 0 : index
    %c0_83 = arith.constant 0 : index
    %138 = vector.load %arg11[%c0_82, %c0_83] : memref<32x1xf32, #tpu.memory_space<vmem>>, vector<32x1xf32>
    %c17_i32 = arith.constant 17 : i32
    %139 = tpu.dynamic_rotate %137 by %c17_i32 dim 1 : vector<64x512xf32>, i32 -> vector<64x512xf32>
    %c0_84 = arith.constant 0 : index
    %c0_85 = arith.constant 0 : index
    %c0_86 = arith.constant 0 : index
    %140 = vector.load %arg10[%c0_84, %c0_85, %c0_86] : memref<9x32x64xf32, #tpu.memory_space<vmem>>, vector<1x32x64xf32>
    %141 = vector.shape_cast %140 : vector<1x32x64xf32> to vector<32x64xf32>
    %cst_87 = arith.constant dense<0.000000e+00> : vector<32x512xf32>
    %142 = tpu.matmul %141, %139, %cst_87 {dimension_numbers = #tpu.dot_dimension_numbers<[1], [0], [0], [1], [0, 0, 1, 1], [], []>} : vector<32x64xf32>, vector<64x512xf32>, vector<32x512xf32> -> vector<32x512xf32>
    %c0_88 = arith.constant 0 : index
    %c0_89 = arith.constant 0 : index
    %c0_90 = arith.constant 0 : index
    %143 = vector.load %arg17[%c0_88, %c0_89, %c0_90] : memref<9x1x512xf32, #tpu.memory_space<vmem>>, vector<1x1x512xf32>
    %144 = vector.shape_cast %143 : vector<1x1x512xf32> to vector<1x512xf32>
    %145 = vector.broadcast %144 : vector<1x512xf32> to vector<32x512xf32>
    %146 = arith.mulf %142, %145 : vector<32x512xf32>
    %c16_i32 = arith.constant 16 : i32
    %147 = tpu.dynamic_rotate %137 by %c16_i32 dim 1 : vector<64x512xf32>, i32 -> vector<64x512xf32>
    %c1_91 = arith.constant 1 : index
    %c0_92 = arith.constant 0 : index
    %c0_93 = arith.constant 0 : index
    %148 = vector.load %arg10[%c1_91, %c0_92, %c0_93] : memref<9x32x64xf32, #tpu.memory_space<vmem>>, vector<1x32x64xf32>
    %149 = vector.shape_cast %148 : vector<1x32x64xf32> to vector<32x64xf32>
    %cst_94 = arith.constant dense<0.000000e+00> : vector<32x512xf32>
    %150 = tpu.matmul %149, %147, %cst_94 {dimension_numbers = #tpu.dot_dimension_numbers<[1], [0], [0], [1], [0, 0, 1, 1], [], []>} : vector<32x64xf32>, vector<64x512xf32>, vector<32x512xf32> -> vector<32x512xf32>
    %c1_95 = arith.constant 1 : index
    %c0_96 = arith.constant 0 : index
    %c0_97 = arith.constant 0 : index
    %151 = vector.load %arg17[%c1_95, %c0_96, %c0_97] : memref<9x1x512xf32, #tpu.memory_space<vmem>>, vector<1x1x512xf32>
    %152 = vector.shape_cast %151 : vector<1x1x512xf32> to vector<1x512xf32>
    %153 = vector.broadcast %152 : vector<1x512xf32> to vector<32x512xf32>
    %154 = arith.mulf %150, %153 : vector<32x512xf32>
    %155 = arith.addf %146, %154 : vector<32x512xf32>
    %c15_i32 = arith.constant 15 : i32
    %156 = tpu.dynamic_rotate %137 by %c15_i32 dim 1 : vector<64x512xf32>, i32 -> vector<64x512xf32>
    %c2_98 = arith.constant 2 : index
    %c0_99 = arith.constant 0 : index
    %c0_100 = arith.constant 0 : index
    %157 = vector.load %arg10[%c2_98, %c0_99, %c0_100] : memref<9x32x64xf32, #tpu.memory_space<vmem>>, vector<1x32x64xf32>
    %158 = vector.shape_cast %157 : vector<1x32x64xf32> to vector<32x64xf32>
    %cst_101 = arith.constant dense<0.000000e+00> : vector<32x512xf32>
    %159 = tpu.matmul %158, %156, %cst_101 {dimension_numbers = #tpu.dot_dimension_numbers<[1], [0], [0], [1], [0, 0, 1, 1], [], []>} : vector<32x64xf32>, vector<64x512xf32>, vector<32x512xf32> -> vector<32x512xf32>
    %c2_102 = arith.constant 2 : index
    %c0_103 = arith.constant 0 : index
    %c0_104 = arith.constant 0 : index
    %160 = vector.load %arg17[%c2_102, %c0_103, %c0_104] : memref<9x1x512xf32, #tpu.memory_space<vmem>>, vector<1x1x512xf32>
    %161 = vector.shape_cast %160 : vector<1x1x512xf32> to vector<1x512xf32>
    %162 = vector.broadcast %161 : vector<1x512xf32> to vector<32x512xf32>
    %163 = arith.mulf %159, %162 : vector<32x512xf32>
    %164 = arith.addf %155, %163 : vector<32x512xf32>
    %c1_i32_105 = arith.constant 1 : i32
    %165 = tpu.dynamic_rotate %137 by %c1_i32_105 dim 1 : vector<64x512xf32>, i32 -> vector<64x512xf32>
    %c3_106 = arith.constant 3 : index
    %c0_107 = arith.constant 0 : index
    %c0_108 = arith.constant 0 : index
    %166 = vector.load %arg10[%c3_106, %c0_107, %c0_108] : memref<9x32x64xf32, #tpu.memory_space<vmem>>, vector<1x32x64xf32>
    %167 = vector.shape_cast %166 : vector<1x32x64xf32> to vector<32x64xf32>
    %cst_109 = arith.constant dense<0.000000e+00> : vector<32x512xf32>
    %168 = tpu.matmul %167, %165, %cst_109 {dimension_numbers = #tpu.dot_dimension_numbers<[1], [0], [0], [1], [0, 0, 1, 1], [], []>} : vector<32x64xf32>, vector<64x512xf32>, vector<32x512xf32> -> vector<32x512xf32>
    %c3_110 = arith.constant 3 : index
    %c0_111 = arith.constant 0 : index
    %c0_112 = arith.constant 0 : index
    %169 = vector.load %arg17[%c3_110, %c0_111, %c0_112] : memref<9x1x512xf32, #tpu.memory_space<vmem>>, vector<1x1x512xf32>
    %170 = vector.shape_cast %169 : vector<1x1x512xf32> to vector<1x512xf32>
    %171 = vector.broadcast %170 : vector<1x512xf32> to vector<32x512xf32>
    %172 = arith.mulf %168, %171 : vector<32x512xf32>
    %173 = arith.addf %164, %172 : vector<32x512xf32>
    %c4_113 = arith.constant 4 : index
    %c0_114 = arith.constant 0 : index
    %c0_115 = arith.constant 0 : index
    %174 = vector.load %arg10[%c4_113, %c0_114, %c0_115] : memref<9x32x64xf32, #tpu.memory_space<vmem>>, vector<1x32x64xf32>
    %175 = vector.shape_cast %174 : vector<1x32x64xf32> to vector<32x64xf32>
    %cst_116 = arith.constant dense<0.000000e+00> : vector<32x512xf32>
    %176 = tpu.matmul %175, %137, %cst_116 {dimension_numbers = #tpu.dot_dimension_numbers<[1], [0], [0], [1], [0, 0, 1, 1], [], []>} : vector<32x64xf32>, vector<64x512xf32>, vector<32x512xf32> -> vector<32x512xf32>
    %177 = arith.addf %173, %176 : vector<32x512xf32>
    %c511_i32 = arith.constant 511 : i32
    %178 = tpu.dynamic_rotate %137 by %c511_i32 dim 1 : vector<64x512xf32>, i32 -> vector<64x512xf32>
    %c5_117 = arith.constant 5 : index
    %c0_118 = arith.constant 0 : index
    %c0_119 = arith.constant 0 : index
    %179 = vector.load %arg10[%c5_117, %c0_118, %c0_119] : memref<9x32x64xf32, #tpu.memory_space<vmem>>, vector<1x32x64xf32>
    %180 = vector.shape_cast %179 : vector<1x32x64xf32> to vector<32x64xf32>
    %cst_120 = arith.constant dense<0.000000e+00> : vector<32x512xf32>
    %181 = tpu.matmul %180, %178, %cst_120 {dimension_numbers = #tpu.dot_dimension_numbers<[1], [0], [0], [1], [0, 0, 1, 1], [], []>} : vector<32x64xf32>, vector<64x512xf32>, vector<32x512xf32> -> vector<32x512xf32>
    %c5_121 = arith.constant 5 : index
    %c0_122 = arith.constant 0 : index
    %c0_123 = arith.constant 0 : index
    %182 = vector.load %arg17[%c5_121, %c0_122, %c0_123] : memref<9x1x512xf32, #tpu.memory_space<vmem>>, vector<1x1x512xf32>
    %183 = vector.shape_cast %182 : vector<1x1x512xf32> to vector<1x512xf32>
    %184 = vector.broadcast %183 : vector<1x512xf32> to vector<32x512xf32>
    %185 = arith.mulf %181, %184 : vector<32x512xf32>
    %186 = arith.addf %177, %185 : vector<32x512xf32>
    %c497_i32 = arith.constant 497 : i32
    %187 = tpu.dynamic_rotate %137 by %c497_i32 dim 1 : vector<64x512xf32>, i32 -> vector<64x512xf32>
    %c6_124 = arith.constant 6 : index
    %c0_125 = arith.constant 0 : index
    %c0_126 = arith.constant 0 : index
    %188 = vector.load %arg10[%c6_124, %c0_125, %c0_126] : memref<9x32x64xf32, #tpu.memory_space<vmem>>, vector<1x32x64xf32>
    %189 = vector.shape_cast %188 : vector<1x32x64xf32> to vector<32x64xf32>
    %cst_127 = arith.constant dense<0.000000e+00> : vector<32x512xf32>
    %190 = tpu.matmul %189, %187, %cst_127 {dimension_numbers = #tpu.dot_dimension_numbers<[1], [0], [0], [1], [0, 0, 1, 1], [], []>} : vector<32x64xf32>, vector<64x512xf32>, vector<32x512xf32> -> vector<32x512xf32>
    %c6_128 = arith.constant 6 : index
    %c0_129 = arith.constant 0 : index
    %c0_130 = arith.constant 0 : index
    %191 = vector.load %arg17[%c6_128, %c0_129, %c0_130] : memref<9x1x512xf32, #tpu.memory_space<vmem>>, vector<1x1x512xf32>
    %192 = vector.shape_cast %191 : vector<1x1x512xf32> to vector<1x512xf32>
    %193 = vector.broadcast %192 : vector<1x512xf32> to vector<32x512xf32>
    %194 = arith.mulf %190, %193 : vector<32x512xf32>
    %195 = arith.addf %186, %194 : vector<32x512xf32>
    %c496_i32 = arith.constant 496 : i32
    %196 = tpu.dynamic_rotate %137 by %c496_i32 dim 1 : vector<64x512xf32>, i32 -> vector<64x512xf32>
    %c7_131 = arith.constant 7 : index
    %c0_132 = arith.constant 0 : index
    %c0_133 = arith.constant 0 : index
    %197 = vector.load %arg10[%c7_131, %c0_132, %c0_133] : memref<9x32x64xf32, #tpu.memory_space<vmem>>, vector<1x32x64xf32>
    %198 = vector.shape_cast %197 : vector<1x32x64xf32> to vector<32x64xf32>
    %cst_134 = arith.constant dense<0.000000e+00> : vector<32x512xf32>
    %199 = tpu.matmul %198, %196, %cst_134 {dimension_numbers = #tpu.dot_dimension_numbers<[1], [0], [0], [1], [0, 0, 1, 1], [], []>} : vector<32x64xf32>, vector<64x512xf32>, vector<32x512xf32> -> vector<32x512xf32>
    %c7_135 = arith.constant 7 : index
    %c0_136 = arith.constant 0 : index
    %c0_137 = arith.constant 0 : index
    %200 = vector.load %arg17[%c7_135, %c0_136, %c0_137] : memref<9x1x512xf32, #tpu.memory_space<vmem>>, vector<1x1x512xf32>
    %201 = vector.shape_cast %200 : vector<1x1x512xf32> to vector<1x512xf32>
    %202 = vector.broadcast %201 : vector<1x512xf32> to vector<32x512xf32>
    %203 = arith.mulf %199, %202 : vector<32x512xf32>
    %204 = arith.addf %195, %203 : vector<32x512xf32>
    %c495_i32 = arith.constant 495 : i32
    %205 = tpu.dynamic_rotate %137 by %c495_i32 dim 1 : vector<64x512xf32>, i32 -> vector<64x512xf32>
    %c8_138 = arith.constant 8 : index
    %c0_139 = arith.constant 0 : index
    %c0_140 = arith.constant 0 : index
    %206 = vector.load %arg10[%c8_138, %c0_139, %c0_140] : memref<9x32x64xf32, #tpu.memory_space<vmem>>, vector<1x32x64xf32>
    %207 = vector.shape_cast %206 : vector<1x32x64xf32> to vector<32x64xf32>
    %cst_141 = arith.constant dense<0.000000e+00> : vector<32x512xf32>
    %208 = tpu.matmul %207, %205, %cst_141 {dimension_numbers = #tpu.dot_dimension_numbers<[1], [0], [0], [1], [0, 0, 1, 1], [], []>} : vector<32x64xf32>, vector<64x512xf32>, vector<32x512xf32> -> vector<32x512xf32>
    %c8_142 = arith.constant 8 : index
    %c0_143 = arith.constant 0 : index
    %c0_144 = arith.constant 0 : index
    %209 = vector.load %arg17[%c8_142, %c0_143, %c0_144] : memref<9x1x512xf32, #tpu.memory_space<vmem>>, vector<1x1x512xf32>
    %210 = vector.shape_cast %209 : vector<1x1x512xf32> to vector<1x512xf32>
    %211 = vector.broadcast %210 : vector<1x512xf32> to vector<32x512xf32>
    %212 = arith.mulf %208, %211 : vector<32x512xf32>
    %213 = arith.addf %204, %212 : vector<32x512xf32>
    %214 = vector.broadcast %138 : vector<32x1xf32> to vector<32x512xf32>
    %215 = arith.addf %213, %214 : vector<32x512xf32>
    %c0_145 = arith.constant 0 : index
    %c0_146 = arith.constant 0 : index
    %216 = vector.load %arg12[%c0_145, %c0_146] : memref<32x1xf32, #tpu.memory_space<vmem>>, vector<32x1xf32>
    %c0_147 = arith.constant 0 : index
    %c0_148 = arith.constant 0 : index
    %217 = vector.load %arg13[%c0_147, %c0_148] : memref<32x1xf32, #tpu.memory_space<vmem>>, vector<32x1xf32>
    %cst_149 = arith.constant dense<0.000000e+00> : vector<32xf32>
    %218 = vector.multi_reduction <add>, %215, %cst_149 [1] : vector<32x512xf32> to vector<32xf32>
    %219 = vector.shape_cast %218 : vector<32xf32> to vector<32x1xf32>
    %cst_150 = arith.constant 5.120000e+02 : f32
    %220 = vector.broadcast %cst_150 : f32 to vector<32x1xf32>
    %221 = arith.divf %219, %220 : vector<32x1xf32>
    %222 = vector.broadcast %221 : vector<32x1xf32> to vector<32x512xf32>
    %223 = arith.subf %215, %222 : vector<32x512xf32>
    %224 = arith.mulf %223, %223 : vector<32x512xf32>
    %cst_151 = arith.constant dense<0.000000e+00> : vector<32xf32>
    %225 = vector.multi_reduction <add>, %224, %cst_151 [1] : vector<32x512xf32> to vector<32xf32>
    %226 = vector.shape_cast %225 : vector<32xf32> to vector<32x1xf32>
    %cst_152 = arith.constant 5.120000e+02 : f32
    %227 = vector.broadcast %cst_152 : f32 to vector<32x1xf32>
    %228 = arith.divf %226, %227 : vector<32x1xf32>
    %229 = vector.broadcast %221 : vector<32x1xf32> to vector<32x512xf32>
    %230 = arith.subf %215, %229 : vector<32x512xf32>
    %cst_153 = arith.constant 8.000000e-01 : f32
    %231 = vector.broadcast %cst_153 : f32 to vector<32x1xf32>
    %232 = arith.addf %228, %231 : vector<32x1xf32>
    %233 = math.rsqrt %232 : vector<32x1xf32>
    %234 = vector.broadcast %233 : vector<32x1xf32> to vector<32x512xf32>
    %235 = arith.mulf %230, %234 : vector<32x512xf32>
    %236 = vector.broadcast %216 : vector<32x1xf32> to vector<32x512xf32>
    %237 = arith.mulf %235, %236 : vector<32x512xf32>
    %238 = vector.broadcast %217 : vector<32x1xf32> to vector<32x512xf32>
    %239 = arith.addf %237, %238 : vector<32x512xf32>
    %cst_154 = arith.constant 0.000000e+00 : f32
    %240 = vector.broadcast %cst_154 : f32 to vector<32x512xf32>
    %241 = arith.cmpf ogt, %239, %240 : vector<32x512xf32>
    %cst_155 = arith.constant 2.000000e-01 : f32
    %242 = vector.broadcast %cst_155 : f32 to vector<32x512xf32>
    %243 = arith.mulf %242, %239 : vector<32x512xf32>
    %244 = arith.select %241, %239, %243 : vector<32x512xi1>, vector<32x512xf32>
    %c0_156 = arith.constant 0 : index
    %c0_157 = arith.constant 0 : index
    %245 = vector.load %arg15[%c0_156, %c0_157] : memref<1x1xf32, #tpu.memory_space<vmem>>, vector<1x1xf32>
    %c17_i32_158 = arith.constant 17 : i32
    %246 = tpu.dynamic_rotate %244 by %c17_i32_158 dim 1 : vector<32x512xf32>, i32 -> vector<32x512xf32>
    %c0_159 = arith.constant 0 : index
    %c0_160 = arith.constant 0 : index
    %c0_161 = arith.constant 0 : index
    %247 = vector.load %arg14[%c0_159, %c0_160, %c0_161] : memref<9x1x32xf32, #tpu.memory_space<vmem>>, vector<1x1x32xf32>
    %248 = vector.shape_cast %247 : vector<1x1x32xf32> to vector<1x32xf32>
    %cst_162 = arith.constant dense<0.000000e+00> : vector<1x512xf32>
    %249 = tpu.matmul %248, %246, %cst_162 {dimension_numbers = #tpu.dot_dimension_numbers<[1], [0], [0], [1], [0, 0, 1, 1], [], []>} : vector<1x32xf32>, vector<32x512xf32>, vector<1x512xf32> -> vector<1x512xf32>
    %c0_163 = arith.constant 0 : index
    %c0_164 = arith.constant 0 : index
    %c0_165 = arith.constant 0 : index
    %250 = vector.load %arg17[%c0_163, %c0_164, %c0_165] : memref<9x1x512xf32, #tpu.memory_space<vmem>>, vector<1x1x512xf32>
    %251 = vector.shape_cast %250 : vector<1x1x512xf32> to vector<1x512xf32>
    %252 = arith.mulf %249, %251 : vector<1x512xf32>
    %c16_i32_166 = arith.constant 16 : i32
    %253 = tpu.dynamic_rotate %244 by %c16_i32_166 dim 1 : vector<32x512xf32>, i32 -> vector<32x512xf32>
    %c1_167 = arith.constant 1 : index
    %c0_168 = arith.constant 0 : index
    %c0_169 = arith.constant 0 : index
    %254 = vector.load %arg14[%c1_167, %c0_168, %c0_169] : memref<9x1x32xf32, #tpu.memory_space<vmem>>, vector<1x1x32xf32>
    %255 = vector.shape_cast %254 : vector<1x1x32xf32> to vector<1x32xf32>
    %cst_170 = arith.constant dense<0.000000e+00> : vector<1x512xf32>
    %256 = tpu.matmul %255, %253, %cst_170 {dimension_numbers = #tpu.dot_dimension_numbers<[1], [0], [0], [1], [0, 0, 1, 1], [], []>} : vector<1x32xf32>, vector<32x512xf32>, vector<1x512xf32> -> vector<1x512xf32>
    %c1_171 = arith.constant 1 : index
    %c0_172 = arith.constant 0 : index
    %c0_173 = arith.constant 0 : index
    %257 = vector.load %arg17[%c1_171, %c0_172, %c0_173] : memref<9x1x512xf32, #tpu.memory_space<vmem>>, vector<1x1x512xf32>
    %258 = vector.shape_cast %257 : vector<1x1x512xf32> to vector<1x512xf32>
    %259 = arith.mulf %256, %258 : vector<1x512xf32>
    %260 = arith.addf %252, %259 : vector<1x512xf32>
    %c15_i32_174 = arith.constant 15 : i32
    %261 = tpu.dynamic_rotate %244 by %c15_i32_174 dim 1 : vector<32x512xf32>, i32 -> vector<32x512xf32>
    %c2_175 = arith.constant 2 : index
    %c0_176 = arith.constant 0 : index
    %c0_177 = arith.constant 0 : index
    %262 = vector.load %arg14[%c2_175, %c0_176, %c0_177] : memref<9x1x32xf32, #tpu.memory_space<vmem>>, vector<1x1x32xf32>
    %263 = vector.shape_cast %262 : vector<1x1x32xf32> to vector<1x32xf32>
    %cst_178 = arith.constant dense<0.000000e+00> : vector<1x512xf32>
    %264 = tpu.matmul %263, %261, %cst_178 {dimension_numbers = #tpu.dot_dimension_numbers<[1], [0], [0], [1], [0, 0, 1, 1], [], []>} : vector<1x32xf32>, vector<32x512xf32>, vector<1x512xf32> -> vector<1x512xf32>
    %c2_179 = arith.constant 2 : index
    %c0_180 = arith.constant 0 : index
    %c0_181 = arith.constant 0 : index
    %265 = vector.load %arg17[%c2_179, %c0_180, %c0_181] : memref<9x1x512xf32, #tpu.memory_space<vmem>>, vector<1x1x512xf32>
    %266 = vector.shape_cast %265 : vector<1x1x512xf32> to vector<1x512xf32>
    %267 = arith.mulf %264, %266 : vector<1x512xf32>
    %268 = arith.addf %260, %267 : vector<1x512xf32>
    %c1_i32_182 = arith.constant 1 : i32
    %269 = tpu.dynamic_rotate %244 by %c1_i32_182 dim 1 : vector<32x512xf32>, i32 -> vector<32x512xf32>
    %c3_183 = arith.constant 3 : index
    %c0_184 = arith.constant 0 : index
    %c0_185 = arith.constant 0 : index
    %270 = vector.load %arg14[%c3_183, %c0_184, %c0_185] : memref<9x1x32xf32, #tpu.memory_space<vmem>>, vector<1x1x32xf32>
    %271 = vector.shape_cast %270 : vector<1x1x32xf32> to vector<1x32xf32>
    %cst_186 = arith.constant dense<0.000000e+00> : vector<1x512xf32>
    %272 = tpu.matmul %271, %269, %cst_186 {dimension_numbers = #tpu.dot_dimension_numbers<[1], [0], [0], [1], [0, 0, 1, 1], [], []>} : vector<1x32xf32>, vector<32x512xf32>, vector<1x512xf32> -> vector<1x512xf32>
    %c3_187 = arith.constant 3 : index
    %c0_188 = arith.constant 0 : index
    %c0_189 = arith.constant 0 : index
    %273 = vector.load %arg17[%c3_187, %c0_188, %c0_189] : memref<9x1x512xf32, #tpu.memory_space<vmem>>, vector<1x1x512xf32>
    %274 = vector.shape_cast %273 : vector<1x1x512xf32> to vector<1x512xf32>
    %275 = arith.mulf %272, %274 : vector<1x512xf32>
    %276 = arith.addf %268, %275 : vector<1x512xf32>
    %c4_190 = arith.constant 4 : index
    %c0_191 = arith.constant 0 : index
    %c0_192 = arith.constant 0 : index
    %277 = vector.load %arg14[%c4_190, %c0_191, %c0_192] : memref<9x1x32xf32, #tpu.memory_space<vmem>>, vector<1x1x32xf32>
    %278 = vector.shape_cast %277 : vector<1x1x32xf32> to vector<1x32xf32>
    %cst_193 = arith.constant dense<0.000000e+00> : vector<1x512xf32>
    %279 = tpu.matmul %278, %244, %cst_193 {dimension_numbers = #tpu.dot_dimension_numbers<[1], [0], [0], [1], [0, 0, 1, 1], [], []>} : vector<1x32xf32>, vector<32x512xf32>, vector<1x512xf32> -> vector<1x512xf32>
    %280 = arith.addf %276, %279 : vector<1x512xf32>
    %c511_i32_194 = arith.constant 511 : i32
    %281 = tpu.dynamic_rotate %244 by %c511_i32_194 dim 1 : vector<32x512xf32>, i32 -> vector<32x512xf32>
    %c5_195 = arith.constant 5 : index
    %c0_196 = arith.constant 0 : index
    %c0_197 = arith.constant 0 : index
    %282 = vector.load %arg14[%c5_195, %c0_196, %c0_197] : memref<9x1x32xf32, #tpu.memory_space<vmem>>, vector<1x1x32xf32>
    %283 = vector.shape_cast %282 : vector<1x1x32xf32> to vector<1x32xf32>
    %cst_198 = arith.constant dense<0.000000e+00> : vector<1x512xf32>
    %284 = tpu.matmul %283, %281, %cst_198 {dimension_numbers = #tpu.dot_dimension_numbers<[1], [0], [0], [1], [0, 0, 1, 1], [], []>} : vector<1x32xf32>, vector<32x512xf32>, vector<1x512xf32> -> vector<1x512xf32>
    %c5_199 = arith.constant 5 : index
    %c0_200 = arith.constant 0 : index
    %c0_201 = arith.constant 0 : index
    %285 = vector.load %arg17[%c5_199, %c0_200, %c0_201] : memref<9x1x512xf32, #tpu.memory_space<vmem>>, vector<1x1x512xf32>
    %286 = vector.shape_cast %285 : vector<1x1x512xf32> to vector<1x512xf32>
    %287 = arith.mulf %284, %286 : vector<1x512xf32>
    %288 = arith.addf %280, %287 : vector<1x512xf32>
    %c497_i32_202 = arith.constant 497 : i32
    %289 = tpu.dynamic_rotate %244 by %c497_i32_202 dim 1 : vector<32x512xf32>, i32 -> vector<32x512xf32>
    %c6_203 = arith.constant 6 : index
    %c0_204 = arith.constant 0 : index
    %c0_205 = arith.constant 0 : index
    %290 = vector.load %arg14[%c6_203, %c0_204, %c0_205] : memref<9x1x32xf32, #tpu.memory_space<vmem>>, vector<1x1x32xf32>
    %291 = vector.shape_cast %290 : vector<1x1x32xf32> to vector<1x32xf32>
    %cst_206 = arith.constant dense<0.000000e+00> : vector<1x512xf32>
    %292 = tpu.matmul %291, %289, %cst_206 {dimension_numbers = #tpu.dot_dimension_numbers<[1], [0], [0], [1], [0, 0, 1, 1], [], []>} : vector<1x32xf32>, vector<32x512xf32>, vector<1x512xf32> -> vector<1x512xf32>
    %c6_207 = arith.constant 6 : index
    %c0_208 = arith.constant 0 : index
    %c0_209 = arith.constant 0 : index
    %293 = vector.load %arg17[%c6_207, %c0_208, %c0_209] : memref<9x1x512xf32, #tpu.memory_space<vmem>>, vector<1x1x512xf32>
    %294 = vector.shape_cast %293 : vector<1x1x512xf32> to vector<1x512xf32>
    %295 = arith.mulf %292, %294 : vector<1x512xf32>
    %296 = arith.addf %288, %295 : vector<1x512xf32>
    %c496_i32_210 = arith.constant 496 : i32
    %297 = tpu.dynamic_rotate %244 by %c496_i32_210 dim 1 : vector<32x512xf32>, i32 -> vector<32x512xf32>
    %c7_211 = arith.constant 7 : index
    %c0_212 = arith.constant 0 : index
    %c0_213 = arith.constant 0 : index
    %298 = vector.load %arg14[%c7_211, %c0_212, %c0_213] : memref<9x1x32xf32, #tpu.memory_space<vmem>>, vector<1x1x32xf32>
    %299 = vector.shape_cast %298 : vector<1x1x32xf32> to vector<1x32xf32>
    %cst_214 = arith.constant dense<0.000000e+00> : vector<1x512xf32>
    %300 = tpu.matmul %299, %297, %cst_214 {dimension_numbers = #tpu.dot_dimension_numbers<[1], [0], [0], [1], [0, 0, 1, 1], [], []>} : vector<1x32xf32>, vector<32x512xf32>, vector<1x512xf32> -> vector<1x512xf32>
    %c7_215 = arith.constant 7 : index
    %c0_216 = arith.constant 0 : index
    %c0_217 = arith.constant 0 : index
    %301 = vector.load %arg17[%c7_215, %c0_216, %c0_217] : memref<9x1x512xf32, #tpu.memory_space<vmem>>, vector<1x1x512xf32>
    %302 = vector.shape_cast %301 : vector<1x1x512xf32> to vector<1x512xf32>
    %303 = arith.mulf %300, %302 : vector<1x512xf32>
    %304 = arith.addf %296, %303 : vector<1x512xf32>
    %c495_i32_218 = arith.constant 495 : i32
    %305 = tpu.dynamic_rotate %244 by %c495_i32_218 dim 1 : vector<32x512xf32>, i32 -> vector<32x512xf32>
    %c8_219 = arith.constant 8 : index
    %c0_220 = arith.constant 0 : index
    %c0_221 = arith.constant 0 : index
    %306 = vector.load %arg14[%c8_219, %c0_220, %c0_221] : memref<9x1x32xf32, #tpu.memory_space<vmem>>, vector<1x1x32xf32>
    %307 = vector.shape_cast %306 : vector<1x1x32xf32> to vector<1x32xf32>
    %cst_222 = arith.constant dense<0.000000e+00> : vector<1x512xf32>
    %308 = tpu.matmul %307, %305, %cst_222 {dimension_numbers = #tpu.dot_dimension_numbers<[1], [0], [0], [1], [0, 0, 1, 1], [], []>} : vector<1x32xf32>, vector<32x512xf32>, vector<1x512xf32> -> vector<1x512xf32>
    %c8_223 = arith.constant 8 : index
    %c0_224 = arith.constant 0 : index
    %c0_225 = arith.constant 0 : index
    %309 = vector.load %arg17[%c8_223, %c0_224, %c0_225] : memref<9x1x512xf32, #tpu.memory_space<vmem>>, vector<1x1x512xf32>
    %310 = vector.shape_cast %309 : vector<1x1x512xf32> to vector<1x512xf32>
    %311 = arith.mulf %308, %310 : vector<1x512xf32>
    %312 = arith.addf %304, %311 : vector<1x512xf32>
    %313 = vector.broadcast %245 : vector<1x1xf32> to vector<1x512xf32>
    %314 = arith.addf %312, %313 : vector<1x512xf32>
    %315 = math.tanh %314 : vector<1x512xf32>
    %c0_226 = arith.constant 0 : index
    %c0_227 = arith.constant 0 : index
    %316 = vector.load %arg18[%c0_226, %c0_227] : memref<1x512xf32, #tpu.memory_space<vmem>>, vector<1x512xf32>
    tpu.vector_store %arg18[%c0_226, %c0_227], %315 {strides = array<i32>} : memref<1x512xf32, #tpu.memory_space<vmem>>, vector<1x512xf32>,
    return
  }
}

</mosaic_0001>

<bundles_post_ra>
// kernel: mul.8
= control target key start
LH: loop header
LB: loop body
LE: loop exit
PB: predicated region body
PF: predicated region fallthrough
CT: control target
= control target key end

     0   :  { %vm60_vm0 = vcmask 1047556   ;;  %vm62_vm1 = vcmask 523264   ;;  %s87_s7 = smov 48  ;;  %vm69_vm2 = vcmask 1045508   ;;  %s67_s8 = smov 48  ;;  %vm82_vm3 = vcmask 1048064   ;;  %s179_s0 = inlined_call_operand.vmem [shape: f32[14,2,64], index: 0, kind: input, shape index: {}]   ;;  %s180_s1 = inlined_call_operand.vmem [shape: f32[14,128], index: 1, kind: output, shape index: {}]  }
   0x1   :  { %v102_v0 = vld [vmem:[%s179_s0 + $0xe] sm:$0x3]  ;;  %v103_v1 = vld [vmem:[%s179_s0 + $0xc] sm:$0x3]  ;;  %v104_v2 = vld [vmem:[%s179_s0 + $0xa] sm:$0x3] }
   0x2   :  { %31 = vst [vmem:[#allocation0 + $0x38] sm:$0x3] %v102_v0  ;;  %v105_v3 = vld [vmem:[%s179_s0 + $0x8] sm:$0x3]  ;;  %v106_v4 = vld [vmem:[%s179_s0 + $0x6] sm:$0x3] }
   0x3   :  { %35 = vst [vmem:[#allocation0 + $0x30] sm:$0x3] %v103_v1  ;;  %v107_v5 = vld [vmem:[%s179_s0 + $0x4] sm:$0x3]  ;;  %v108_v6 = vld [vmem:[%s179_s0 + $0x2] sm:$0x3] }
   0x4   :  { %39 = vst [vmem:[#allocation0 + $0x28] sm:$0x3] %v104_v2  ;;  %v56_v7 = vld [vmem:[%s179_s0] sm:$0x3]  ;;  %v96_v8 = vld [vmem:[%s179_s0 + $0x1a] sm:$0x3] }
   0x5   :  { %43 = vst [vmem:[#allocation0 + $0x20] sm:$0x3] %v105_v3  ;;  %v97_v9 = vld [vmem:[%s179_s0 + $0x18] sm:$0x3]  ;;  %v98_v10 = vld [vmem:[%s179_s0 + $0x16] sm:$0x3] }
   0x6   :  { %47 = vst [vmem:[#allocation0 + $0x18] sm:$0x3] %v106_v4  ;;  %v99_v11 = vld [vmem:[%s179_s0 + $0x14] sm:$0x3]  ;;  %v100_v12 = vld [vmem:[%s179_s0 + $0x12] sm:$0x3] }
   0x7   :  { %51 = vst [vmem:[#allocation0 + $0x10] sm:$0x3] %v107_v5  ;;  %v101_v13 = vld [vmem:[%s179_s0 + $0x10] sm:$0x3]  ;;  %s112_s0 = smov 64  }
   0x8   :  { %55 = vst [vmem:[#allocation0 + $0x8] sm:$0x3] %v108_v6 }
   0x9   :  { %57 = vst [vmem:[#allocation0] sm:$0x3] %v56_v7 }
   0xa   :  { %7 = vst [vmem:[#allocation0 + $0x68] sm:$0x3] %v96_v8 }
   0xb   :  { %11 = vst [vmem:[#allocation0 + $0x60] sm:$0x3] %v97_v9 }
   0xc   :  { %v77_v14 = vld [vmem:[#allocation0 + $0x1] ss:$8 sm:$0xf0]   ;;  %15 = vst [vmem:[#allocation0 + $0x58] sm:$0x3] %v98_v10 }
   0xd   :  { %v59_v15 = vld [vmem:[#allocation0] ss:$8 sm:$0xf0]   ;;  %19 = vst [vmem:[#allocation0 + $0x50] sm:$0x3] %v99_v11 }
   0xe   :  { %23 = vst [vmem:[#allocation0 + $0x48] sm:$0x3] %v100_v12 }
   0xf   :  { %27 = vst [vmem:[#allocation0 + $0x40] sm:$0x3] %v101_v13 }
  0x10   :  { %v58_v16 = vld [vmem:[#allocation0] ss:$8 sm:$0xf]   ;;  %v75_v17 = vld [vmem:[#allocation0 + $0x1] ss:$8 sm:$0xf]  }
  0x11   :  { %v79_v18 = vsel %vm60_vm0, %v77_v14, %v75_v17  ;;  %v61_v19 = vsel %vm60_vm0, %v59_v15, %v58_v16 }
  0x12   :  { %80 = vrot.lane.b32.xlu0 %v79_v18, %s112_s0  ;;  %63 = vst.msk [vmem:[%s180_s1] sm:$0xff] %vm62_vm1, %v61_v19  }
  0x16   :  { %v85_v20 = vld [vmem:[#allocation0 + $0x41] ss:$8 sm:$0xf]   ;;  %v65_v23 = vld [vmem:[#allocation0 + $0x40] ss:$8 sm:$0xf]  }
  0x17   :  { %v88_v21 = vld [vmem:[#allocation0 + $0x41] ss:$8 sm:%s87_s7]   ;;  %v68_v24 = vld [vmem:[#allocation0 + $0x40] ss:$8 sm:%s67_s8]  }
  0x18   :  { %v90_v22 = vsel %vm69_vm2, %v88_v21, %v85_v20  ;;  %v70_v25 = vsel %vm69_vm2, %v68_v24, %v65_v23 }
  0x19   :  { %109 = vst.msk [vmem:[%s180_s1 + $0x8] sm:$0x3f] %vm62_vm1, %v70_v25  }
  0x1a   :  { %91 = vrot.lane.b32.xlu0 %v90_v22, %s112_s0 }
  0x84   :  { %v81_v26 = vpop.permute.xlu0 %80  }
  0x85   :  { %83 = vst.msk [vmem:[%s180_s1] sm:$0xff] %vm82_vm3, %v81_v26  }
  0x8c   :  { %v92_v27 = vpop.permute.xlu0 %91  }
  0x8d   :  { %110 = vst.msk [vmem:[%s180_s1 + $0x8] sm:$0x3f] %vm82_vm3, %v92_v27  }

// kernel: generator_forward.1
= control target key start
LH: loop header
LB: loop body
LE: loop exit
PB: predicated region body
PF: predicated region fallthrough
CT: control target
= control target key end

     0   :  { %s12423_s0 = inlined_call_operand.vmem [shape: f32[224,128], index: 0, kind: input, shape index: {}]   ;;  %s12424_s1 = inlined_call_operand.vmem [shape: f32[64,224], index: 1, kind: input, shape index: {}]   ;;  %s12425_s2 = inlined_call_operand.vmem [shape: f32[64,128], index: 2, kind: input, shape index: {}]   ;;  %s12426_s3 = inlined_call_operand.vmem [shape: f32[64,1], index: 3, kind: input, shape index: {}]   ;;  %s12427_s4 = inlined_call_operand.vmem [shape: f32[64,1], index: 4, kind: input, shape index: {}]   ;;  %s12428_s5 = inlined_call_operand.hbm [shape: f32[9,64,64], index: 5, kind: input, shape index: {}]   ;;  %s12429_s6 = inlined_call_operand.vmem [shape: f32[64,1], index: 6, kind: input, shape index: {}]   ;;  %s12430_s7 = inlined_call_operand.vmem [shape: f32[64,1], index: 7, kind: input, shape index: {}]   ;;  %s12431_s8 = inlined_call_operand.vmem [shape: f32[64,1], index: 8, kind: input, shape index: {}]   ;;  %s12432_s9 = inlined_call_operand.hbm [shape: f32[128,512], index: 9, kind: input, shape index: {}]   ;;  %s12433_s10 = inlined_call_operand.vmem [shape: f32[9,32,64], index: 10, kind: input, shape index: {}]   ;;  %s12434_s11 = inlined_call_operand.vmem [shape: f32[32,1], index: 11, kind: input, shape index: {}]   ;;  %s12435_s12 = inlined_call_operand.vmem [shape: f32[32,1], index: 12, kind: input, shape index: {}]   ;;  %s12436_s13 = inlined_call_operand.vmem [shape: f32[32,1], index: 13, kind: input, shape index: {}]   ;;  %s12437_s14 = inlined_call_operand.vmem [shape: f32[9,1,32], index: 14, kind: input, shape index: {}]   ;;  %s12438_s15 = inlined_call_operand.<no memory space> [shape: f32[1,1], index: 15, kind: input, shape index: {}]   ;;  %s12439_s16 = inlined_call_operand.vmem [shape: f32[9,1,128], index: 16, kind: input, shape index: {}]   ;;  %s12440_s17 = inlined_call_operand.vmem [shape: f32[9,1,512], index: 17, kind: input, shape index: {}]   ;;  %s12441_s18 = inlined_call_operand.vmem [shape: f32[1,512], index: 18, kind: output, shape index: {}]  }
   0x1   :  { %12606 = sst [smem:[#allocation92_spill]] %s12423_s0  ;;  %v23_v0 = vstv %s12438_s15 }
   0x2   :  { %12607 = sst [smem:[#allocation93_spill]] %s12424_s1  ;;  %24 = vst [vmem:[#allocation2] sm:$0x1] %v23_v0 }
   0x3   :  { %12608 = sst [smem:[#allocation94_spill]] %s12425_s2 }
   0x4   :  { %25 = vsyncpa [#allocation4], 0  ;;  %s41_s0 = sshll.u32 %s12428_s5, 4  ;;  %s42_s0 = int_to_ptr.hbm [resolvable:$true] %s41_s0 }
   0x5   :  { %26 = vsyncpa [#allocation6], 0  ;;  %s7528_s19 = smov [#allocation3]   ;;  %s60_s22 = sshll.u32 %s12432_s9, 4  ;;  %s61_s22 = int_to_ptr.hbm [resolvable:$true] %s60_s22 }
   0x6   :  { %s43_s1 = sshll.u32 %s7528_s19, 4  ;;  %s7529_s2 = smov 128   ;;  %s44_s1 = int_to_ptr.vmem [resolvable:$true] %s43_s1 }
   0x7   :  { %s7530_s23 = smov 8   ;;  %s7531_s15 = smov [#allocation5]  }
   0x8   :  { %49 = dma.hbm_to_vmem [thread:$0]  %s42_s0, 9216, %s44_s1, [#allocation4], %s7529_s2, %s7529_s2, %s7530_s23  }
   0x9   :  { %s62_s24 = sshll.u32 %s7531_s15, 4  ;;  %s7532_s25 = smov 512   ;;  %s63_s24 = int_to_ptr.vmem [resolvable:$true] %s62_s24 }
   0xa   :  { %s7533_s26 = smov 32  }
   0xb   :  { %68 = dma.hbm_to_vmem [thread:$0]  %s61_s22, 8192, %s63_s24, [#allocation6], %s7532_s25, %s7532_s25, %s7533_s26  }
   0xc   :  { %7524 = dma.done.wait [#allocation4], 9216  }
   0xd   :  { %7525 = vsyncadd [#allocation4], 4294958080 }
   0xe   :  { %7526 = dma.done.wait [#allocation6], 8192  }
   0xf   :  { %7527 = vsyncadd [#allocation6], 4294959104  ;;  %s12609_s28 = sld [smem:[#allocation92_spill]]  ;;  %vm145_vm0 = vcmask 785408   ;;  %v254_v38 = vld [vmem:[%s12426_s3 + $0x10] sm:$0xff]  ;;  %v252_v39 = vld [vmem:[%s12426_s3] sm:$0xff] }
  0x10   :  { %s12610_s30 = sld [smem:[#allocation93_spill]]  ;;  %v7534_v40 = vmov 0   ;;  %v253_v41 = vld [vmem:[%s12426_s3 + $0x8] sm:$0xff]  ;;  %v256_v45 = vld [vmem:[%s12426_s3 + $0x20] sm:$0xff]  ;;  %v255_v46 = vld [vmem:[%s12426_s3 + $0x18] sm:$0xff]  ;;  %s7537_s19 = smov 7  }
  0x11   :  { %6295 = vset.pattern.permute.xlu0 %v7534_v40  ;;  %6293 = vset.pattern.permute.xlu1 %v7534_v40  ;;  %v261_v44 = vld [vmem:[%s12427_s4 + $0x8] sm:$0xff]  ;;  %v258_v49 = vld [vmem:[%s12426_s3 + $0x30] sm:$0xff]  ;;  %v260_v53 = vld [vmem:[%s12427_s4] sm:$0xff]  ;;  %s12611_s26 = sld [smem:[#allocation94_spill]]  ;;  %s7538_s1 = smov 1  }
  0x12   :  { %447 = vperm.xlu0 %6295, %v254_v38   ;;  %437 = vperm.xlu1 %6293, %v252_v39   ;;  %v257_v50 = vld [vmem:[%s12426_s3 + $0x28] sm:$0xff]  ;;  %v259_v54 = vld [vmem:[%s12426_s3 + $0x38] sm:$0xff]  ;;  %s7539_s20 = smov 127   ;;  %s7541_s21 = smov 120  }
  0x13   :  { %6294 = vset.pattern.permute.xlu2 %v7534_v40  ;;  %s7542_s22 = smov 119   ;;  %s7544_s5 = smov 16  }
  0x14   :  { %442 = vperm.xlu2 %6294, %v253_v41   ;;  %s7547_s25 = smov 112  }
  0x15   :  { %v124_v1 = vld [vmem:[%s12609_s28 + $0x78] sm:$0xff]  ;;  %v123_v2 = vld [vmem:[%s12609_s28 + $0x70] sm:$0xff]  ;;  %v122_v3 = vld [vmem:[%s12609_s28 + $0x68] sm:$0xff] }
  0x16   :  { %170 = vmatpush.msra.mxu0 %v124_v1  ;;  %v136_v4 = vld [vmem:[%s12609_s28 + $0xd8] sm:$0xff]  ;;  %v135_v5 = vld [vmem:[%s12609_s28 + $0xd0] sm:$0xff]  ;;  %v121_v6 = vld [vmem:[%s12609_s28 + $0x60] sm:$0xff] }
  0x17   :  { %215 = vmatpush.msra.mxu1 %v136_v4  ;;  %v134_v7 = vld [vmem:[%s12609_s28 + $0xc8] sm:$0xff]  ;;  %v120_v8 = vld [vmem:[%s12609_s28 + $0x58] sm:$0xff]  ;;  %v133_v9 = vld [vmem:[%s12609_s28 + $0xc0] sm:$0xff] }
  0x18   :  { %171 = vmatpush.msra.mxu0 %v123_v2  ;;  %v119_v10 = vld [vmem:[%s12609_s28 + $0x50] sm:$0xff]  ;;  %v132_v11 = vld [vmem:[%s12609_s28 + $0xb8] sm:$0xff]  ;;  %v118_v12 = vld [vmem:[%s12609_s28 + $0x48] sm:$0xff] }
  0x19   :  { %216 = vmatpush.msra.mxu1 %v135_v5  ;;  %v117_v13 = vld [vmem:[%s12609_s28 + $0x40] sm:$0xff]  ;;  %v131_v14 = vld [vmem:[%s12609_s28 + $0xb0] sm:$0xff]  ;;  %v130_v15 = vld [vmem:[%s12609_s28 + $0xa8] sm:$0xff] }
  0x1a   :  { %172 = vmatpush.msra.mxu0 %v122_v3  ;;  %v116_v16 = vld [vmem:[%s12609_s28 + $0x38] sm:$0xff]  ;;  %v129_v17 = vld [vmem:[%s12609_s28 + $0xa0] sm:$0xff]  ;;  %v115_v18 = vld [vmem:[%s12609_s28 + $0x30] sm:$0xff]  ;;  %490 = vperm.xlu0 %6295, %v261_v44  }
  0x1b   :  { %217 = vmatpush.msra.mxu1 %v134_v7  ;;  %v128_v19 = vld [vmem:[%s12609_s28 + $0x98] sm:$0xff]  ;;  %v114_v20 = vld [vmem:[%s12609_s28 + $0x28] sm:$0xff]  ;;  %v127_v21 = vld [vmem:[%s12609_s28 + $0x90] sm:$0xff]  ;;  %457 = vperm.xlu1 %6293, %v256_v45  }
  0x1c   :  { %173 = vmatpush.msra.mxu0 %v121_v6  ;;  %v113_v22 = vld [vmem:[%s12609_s28 + $0x20] sm:$0xff]  ;;  %v126_v23 = vld [vmem:[%s12609_s28 + $0x88] sm:$0xff]  ;;  %v112_v24 = vld [vmem:[%s12609_s28 + $0x18] sm:$0xff]  ;;  %452 = vperm.xlu2 %6294, %v255_v46  }
  0x1d   :  { %218 = vmatpush.msra.mxu1 %v133_v9  ;;  %v125_v25 = vld [vmem:[%s12609_s28 + $0x80] sm:$0xff]  ;;  %v94_v26 = vld [vmem:[%s12610_s30 + $0x8] sm:$0xff]  ;;  %v111_v27 = vld [vmem:[%s12609_s28 + $0x10] sm:$0xff] }
  0x1e   :  { %174 = vmatpush.msra.mxu0 %v120_v8  ;;  %v110_v28 = vld [vmem:[%s12609_s28 + $0x8] sm:$0xff]  ;;  %v109_v29 = vld [vmem:[%s12609_s28] sm:$0xff]  ;;  %v96_v31 = vld [vmem:[%s12610_s30 + $0x18] sm:$0xff] }
  0x1f   :  { %219 = vmatpush.msra.mxu1 %v132_v11  ;;  %v93_v30 = vld [vmem:[%s12610_s30] sm:$0xff]  ;;  %v95_v32 = vld [vmem:[%s12610_s30 + $0x10] sm:$0xff]  ;;  %v98_v33 = vld [vmem:[%s12610_s30 + $0x28] sm:$0xff] }
  0x20   :  { %175 = vmatpush.msra.mxu0 %v119_v10  ;;  %v97_v34 = vld [vmem:[%s12610_s30 + $0x20] sm:$0xff]  ;;  %v100_v35 = vld [vmem:[%s12610_s30 + $0x38] sm:$0xff]  ;;  %v99_v36 = vld [vmem:[%s12610_s30 + $0x30] sm:$0xff] }
  0x21   :  { %220 = vmatpush.msra.mxu1 %v131_v14  ;;  %v102_v37 = vld [vmem:[%s12610_s30 + $0x48] sm:$0xff]  ;;  %v101_v42 = vld [vmem:[%s12610_s30 + $0x40] sm:$0xff]  ;;  %v104_v43 = vld [vmem:[%s12610_s30 + $0x58] sm:$0xff] }
  0x22   :  { %176 = vmatpush.msra.mxu0 %v118_v12  ;;  %v103_v47 = vld [vmem:[%s12610_s30 + $0x50] sm:$0xff]  ;;  %v106_v48 = vld [vmem:[%s12610_s30 + $0x68] sm:$0xff]  ;;  %v105_v51 = vld [vmem:[%s12610_s30 + $0x60] sm:$0xff] }
  0x23   :  { %221 = vmatpush.msra.mxu1 %v130_v15  ;;  %467 = vperm.xlu1 %6293, %v258_v49   ;;  %v108_v52 = vld [vmem:[%s12610_s30 + $0x78] sm:$0xff]  ;;  %v107_v55 = vld [vmem:[%s12610_s30 + $0x70] sm:$0xff]  ;;  %v137_v57 = vld [vmem:[%s12611_s26] sm:$0xff]  ;;  %s7545_s30 = smov 15  }
  0x24   :  { %177 = vmatpush.msra.mxu0 %v117_v13  ;;  %462 = vperm.xlu2 %6294, %v257_v50   ;;  %v138_v62 = vld [vmem:[%s12611_s26 + $0x8] sm:$0xff]  ;;  %v139_v3 = vld [vmem:[%s12611_s26 + $0x10] sm:$0xff]  ;;  %v140_v8 = vld [vmem:[%s12611_s26 + $0x18] sm:$0xff] }
  0x25   :  { %222 = vmatpush.msra.mxu1 %v129_v17  ;;  %v141_v13 = vld [vmem:[%s12611_s26 + $0x20] sm:$0xff] }
  0x26   :  { %178 = vmatpush.msra.mxu0 %v116_v16 }
  0x27   :  { %223 = vmatpush.msra.mxu1 %v128_v19 }
  0x28   :  { %179 = vmatpush.msra.mxu0 %v115_v18  ;;  %v142_v18 = vld [vmem:[%s12611_s26 + $0x28] sm:$0xff] }
  0x29   :  { %224 = vmatpush.msra.mxu1 %v127_v21 }
  0x2a   :  { %180 = vmatpush.msra.mxu0 %v114_v20 }
  0x2b   :  { %225 = vmatpush.msra.mxu1 %v126_v23  ;;  %485 = vperm.xlu1 %6293, %v260_v53  }
  0x2c   :  { %181 = vmatpush.msra.mxu0 %v113_v22  ;;  %472 = vperm.xlu2 %6294, %v259_v54   ;;  %v143_v22 = vld [vmem:[%s12611_s26 + $0x30] sm:$0xff] }
  0x2d   :  { %226 = vmatpush.msra.mxu1 %v125_v25 }
  0x2e   :  { %182 = vmatpush.msra.mxu0 %v112_v24  ;;  %5957 = vmatmul.msk.f32.vlgmr.msra.gmra.mxu1 %vm145_vm0, %v94_v26 }
  0x30   :  { %183 = vmatpush.msra.mxu0 %v111_v27  ;;  %v144_v27 = vld [vmem:[%s12611_s26 + $0x38] sm:$0xff] }
  0x32   :  { %184 = vmatpush.msra.mxu0 %v110_v28 }
  0x34   :  { %185 = vmatpush.msra.mxu0 %v109_v29 }
  0x35   :  { %186 = vmatmul.f32.vlgmr.msra.gmra.mxu0 %v93_v30 }
  0x36   :  { %5958 = vmatmul.msk.f32.gmra.mxu1 %vm145_vm0, %v96_v31 }
  0x3d   :  { %189 = vmatmul.f32.gmra.mxu0 %v95_v32  ;;  %v262_v32 = vld [vmem:[%s12427_s4 + $0x10] sm:$0xff] }
  0x3e   :  { %5959 = vmatmul.msk.f32.gmra.mxu1 %vm145_vm0, %v98_v33  ;;  %v264_v33 = vld [vmem:[%s12427_s4 + $0x20] sm:$0xff] }
  0x45   :  { %192 = vmatmul.f32.gmra.mxu0 %v97_v34  ;;  %v263_v34 = vld [vmem:[%s12427_s4 + $0x18] sm:$0xff] }
  0x46   :  { %5960 = vmatmul.msk.f32.gmra.mxu1 %vm145_vm0, %v100_v35  ;;  %v7535_v35 = vmov 128.0  }
  0x47   :  { %7424 = vrcp.f32 %v7535_v35 }
  0x4d   :  { %195 = vmatmul.f32.gmra.mxu0 %v99_v36 }
  0x4e   :  { %5961 = vmatmul.msk.f32.gmra.mxu1 %vm145_vm0, %v102_v37  ;;  %v7425_v37 = vpop.eup %7424 }
  0x4f   :  { %v285_v39 = vmul.f32 128.0, %v7425_v37  ;;  %vm289_vm1 = vweird.f32 %v7425_v37 }
  0x51   :  { %v286_v40 = vsub.f32 1.0, %v285_v39 }
  0x55   :  { %198 = vmatmul.f32.gmra.mxu0 %v101_v42  ;;  %v287_v42 = vmul.f32 %v7425_v37, %v286_v40 }
  0x56   :  { %5962 = vmatmul.msk.f32.gmra.mxu1 %vm145_vm0, %v104_v43 }
  0x57   :  { %v288_v45 = vadd.f32 %v7425_v37, %v287_v42 }
  0x5d   :  { %201 = vmatmul.f32.gmra.mxu0 %v103_v47  ;;  %v7894_v47 = vsel %vm289_vm1, %v7425_v37, %v288_v45 }
  0x5e   :  { %5963 = vmatmul.msk.f32.gmra.mxu1 %vm145_vm0, %v106_v48 }
  0x65   :  { %204 = vmatmul.f32.gmra.mxu0 %v105_v51 }
  0x66   :  { %5964 = vmatmul.msk.f32.gmra.mxu1 %vm145_vm0, %v108_v52 }
  0x6d   :  { %207 = vmatmul.f32.gmra.mxu0 %v107_v55 }
  0x6e   :  { %v7890_v44 = vpop.permute.xlu2 %442 }
  0x76   :  { %v7900_v51 = vpop.permute.xlu2 %452 }
  0x84   :  { %v7882_v36 = vpop.permute.xlu1 %437  ;;  %v7884_v38 = vpop.permute.xlu0 %447 }
  0x8c   :  { %v7888_v43 = vpop.permute.xlu0 %490 }
  0x8d   :  { %v7886_v41 = vpop.permute.xlu1 %457 }
  0x95   :  { %v7892_v46 = vpop.permute.xlu1 %467 }
  0x9d   :  { %v7904_v53 = vpop.permute.xlu1 %485 }
  0xab   :  { %v228_v56 = vpop.f32.mrf.mxu1 }
  0xb2   :  { %v187_v58 = vpop.f32.mrf.mxu0 }
  0xb3   :  { %v188_v59 = vadd.f32 %v187_v58, %v137_v57  ;;  %v231_v60 = vpop.f32.mrf.mxu1  ;;  %v7912_v58 = vpop.permute.xlu2 %462 }
  0xb5   :  { %v7828_v61 = vadd.f32 %v228_v56, %v188_v59 }
  0xb7   :  { %268 = vadd.xlane.f32.xlu0 %v7828_v61 }
  0xba   :  { %v190_v63 = vpop.f32.mrf.mxu0 }
  0xbb   :  { %v191_v0 = vadd.f32 %v190_v63, %v138_v62  ;;  %v234_v1 = vpop.f32.mrf.mxu1  ;;  %v7920_v63 = vpop.permute.xlu2 %472 }
  0xbd   :  { %v7834_v2 = vadd.f32 %v231_v60, %v191_v0 }
  0xbf   :  { %270 = vadd.xlane.f32.xlu0 %v7834_v2 }
  0xc2   :  { %v193_v4 = vpop.f32.mrf.mxu0 }
  0xc3   :  { %v194_v5 = vadd.f32 %v193_v4, %v139_v3  ;;  %v237_v6 = vpop.f32.mrf.mxu1 }
  0xc5   :  { %v7840_v7 = vadd.f32 %v234_v1, %v194_v5 }
  0xc7   :  { %272 = vadd.xlane.f32.xlu1 %v7840_v7 }
  0xca   :  { %v196_v9 = vpop.f32.mrf.mxu0 }
  0xcb   :  { %v197_v10 = vadd.f32 %v196_v9, %v140_v8  ;;  %v240_v11 = vpop.f32.mrf.mxu1 }
  0xcd   :  { %v7846_v12 = vadd.f32 %v237_v6, %v197_v10 }
  0xcf   :  { %274 = vadd.xlane.f32.xlu1 %v7846_v12 }
  0xd2   :  { %v199_v14 = vpop.f32.mrf.mxu0 }
  0xd3   :  { %v200_v15 = vadd.f32 %v199_v14, %v141_v13  ;;  %v243_v17 = vpop.f32.mrf.mxu1 }
  0xd5   :  { %v7852_v16 = vadd.f32 %v240_v11, %v200_v15 }
  0xd7   :  { %276 = vadd.xlane.f32.xlu2 %v7852_v16 }
  0xda   :  { %v202_v19 = vpop.f32.mrf.mxu0 }
  0xdb   :  { %v203_v20 = vadd.f32 %v202_v19, %v142_v18  ;;  %v246_v23 = vpop.f32.mrf.mxu1 }
  0xdd   :  { %v7858_v21 = vadd.f32 %v243_v17, %v203_v20  ;;  %v266_v20 = vld [vmem:[%s12427_s4 + $0x30] sm:$0xff] }
  0xdf   :  { %278 = vadd.xlane.f32.xlu2 %v7858_v21 }
  0xe2   :  { %v205_v24 = vpop.f32.mrf.mxu0 }
  0xe3   :  { %v206_v25 = vadd.f32 %v205_v24, %v143_v22  ;;  %v249_v29 = vpop.f32.mrf.mxu1  ;;  %v267_v22 = vld [vmem:[%s12427_s4 + $0x38] sm:$0xff] }
  0xe5   :  { %v7864_v26 = vadd.f32 %v246_v23, %v206_v25 }
  0xe7   :  { %280 = vadd.xlane.f32.xlu0 %v7864_v26 }
  0xea   :  { %v208_v28 = vpop.f32.mrf.mxu0 }
  0xeb   :  { %v209_v30 = vadd.f32 %v208_v28, %v144_v27 }
  0xed   :  { %v7870_v31 = vadd.f32 %v249_v29, %v209_v30 }
  0xef   :  { %282 = vadd.xlane.f32.xlu1 %v7870_v31 }
  0xf7   :  { %495 = vperm.xlu2 %6294, %v262_v32  }
  0xfb   :  { %505 = vperm.xlu0 %6295, %v264_v33  }
 0x108   :  { %500 = vperm.xlu1 %6293, %v263_v34  }
 0x12a   :  { %v269_v48 = vpop.xlane.xlu0 %268 }
 0x12b   :  { %v291_v49 = vmul.f32 %v7894_v47, %v269_v48 }
 0x12d   :  { %v7898_v50 = vsub.f32 %v7828_v61, %v291_v49 }
 0x12f   :  { %v307_v52 = vmul.f32 %v7898_v50, %v7898_v50 }
 0x131   :  { %315 = vadd.xlane.f32.xlu2 %v307_v52 }
 0x132   :  { %v271_v54 = vpop.xlane.xlu0 %270 }
 0x133   :  { %v292_v55 = vmul.f32 %v7894_v47, %v271_v54 }
 0x135   :  { %v7908_v56 = vsub.f32 %v7834_v2, %v292_v55 }
 0x137   :  { %v308_v57 = vmul.f32 %v7908_v56, %v7908_v56 }
 0x139   :  { %317 = vadd.xlane.f32.xlu0 %v308_v57 }
 0x13a   :  { %v273_v59 = vpop.xlane.xlu1 %272 }
 0x13b   :  { %v293_v60 = vmul.f32 %v7894_v47, %v273_v59 }
 0x13d   :  { %v7916_v61 = vsub.f32 %v7840_v7, %v293_v60 }
 0x13f   :  { %v309_v62 = vmul.f32 %v7916_v61, %v7916_v61 }
 0x141   :  { %319 = vadd.xlane.f32.xlu1 %v309_v62 }
 0x142   :  { %v275_v0 = vpop.xlane.xlu1 %274 }
 0x143   :  { %v294_v1 = vmul.f32 %v7894_v47, %v275_v0 }
 0x145   :  { %v7924_v2 = vsub.f32 %v7846_v12, %v294_v1 }
 0x147   :  { %v310_v3 = vmul.f32 %v7924_v2, %v7924_v2 }
 0x149   :  { %321 = vadd.xlane.f32.xlu2 %v310_v3 }
 0x14a   :  { %v277_v4 = vpop.xlane.xlu2 %276 }
 0x14b   :  { %v295_v5 = vmul.f32 %v7894_v47, %v277_v4 }
 0x14d   :  { %v7930_v6 = vsub.f32 %v7852_v16, %v295_v5 }
 0x14f   :  { %v311_v7 = vmul.f32 %v7930_v6, %v7930_v6 }
 0x151   :  { %323 = vadd.xlane.f32.xlu0 %v311_v7 }
 0x152   :  { %v279_v8 = vpop.xlane.xlu2 %278 }
 0x153   :  { %v296_v9 = vmul.f32 %v7894_v47, %v279_v8 }
 0x155   :  { %v7936_v10 = vsub.f32 %v7858_v21, %v296_v9  ;;  %v265_v21 = vld [vmem:[%s12427_s4 + $0x28] sm:$0xff]  ;;  %s7536_s4 = smov 9  }
 0x157   :  { %v312_v11 = vmul.f32 %v7936_v10, %v7936_v10 }
 0x159   :  { %325 = vadd.xlane.f32.xlu1 %v312_v11 }
 0x15a   :  { %v281_v12 = vpop.xlane.xlu0 %280  ;;  %v7961_v23 = vpop.permute.xlu2 %495 }
 0x15b   :  { %v297_v13 = vmul.f32 %v7894_v47, %v281_v12 }
 0x15d   :  { %v7942_v14 = vsub.f32 %v7864_v26, %v297_v13 }
 0x15f   :  { %v313_v15 = vmul.f32 %v7942_v14, %v7942_v14 }
 0x161   :  { %327 = vadd.xlane.f32.xlu2 %v313_v15 }
 0x162   :  { %v283_v16 = vpop.xlane.xlu1 %282 }
 0x163   :  { %v298_v17 = vmul.f32 %v7894_v47, %v283_v16 }
 0x165   :  { %v7948_v18 = vsub.f32 %v7870_v31, %v298_v17 }
 0x167   :  { %v314_v19 = vmul.f32 %v7948_v18, %v7948_v18 }
 0x169   :  { %329 = vadd.xlane.f32.xlu0 %v314_v19 }
 0x16d   :  { %v7963_v24 = vpop.permute.xlu0 %505 }
 0x172   :  { %515 = vperm.xlu1 %6293, %v266_v20  }
 0x179   :  { %510 = vperm.xlu2 %6294, %v265_v21  }
 0x17a   :  { %v7966_v28 = vpop.permute.xlu1 %500 }
 0x17d   :  { %520 = vperm.xlu0 %6295, %v267_v22  }
 0x1a4   :  { %v316_v25 = vpop.xlane.xlu2 %315 }
 0x1a5   :  { %v331_v26 = vmul.f32 %v316_v25, %v7894_v47 }
 0x1a7   :  { %v339_v27 = vadd.f32 1e-05, %v331_v26 }
 0x1a9   :  { %7426 = vrsqrt.f32 %v339_v27  ;;  %vm353_vm3 = vweird.f32 %v339_v27 }
 0x1ac   :  { %v318_v29 = vpop.xlane.xlu0 %317 }
 0x1ad   :  { %v332_v30 = vmul.f32 %v318_v29, %v7894_v47 }
 0x1af   :  { %v7427_v31 = vpop.eup %7426  ;;  %v340_v32 = vadd.f32 1e-05, %v332_v30 }
 0x1b0   :  { %v348_v33 = vmul.f32 %v7427_v31, %v339_v27  ;;  %vm354_vm2 = vweird.f32 %v7427_v31 }
 0x1b1   :  { %7428 = vrsqrt.f32 %v340_v32  ;;  %vm355_vm4 = vmor %vm353_vm3, %vm354_vm2  ;;  %vm363_vm6 = vweird.f32 %v340_v32 }
 0x1b2   :  { %v349_v34 = vmul.f32 %v7427_v31, %v348_v33 }
 0x1b4   :  { %v350_v35 = vmul.f32 0.5, %v349_v34  ;;  %v320_v37 = vpop.xlane.xlu1 %319 }
 0x1b5   :  { %v333_v39 = vmul.f32 %v320_v37, %v7894_v47 }
 0x1b6   :  { %v351_v40 = vsub.f32 1.5, %v350_v35 }
 0x1b7   :  { %v7429_v42 = vpop.eup %7428  ;;  %v341_v45 = vadd.f32 1e-05, %v333_v39 }
 0x1b8   :  { %v352_v48 = vmul.f32 %v7427_v31, %v351_v40  ;;  %v358_v49 = vmul.f32 %v7429_v42, %v340_v32  ;;  %vm364_vm5 = vweird.f32 %v7429_v42 }
 0x1b9   :  { %7430 = vrsqrt.f32 %v341_v45  ;;  %vm365_vm7 = vmor %vm363_vm6, %vm364_vm5  ;;  %vm373_vm9 = vweird.f32 %v341_v45 }
 0x1ba   :  { %v359_v52 = vmul.f32 %v7429_v42, %v358_v49  ;;  %v356_v54 = vsel %vm355_vm4, %v7427_v31, %v352_v48 }
 0x1bb   :  { %v427_v0 = vmul.f32 %v356_v54, %v7898_v50 }
 0x1bc   :  { %v360_v55 = vmul.f32 0.5, %v359_v52  ;;  %v322_v57 = vpop.xlane.xlu2 %321 }
 0x1bd   :  { %v334_v59 = vmul.f32 %v322_v57, %v7894_v47  ;;  %v475_v8 = vmul.f32 %v7882_v36, %v427_v0 }
 0x1be   :  { %v361_v60 = vsub.f32 1.5, %v360_v55 }
 0x1bf   :  { %v7431_v62 = vpop.eup %7430  ;;  %v342_v1 = vadd.f32 1e-05, %v334_v59  ;;  %v7977_v17 = vadd.f32 %v7904_v53, %v475_v8 }
 0x1c0   :  { %v362_v3 = vmul.f32 %v7429_v42, %v361_v60  ;;  %v368_v4 = vmul.f32 %v7431_v62, %v341_v45  ;;  %vm374_vm8 = vweird.f32 %v7431_v62 }
 0x1c1   :  { %7432 = vrsqrt.f32 %v342_v1  ;;  %vm375_vm10 = vmor %vm373_vm9, %vm374_vm8  ;;  %vm383_vm12 = vweird.f32 %v342_v1 }
 0x1c2   :  { %v366_v5 = vsel %vm365_vm7, %v7429_v42, %v362_v3  ;;  %v369_v7 = vmul.f32 %v7431_v62, %v368_v4 }
 0x1c3   :  { %v428_v9 = vmul.f32 %v366_v5, %v7908_v56 }
 0x1c4   :  { %v370_v11 = vmul.f32 0.5, %v369_v7  ;;  %v324_v12 = vpop.xlane.xlu0 %323 }
 0x1c5   :  { %v476_v13 = vmul.f32 %v7890_v44, %v428_v9  ;;  %v335_v15 = vmul.f32 %v324_v12, %v7894_v47 }
 0x1c6   :  { %v371_v16 = vsub.f32 1.5, %v370_v11 }
 0x1c7   :  { %v7433_v50 = vpop.eup %7432  ;;  %v7980_v19 = vadd.f32 %v7888_v43, %v476_v13  ;;  %v343_v20 = vadd.f32 1e-05, %v335_v15 }
 0x1c8   :  { %v372_v21 = vmul.f32 %v7431_v62, %v371_v16  ;;  %v378_v36 = vmul.f32 %v7433_v50, %v342_v1  ;;  %vm384_vm11 = vweird.f32 %v7433_v50 }
 0x1c9   :  { %7434 = vrsqrt.f32 %v343_v20  ;;  %v7984_v56 = vpack.i.bf16 %v7980_v19, %v7977_v17  ;;  %vm385_vm13 = vmor %vm383_vm12, %vm384_vm11  ;;  %vm393_vm15 = vweird.f32 %v343_v20 }
 0x1ca   :  { %v379_v44 = vmul.f32 %v7433_v50, %v378_v36  ;;  %v376_v43 = vsel %vm375_vm10, %v7431_v62, %v372_v21  ;;  %vm563_vm10 = vcmask 523264  }
 0x1cb   :  { %6302 = vrot.lane.b32.xlu1 %v7984_v56, %s7530_s23  ;;  %6297 = vrot.lane.b32.xlu2 %v7984_v56, %s7536_s4  ;;  %v429_v29 = vmul.f32 %v376_v43, %v7916_v61 }
 0x1cc   :  { %v380_v53 = vmul.f32 0.5, %v379_v44  ;;  %v326_v22 = vpop.xlane.xlu1 %325 }
 0x1cd   :  { %v336_v25 = vmul.f32 %v326_v22, %v7894_v47  ;;  %v477_v35 = vmul.f32 %v7884_v38, %v429_v29 }
 0x1ce   :  { %v381_v26 = vsub.f32 1.5, %v380_v53 }
 0x1cf   :  { %v7435_v27 = vpop.eup %7434  ;;  %v344_v30 = vadd.f32 1e-05, %v336_v25  ;;  %v7997_v49 = vadd.f32 %v7961_v23, %v477_v35  ;;  %v535_v35 = vld [vmem:[%s12429_s6 + $0x20] sm:$0xff] }
 0x1d0   :  { %v382_v31 = vmul.f32 %v7433_v50, %v381_v26  ;;  %v388_v32 = vmul.f32 %v7435_v27, %v343_v20  ;;  %vm394_vm14 = vweird.f32 %v7435_v27 }
 0x1d1   :  { %7436 = vrsqrt.f32 %v344_v30  ;;  %vm395_vm0 = vmor %vm393_vm15, %vm394_vm14  ;;  %vm403_vm2 = vweird.f32 %v344_v30 }
 0x1d2   :  { %v386_v33 = vsel %vm385_vm13, %v7433_v50, %v382_v31  ;;  %v389_v34 = vmul.f32 %v7435_v27, %v388_v32 }
 0x1d3   :  { %v430_v37 = vmul.f32 %v386_v33, %v7924_v2  ;;  %v1549_v33 = vld [vmem:[%s12430_s7 + $0x8] sm:$0xff] }
 0x1d4   :  { %v390_v39 = vmul.f32 0.5, %v389_v34  ;;  %v328_v40 = vpop.xlane.xlu2 %327  ;;  %v1550_v34 = vld [vmem:[%s12430_s7 + $0x10] sm:$0xff] }
 0x1d5   :  { %v478_v42 = vmul.f32 %v7900_v51, %v430_v37  ;;  %v337_v45 = vmul.f32 %v328_v40, %v7894_v47 }
 0x1d6   :  { %v391_v48 = vsub.f32 1.5, %v390_v39 }
 0x1d7   :  { %v7437_v61 = vpop.eup %7436  ;;  %v8000_v52 = vadd.f32 %v7966_v28, %v478_v42  ;;  %v345_v54 = vadd.f32 1e-05, %v337_v45  ;;  %v1551_v42 = vld [vmem:[%s12430_s7 + $0x18] sm:$0xff] }
 0x1d8   :  { %v392_v55 = vmul.f32 %v7435_v27, %v391_v48  ;;  %v398_v38 = vmul.f32 %v7437_v61, %v344_v30  ;;  %vm404_vm1 = vweird.f32 %v7437_v61  ;;  %v1553_v48 = vld [vmem:[%s12430_s7 + $0x28] sm:$0xff] }
 0x1d9   :  { %7438 = vrsqrt.f32 %v345_v54  ;;  %v8004_v2 = vpack.i.bf16 %v8000_v52, %v7997_v49  ;;  %vm405_vm3 = vmor %vm403_vm2, %vm404_vm1  ;;  %vm413_vm5 = vweird.f32 %v345_v54 }
 0x1da   :  { %v399_v51 = vmul.f32 %v7437_v61, %v398_v38  ;;  %v396_v23 = vsel %vm395_vm0, %v7435_v27, %v392_v55 }
 0x1db   :  { %6307 = vrot.lane.b32.xlu1 %v8004_v2, %s7536_s4  ;;  %v431_v0 = vmul.f32 %v396_v23, %v7930_v6  ;;  %v1548_v23 = vld [vmem:[%s12430_s7] sm:$0xff] }
 0x1dc   :  { %v400_v57 = vmul.f32 0.5, %v399_v51  ;;  %v330_v59 = vpop.xlane.xlu0 %329  ;;  %v511_v15 = vpop.permute.xlu2 %510  ;;  %v1556_v51 = vld [vmem:[%s12431_s8] sm:$0xff] }
 0x1dd   :  { %v338_v28 = vmul.f32 %v330_v59, %v7894_v47  ;;  %v479_v8 = vmul.f32 %v7886_v41, %v431_v0  ;;  %v1557_v0 = vld [vmem:[%s12431_s8 + $0x8] sm:$0xff] }
 0x1de   :  { %v401_v60 = vsub.f32 1.5, %v400_v57 }
 0x1df   :  { %v7439_v62 = vpop.eup %7438  ;;  %v346_v1 = vadd.f32 1e-05, %v338_v28  ;;  %v527_v6 = vadd.f32 %v7963_v24, %v479_v8 }
 0x1e0   :  { %v408_v3 = vmul.f32 %v7439_v62, %v345_v54  ;;  %v402_v4 = vmul.f32 %v7437_v61, %v401_v60  ;;  %vm414_vm4 = vweird.f32 %v7439_v62 }
 0x1e1   :  { %7440 = vrsqrt.f32 %v346_v1  ;;  %vm415_vm6 = vmor %vm413_vm5, %vm414_vm4  ;;  %vm423_vm8 = vweird.f32 %v346_v1 }
 0x1e2   :  { %v409_v5 = vmul.f32 %v7439_v62, %v408_v3  ;;  %v406_v7 = vsel %vm405_vm3, %v7437_v61, %v402_v4  ;;  %v538_v61 = vld [vmem:[%s12429_s6 + $0x38] sm:$0xff]  ;;  %v1552_v3 = vld [vmem:[%s12430_s7 + $0x20] sm:$0xff] }
 0x1e3   :  { %v432_v9 = vmul.f32 %v406_v7, %v7936_v10  ;;  %v555_v4 = vld [vmem:[#allocation3] sm:$0xff] }
 0x1e4   :  { %v410_v11 = vmul.f32 0.5, %v409_v5  ;;  %v516_v27 = vpop.permute.xlu1 %515 }
 0x1e5   :  { %v480_v12 = vmul.f32 %v7912_v58, %v432_v9 }
 0x1e6   :  { %v411_v13 = vsub.f32 1.5, %v410_v11 }
 0x1e7   :  { %v7441_v16 = vpop.eup %7440  ;;  %v528_v50 = vadd.f32 %v511_v15, %v480_v12  ;;  %v1555_v12 = vld [vmem:[%s12430_s7 + $0x38] sm:$0xff] }
 0x1e8   :  { %v418_v20 = vmul.f32 %v7441_v16, %v346_v1  ;;  %v412_v21 = vmul.f32 %v7439_v62, %v411_v13  ;;  %vm424_vm7 = vweird.f32 %v7441_v16  ;;  %v556_v13 = vld [vmem:[#allocation3 + $0x8] sm:$0xff] }
 0x1e9   :  { %v8014_v36 = vpack.i.bf16 %v528_v50, %v527_v6  ;;  %vm425_vm9 = vmor %vm423_vm8, %vm424_vm7 }
 0x1ea   :  { %v419_v44 = vmul.f32 %v7441_v16, %v418_v20  ;;  %v416_v10 = vsel %vm415_vm6, %v7439_v62, %v412_v21 }
 0x1eb   :  { %6312 = vrot.lane.b32.xlu0 %v8014_v36, %s7536_s4  ;;  %v433_v43 = vmul.f32 %v416_v10, %v7942_v14  ;;  %v533_v14 = vld [vmem:[%s12429_s6 + $0x10] sm:$0xff] }
 0x1ec   :  { %v420_v41 = vmul.f32 0.5, %v419_v44  ;;  %v557_v10 = vld [vmem:[#allocation3 + $0x10] sm:$0xff] }
 0x1ed   :  { %v481_v22 = vmul.f32 %v7892_v46, %v433_v43  ;;  %v531_v46 = vld [vmem:[%s12429_s6] sm:$0xff] }
 0x1ee   :  { %v421_v58 = vsub.f32 1.5, %v420_v41 }
 0x1ef   :  { %v521_v29 = vpop.permute.xlu0 %520  ;;  %v529_v30 = vadd.f32 %v516_v27, %v481_v22 }
 0x1f0   :  { %v422_v24 = vmul.f32 %v7441_v16, %v421_v58 }
 0x1f2   :  { %v426_v53 = vsel %vm425_vm9, %v7441_v16, %v422_v24 }
 0x1f3   :  { %v434_v25 = vmul.f32 %v426_v53, %v7948_v18  ;;  %6317 = vrot.lane.b32.xlu0 %v8004_v2, %s7530_s23  ;;  %v537_v18 = vld [vmem:[%s12429_s6 + $0x30] sm:$0xff] }
 0x1f5   :  { %v482_v26 = vmul.f32 %v7920_v63, %v434_v25  ;;  %v534_v63 = vld [vmem:[%s12429_s6 + $0x18] sm:$0xff] }
 0x1f7   :  { %v530_v31 = vadd.f32 %v521_v29, %v482_v26  ;;  %v658_v26 = vld [vmem:[#allocation3 + $0x40] sm:$0xff] }
 0x1f9   :  { %1015 = vmatpush.msrb.mxu1 %v530_v31  ;;  %v6331_v32 = vpack.i.bf16 %v530_v31, %v529_v30 }
 0x1fb   :  { %6337 = vrot.lane.b32.xlu0 %v7984_v56, %s7537_s19  ;;  %6332 = vrot.lane.b32.xlu1 %v6331_v32, %s7530_s23 }
 0x1fc   :  { %6322 = vrot.lane.b32.xlu2 %v6331_v32, %s7536_s4  ;;  %1016 = vmatpush.msrb.mxu1 %v529_v30  ;;  %s7546_s4 = smov 113  }
 0x1fe   :  { %1017 = vmatpush.msrb.mxu1 %v528_v50 }
 0x200   :  { %1018 = vmatpush.msrb.mxu1 %v527_v6 }
 0x202   :  { %1019 = vmatpush.msrb.mxu1 %v8000_v52 }
 0x203   :  { %6362 = vrot.lane.b32.xlu0 %v6331_v32, %s7537_s19  ;;  %6347 = vrot.lane.b32.xlu1 %v8014_v36, %s7537_s19 }
 0x204   :  { %6327 = vrot.lane.b32.xlu2 %v8014_v36, %s7530_s23  ;;  %1020 = vmatpush.msrb.mxu1 %v7997_v49  ;;  %s7540_s23 = smov 121  }
 0x206   :  { %1021 = vmatpush.msrb.mxu1 %v7980_v19  ;;  %v532_v19 = vld [vmem:[%s12429_s6 + $0x8] sm:$0xff] }
 0x208   :  { %1022 = vmatpush.msrb.mxu1 %v7977_v17  ;;  %v536_v17 = vld [vmem:[%s12429_s6 + $0x28] sm:$0xff] }
 0x20b   :  { %6367 = vrot.lane.b32.xlu0 %v8014_v36, %s7538_s1  ;;  %6357 = vrot.lane.b32.xlu1 %v8004_v2, %s7538_s1 }
 0x20c   :  { %6342 = vrot.lane.b32.xlu2 %v8004_v2, %s7537_s19 }
 0x213   :  { %6382 = vrot.lane.b32.xlu0 %v8004_v2, %s7539_s20  ;;  %6377 = vrot.lane.b32.xlu1 %v7984_v56, %s7539_s20 }
 0x214   :  { %6352 = vrot.lane.b32.xlu2 %v7984_v56, %s7538_s1 }
 0x21b   :  { %6392 = vrot.lane.b32.xlu0 %v7984_v56, %s7540_s23  ;;  %6402 = vrot.lane.b32.xlu1 %v8014_v36, %s7540_s23 }
 0x21c   :  { %6372 = vrot.lane.b32.xlu2 %v6331_v32, %s7538_s1 }
 0x223   :  { %6422 = vrot.lane.b32.xlu0 %v6331_v32, %s7540_s23  ;;  %6412 = vrot.lane.b32.xlu1 %v8004_v2, %s7541_s21 }
 0x224   :  { %6387 = vrot.lane.b32.xlu2 %v8014_v36, %s7539_s20 }
 0x22b   :  { %6427 = vrot.lane.b32.xlu0 %v8014_v36, %s7541_s21  ;;  %6417 = vrot.lane.b32.xlu1 %v6331_v32, %s7539_s20 }
 0x22c   :  { %6397 = vrot.lane.b32.xlu2 %v8004_v2, %s7540_s23 }
 0x233   :  { %6442 = vrot.lane.b32.xlu0 %v8004_v2, %s7542_s22  ;;  %6437 = vrot.lane.b32.xlu1 %v7984_v56, %s7542_s22  ;;  %v1554_v2 = vld [vmem:[%s12430_s7 + $0x30] sm:$0xff] }
 0x234   :  { %6407 = vrot.lane.b32.xlu2 %v7984_v56, %s7541_s21  ;;  %v6298_v56 = vpop.permute.xlu2 %6297 }
 0x235   :  { %v6300_v62 = vunpack.i.h.bf16 %v6298_v56  ;;  %v6299_v1 = vunpack.i.l.bf16 %v6298_v56 }
 0x23b   :  { %1502 = vperm.xlu0 %6295, %v531_v46   ;;  %6452 = vrot.lane.b32.xlu1 %v6331_v32, %s7542_s22  ;;  %v558_v46 = vld [vmem:[#allocation3 + $0x18] sm:$0xff] }
 0x23c   :  { %6432 = vrot.lane.b32.xlu2 %v6331_v32, %s7541_s21 }
 0x23d   :  { %v8085_v40 = vpop.permute.xlu1 %6302 }
 0x23e   :  { %v6305_v58 = vunpack.i.h.bf16 %v8085_v40  ;;  %v6304_v22 = vunpack.i.l.bf16 %v8085_v40 }
 0x243   :  { %1517 = vperm.xlu0 %6295, %v534_v63   ;;  %1512 = vperm.xlu1 %6293, %v533_v14  }
 0x244   :  { %6447 = vrot.lane.b32.xlu2 %v8014_v36, %s7542_s22 }
 0x24b   :  { %1532 = vperm.xlu0 %6295, %v537_v18   ;;  %1527 = vperm.xlu1 %6293, %v536_v17  }
 0x24c   :  { %1507 = vperm.xlu2 %6294, %v532_v19  }
 0x24d   :  { %v6308_v55 = vpop.permute.xlu1 %6307 }
 0x24e   :  { %v6310_v57 = vunpack.i.h.bf16 %v6308_v55  ;;  %v6309_v28 = vunpack.i.l.bf16 %v6308_v55 }
 0x253   :  { %1731 = vperm.xlu0 %6295, %v1549_v33   ;;  %1736 = vperm.xlu1 %6293, %v1550_v34   ;;  %v659_v33 = vld [vmem:[#allocation3 + $0x48] sm:$0xff] }
 0x254   :  { %1522 = vperm.xlu2 %6294, %v535_v35  }
 0x256   :  { %v6323_v37 = vpop.permute.xlu2 %6322 }
 0x257   :  { %v6325_v39 = vunpack.i.h.bf16 %v6323_v37  ;;  %v6324_v45 = vunpack.i.l.bf16 %v6323_v37 }
 0x259   :  { %596 = vmatpush.msra.mxu2 %v6325_v39  ;;  %v559_v39 = vld [vmem:[#allocation3 + $0x20] sm:$0xff] }
 0x25b   :  { %597 = vmatpush.msra.mxu2 %v6324_v45  ;;  %1741 = vperm.xlu0 %6295, %v1551_v42  }
 0x25c   :  { %1751 = vperm.xlu1 %6293, %v1553_v48   ;;  %1537 = vperm.xlu2 %6294, %v538_v61   ;;  %v660_v61 = vld [vmem:[#allocation3 + $0x50] sm:$0xff] }
 0x25d   :  { %v6313_v49 = vpop.permute.xlu0 %6312 }
 0x25e   :  { %v6328_v52 = vpop.permute.xlu2 %6327  ;;  %v6315_v54 = vunpack.i.h.bf16 %v6313_v49  ;;  %v6314_v38 = vunpack.i.l.bf16 %v6313_v49 }
 0x25f   :  { %v6330_v15 = vunpack.i.h.bf16 %v6328_v52  ;;  %v6329_v50 = vunpack.i.l.bf16 %v6328_v52  ;;  %v560_v52 = vld [vmem:[#allocation3 + $0x28] sm:$0xff] }
 0x260   :  { %598 = vmatpush.msra.mxu2 %v6315_v54 }
 0x262   :  { %599 = vmatpush.msra.mxu2 %v6314_v38  ;;  %v661_v38 = vld [vmem:[#allocation3 + $0x58] sm:$0xff] }
 0x263   :  { %1756 = vperm.xlu0 %6295, %v1554_v2  }
 0x264   :  { %1774 = vperm.xlu1 %6293, %v1556_v51   ;;  %1726 = vperm.xlu2 %6294, %v1548_v23  }
 0x265   :  { %600 = vmatpush.msra.mxu2 %v6310_v57  ;;  %v6318_v59 = vpop.permute.xlu0 %6317 }
 0x266   :  { %v6343_v60 = vpop.permute.xlu2 %6342  ;;  %v6320_v36 = vunpack.i.h.bf16 %v6318_v59  ;;  %v6319_v41 = vunpack.i.l.bf16 %v6318_v59 }
 0x267   :  { %601 = vmatpush.msra.mxu2 %v6309_v28  ;;  %v6345_v30 = vunpack.i.h.bf16 %v6343_v60  ;;  %v6344_v32 = vunpack.i.l.bf16 %v6343_v60  ;;  %v561_v28 = vld [vmem:[#allocation3 + $0x30] sm:$0xff] }
 0x269   :  { %602 = vmatpush.msra.mxu2 %v6300_v62 }
 0x26b   :  { %603 = vmatpush.msra.mxu2 %v6299_v1  ;;  %1779 = vperm.xlu0 %6295, %v1557_v0  }
 0x26c   :  { %1746 = vperm.xlu2 %6294, %v1552_v3   ;;  %5965 = vmatmul.msk.f32.vlgmr.msra.gmra.mxu2 %vm563_vm10, %v555_v4  ;;  %v662_v3 = vld [vmem:[#allocation3 + $0x60] sm:$0xff] }
 0x26d   :  { %v6333_v5 = vpop.permute.xlu1 %6332  ;;  %v6338_v7 = vpop.permute.xlu0 %6337 }
 0x26e   :  { %v8112_v8 = vpop.permute.xlu2 %6352  ;;  %v6335_v9 = vunpack.i.h.bf16 %v6333_v5  ;;  %v6334_v11 = vunpack.i.l.bf16 %v6333_v5  ;;  %v6340_v14 = vunpack.i.h.bf16 %v6338_v7  ;;  %v6339_v56 = vunpack.i.l.bf16 %v6338_v7 }
 0x26f   :  { %v6355_v40 = vunpack.i.h.bf16 %v8112_v8  ;;  %v6354_v48 = vunpack.i.l.bf16 %v8112_v8 }
 0x270   :  { %698 = vmatpush.msra.mxu3 %v6335_v9 }
 0x272   :  { %699 = vmatpush.msra.mxu3 %v6334_v11 }
 0x274   :  { %1761 = vperm.xlu2 %6294, %v1555_v12   ;;  %5966 = vmatmul.msk.f32.gmra.mxu2 %vm563_vm10, %v556_v13  ;;  %v562_v12 = vld [vmem:[#allocation3 + $0x38] sm:$0xff] }
 0x275   :  { %700 = vmatpush.msra.mxu3 %v6330_v15  ;;  %v6348_v16 = vpop.permute.xlu1 %6347  ;;  %v6363_v6 = vpop.permute.xlu0 %6362 }
 0x276   :  { %v6373_v20 = vpop.permute.xlu2 %6372  ;;  %v6365_v21 = vunpack.i.h.bf16 %v6363_v6  ;;  %v6364_v44 = vunpack.i.l.bf16 %v6363_v6  ;;  %v6350_v43 = vunpack.i.h.bf16 %v6348_v16  ;;  %v6349_v25 = vunpack.i.l.bf16 %v6348_v16 }
 0x277   :  { %701 = vmatpush.msra.mxu3 %v6329_v50  ;;  %v6375_v29 = vunpack.i.h.bf16 %v6373_v20  ;;  %v6374_v31 = vunpack.i.l.bf16 %v6373_v20 }
 0x278   :  { %809 = vmatpush.msrb.mxu2 %v6365_v21 }
 0x279   :  { %702 = vmatpush.msra.mxu3 %v6320_v36  ;;  %v663_v36 = vld [vmem:[#allocation3 + $0x68] sm:$0xff] }
 0x27a   :  { %810 = vmatpush.msrb.mxu2 %v6364_v44 }
 0x27b   :  { %703 = vmatpush.msra.mxu3 %v6319_v41 }
 0x27c   :  { %5967 = vmatmul.msk.f32.gmra.mxu2 %vm563_vm10, %v557_v10 }
 0x27d   :  { %704 = vmatpush.msra.mxu3 %v6305_v58  ;;  %811 = vmatpush.msrb.mxu2 %v6350_v43  ;;  %v6358_v24 = vpop.permute.xlu1 %6357  ;;  %v6368_v53 = vpop.permute.xlu0 %6367  ;;  %v975_v58 = vld [vmem:[#allocation3 + $0x100] sm:$0xff] }
 0x27e   :  { %v8121_v27 = vpop.permute.xlu2 %6387  ;;  %v6370_v63 = vunpack.i.h.bf16 %v6368_v53  ;;  %v6369_v19 = vunpack.i.l.bf16 %v6368_v53  ;;  %v6360_v35 = vunpack.i.h.bf16 %v6358_v24  ;;  %v6359_v37 = vunpack.i.l.bf16 %v6358_v24  ;;  %v769_v24 = vld [vmem:[#allocation3 + $0x80] sm:$0xff]  ;;  %6000 = vmatmul.msk.f32.vlgmr.msrb.gmra.mxu1 %vm563_vm10, %v975_v58 }
 0x27f   :  { %705 = vmatpush.msra.mxu3 %v6304_v22  ;;  %812 = vmatpush.msrb.mxu2 %v6349_v25  ;;  %v6390_v13 = vunpack.i.h.bf16 %v8121_v27  ;;  %v6389_v6 = vunpack.i.l.bf16 %v8121_v27  ;;  %v1073_v25 = vld [vmem:[#allocation3 + $0x140] sm:$0xff]  ;;  %v664_v27 = vld [vmem:[#allocation3 + $0x70] sm:$0xff] }
 0x280   :  { %5973 = vmatmul.msk.f32.vlgmr.msra.gmra.mxu3 %vm563_vm10, %v658_v26  ;;  %v1410_v58 = vld [vmem:[#allocation3 + $0x220] sm:$0xff] }
 0x281   :  { %920 = vmatpush.msrb.mxu3 %v6375_v29  ;;  %813 = vmatpush.msrb.mxu2 %v6345_v30 }
 0x283   :  { %921 = vmatpush.msrb.mxu3 %v6374_v31  ;;  %814 = vmatpush.msrb.mxu2 %v6344_v32  ;;  %v976_v32 = vld [vmem:[#allocation3 + $0x108] sm:$0xff] }
 0x284   :  { %5968 = vmatmul.msk.f32.gmra.mxu2 %vm563_vm10, %v558_v46  ;;  %v770_v46 = vld [vmem:[#allocation3 + $0x88] sm:$0xff] }
 0x285   :  { %922 = vmatpush.msrb.mxu3 %v6370_v63  ;;  %815 = vmatpush.msrb.mxu2 %v6340_v14  ;;  %v8125_v18 = vpop.permute.xlu1 %6377  ;;  %v8127_v17 = vpop.permute.xlu0 %6382 }
 0x286   :  { %v6398_v34 = vpop.permute.xlu2 %6397  ;;  %v6385_v44 = vunpack.i.h.bf16 %v8127_v17  ;;  %v6384_v10 = vunpack.i.l.bf16 %v8127_v17  ;;  %v6380_v53 = vunpack.i.h.bf16 %v8125_v18  ;;  %v6379_v22 = vunpack.i.l.bf16 %v8125_v18  ;;  %6001 = vmatmul.msk.f32.gmra.mxu1 %vm563_vm10, %v976_v32  ;;  %v1074_v17 = vld [vmem:[#allocation3 + $0x148] sm:$0xff]  ;;  %v1412_v32 = vld [vmem:[#allocation3 + $0x230] sm:$0xff] }
 0x287   :  { %923 = vmatpush.msrb.mxu3 %v6369_v19  ;;  %816 = vmatpush.msrb.mxu2 %v6339_v56  ;;  %v6400_v7 = vunpack.i.h.bf16 %v6398_v34  ;;  %v6399_v9 = vunpack.i.l.bf16 %v6398_v34  ;;  %v665_v19 = vld [vmem:[#allocation3 + $0x78] sm:$0xff]  ;;  %v977_v34 = vld [vmem:[#allocation3 + $0x110] sm:$0xff] }
 0x288   :  { %5974 = vmatmul.msk.f32.gmra.mxu3 %vm563_vm10, %v659_v33 }
 0x289   :  { %924 = vmatpush.msrb.mxu3 %v6360_v35  ;;  %v771_v35 = vld [vmem:[#allocation3 + $0x90] sm:$0xff] }
 0x28b   :  { %925 = vmatpush.msrb.mxu3 %v6359_v37 }
 0x28c   :  { %5969 = vmatmul.msk.f32.gmra.mxu2 %vm563_vm10, %v559_v39 }
 0x28d   :  { %926 = vmatpush.msrb.mxu3 %v6355_v40  ;;  %v6403_v42 = vpop.permute.xlu1 %6402  ;;  %v6393_v45 = vpop.permute.xlu0 %6392  ;;  %v1075_v40 = vld [vmem:[#allocation3 + $0x150] sm:$0xff] }
 0x28e   :  { %v8133_v49 = vpop.permute.xlu2 %6407  ;;  %v6405_v60 = vunpack.i.h.bf16 %v6403_v42  ;;  %v6404_v62 = vunpack.i.l.bf16 %v6403_v42  ;;  %v6395_v15 = vunpack.i.h.bf16 %v6393_v45  ;;  %v6394_v50 = vunpack.i.l.bf16 %v6393_v45  ;;  %6002 = vmatmul.msk.f32.gmra.mxu1 %vm563_vm10, %v977_v34  ;;  %v880_v42 = vld [vmem:[#allocation3 + $0xc0] sm:$0xff]  ;;  %v978_v45 = vld [vmem:[#allocation3 + $0x118] sm:$0xff] }
 0x28f   :  { %927 = vmatpush.msrb.mxu3 %v6354_v48  ;;  %v6410_v41 = vunpack.i.h.bf16 %v8133_v49  ;;  %v6409_v43 = vunpack.i.l.bf16 %v8133_v49  ;;  %v772_v48 = vld [vmem:[#allocation3 + $0x98] sm:$0xff]  ;;  %v881_v49 = vld [vmem:[#allocation3 + $0xc8] sm:$0xff] }
 0x290   :  { %5975 = vmatmul.msk.f32.gmra.mxu3 %vm563_vm10, %v660_v61  ;;  %v1076_v61 = vld [vmem:[#allocation3 + $0x158] sm:$0xff] }
 0x294   :  { %5970 = vmatmul.msk.f32.gmra.mxu2 %vm563_vm10, %v560_v52  ;;  %v979_v52 = vld [vmem:[#allocation3 + $0x120] sm:$0xff] }
 0x295   :  { %v6413_v54 = vpop.permute.xlu1 %6412  ;;  %v6423_v55 = vpop.permute.xlu0 %6422 }
 0x296   :  { %v6433_v2 = vpop.permute.xlu2 %6432  ;;  %v6425_v51 = vunpack.i.h.bf16 %v6423_v55  ;;  %v6424_v57 = vunpack.i.l.bf16 %v6423_v55  ;;  %v6415_v16 = vunpack.i.h.bf16 %v6413_v54  ;;  %v6414_v20 = vunpack.i.l.bf16 %v6413_v54  ;;  %6003 = vmatmul.msk.f32.gmra.mxu1 %vm563_vm10, %v978_v45  ;;  %v773_v54 = vld [vmem:[#allocation3 + $0xa0] sm:$0xff]  ;;  %v1302_v45 = vld [vmem:[#allocation3 + $0x1f8] sm:$0xff] }
 0x297   :  { %v6435_v23 = vunpack.i.h.bf16 %v6433_v2  ;;  %v6434_v59 = vunpack.i.l.bf16 %v6433_v2  ;;  %v1077_v55 = vld [vmem:[#allocation3 + $0x160] sm:$0xff]  ;;  %v980_v2 = vld [vmem:[#allocation3 + $0x128] sm:$0xff] }
 0x298   :  { %5976 = vmatmul.msk.f32.gmra.mxu3 %vm563_vm10, %v661_v38  ;;  %1224 = vmatpush.msra.mxu2 %v6425_v51  ;;  %v882_v38 = vld [vmem:[#allocation3 + $0xd0] sm:$0xff]  ;;  %v774_v51 = vld [vmem:[#allocation3 + $0xa8] sm:$0xff] }
 0x299   :  { %1335 = vmatpush.msra.mxu3 %v6435_v23  ;;  %v1078_v23 = vld [vmem:[#allocation3 + $0x168] sm:$0xff] }
 0x29a   :  { %1225 = vmatpush.msra.mxu2 %v6424_v57  ;;  %v883_v57 = vld [vmem:[#allocation3 + $0xd8] sm:$0xff] }
 0x29b   :  { %1336 = vmatpush.msra.mxu3 %v6434_v59  ;;  %v981_v59 = vld [vmem:[#allocation3 + $0x130] sm:$0xff] }
 0x29c   :  { %5971 = vmatmul.msk.f32.gmra.mxu2 %vm563_vm10, %v561_v28  ;;  %v775_v28 = vld [vmem:[#allocation3 + $0xb0] sm:$0xff] }
 0x29d   :  { %1226 = vmatpush.msra.mxu2 %v6405_v60  ;;  %v6418_v0 = vpop.permute.xlu1 %6417  ;;  %v6428_v1 = vpop.permute.xlu0 %6427  ;;  %v1079_v60 = vld [vmem:[#allocation3 + $0x170] sm:$0xff] }
 0x29e   :  { %v6430_v4 = vunpack.i.h.bf16 %v6428_v1  ;;  %v6420_v5 = vunpack.i.h.bf16 %v6418_v0  ;;  %v6419_v8 = vunpack.i.l.bf16 %v6418_v0  ;;  %v6429_v11 = vunpack.i.l.bf16 %v6428_v1  ;;  %v6448_v30 = vpop.permute.xlu2 %6447  ;;  %6004 = vmatmul.msk.f32.gmra.mxu1 %vm563_vm10, %v979_v52  ;;  %v982_v0 = vld [vmem:[#allocation3 + $0x138] sm:$0xff] }
 0x29f   :  { %1227 = vmatpush.msra.mxu2 %v6404_v62  ;;  %v6450_v63 = vunpack.i.h.bf16 %v6448_v30  ;;  %v6449_v18 = vunpack.i.l.bf16 %v6448_v30  ;;  %v884_v62 = vld [vmem:[#allocation3 + $0xe0] sm:$0xff]  ;;  %v776_v1 = vld [vmem:[#allocation3 + $0xb8] sm:$0xff] }
 0x2a0   :  { %5977 = vmatmul.msk.f32.gmra.mxu3 %vm563_vm10, %v662_v3  ;;  %1113 = vmatpush.msrb.mxu0 %v6420_v5  ;;  %v1080_v3 = vld [vmem:[#allocation3 + $0x178] sm:$0xff]  ;;  %v1406_v5 = vld [vmem:[#allocation3 + $0x200] sm:$0xff] }
 0x2a1   :  { %1228 = vmatpush.msra.mxu2 %v6400_v7  ;;  %1337 = vmatpush.msra.mxu3 %v6430_v4  ;;  %v885_v4 = vld [vmem:[#allocation3 + $0xe8] sm:$0xff]  ;;  %v1184_v7 = vld [vmem:[#allocation3 + $0x180] sm:$0xff] }
 0x2a2   :  { %1114 = vmatpush.msrb.mxu0 %v6419_v8  ;;  %v886_v8 = vld [vmem:[#allocation3 + $0xf0] sm:$0xff] }
 0x2a3   :  { %1229 = vmatpush.msra.mxu2 %v6399_v9  ;;  %1338 = vmatpush.msra.mxu3 %v6429_v11  ;;  %v1407_v11 = vld [vmem:[#allocation3 + $0x208] sm:$0xff] }
 0x2a4   :  { %5972 = vmatmul.msk.f32.gmra.mxu2 %vm563_vm10, %v562_v12  ;;  %1115 = vmatpush.msrb.mxu0 %v6390_v13  ;;  %v1185_v12 = vld [vmem:[#allocation3 + $0x188] sm:$0xff]  ;;  %v887_v13 = vld [vmem:[#allocation3 + $0xf8] sm:$0xff] }
 0x2a5   :  { %1230 = vmatpush.msra.mxu2 %v6395_v15  ;;  %1339 = vmatpush.msra.mxu3 %v6415_v16  ;;  %v6438_v21 = vpop.permute.xlu1 %6437  ;;  %v6443_v14 = vpop.permute.xlu0 %6442  ;;  %v1408_v16 = vld [vmem:[#allocation3 + $0x210] sm:$0xff] }
 0x2a6   :  { %1116 = vmatpush.msrb.mxu0 %v6389_v6  ;;  %v6445_v56 = vunpack.i.h.bf16 %v6443_v14  ;;  %v6444_v33 = vunpack.i.l.bf16 %v6443_v14  ;;  %v6440_v37 = vunpack.i.h.bf16 %v6438_v21  ;;  %v6439_v39 = vunpack.i.l.bf16 %v6438_v21  ;;  %6005 = vmatmul.msk.f32.gmra.mxu1 %vm563_vm10, %v980_v2  ;;  %v1186_v6 = vld [vmem:[#allocation3 + $0x190] sm:$0xff]  ;;  %v1409_v21 = vld [vmem:[#allocation3 + $0x218] sm:$0xff] }
 0x2a7   :  { %1231 = vmatpush.msra.mxu2 %v6394_v50  ;;  %1340 = vmatpush.msra.mxu3 %v6414_v20  ;;  %v1295_v50 = vld [vmem:[#allocation3 + $0x1c0] sm:$0xff] }
 0x2a8   :  { %5978 = vmatmul.msk.f32.gmra.mxu3 %vm563_vm10, %v663_v36  ;;  %1117 = vmatpush.msrb.mxu0 %v6385_v44  ;;  %v1187_v36 = vld [vmem:[#allocation3 + $0x198] sm:$0xff] }
 0x2a9   :  { %1341 = vmatpush.msra.mxu3 %v6410_v41  ;;  %v1296_v41 = vld [vmem:[#allocation3 + $0x1c8] sm:$0xff] }
 0x2aa   :  { %1118 = vmatpush.msrb.mxu0 %v6384_v10 }
 0x2ab   :  { %1342 = vmatpush.msra.mxu3 %v6409_v43  ;;  %v1188_v43 = vld [vmem:[#allocation3 + $0x1a0] sm:$0xff] }
 0x2ac   :  { %5982 = vmatmul.msk.f32.vlgmr.msrb.gmra.mxu2 %vm563_vm10, %v769_v24  ;;  %1119 = vmatpush.msrb.mxu0 %v6380_v53  ;;  %v1297_v53 = vld [vmem:[#allocation3 + $0x1d0] sm:$0xff] }
 0x2ad   :  { %v6453_v26 = vpop.permute.xlu1 %6452 }
 0x2ae   :  { %v6455_v29 = vunpack.i.h.bf16 %v6453_v26  ;;  %1120 = vmatpush.msrb.mxu0 %v6379_v22  ;;  %v6454_v31 = vunpack.i.l.bf16 %v6453_v26  ;;  %6006 = vmatmul.msk.f32.gmra.mxu1 %vm563_vm10, %v981_v59  ;;  %v1411_v26 = vld [vmem:[#allocation3 + $0x228] sm:$0xff] }
 0x2af   :  { %6008 = vmatmul.msk.f32.vlgmr.msrb.gmra.mxu0 %vm563_vm10, %v1073_v25  ;;  %v1189_v25 = vld [vmem:[#allocation3 + $0x1a8] sm:$0xff] }
 0x2b0   :  { %5979 = vmatmul.msk.f32.gmra.mxu3 %vm563_vm10, %v664_v27  ;;  %1446 = vmatpush.msra.mxu1 %v6455_v29  ;;  %v1298_v29 = vld [vmem:[#allocation3 + $0x1d8] sm:$0xff] }
 0x2b2   :  { %1447 = vmatpush.msra.mxu1 %v6454_v31  ;;  %v1190_v31 = vld [vmem:[#allocation3 + $0x1b0] sm:$0xff] }
 0x2b4   :  { %5983 = vmatmul.msk.f32.gmra.mxu2 %vm563_vm10, %v770_v46  ;;  %1448 = vmatpush.msra.mxu1 %v6450_v63  ;;  %v1299_v63 = vld [vmem:[#allocation3 + $0x1e0] sm:$0xff] }
 0x2b6   :  { %1449 = vmatpush.msra.mxu1 %v6449_v18  ;;  %v1191_v18 = vld [vmem:[#allocation3 + $0x1b8] sm:$0xff] }
 0x2b7   :  { %6009 = vmatmul.msk.f32.gmra.mxu0 %vm563_vm10, %v1074_v17  ;;  %6007 = vmatmul.msk.f32.gmra.mxu1 %vm563_vm10, %v982_v0  ;;  %v1413_v17 = vld [vmem:[#allocation3 + $0x238] sm:$0xff] }
 0x2b8   :  { %5980 = vmatmul.msk.f32.gmra.mxu3 %vm563_vm10, %v665_v19  ;;  %1450 = vmatpush.msra.mxu1 %v6445_v56  ;;  %v1300_v56 = vld [vmem:[#allocation3 + $0x1e8] sm:$0xff] }
 0x2ba   :  { %1451 = vmatpush.msra.mxu1 %v6444_v33 }
 0x2bc   :  { %5984 = vmatmul.msk.f32.gmra.mxu2 %vm563_vm10, %v771_v35  ;;  %1452 = vmatpush.msra.mxu1 %v6440_v37  ;;  %v1301_v37 = vld [vmem:[#allocation3 + $0x1f0] sm:$0xff] }
 0x2be   :  { %1453 = vmatpush.msra.mxu1 %v6439_v39 }
 0x2bf   :  { %6010 = vmatmul.msk.f32.gmra.mxu0 %vm563_vm10, %v1075_v40  ;;  %6035 = vmatmul.msk.f32.vlgmr.msra.gmra.mxu1 %vm563_vm10, %v1406_v5 }
 0x2c0   :  { %5991 = vmatmul.msk.f32.vlgmr.msrb.gmra.mxu3 %vm563_vm10, %v880_v42 }
 0x2c4   :  { %5985 = vmatmul.msk.f32.gmra.mxu2 %vm563_vm10, %v772_v48 }
 0x2c7   :  { %6011 = vmatmul.msk.f32.gmra.mxu0 %vm563_vm10, %v1076_v61  ;;  %6036 = vmatmul.msk.f32.gmra.mxu1 %vm563_vm10, %v1407_v11 }
 0x2c8   :  { %5992 = vmatmul.msk.f32.gmra.mxu3 %vm563_vm10, %v881_v49 }
 0x2cc   :  { %5986 = vmatmul.msk.f32.gmra.mxu2 %vm563_vm10, %v773_v54 }
 0x2cf   :  { %6012 = vmatmul.msk.f32.gmra.mxu0 %vm563_vm10, %v1077_v55  ;;  %6037 = vmatmul.msk.f32.gmra.mxu1 %vm563_vm10, %v1408_v16 }
 0x2d0   :  { %5993 = vmatmul.msk.f32.gmra.mxu3 %vm563_vm10, %v882_v38 }
 0x2d4   :  { %5987 = vmatmul.msk.f32.gmra.mxu2 %vm563_vm10, %v774_v51 }
 0x2d7   :  { %6013 = vmatmul.msk.f32.gmra.mxu0 %vm563_vm10, %v1078_v23  ;;  %6038 = vmatmul.msk.f32.gmra.mxu1 %vm563_vm10, %v1409_v21 }
 0x2d8   :  { %5994 = vmatmul.msk.f32.gmra.mxu3 %vm563_vm10, %v883_v57 }
 0x2dc   :  { %5988 = vmatmul.msk.f32.gmra.mxu2 %vm563_vm10, %v775_v28 }
 0x2df   :  { %6014 = vmatmul.msk.f32.gmra.mxu0 %vm563_vm10, %v1079_v60  ;;  %6039 = vmatmul.msk.f32.gmra.mxu1 %vm563_vm10, %v1410_v58 }
 0x2e0   :  { %5995 = vmatmul.msk.f32.gmra.mxu3 %vm563_vm10, %v884_v62 }
 0x2e4   :  { %5989 = vmatmul.msk.f32.gmra.mxu2 %vm563_vm10, %v776_v1 }
 0x2e7   :  { %6015 = vmatmul.msk.f32.gmra.mxu0 %vm563_vm10, %v1080_v3  ;;  %6040 = vmatmul.msk.f32.gmra.mxu1 %vm563_vm10, %v1411_v26 }
 0x2e8   :  { %5996 = vmatmul.msk.f32.gmra.mxu3 %vm563_vm10, %v885_v4 }
 0x2ec   :  { %6017 = vmatmul.msk.f32.vlgmr.msra.gmra.mxu2 %vm563_vm10, %v1184_v7 }
 0x2ef   :  { %v8184_v9 = vpop.f32.mrf.mxu2  ;;  %6041 = vmatmul.msk.f32.gmra.mxu1 %vm563_vm10, %v1412_v32 }
 0x2f0   :  { %5997 = vmatmul.msk.f32.gmra.mxu3 %vm563_vm10, %v886_v8  ;;  %v8273_v8 = vld [vmem:[%s12439_s16 + $0x1] ss:$0 sm:$0xff] }
 0x2f4   :  { %6018 = vmatmul.msk.f32.gmra.mxu2 %vm563_vm10, %v1185_v12  ;;  %v8278_v12 = vld [vmem:[%s12439_s16] ss:$0 sm:$0xff] }
 0x2f7   :  { %v8189_v15 = vpop.f32.mrf.mxu2  ;;  %6042 = vmatmul.msk.f32.gmra.mxu1 %vm563_vm10, %v1413_v17 }
 0x2f8   :  { %5998 = vmatmul.msk.f32.gmra.mxu3 %vm563_vm10, %v887_v13  ;;  %v8283_v13 = vld [vmem:[%s12439_s16 + $0x2] ss:$0 sm:$0xff] }
 0x2fb   :  { %v1024_v33 = vpop.f32.mrf.mxu1 }
 0x2fc   :  { %6019 = vmatmul.msk.f32.gmra.mxu2 %vm563_vm10, %v1186_v6  ;;  %v8290_v6 = vld [vmem:[%s12439_s16 + $0x3] ss:$0 sm:$0xff] }
 0x2ff   :  { %v8194_v20 = vpop.f32.mrf.mxu2 }
 0x300   :  { %6026 = vmatmul.msk.f32.vlgmr.msra.gmra.mxu3 %vm563_vm10, %v1295_v50 }
 0x303   :  { %v8198_v44 = vpop.f32.mrf.mxu3  ;;  %v8234_v39 = vpop.f32.mrf.mxu1 }
 0x304   :  { %6020 = vmatmul.msk.f32.gmra.mxu2 %vm563_vm10, %v1187_v36  ;;  %v736_v16 = vmul.f32 %v8273_v8, %v8198_v44  ;;  %v633_v36 = vmul.f32 %v8278_v12, %v8184_v9  ;;  %v634_v9 = vmul.f32 %v8278_v12, %v8189_v15  ;;  %v8321_v15 = vld [vmem:[%s12439_s16 + $0x7] ss:$0 sm:$0xff] }
 0x306   :  { %v744_v58 = vadd.f32 %v736_v16, %v633_v36 }
 0x307   :  { %v8201_v10 = vpop.f32.mrf.mxu2 }
 0x308   :  { %6027 = vmatmul.msk.f32.gmra.mxu3 %vm563_vm10, %v1296_v41 }
 0x30b   :  { %v8205_v24 = vpop.f32.mrf.mxu3  ;;  %v8239_v61 = vpop.f32.mrf.mxu1 }
 0x30c   :  { %6021 = vmatmul.msk.f32.gmra.mxu2 %vm563_vm10, %v1188_v43  ;;  %v737_v44 = vmul.f32 %v8273_v8, %v8205_v24 }
 0x30e   :  { %v745_v24 = vadd.f32 %v737_v44, %v634_v9 }
 0x30f   :  { %v8208_v22 = vpop.f32.mrf.mxu2 }
 0x310   :  { %6028 = vmatmul.msk.f32.gmra.mxu3 %vm563_vm10, %v1297_v53 }
 0x313   :  { %v8212_v27 = vpop.f32.mrf.mxu3  ;;  %v8244_v54 = vpop.f32.mrf.mxu1 }
 0x314   :  { %6022 = vmatmul.msk.f32.gmra.mxu2 %vm563_vm10, %v1189_v25 }
 0x317   :  { %v8215_v30 = vpop.f32.mrf.mxu2 }
 0x318   :  { %6029 = vmatmul.msk.f32.gmra.mxu3 %vm563_vm10, %v1298_v29 }
 0x31b   :  { %v8219_v46 = vpop.f32.mrf.mxu3  ;;  %v8248_v51 = vpop.f32.mrf.mxu1 }
 0x31c   :  { %6023 = vmatmul.msk.f32.gmra.mxu2 %vm563_vm10, %v1190_v31  ;;  %v8303_v31 = vld [vmem:[%s12439_s16 + $0x5] ss:$0 sm:$0xff] }
 0x31f   :  { %v8222_v14 = vpop.f32.mrf.mxu2 }
 0x320   :  { %6030 = vmatmul.msk.f32.gmra.mxu3 %vm563_vm10, %v1299_v63 }
 0x323   :  { %v8226_v19 = vpop.f32.mrf.mxu3  ;;  %v8252_v59 = vpop.f32.mrf.mxu1 }
 0x324   :  { %6024 = vmatmul.msk.f32.gmra.mxu2 %vm563_vm10, %v1191_v18  ;;  %v8313_v18 = vld [vmem:[%s12439_s16 + $0x6] ss:$0 sm:$0xff] }
 0x327   :  { %v8229_v34 = vpop.f32.mrf.mxu2 }
 0x328   :  { %6031 = vmatmul.msk.f32.gmra.mxu3 %vm563_vm10, %v1300_v56 }
 0x32b   :  { %v8232_v35 = vpop.f32.mrf.mxu3  ;;  %v8260_v0 = vpop.f32.mrf.mxu1 }
 0x32c   :  { %v1122_v7 = vpop.f32.mrf.mxu0 }
 0x32f   :  { %v818_v40 = vpop.f32.mrf.mxu2 }
 0x330   :  { %6032 = vmatmul.msk.f32.gmra.mxu3 %vm563_vm10, %v1301_v37  ;;  %v847_v41 = vmul.f32 %v8283_v13, %v818_v40  ;;  %v1151_v37 = vmul.f32 %v8303_v31, %v1122_v7 }
 0x332   :  { %v855_v25 = vadd.f32 %v847_v41, %v744_v58 }
 0x333   :  { %v8237_v42 = vpop.f32.mrf.mxu3 }
 0x334   :  { %v8266_v4 = vpop.f32.mrf.mxu1  ;;  %v1125_v53 = vpop.f32.mrf.mxu0 }
 0x337   :  { %v821_v48 = vpop.f32.mrf.mxu2 }
 0x338   :  { %6033 = vmatmul.msk.f32.gmra.mxu3 %vm563_vm10, %v1302_v45  ;;  %v848_v63 = vmul.f32 %v8283_v13, %v821_v48  ;;  %v8326_v48 = vld [vmem:[%s12439_s16 + $0x8] ss:$0 sm:$0xff]  ;;  %s7548_s16 = smov 111  }
 0x33a   :  { %v856_v45 = vadd.f32 %v848_v63, %v745_v24 }
 0x33b   :  { %v8242_v49 = vpop.f32.mrf.mxu3 }
 0x33c   :  { %v1455_v21 = vpop.f32.mrf.mxu1  ;;  %v1128_v16 = vpop.f32.mrf.mxu0 }
 0x33d   :  { %v1484_v44 = vmul.f32 %v8326_v48, %v1455_v21 }
 0x33f   :  { %v824_v52 = vpop.f32.mrf.mxu2 }
 0x340   :  { %v849_v58 = vmul.f32 %v8283_v13, %v824_v52  ;;  %v739_v52 = vmul.f32 %v8273_v8, %v8219_v46 }
 0x343   :  { %v929_v55 = vpop.f32.mrf.mxu3 }
 0x344   :  { %v958_v43 = vmul.f32 %v8290_v6, %v929_v55  ;;  %v1458_v17 = vpop.f32.mrf.mxu1 }
 0x346   :  { %v966_v29 = vadd.f32 %v958_v43, %v855_v25 }
 0x347   :  { %v8246_v38 = vpop.f32.mrf.mxu2 }
 0x348   :  { %v1048_v56 = vadd.f32 %v1024_v33, %v966_v29  ;;  %v738_v33 = vmul.f32 %v8273_v8, %v8212_v27  ;;  %v1152_v27 = vmul.f32 %v8303_v31, %v1125_v53  ;;  %v1131_v53 = vpop.f32.mrf.mxu0 }
 0x34a   :  { %v1159_v7 = vadd.f32 %v1151_v37, %v1048_v56 }
 0x34b   :  { %v932_v2 = vpop.f32.mrf.mxu3 }
 0x34c   :  { %v959_v40 = vmul.f32 %v8290_v6, %v932_v2  ;;  %v635_v2 = vmul.f32 %v8278_v12, %v8194_v20  ;;  %v1461_v56 = vpop.f32.mrf.mxu1 }
 0x34e   :  { %v967_v36 = vadd.f32 %v959_v40, %v856_v45  ;;  %v746_v29 = vadd.f32 %v738_v33, %v635_v2  ;;  %v1503_v45 = vpop.permute.xlu0 %1502  ;;  %v1485_v2 = vmul.f32 %v8326_v48, %v1458_v17 }
 0x34f   :  { %v8250_v23 = vpop.f32.mrf.mxu2 }
 0x350   :  { %v1049_v9 = vadd.f32 %v8234_v39, %v967_v36  ;;  %v857_v37 = vadd.f32 %v849_v58, %v746_v29  ;;  %v636_v39 = vmul.f32 %v8278_v12, %v8201_v10 }
 0x352   :  { %v747_v46 = vadd.f32 %v739_v52, %v636_v39 }
 0x353   :  { %v935_v57 = vpop.f32.mrf.mxu3 }
 0x354   :  { %v960_v63 = vmul.f32 %v8290_v6, %v935_v57  ;;  %v850_v57 = vmul.f32 %v8283_v13, %v8246_v38 }
 0x357   :  { %v8254_v28 = vpop.f32.mrf.mxu2 }
 0x35b   :  { %v8256_v60 = vpop.f32.mrf.mxu3 }
 0x35c   :  { %v961_v10 = vmul.f32 %v8290_v6, %v8256_v60  ;;  %v851_v60 = vmul.f32 %v8283_v13, %v8250_v23 }
 0x35f   :  { %v8258_v62 = vpop.f32.mrf.mxu2 }
 0x363   :  { %v8262_v1 = vpop.f32.mrf.mxu3 }
 0x367   :  { %v8264_v3 = vpop.f32.mrf.mxu2 }
 0x36b   :  { %v8268_v5 = vpop.f32.mrf.mxu3 }
 0x36f   :  { %v1233_v11 = vpop.f32.mrf.mxu2 }
 0x370   :  { %v1262_v55 = vmul.f32 %v8313_v18, %v1233_v11 }
 0x372   :  { %v1270_v43 = vadd.f32 %v1262_v55, %v1159_v7  ;;  %v1160_v55 = vadd.f32 %v1152_v27, %v1049_v9  ;;  %v968_v7 = vadd.f32 %v960_v63, %v857_v37  ;;  %v1508_v9 = vpop.permute.xlu2 %1507  ;;  %v740_v27 = vmul.f32 %v8273_v8, %v8226_v19  ;;  %v1464_v63 = vpop.f32.mrf.mxu1 }
 0x373   :  { %v8292_v50 = vpop.f32.mrf.mxu3 }
 0x374   :  { %v1050_v58 = vadd.f32 %v8239_v61, %v968_v7  ;;  %v637_v61 = vmul.f32 %v8278_v12, %v8208_v22  ;;  %v962_v22 = vmul.f32 %v8290_v6, %v8262_v1  ;;  %v852_v1 = vmul.f32 %v8283_v13, %v8254_v28 }
 0x376   :  { %v748_v19 = vadd.f32 %v740_v27, %v637_v61 }
 0x377   :  { %v1236_v26 = vpop.f32.mrf.mxu2 }
 0x378   :  { %v1263_v20 = vmul.f32 %v8313_v18, %v1236_v26 }
 0x37a   :  { %v1271_v36 = vadd.f32 %v1263_v20, %v1160_v55  ;;  %v1154_v55 = vmul.f32 %v8303_v31, %v1131_v53 }
 0x37b   :  { %v8305_v32 = vpop.f32.mrf.mxu3 }
 0x37f   :  { %v1239_v11 = vpop.f32.mrf.mxu2 }
 0x380   :  { %v1264_v38 = vmul.f32 %v8313_v18, %v1239_v11 }
 0x383   :  { %v1344_v41 = vpop.f32.mrf.mxu3 }
 0x384   :  { %v1373_v25 = vmul.f32 %v8321_v15, %v1344_v41 }
 0x386   :  { %v1381_v24 = vadd.f32 %v1373_v25, %v1270_v43  ;;  %v1153_v43 = vmul.f32 %v8303_v31, %v1128_v16 }
 0x387   :  { %v1242_v41 = vpop.f32.mrf.mxu2 }
 0x388   :  { %v1492_v40 = vadd.f32 %v1484_v44, %v1381_v24  ;;  %v858_v44 = vadd.f32 %v850_v57, %v747_v46  ;;  %v1161_v17 = vadd.f32 %v1153_v43, %v1050_v58  ;;  %v1265_v23 = vmul.f32 %v8313_v18, %v1242_v41  ;;  %v1467_v58 = vpop.f32.mrf.mxu1 }
 0x38a   :  { %v8341_v21 = vadd.f32 %v1503_v45, %v1492_v40  ;;  %v969_v24 = vadd.f32 %v961_v10, %v858_v44  ;;  %v1272_v20 = vadd.f32 %v1264_v38, %v1161_v17  ;;  %v1486_v40 = vmul.f32 %v8326_v48, %v1461_v56  ;;  %v1134_v45 = vpop.f32.mrf.mxu0  ;;  %v1518_v17 = vpop.permute.xlu0 %1517 }
 0x38b   :  { %v1347_v33 = vpop.f32.mrf.mxu3  ;;  %v1487_v10 = vmul.f32 %v8326_v48, %v1464_v63  ;;  %v1155_v44 = vmul.f32 %v8303_v31, %v1134_v45 }
 0x38c   :  { %v1374_v26 = vmul.f32 %v8321_v15, %v1347_v33  ;;  %1564 = vadd.xlane.f32.xlu1 %v8341_v21  ;;  %v1051_v52 = vadd.f32 %v8244_v54, %v969_v24  ;;  %v859_v33 = vadd.f32 %v851_v60, %v748_v19  ;;  %v638_v54 = vmul.f32 %v8278_v12, %v8215_v30 }
 0x38d   :  { %v963_v30 = vmul.f32 %v8290_v6, %v8268_v5  ;;  %v742_v24 = vmul.f32 %v8273_v8, %v8237_v42  ;;  %v853_v5 = vmul.f32 %v8283_v13, %v8258_v62  ;;  %v1488_v19 = vmul.f32 %v8326_v48, %v1467_v58 }
 0x38e   :  { %v1382_v25 = vadd.f32 %v1374_v26, %v1271_v36  ;;  %v1513_v36 = vpop.permute.xlu1 %1512  ;;  %v741_v26 = vmul.f32 %v8273_v8, %v8232_v35  ;;  %v1162_v56 = vadd.f32 %v1154_v55, %v1051_v52 }
 0x38f   :  { %v1245_v39 = vpop.f32.mrf.mxu2 }
 0x390   :  { %v1493_v29 = vadd.f32 %v1485_v2, %v1382_v25  ;;  %v970_v2 = vadd.f32 %v962_v22, %v859_v33  ;;  %v1273_v43 = vadd.f32 %v1265_v23, %v1162_v56  ;;  %v749_v35 = vadd.f32 %v741_v26, %v638_v54  ;;  %v1470_v45 = vpop.f32.mrf.mxu1  ;;  %v1523_v33 = vpop.permute.xlu2 %1522 }
 0x391   :  { %v1266_v28 = vmul.f32 %v8313_v18, %v1245_v39  ;;  %v743_v23 = vmul.f32 %v8273_v8, %v8242_v49  ;;  %v1489_v49 = vmul.f32 %v8326_v48, %v1470_v45 }
 0x392   :  { %v8357_v37 = vadd.f32 %v1508_v9, %v1493_v29  ;;  %v1052_v25 = vadd.f32 %v8248_v51, %v970_v2  ;;  %v1137_v29 = vpop.f32.mrf.mxu0  ;;  %v860_v9 = vadd.f32 %v852_v1, %v749_v35  ;;  %v639_v51 = vmul.f32 %v8278_v12, %v8222_v14 }
 0x393   :  { %v1350_v16 = vpop.f32.mrf.mxu3  ;;  %v1156_v55 = vmul.f32 %v8303_v31, %v1137_v29  ;;  %v964_v14 = vmul.f32 %v8290_v6, %v8292_v50  ;;  %v854_v50 = vmul.f32 %v8283_v13, %v8264_v3 }
 0x394   :  { %v1375_v11 = vmul.f32 %v8321_v15, %v1350_v16  ;;  %1566 = vadd.xlane.f32.xlu0 %v8357_v37  ;;  %v1163_v63 = vadd.f32 %v1155_v44, %v1052_v25  ;;  %v971_v16 = vadd.f32 %v963_v30, %v860_v9  ;;  %v750_v42 = vadd.f32 %v742_v24, %v639_v51 }
 0x396   :  { %v1383_v7 = vadd.f32 %v1375_v11, %v1272_v20  ;;  %v1274_v11 = vadd.f32 %v1266_v28, %v1163_v63  ;;  %v1053_v52 = vadd.f32 %v8252_v59, %v971_v16  ;;  %v640_v59 = vmul.f32 %v8278_v12, %v8229_v34  ;;  %v1528_v35 = vpop.permute.xlu1 %1527  ;;  %v1533_v63 = vpop.permute.xlu0 %1532 }
 0x397   :  { %v1248_v61 = vpop.f32.mrf.mxu2  ;;  %v965_v34 = vmul.f32 %v8290_v6, %v8305_v32 }
 0x398   :  { %v1494_v57 = vadd.f32 %v1486_v40, %v1383_v7  ;;  %v861_v7 = vadd.f32 %v853_v5, %v750_v42  ;;  %v1267_v62 = vmul.f32 %v8313_v18, %v1248_v61  ;;  %v751_v8 = vadd.f32 %v743_v23, %v640_v59 }
 0x39a   :  { %v8373_v46 = vadd.f32 %v1513_v36, %v1494_v57  ;;  %v1140_v57 = vpop.f32.mrf.mxu0  ;;  %v1164_v36 = vadd.f32 %v1156_v55, %v1053_v52  ;;  %v972_v26 = vadd.f32 %v964_v14, %v861_v7 }
 0x39b   :  { %v1353_v53 = vpop.f32.mrf.mxu3 }
 0x39c   :  { %v1376_v41 = vmul.f32 %v8321_v15, %v1353_v53  ;;  %1568 = vadd.xlane.f32.xlu2 %v8373_v46  ;;  %v1275_v53 = vadd.f32 %v1267_v62, %v1164_v36  ;;  %v1054_v1 = vadd.f32 %v8260_v0, %v972_v26 }
 0x39e   :  { %v1384_v38 = vadd.f32 %v1376_v41, %v1273_v43  ;;  %v1157_v43 = vmul.f32 %v8303_v31, %v1140_v57  ;;  %v1473_v41 = vpop.f32.mrf.mxu1 }
 0x39f   :  { %v1251_v2 = vpop.f32.mrf.mxu2  ;;  %v1490_v6 = vmul.f32 %v8326_v48, %v1473_v41 }
 0x3a0   :  { %v1495_v27 = vadd.f32 %v1487_v10, %v1384_v38  ;;  %v862_v10 = vadd.f32 %v854_v50, %v751_v8  ;;  %v1268_v3 = vmul.f32 %v8313_v18, %v1251_v2  ;;  %v1165_v25 = vadd.f32 %v1157_v43, %v1054_v1  ;;  %v1559_v43 = vld [vmem:[%s12431_s8 + $0x18] sm:$0xff] }
 0x3a2   :  { %v8389_v60 = vadd.f32 %v1518_v17, %v1495_v27  ;;  %v973_v44 = vadd.f32 %v965_v34, %v862_v10  ;;  %v1143_v38 = vpop.f32.mrf.mxu0  ;;  %v1276_v9 = vadd.f32 %v1268_v3, %v1165_v25  ;;  %v1560_v34 = vld [vmem:[%s12431_s8 + $0x20] sm:$0xff] }
 0x3a3   :  { %v1356_v20 = vpop.f32.mrf.mxu3  ;;  %v1158_v27 = vmul.f32 %v8303_v31, %v1143_v38  ;;  %v8429_v31 = vpop.permute.xlu0 %1731 }
 0x3a4   :  { %v1377_v40 = vmul.f32 %v8321_v15, %v1356_v20  ;;  %1570 = vadd.xlane.f32.xlu1 %v8389_v60  ;;  %v1055_v28 = vadd.f32 %v8266_v4, %v973_v44  ;;  %v1538_v4 = vpop.permute.xlu2 %1537 }
 0x3a6   :  { %v1385_v22 = vadd.f32 %v1377_v40, %v1274_v11  ;;  %v1476_v16 = vpop.f32.mrf.mxu1  ;;  %v1166_v51 = vadd.f32 %v1158_v27, %v1055_v28  ;;  %v1904_v28 = vld [vmem:[#allocation5 + $0x1e0] sm:$0xff]  ;;  %v1906_v27 = vld [vmem:[#allocation5 + $0x1f0] sm:$0xff] }
 0x3a7   :  { %v1254_v32 = vpop.f32.mrf.mxu2  ;;  %1908 = vmatpush.msra.mxu0 %v1904_v28  ;;  %1990 = vmatpush.msrb.mxu3 %v1906_v27  ;;  %v1866_v28 = vld [vmem:[#allocation5 + $0xb0] sm:$0xff]  ;;  %v1860_v27 = vld [vmem:[#allocation5 + $0x80] sm:$0xff] }
 0x3a8   :  { %v1496_v39 = vadd.f32 %v1488_v19, %v1385_v22  ;;  %v1269_v24 = vmul.f32 %v8313_v18, %v1254_v32  ;;  %v1491_v19 = vmul.f32 %v8326_v48, %v1476_v16  ;;  %v8431_v18 = vpop.permute.xlu1 %1736  ;;  %v1903_v16 = vld [vmem:[#allocation5 + $0x1d8] sm:$0xff] }
 0x3aa   :  { %v8405_v56 = vadd.f32 %v1523_v33, %v1496_v39  ;;  %v1277_v11 = vadd.f32 %v1269_v24, %v1166_v51  ;;  %v1900_v24 = vld [vmem:[#allocation5 + $0x1c0] sm:$0xff] }
 0x3ab   :  { %v1359_v54 = vpop.f32.mrf.mxu3  ;;  %v8433_v55 = vpop.permute.xlu0 %1741  ;;  %1909 = vmatpush.msra.mxu0 %v1900_v24  ;;  %v1896_v51 = vld [vmem:[#allocation5 + $0x1a0] sm:$0xff]  ;;  %v1862_v24 = vld [vmem:[#allocation5 + $0x90] sm:$0xff] }
 0x3ac   :  { %v1378_v58 = vmul.f32 %v8321_v15, %v1359_v54  ;;  %1572 = vadd.xlane.f32.xlu2 %v8405_v56  ;;  %v8437_v22 = vpop.permute.xlu2 %1726 }
 0x3ad   :  { %1910 = vmatpush.msra.mxu0 %v1896_v51  ;;  %v1858_v51 = vld [vmem:[#allocation5 + $0x70] sm:$0xff] }
 0x3ae   :  { %v1386_v12 = vadd.f32 %v1378_v58, %v1275_v53 }
 0x3b0   :  { %v1497_v13 = vadd.f32 %v1489_v49, %v1386_v12  ;;  %v8435_v14 = vpop.permute.xlu1 %1751 }
 0x3b2   :  { %v8419_v30 = vadd.f32 %v1528_v35, %v1497_v13 }
 0x3b3   :  { %v1362_v29 = vpop.f32.mrf.mxu3  ;;  %v8439_v7 = vpop.permute.xlu0 %1756 }
 0x3b4   :  { %v1379_v0 = vmul.f32 %v8321_v15, %v1362_v29  ;;  %1574 = vadd.xlane.f32.xlu0 %v8419_v30  ;;  %v8443_v48 = vpop.permute.xlu2 %1746 }
 0x3b6   :  { %v1387_v17 = vadd.f32 %v1379_v0, %v1276_v9 }
 0x3b8   :  { %v1498_v61 = vadd.f32 %v1490_v6, %v1387_v17  ;;  %v1907_v17 = vld [vmem:[#allocation5 + $0x1f8] sm:$0xff] }
 0x3b9   :  { %2031 = vmatpush.msrb.mxu1 %v1907_v17  ;;  %v1861_v17 = vld [vmem:[#allocation5 + $0x88] sm:$0xff] }
 0x3ba   :  { %v1546_v20 = vadd.f32 %v1533_v63, %v1498_v61  ;;  %v1901_v61 = vld [vmem:[#allocation5 + $0x1c8] sm:$0xff]  ;;  %v1902_v63 = vld [vmem:[#allocation5 + $0x1d0] sm:$0xff] }
 0x3bb   :  { %v1365_v5 = vpop.f32.mrf.mxu3  ;;  %v8445_v62 = vpop.permute.xlu0 %1779  ;;  %1991 = vmatpush.msrb.mxu3 %v1902_v63  ;;  %2032 = vmatpush.msrb.mxu1 %v1903_v16  ;;  %v1856_v63 = vld [vmem:[#allocation5 + $0x60] sm:$0xff]  ;;  %v1857_v16 = vld [vmem:[#allocation5 + $0x68] sm:$0xff] }
 0x3bc   :  { %v1380_v40 = vmul.f32 %v8321_v15, %v1365_v5  ;;  %1576 = vadd.xlane.f32.xlu1 %v1546_v20  ;;  %v8441_v15 = vpop.permute.xlu1 %1774  ;;  %v8453_v36 = vpop.permute.xlu2 %1761  ;;  %v1898_v5 = vld [vmem:[#allocation5 + $0x1b0] sm:$0xff] }
 0x3bd   :  { %1992 = vmatpush.msrb.mxu3 %v1898_v5  ;;  %v1852_v5 = vld [vmem:[#allocation5 + $0x40] sm:$0xff] }
 0x3be   :  { %v1388_v42 = vadd.f32 %v1380_v40, %v1277_v11  ;;  %v1899_v11 = vld [vmem:[#allocation5 + $0x1b8] sm:$0xff]  ;;  %v1892_v40 = vld [vmem:[#allocation5 + $0x180] sm:$0xff] }
 0x3bf   :  { %2033 = vmatpush.msrb.mxu1 %v1899_v11  ;;  %1911 = vmatpush.msra.mxu0 %v1892_v40  ;;  %v1853_v11 = vld [vmem:[#allocation5 + $0x48] sm:$0xff]  ;;  %v1854_v40 = vld [vmem:[#allocation5 + $0x50] sm:$0xff] }
 0x3c0   :  { %v1499_v45 = vadd.f32 %v1491_v19, %v1388_v42  ;;  %v1893_v19 = vld [vmem:[#allocation5 + $0x188] sm:$0xff]  ;;  %v1894_v42 = vld [vmem:[#allocation5 + $0x190] sm:$0xff] }
 0x3c1   :  { %1993 = vmatpush.msrb.mxu3 %v1894_v42  ;;  %v1848_v42 = vld [vmem:[#allocation5 + $0x20] sm:$0xff] }
 0x3c2   :  { %v1547_v52 = vadd.f32 %v1538_v4, %v1499_v45  ;;  %v1895_v45 = vld [vmem:[#allocation5 + $0x198] sm:$0xff]  ;;  %v1888_v4 = vld [vmem:[#allocation5 + $0x160] sm:$0xff] }
 0x3c3   :  { %2034 = vmatpush.msrb.mxu1 %v1895_v45  ;;  %1912 = vmatpush.msra.mxu0 %v1888_v4  ;;  %v1849_v45 = vld [vmem:[#allocation5 + $0x28] sm:$0xff]  ;;  %v1850_v4 = vld [vmem:[#allocation5 + $0x30] sm:$0xff] }
 0x3c4   :  { %1578 = vadd.xlane.f32.xlu2 %v1547_v52 }
 0x3ff   :  { %v1565_v39 = vpop.xlane.xlu1 %1564 }
 0x400   :  { %v1580_v33 = vmul.f32 %v1565_v39, %v7894_v47  ;;  %v1890_v39 = vld [vmem:[#allocation5 + $0x170] sm:$0xff] }
 0x401   :  { %1994 = vmatpush.msrb.mxu3 %v1890_v39 }
 0x402   :  { %v8449_v23 = vsub.f32 %v8341_v21, %v1580_v33  ;;  %v1891_v33 = vld [vmem:[#allocation5 + $0x178] sm:$0xff] }
 0x403   :  { %2035 = vmatpush.msrb.mxu1 %v1891_v33  ;;  %v1844_v33 = vld [vmem:[#allocation5] sm:$0xff] }
 0x404   :  { %v1596_v57 = vmul.f32 %v8449_v23, %v8449_v23 }
 0x406   :  { %1604 = vadd.xlane.f32.xlu0 %v1596_v57  ;;  %v1884_v57 = vld [vmem:[#allocation5 + $0x140] sm:$0xff] }
 0x407   :  { %v1567_v26 = vpop.xlane.xlu0 %1566  ;;  %1913 = vmatpush.msra.mxu0 %v1884_v57  ;;  %v1845_v57 = vld [vmem:[#allocation5 + $0x8] sm:$0xff] }
 0x408   :  { %v1581_v59 = vmul.f32 %v1567_v26, %v7894_v47  ;;  %v1885_v26 = vld [vmem:[#allocation5 + $0x148] sm:$0xff] }
 0x40a   :  { %v8457_v2 = vsub.f32 %v8357_v37, %v1581_v59  ;;  %v1886_v59 = vld [vmem:[#allocation5 + $0x150] sm:$0xff] }
 0x40b   :  { %1995 = vmatpush.msrb.mxu3 %v1886_v59  ;;  %v1846_v59 = vld [vmem:[#allocation5 + $0x10] sm:$0xff] }
 0x40c   :  { %v1597_v54 = vmul.f32 %v8457_v2, %v8457_v2 }
 0x40e   :  { %1606 = vadd.xlane.f32.xlu1 %v1597_v54  ;;  %v1887_v54 = vld [vmem:[#allocation5 + $0x158] sm:$0xff] }
 0x40f   :  { %v1569_v50 = vpop.xlane.xlu2 %1568  ;;  %2036 = vmatpush.msrb.mxu1 %v1887_v54  ;;  %v1847_v54 = vld [vmem:[#allocation5 + $0x18] sm:$0xff] }
 0x410   :  { %v1582_v21 = vmul.f32 %v1569_v50, %v7894_v47  ;;  %v1880_v50 = vld [vmem:[#allocation5 + $0x120] sm:$0xff] }
 0x411   :  { %1914 = vmatpush.msra.mxu0 %v1880_v50 }
 0x412   :  { %v8463_v53 = vsub.f32 %v8373_v46, %v1582_v21  ;;  %v1558_v46 = vld [vmem:[%s12431_s8 + $0x10] sm:$0xff] }
 0x413   :  { %v1881_v21 = vld [vmem:[#allocation5 + $0x128] sm:$0xff] }
 0x414   :  { %v1598_v58 = vmul.f32 %v8463_v53, %v8463_v53 }
 0x416   :  { %1608 = vadd.xlane.f32.xlu2 %v1598_v58  ;;  %v1882_v58 = vld [vmem:[#allocation5 + $0x130] sm:$0xff] }
 0x417   :  { %v1571_v49 = vpop.xlane.xlu1 %1570  ;;  %1996 = vmatpush.msrb.mxu3 %v1882_v58 }
 0x418   :  { %v1583_v8 = vmul.f32 %v1571_v49, %v7894_v47  ;;  %v1883_v49 = vld [vmem:[#allocation5 + $0x138] sm:$0xff] }
 0x419   :  { %2037 = vmatpush.msrb.mxu1 %v1883_v49 }
 0x41a   :  { %v8469_v37 = vsub.f32 %v8389_v60, %v1583_v8  ;;  %v1876_v8 = vld [vmem:[#allocation5 + $0x100] sm:$0xff] }
 0x41b   :  { %1915 = vmatpush.msra.mxu0 %v1876_v8 }
 0x41c   :  { %v1599_v1 = vmul.f32 %v8469_v37, %v8469_v37 }
 0x41e   :  { %1610 = vadd.xlane.f32.xlu0 %v1599_v1  ;;  %v1877_v1 = vld [vmem:[#allocation5 + $0x108] sm:$0xff] }
 0x41f   :  { %v1573_v60 = vpop.xlane.xlu2 %1572 }
 0x420   :  { %v1584_v12 = vmul.f32 %v1573_v60, %v7894_v47  ;;  %v1873_v60 = vld [vmem:[#allocation5 + $0xe8] sm:$0xff] }
 0x422   :  { %v8484_v10 = vsub.f32 %v8405_v56, %v1584_v12  ;;  %v1874_v12 = vld [vmem:[#allocation5 + $0xf0] sm:$0xff] }
 0x424   :  { %v1600_v44 = vmul.f32 %v8484_v10, %v8484_v10 }
 0x427   :  { %1789 = vperm.xlu1 %6293, %v1559_v43   ;;  %v1575_v41 = vpop.xlane.xlu0 %1574  ;;  %v1878_v43 = vld [vmem:[#allocation5 + $0x110] sm:$0xff] }
 0x428   :  { %v1585_v13 = vmul.f32 %v1575_v41, %v7894_v47  ;;  %1997 = vmatpush.msrb.mxu3 %v1878_v43  ;;  %v1561_v41 = vld [vmem:[%s12431_s8 + $0x28] sm:$0xff] }
 0x42a   :  { %v8491_v38 = vsub.f32 %v8419_v30, %v1585_v13  ;;  %v1905_v30 = vld [vmem:[#allocation5 + $0x1e8] sm:$0xff]  ;;  %v1875_v13 = vld [vmem:[#allocation5 + $0xf8] sm:$0xff]  ;;  %1998 = vmatpush.msrb.mxu3 %v1874_v12 }
 0x42b   :  { %1949 = vmatpush.msrb.mxu2 %v1905_v30  ;;  %v1867_v30 = vld [vmem:[#allocation5 + $0xb8] sm:$0xff] }
 0x42c   :  { %v1601_v56 = vmul.f32 %v8491_v38, %v8491_v38 }
 0x42d   :  { %1950 = vmatpush.msrb.mxu2 %v1901_v61  ;;  %v1863_v61 = vld [vmem:[#allocation5 + $0x98] sm:$0xff] }
 0x42e   :  { %1784 = vperm.xlu2 %6294, %v1558_v46   ;;  %v1879_v46 = vld [vmem:[#allocation5 + $0x118] sm:$0xff] }
 0x42f   :  { %v1577_v35 = vpop.xlane.xlu1 %1576  ;;  %2038 = vmatpush.msrb.mxu1 %v1879_v46 }
 0x430   :  { %v1586_v29 = vmul.f32 %v1577_v35, %v7894_v47  ;;  %v1868_v35 = vld [vmem:[#allocation5 + $0xc0] sm:$0xff] }
 0x431   :  { %2039 = vmatpush.msrb.mxu1 %v1875_v13 }
 0x432   :  { %1794 = vperm.xlu0 %6295, %v1560_v34   ;;  %v8498_v0 = vsub.f32 %v1546_v20, %v1586_v29  ;;  %v1897_v20 = vld [vmem:[#allocation5 + $0x1a8] sm:$0xff]  ;;  %v1872_v34 = vld [vmem:[#allocation5 + $0xe0] sm:$0xff]  ;;  %v1871_v29 = vld [vmem:[#allocation5 + $0xd8] sm:$0xff] }
 0x433   :  { %1951 = vmatpush.msrb.mxu2 %v1897_v20  ;;  %1916 = vmatpush.msra.mxu0 %v1872_v34  ;;  %v1859_v20 = vld [vmem:[#allocation5 + $0x78] sm:$0xff] }
 0x434   :  { %v1602_v32 = vmul.f32 %v8498_v0, %v8498_v0  ;;  %2040 = vmatpush.msrb.mxu1 %v1871_v29 }
 0x435   :  { %1952 = vmatpush.msrb.mxu2 %v1893_v19  ;;  %1917 = vmatpush.msra.mxu0 %v1868_v35  ;;  %v1855_v19 = vld [vmem:[#allocation5 + $0x58] sm:$0xff] }
 0x436   :  { %2041 = vmatpush.msrb.mxu1 %v1867_v30 }
 0x437   :  { %v1579_v3 = vpop.xlane.xlu2 %1578 }
 0x438   :  { %v1587_v25 = vmul.f32 %v1579_v3, %v7894_v47  ;;  %v1563_v3 = vld [vmem:[%s12431_s8 + $0x38] sm:$0xff]  ;;  %2042 = vmatpush.msrb.mxu1 %v1863_v61 }
 0x43a   :  { %v8494_v9 = vsub.f32 %v1547_v52, %v1587_v25  ;;  %v1889_v52 = vld [vmem:[#allocation5 + $0x168] sm:$0xff]  ;;  %2043 = vmatpush.msrb.mxu1 %v1859_v20 }
 0x43b   :  { %1953 = vmatpush.msrb.mxu2 %v1889_v52  ;;  %v1869_v25 = vld [vmem:[#allocation5 + $0xc8] sm:$0xff]  ;;  %v1851_v52 = vld [vmem:[#allocation5 + $0x38] sm:$0xff] }
 0x43c   :  { %v1603_v6 = vmul.f32 %v8494_v9, %v8494_v9  ;;  %2044 = vmatpush.msrb.mxu1 %v1855_v19 }
 0x43d   :  { %1954 = vmatpush.msrb.mxu2 %v1885_v26 }
 0x43e   :  { %2045 = vmatpush.msrb.mxu1 %v1851_v52 }
 0x43f   :  { %1955 = vmatpush.msrb.mxu2 %v1881_v21 }
 0x440   :  { %2046 = vmatpush.msrb.mxu1 %v1847_v54 }
 0x441   :  { %1956 = vmatpush.msrb.mxu2 %v1877_v1 }
 0x443   :  { %1957 = vmatpush.msrb.mxu2 %v1873_v60 }
 0x445   :  { %1958 = vmatpush.msrb.mxu2 %v1869_v25 }
 0x451   :  { %1612 = vadd.xlane.f32.xlu1 %v1600_v44  ;;  %v1870_v44 = vld [vmem:[#allocation5 + $0xd0] sm:$0xff] }
 0x452   :  { %1999 = vmatpush.msrb.mxu3 %v1870_v44 }
 0x454   :  { %2000 = vmatpush.msrb.mxu3 %v1866_v28 }
 0x456   :  { %2001 = vmatpush.msrb.mxu3 %v1862_v24 }
 0x457   :  { %1614 = vadd.xlane.f32.xlu2 %v1601_v56  ;;  %v1562_v56 = vld [vmem:[%s12431_s8 + $0x30] sm:$0xff]  ;;  %s7543_s8 = smov 17  }
 0x458   :  { %2002 = vmatpush.msrb.mxu3 %v1858_v51 }
 0x459   :  { %1618 = vadd.xlane.f32.xlu1 %v1603_v6  ;;  %v1864_v6 = vld [vmem:[#allocation5 + $0xa0] sm:$0xff] }
 0x45a   :  { %1918 = vmatpush.msra.mxu0 %v1864_v6  ;;  %2003 = vmatpush.msrb.mxu3 %v1854_v40 }
 0x45c   :  { %1616 = vadd.xlane.f32.xlu0 %v1602_v32  ;;  %v1865_v32 = vld [vmem:[#allocation5 + $0xa8] sm:$0xff]  ;;  %1919 = vmatpush.msra.mxu0 %v1860_v27 }
 0x45d   :  { %1959 = vmatpush.msrb.mxu2 %v1865_v32  ;;  %2004 = vmatpush.msrb.mxu3 %v1850_v4 }
 0x45e   :  { %1920 = vmatpush.msra.mxu0 %v1856_v63 }
 0x45f   :  { %1960 = vmatpush.msrb.mxu2 %v1861_v17  ;;  %2005 = vmatpush.msrb.mxu3 %v1846_v59 }
 0x460   :  { %1921 = vmatpush.msra.mxu0 %v1852_v5 }
 0x461   :  { %1961 = vmatpush.msrb.mxu2 %v1857_v16 }
 0x462   :  { %1922 = vmatpush.msra.mxu0 %v1848_v42 }
 0x463   :  { %1962 = vmatpush.msrb.mxu2 %v1853_v11 }
 0x464   :  { %1923 = vmatpush.msra.mxu0 %v1844_v33 }
 0x465   :  { %1963 = vmatpush.msrb.mxu2 %v1849_v45 }
 0x467   :  { %1964 = vmatpush.msrb.mxu2 %v1845_v57 }
 0x46f   :  { %1799 = vperm.xlu2 %6294, %v1561_v41  }
 0x470   :  { %1809 = vperm.xlu0 %6295, %v1563_v3  }
 0x472   :  { %1804 = vperm.xlu1 %6293, %v1562_v56  }
 0x479   :  { %v1605_v39 = vpop.xlane.xlu0 %1604 }
 0x47a   :  { %v1620_v26 = vmul.f32 %v1605_v39, %v7894_v47 }
 0x47c   :  { %v1628_v50 = vadd.f32 0.8, %v1620_v26 }
 0x47e   :  { %7442 = vrsqrt.f32 %v1628_v50  ;;  %vm1642_vm12 = vweird.f32 %v1628_v50 }
 0x481   :  { %v1607_v21 = vpop.xlane.xlu1 %1606 }
 0x482   :  { %v1621_v58 = vmul.f32 %v1607_v21, %v7894_v47 }
 0x484   :  { %v7443_v49 = vpop.eup %7442  ;;  %v1629_v8 = vadd.f32 0.8, %v1621_v58 }
 0x485   :  { %v1637_v1 = vmul.f32 %v7443_v49, %v1628_v50  ;;  %vm1643_vm11 = vweird.f32 %v7443_v49 }
 0x486   :  { %7444 = vrsqrt.f32 %v1629_v8  ;;  %vm1644_vm13 = vmor %vm1642_vm12, %vm1643_vm11  ;;  %vm1652_vm15 = vweird.f32 %v1629_v8 }
 0x487   :  { %v1638_v43 = vmul.f32 %v7443_v49, %v1637_v1 }
 0x489   :  { %v1639_v46 = vmul.f32 0.5, %v1638_v43  ;;  %v1609_v34 = vpop.xlane.xlu2 %1608 }
 0x48a   :  { %v1622_v60 = vmul.f32 %v1609_v34, %v7894_v47 }
 0x48b   :  { %v1640_v12 = vsub.f32 1.5, %v1639_v46 }
 0x48c   :  { %v7445_v41 = vpop.eup %7444  ;;  %v1630_v3 = vadd.f32 0.8, %v1622_v60 }
 0x48d   :  { %v1641_v13 = vmul.f32 %v7443_v49, %v1640_v12  ;;  %v1647_v35 = vmul.f32 %v7445_v41, %v1629_v8  ;;  %vm1653_vm14 = vweird.f32 %v7445_v41 }
 0x48e   :  { %7446 = vrsqrt.f32 %v1630_v3  ;;  %vm1654_vm0 = vmor %vm1652_vm15, %vm1653_vm14  ;;  %vm1662_vm3 = vweird.f32 %v1630_v3 }
 0x48f   :  { %v1645_v25 = vsel %vm1644_vm13, %v7443_v49, %v1641_v13  ;;  %v1648_v44 = vmul.f32 %v7445_v41, %v1647_v35 }
 0x490   :  { %v1716_v29 = vmul.f32 %v1645_v25, %v8449_v23 }
 0x491   :  { %v1649_v56 = vmul.f32 0.5, %v1648_v44  ;;  %v1611_v6 = vpop.xlane.xlu0 %1610 }
 0x492   :  { %v1623_v32 = vmul.f32 %v1611_v6, %v7894_v47  ;;  %v1764_v28 = vmul.f32 %v8437_v22, %v1716_v29 }
 0x493   :  { %v1650_v30 = vsub.f32 1.5, %v1649_v56 }
 0x494   :  { %v7447_v27 = vpop.eup %7446  ;;  %v1631_v17 = vadd.f32 0.8, %v1623_v32  ;;  %v1812_v24 = vadd.f32 %v8441_v15, %v1764_v28 }
 0x495   :  { %v1651_v61 = vmul.f32 %v7445_v41, %v1650_v30  ;;  %v1657_v63 = vmul.f32 %v7447_v27, %v1630_v3  ;;  %vm1663_vm2 = vweird.f32 %v7447_v27 }
 0x496   :  { %7448 = vrsqrt.f32 %v1631_v17  ;;  %vm1820_vm1 = vcmp.gt.f32.partialorder %v1812_v24, 0.0  ;;  %v1828_v16 = vmul.f32 0.2, %v1812_v24  ;;  %vm1664_vm4 = vmor %vm1662_vm3, %vm1663_vm2  ;;  %vm1672_vm7 = vweird.f32 %v1631_v17 }
 0x497   :  { %v1655_v23 = vsel %vm1654_vm0, %v7445_v41, %v1651_v61  ;;  %v1658_v51 = vmul.f32 %v7447_v27, %v1657_v63 }
 0x498   :  { %v1717_v20 = vmul.f32 %v1655_v23, %v8457_v2  ;;  %v1836_v5 = vsel %vm1820_vm1, %v1812_v24, %v1828_v16 }
 0x499   :  { %v1659_v11 = vmul.f32 0.5, %v1658_v51  ;;  %1924 = vmatmul.f32.vlgmr.msra.gmra.mxu0 %v1836_v5  ;;  %1965 = vmatmul.f32.vlgmr.msrb.gmra.mxu2 %v1836_v5 }
 0x49a   :  { %2006 = vmatmul.f32.vlgmr.msrb.gmra.mxu3 %v1836_v5  ;;  %2047 = vmatmul.f32.vlgmr.msrb.gmra.mxu1 %v1836_v5  ;;  %v1765_v22 = vmul.f32 %v8429_v31, %v1717_v20 }
 0x49b   :  { %v1660_v15 = vsub.f32 1.5, %v1659_v11 }
 0x49c   :  { %v7449_v40 = vpop.eup %7448  ;;  %v1813_v19 = vadd.f32 %v8445_v62, %v1765_v22  ;;  %v1785_v62 = vpop.permute.xlu2 %1784 }
 0x49d   :  { %v1667_v42 = vmul.f32 %v7449_v40, %v1631_v17  ;;  %v1661_v45 = vmul.f32 %v7447_v27, %v1660_v15  ;;  %vm1673_vm6 = vweird.f32 %v7449_v40 }
 0x49e   :  { %vm1821_vm5 = vcmp.gt.f32.partialorder %v1813_v19, 0.0  ;;  %v1829_v4 = vmul.f32 0.2, %v1813_v19  ;;  %vm1674_vm8 = vmor %vm1672_vm7, %vm1673_vm6 }
 0x49f   :  { %v1668_v2 = vmul.f32 %v7449_v40, %v1667_v42  ;;  %v1665_v52 = vsel %vm1664_vm4, %v7447_v27, %v1661_v45 }
 0x4a0   :  { %v1718_v39 = vmul.f32 %v1665_v52, %v8463_v53  ;;  %v1837_v33 = vsel %vm1821_vm5, %v1813_v19, %v1829_v4 }
 0x4a1   :  { %v1669_v57 = vmul.f32 0.5, %v1668_v2  ;;  %1927 = vmatmul.f32.gmra.mxu0 %v1837_v33  ;;  %1968 = vmatmul.f32.gmra.mxu2 %v1837_v33 }
 0x4a2   :  { %v1766_v31 = vmul.f32 %v8431_v18, %v1718_v39  ;;  %2009 = vmatmul.f32.gmra.mxu3 %v1837_v33  ;;  %2050 = vmatmul.f32.gmra.mxu1 %v1837_v33  ;;  %v1790_v18 = vpop.permute.xlu1 %1789 }
 0x4a3   :  { %v1670_v26 = vsub.f32 1.5, %v1669_v57 }
 0x4a4   :  { %v1814_v59 = vadd.f32 %v1785_v62, %v1766_v31 }
 0x4a5   :  { %v1671_v54 = vmul.f32 %v7449_v40, %v1670_v26 }
 0x4a6   :  { %v1830_v50 = vmul.f32 0.2, %v1814_v59  ;;  %vm1822_vm9 = vcmp.gt.f32.partialorder %v1814_v59, 0.0 }
 0x4a7   :  { %v1675_v21 = vsel %vm1674_vm8, %v7449_v40, %v1671_v54 }
 0x4a8   :  { %v1719_v53 = vmul.f32 %v1675_v21, %v8469_v37  ;;  %v1838_v58 = vsel %vm1822_vm9, %v1814_v59, %v1830_v50  ;;  %v1795_v37 = vpop.permute.xlu0 %1794 }
 0x4a9   :  { %1930 = vmatmul.f32.gmra.mxu0 %v1838_v58  ;;  %1971 = vmatmul.f32.gmra.mxu2 %v1838_v58 }
 0x4aa   :  { %v1767_v49 = vmul.f32 %v8433_v55, %v1719_v53  ;;  %2012 = vmatmul.f32.gmra.mxu3 %v1838_v58  ;;  %2053 = vmatmul.f32.gmra.mxu1 %v1838_v58 }
 0x4ac   :  { %v1815_v8 = vadd.f32 %v1790_v18, %v1767_v49 }
 0x4ae   :  { %v1831_v1 = vmul.f32 0.2, %v1815_v8  ;;  %vm1823_vm11 = vcmp.gt.f32.partialorder %v1815_v8, 0.0 }
 0x4b0   :  { %v1839_v43 = vsel %vm1823_vm11, %v1815_v8, %v1831_v1 }
 0x4b1   :  { %1933 = vmatmul.f32.gmra.mxu0 %v1839_v43  ;;  %1974 = vmatmul.f32.gmra.mxu2 %v1839_v43 }
 0x4b2   :  { %2015 = vmatmul.f32.gmra.mxu3 %v1839_v43  ;;  %2056 = vmatmul.f32.gmra.mxu1 %v1839_v43 }
 0x4c4   :  { %v1613_v46 = vpop.xlane.xlu1 %1612 }
 0x4c5   :  { %v1624_v34 = vmul.f32 %v1613_v46, %v7894_v47 }
 0x4c7   :  { %v1632_v60 = vadd.f32 0.8, %v1624_v34 }
 0x4c9   :  { %7450 = vrsqrt.f32 %v1632_v60  ;;  %vm1682_vm13 = vweird.f32 %v1632_v60 }
 0x4ca   :  { %v1615_v12 = vpop.xlane.xlu2 %1614 }
 0x4cb   :  { %v1625_v55 = vmul.f32 %v1615_v12, %v7894_v47 }
 0x4cc   :  { %v1619_v41 = vpop.xlane.xlu1 %1618 }
 0x4cd   :  { %v1633_v3 = vadd.f32 0.8, %v1625_v55  ;;  %v1627_v13 = vmul.f32 %v1619_v41, %v7894_v47 }
 0x4cf   :  { %v7451_v35 = vpop.eup %7450  ;;  %7452 = vrsqrt.f32 %v1633_v3  ;;  %v1635_v25 = vadd.f32 0.8, %v1627_v13  ;;  %v1617_v44 = vpop.xlane.xlu0 %1616  ;;  %vm1692_vm0 = vweird.f32 %v1633_v3 }
 0x4d0   :  { %v1677_v29 = vmul.f32 %v7451_v35, %v1632_v60  ;;  %v1626_v56 = vmul.f32 %v1617_v44, %v7894_v47  ;;  %vm1683_vm12 = vweird.f32 %v7451_v35 }
 0x4d1   :  { %7454 = vrsqrt.f32 %v1635_v25  ;;  %vm1684_vm14 = vmor %vm1682_vm13, %vm1683_vm12  ;;  %vm1712_vm7 = vweird.f32 %v1635_v25 }
 0x4d2   :  { %v1678_v6 = vmul.f32 %v7451_v35, %v1677_v29  ;;  %v1634_v32 = vadd.f32 0.8, %v1626_v56 }
 0x4d4   :  { %v1679_v28 = vmul.f32 0.5, %v1678_v6  ;;  %7456 = vrsqrt.f32 %v1634_v32  ;;  %vm1702_vm4 = vweird.f32 %v1634_v32 }
 0x4d5   :  { %v7453_v30 = vpop.eup %7452 }
 0x4d6   :  { %v1680_v27 = vsub.f32 1.5, %v1679_v28  ;;  %v1687_v17 = vmul.f32 %v7453_v30, %v1633_v3  ;;  %vm1693_vm15 = vweird.f32 %v7453_v30 }
 0x4d7   :  { %v7455_v24 = vpop.eup %7454  ;;  %vm1694_vm1 = vmor %vm1692_vm0, %vm1693_vm15 }
 0x4d8   :  { %v1681_v61 = vmul.f32 %v7451_v35, %v1680_v27  ;;  %v1688_v63 = vmul.f32 %v7453_v30, %v1687_v17  ;;  %v1707_v16 = vmul.f32 %v7455_v24, %v1635_v25  ;;  %vm1713_vm5 = vweird.f32 %v7455_v24 }
 0x4d9   :  { %vm1714_vm8 = vmor %vm1712_vm7, %vm1713_vm5 }
 0x4da   :  { %v7457_v23 = vpop.eup %7456  ;;  %v1685_v51 = vsel %vm1684_vm14, %v7451_v35, %v1681_v61  ;;  %v1689_v20 = vmul.f32 0.5, %v1688_v63  ;;  %v1708_v5 = vmul.f32 %v7455_v24, %v1707_v16 }
 0x4db   :  { %v1720_v47 = vmul.f32 %v1685_v51, %v8484_v10  ;;  %v1697_v11 = vmul.f32 %v7457_v23, %v1634_v32  ;;  %vm1703_vm2 = vweird.f32 %v7457_v23 }
 0x4dc   :  { %v1690_v22 = vsub.f32 1.5, %v1689_v20  ;;  %v1709_v15 = vmul.f32 0.5, %v1708_v5  ;;  %vm1704_vm6 = vmor %vm1702_vm4, %vm1703_vm2 }
 0x4dd   :  { %v1698_v40 = vmul.f32 %v7457_v23, %v1697_v11  ;;  %v1768_v19 = vmul.f32 %v8443_v48, %v1720_v47  ;;  %v1800_v48 = vpop.permute.xlu2 %1799 }
 0x4de   :  { %v1691_v42 = vmul.f32 %v7453_v30, %v1690_v22  ;;  %v1710_v2 = vsub.f32 1.5, %v1709_v15 }
 0x4df   :  { %v1699_v45 = vmul.f32 0.5, %v1698_v40  ;;  %v1816_v4 = vadd.f32 %v1795_v37, %v1768_v19 }
 0x4e0   :  { %v1695_v52 = vsel %vm1694_vm1, %v7453_v30, %v1691_v42  ;;  %v1711_v62 = vmul.f32 %v7455_v24, %v1710_v2 }
 0x4e1   :  { %v1700_v39 = vsub.f32 1.5, %v1699_v45  ;;  %v1721_v33 = vmul.f32 %v1695_v52, %v8491_v38  ;;  %vm1824_vm3 = vcmp.gt.f32.partialorder %v1816_v4, 0.0  ;;  %v1832_v10 = vmul.f32 0.2, %v1816_v4 }
 0x4e2   :  { %v1715_v21 = vsel %vm1714_vm8, %v7455_v24, %v1711_v62 }
 0x4e3   :  { %v1769_v57 = vmul.f32 %v8435_v14, %v1721_v33  ;;  %v1701_v31 = vmul.f32 %v7457_v23, %v1700_v39  ;;  %v1840_v26 = vsel %vm1824_vm3, %v1816_v4, %v1832_v10  ;;  %v1723_v58 = vmul.f32 %v1715_v21, %v8494_v9 }
 0x4e4   :  { %1936 = vmatmul.f32.gmra.mxu0 %v1840_v26  ;;  %1977 = vmatmul.f32.gmra.mxu2 %v1840_v26  ;;  %v1805_v53 = vpop.permute.xlu1 %1804 }
 0x4e5   :  { %v1817_v59 = vadd.f32 %v1800_v48, %v1769_v57  ;;  %v1705_v54 = vsel %vm1704_vm6, %v7457_v23, %v1701_v31  ;;  %2018 = vmatmul.f32.gmra.mxu3 %v1840_v26  ;;  %2059 = vmatmul.f32.gmra.mxu1 %v1840_v26  ;;  %v1771_v8 = vmul.f32 %v8453_v36, %v1723_v58 }
 0x4e6   :  { %v1722_v38 = vmul.f32 %v1705_v54, %v8498_v0  ;;  %v1810_v0 = vpop.permute.xlu0 %1809 }
 0x4e7   :  { %v1833_v50 = vmul.f32 0.2, %v1817_v59  ;;  %vm1825_vm9 = vcmp.gt.f32.partialorder %v1817_v59, 0.0  ;;  %v1819_v43 = vadd.f32 %v1810_v0, %v1771_v8  ;;  %v12451_v0 = vlaneseq }
 0x4e8   :  { %v1770_v14 = vmul.f32 %v8439_v7, %v1722_v38 }
 0x4e9   :  { %v1841_v18 = vsel %vm1825_vm9, %v1817_v59, %v1833_v50  ;;  %v1835_v7 = vmul.f32 0.2, %v1819_v43  ;;  %vm1827_vm12 = vcmp.gt.f32.partialorder %v1819_v43, 0.0 }
 0x4ea   :  { %v1818_v49 = vadd.f32 %v1805_v53, %v1770_v14 }
 0x4eb   :  { %v1843_v9 = vsel %vm1827_vm12, %v1819_v43, %v1835_v7  ;;  %v8796_v43 = vand.u32 127, %v12451_v0 }
 0x4ec   :  { %1939 = vmatmul.f32.gmra.mxu0 %v1841_v18  ;;  %1980 = vmatmul.f32.gmra.mxu2 %v1841_v18  ;;  %v1834_v1 = vmul.f32 0.2, %v1818_v49  ;;  %vm1826_vm11 = vcmp.gt.f32.partialorder %v1818_v49, 0.0 }
 0x4ed   :  { %2021 = vmatmul.f32.gmra.mxu3 %v1841_v18  ;;  %2062 = vmatmul.f32.gmra.mxu1 %v1841_v18  ;;  %12640 = vst [vmem:[#allocation37_spill] sm:$0xff] %v8796_v43  ;;  %vm2142_vm13 = vcmp.lt.s32.totalorder %v8796_v43, 17  ;;  %vm2397_vm14 = vcmp.lt.s32.totalorder %v8796_v43, 16  ;;  %vm2670_vm15 = vcmp.lt.s32.totalorder %v8796_v43, 15  ;;  %vm2943_vm0 = vcmp.lt.s32.totalorder %v8796_v43, 1 }
 0x4ee   :  { %v1842_v46 = vsel %vm1826_vm11, %v1818_v49, %v1834_v1  ;;  %vm3638_vm1 = vcmp.lt.s32.totalorder %v8796_v43, 113  ;;  %vm3365_vm2 = vcmp.lt.s32.totalorder %v8796_v43, 127  ;;  %vm3911_vm3 = vcmp.lt.s32.totalorder %v8796_v43, 112 }
 0x4ef   :  { %vm4184_vm4 = vcmp.lt.s32.totalorder %v8796_v43, 111 }
 0x4f4   :  { %1942 = vmatmul.f32.gmra.mxu0 %v1842_v46  ;;  %1983 = vmatmul.f32.gmra.mxu2 %v1842_v46 }
 0x4f5   :  { %2024 = vmatmul.f32.gmra.mxu3 %v1842_v46  ;;  %2065 = vmatmul.f32.gmra.mxu1 %v1842_v46 }
 0x4fc   :  { %1945 = vmatmul.f32.gmra.mxu0 %v1843_v9  ;;  %1986 = vmatmul.f32.gmra.mxu2 %v1843_v9 }
 0x4fd   :  { %2027 = vmatmul.f32.gmra.mxu3 %v1843_v9  ;;  %2068 = vmatmul.f32.gmra.mxu1 %v1843_v9 }
 0x516   :  { %v8539_v34 = vpop.f32.mrf.mxu0 }
 0x517   :  { %12612 = vst [vmem:[#allocation9_spill] sm:$0xff] %v8539_v34  ;;  %v8541_v37 = vpop.f32.mrf.mxu1 }
 0x518   :  { %12613 = vst [vmem:[#allocation10_spill] sm:$0xff] %v8541_v37 }
 0x51c   :  { %v8543_v36 = vpop.f32.mrf.mxu2 }
 0x51d   :  { %12614 = vst [vmem:[#allocation11_spill] sm:$0xff] %v8543_v36  ;;  %v8545_v60 = vpop.f32.mrf.mxu3 }
 0x51e   :  { %12615 = vst [vmem:[#allocation12_spill] sm:$0xff] %v8545_v60  ;;  %v8547_v12 = vpop.f32.mrf.mxu0 }
 0x51f   :  { %12616 = vst [vmem:[#allocation13_spill] sm:$0xff] %v8547_v12  ;;  %v8551_v55 = vpack.i.bf16 %v8547_v12, %v8539_v34  ;;  %v8553_v41 = vpop.f32.mrf.mxu1 }
 0x520   :  { %12617 = vst [vmem:[#allocation14_spill] sm:$0xff] %v8553_v41  ;;  %v8571_v44 = vpack.i.bf16 %v8553_v41, %v8541_v37 }
 0x521   :  { %6457 = vrot.lane.b32.xlu2 %v8551_v55, %s7543_s8  ;;  %6467 = vrot.lane.b32.xlu1 %v8551_v55, %s7544_s5 }
 0x524   :  { %v8559_v3 = vpop.f32.mrf.mxu2 }
 0x525   :  { %12618 = vst [vmem:[#allocation15_spill] sm:$0xff] %v8559_v3  ;;  %v8561_v13 = vpop.f32.mrf.mxu3  ;;  %v8575_v29 = vpack.i.bf16 %v8559_v3, %v8543_v36 }
 0x526   :  { %12619 = vst [vmem:[#allocation16_spill] sm:$0xff] %v8561_v13  ;;  %v8563_v35 = vpop.f32.mrf.mxu0  ;;  %v8567_v25 = vpack.i.bf16 %v8561_v13, %v8545_v60 }
 0x527   :  { %12620 = vst [vmem:[#allocation17_spill] sm:$0xff] %v8563_v35  ;;  %v8583_v56 = vpop.f32.mrf.mxu1 }
 0x528   :  { %6477 = vrot.lane.b32.xlu0 %v8567_v25, %s7543_s8  ;;  %12621 = vst [vmem:[#allocation18_spill] sm:$0xff] %v8583_v56 }
 0x529   :  { %6462 = vrot.lane.b32.xlu2 %v8571_v44, %s7543_s8  ;;  %6472 = vrot.lane.b32.xlu1 %v8575_v29, %s7543_s8 }
 0x52c   :  { %v8585_v6 = vpop.f32.mrf.mxu2 }
 0x52d   :  { %12622 = vst [vmem:[#allocation19_spill] sm:$0xff] %v8585_v6  ;;  %v8587_v32 = vpop.f32.mrf.mxu3 }
 0x52e   :  { %12623 = vst [vmem:[#allocation20_spill] sm:$0xff] %v8587_v32  ;;  %v8589_v28 = vpop.f32.mrf.mxu0 }
 0x52f   :  { %12624 = vst [vmem:[#allocation21_spill] sm:$0xff] %v8589_v28  ;;  %v8593_v30 = vpack.i.bf16 %v8589_v28, %v8563_v35  ;;  %v8599_v27 = vpop.f32.mrf.mxu1 }
 0x530   :  { %12625 = vst [vmem:[#allocation22_spill] sm:$0xff] %v8599_v27  ;;  %v8615_v16 = vpack.i.bf16 %v8599_v27, %v8583_v56 }
 0x531   :  { %6492 = vrot.lane.b32.xlu0 %v8593_v30, %s7544_s5  ;;  %6482 = vrot.lane.b32.xlu1 %v8593_v30, %s7543_s8 }
 0x534   :  { %v8601_v17 = vpop.f32.mrf.mxu2 }
 0x535   :  { %12626 = vst [vmem:[#allocation23_spill] sm:$0xff] %v8601_v17  ;;  %v8603_v24 = vpop.f32.mrf.mxu3  ;;  %v8611_v63 = vpack.i.bf16 %v8601_v17, %v8585_v6 }
 0x536   :  { %12627 = vst [vmem:[#allocation24_spill] sm:$0xff] %v8603_v24  ;;  %v8607_v61 = vpack.i.bf16 %v8603_v24, %v8587_v32 }
 0x538   :  { %6502 = vrot.lane.b32.xlu2 %v8607_v61, %s7543_s8 }
 0x539   :  { %6497 = vrot.lane.b32.xlu0 %v8611_v63, %s7543_s8  ;;  %6487 = vrot.lane.b32.xlu1 %v8615_v16, %s7543_s8 }
 0x561   :  { %v8623_v23 = vpop.f32.mrf.mxu0 }
 0x562   :  { %12628 = vst [vmem:[#allocation25_spill] sm:$0xff] %v8623_v23  ;;  %v8625_v51 = vpop.f32.mrf.mxu1 }
 0x563   :  { %12629 = vst [vmem:[#allocation26_spill] sm:$0xff] %v8625_v51 }
 0x567   :  { %v8627_v20 = vpop.f32.mrf.mxu2 }
 0x568   :  { %12630 = vst [vmem:[#allocation27_spill] sm:$0xff] %v8627_v20  ;;  %v8629_v5 = vpop.f32.mrf.mxu3 }
 0x569   :  { %v8631_v47 = vpop.f32.mrf.mxu0 }
 0x56a   :  { %12631 = vst [vmem:[#allocation28_spill] sm:$0xff] %v8631_v47  ;;  %v8635_v11 = vpack.i.bf16 %v8631_v47, %v8623_v23  ;;  %v8637_v22 = vpop.f32.mrf.mxu1 }
 0x56b   :  { %v8659_v4 = vpack.i.bf16 %v8637_v22, %v8625_v51 }
 0x56c   :  { %6507 = vrot.lane.b32.xlu0 %v8635_v11, %s7543_s8 }
 0x56f   :  { %v8641_v15 = vpop.f32.mrf.mxu2 }
 0x570   :  { %12632 = vst [vmem:[#allocation29_spill] sm:$0xff] %v8641_v15  ;;  %v8643_v40 = vpop.f32.mrf.mxu3  ;;  %v8647_v19 = vpack.i.bf16 %v8641_v15, %v8627_v20 }
 0x571   :  { %v8649_v42 = vpop.f32.mrf.mxu0  ;;  %v8653_v45 = vpack.i.bf16 %v8643_v40, %v8629_v5 }
 0x572   :  { %12633 = vst [vmem:[#allocation30_spill] sm:$0xff] %v8649_v42  ;;  %6517 = vrot.lane.b32.xlu2 %v8647_v19, %s7543_s8  ;;  %v8665_v2 = vpop.f32.mrf.mxu1 }
 0x573   :  { %6522 = vrot.lane.b32.xlu1 %v8653_v45, %s7543_s8 }
 0x574   :  { %6512 = vrot.lane.b32.xlu0 %v8659_v4, %s7543_s8 }
 0x577   :  { %v8689_v31 = vpop.f32.mrf.mxu2 }
 0x578   :  { %v8679_v33 = vpop.f32.mrf.mxu3  ;;  %12637 = vst [vmem:[#allocation34_spill] sm:$0xff] %v8689_v31 }
 0x579   :  { %v8667_v52 = vpop.f32.mrf.mxu0  ;;  %12635 = vst [vmem:[#allocation32_spill] sm:$0xff] %v8679_v33 }
 0x57a   :  { %12634 = vst [vmem:[#allocation31_spill] sm:$0xff] %v8667_v52  ;;  %v8671_v39 = vpack.i.bf16 %v8667_v52, %v8649_v42  ;;  %v8681_v10 = vpop.f32.mrf.mxu1 }
 0x57b   :  { %6552 = vrot.lane.b32.xlu1 %v8647_v19, %s7544_s5  ;;  %12636 = vst [vmem:[#allocation33_spill] sm:$0xff] %v8681_v10  ;;  %v8685_v57 = vpack.i.bf16 %v8681_v10, %v8665_v2  ;;  %v8739_v54 = vpop.permute.xlu2 %6457 }
 0x57c   :  { %6542 = vrot.lane.b32.xlu0 %v8575_v29, %s7544_s5  ;;  %6527 = vrot.lane.b32.xlu2 %v8671_v39, %s7543_s8  ;;  %v12485_v23 = vunpack.i.l.bf16 %v8739_v54 }
 0x57f   :  { %v8707_v62 = vpop.f32.mrf.mxu2 }
 0x580   :  { %v8695_v26 = vpop.f32.mrf.mxu3  ;;  %12639 = vst [vmem:[#allocation36_spill] sm:$0xff] %v8707_v62  ;;  %v8711_v59 = vpack.i.bf16 %v8707_v62, %v8689_v31 }
 0x581   :  { %12638 = vst [vmem:[#allocation35_spill] sm:$0xff] %v8695_v26  ;;  %v8699_v48 = vpack.i.bf16 %v8695_v26, %v8679_v33  ;;  %v8936_v26 = vld [vmem:[%s12433_s10 + $0x10] sm:$0xff] }
 0x583   :  { %6562 = vrot.lane.b32.xlu1 %v8607_v61, %s7544_s5  ;;  %v8751_v38 = vpop.permute.xlu2 %6462 }
 0x584   :  { %6567 = vrot.lane.b32.xlu0 %v8653_v45, %s7544_s5  ;;  %6532 = vrot.lane.b32.xlu2 %v8685_v57, %s7543_s8  ;;  %v12644_v51 = vunpack.i.h.bf16 %v8751_v38 }
 0x58b   :  { %6572 = vrot.lane.b32.xlu1 %v8671_v39, %s7544_s5 }
 0x58c   :  { %6587 = vrot.lane.b32.xlu0 %v8699_v48, %s7543_s8  ;;  %6537 = vrot.lane.b32.xlu2 %v8635_v11, %s7544_s5 }
 0x592   :  { %v8763_v14 = vpop.permute.xlu2 %6502 }
 0x593   :  { %6577 = vrot.lane.b32.xlu1 %v8711_v59, %s7543_s8  ;;  %v8753_v50 = vpop.permute.xlu1 %6467 }
 0x594   :  { %6592 = vrot.lane.b32.xlu0 %v8615_v16, %s7544_s5  ;;  %6547 = vrot.lane.b32.xlu2 %v8611_v63, %s7544_s5 }
 0x59a   :  { %v8757_v21 = vpop.permute.xlu0 %6477 }
 0x59b   :  { %6582 = vrot.lane.b32.xlu1 %v8571_v44, %s7544_s5  ;;  %v8765_v53 = vpop.permute.xlu1 %6472 }
 0x59c   :  { %6607 = vrot.lane.b32.xlu0 %v8551_v55, %s7545_s30  ;;  %6557 = vrot.lane.b32.xlu2 %v8567_v25, %s7544_s5 }
 0x5a3   :  { %6602 = vrot.lane.b32.xlu1 %v8685_v57, %s7544_s5  ;;  %v8769_v58 = vpop.permute.xlu0 %6492  ;;  %v8777_v18 = vpop.permute.xlu1 %6482 }
 0x5a4   :  { %6622 = vrot.lane.b32.xlu0 %v8671_v39, %s7545_s30  ;;  %6597 = vrot.lane.b32.xlu2 %v8659_v4, %s7544_s5  ;;  %v12487_v20 = vunpack.i.l.bf16 %v8777_v18  ;;  %v12641_v24 = vunpack.i.h.bf16 %v8777_v18 }
 0x5ab   :  { %6617 = vrot.lane.b32.xlu1 %v8635_v11, %s7545_s30  ;;  %v8785_v8 = vpop.permute.xlu0 %6497  ;;  %v8798_v46 = vpop.permute.xlu1 %6487 }
 0x5ac   :  { %6637 = vrot.lane.b32.xlu0 %v8711_v59, %s7544_s5  ;;  %6612 = vrot.lane.b32.xlu2 %v8593_v30, %s7545_s30  ;;  %v12642_v15 = vunpack.i.h.bf16 %v8798_v46  ;;  %v6499_v27 = vunpack.i.l.bf16 %v8785_v8 }
 0x5ae   :  { %v2170_v60 = vsel %vm2142_vm13, %v12642_v15, %v12641_v24  ;;  %v8890_v24 = vld [vmem:[%s12433_s10] sm:$0xff] }
 0x5b3   :  { %6632 = vrot.lane.b32.xlu1 %v8611_v63, %s7545_s30 }
 0x5b4   :  { %6642 = vrot.lane.b32.xlu0 %v8647_v19, %s7545_s30  ;;  %6627 = vrot.lane.b32.xlu2 %v8575_v29, %s7545_s30 }
 0x5bb   :  { %6647 = vrot.lane.b32.xlu1 %v8567_v25, %s7545_s30 }
 0x5bc   :  { %6652 = vrot.lane.b32.xlu0 %v8607_v61, %s7545_s30  ;;  %6657 = vrot.lane.b32.xlu2 %v8699_v48, %s7544_s5 }
 0x5c3   :  { %6677 = vrot.lane.b32.xlu1 %v8659_v4, %s7545_s30 }
 0x5c4   :  { %6667 = vrot.lane.b32.xlu0 %v8571_v44, %s7545_s30  ;;  %6662 = vrot.lane.b32.xlu2 %v8653_v45, %s7545_s30 }
 0x5cb   :  { %6692 = vrot.lane.b32.xlu1 %v8593_v30, %s7538_s1 }
 0x5cc   :  { %6682 = vrot.lane.b32.xlu0 %v8685_v57, %s7545_s30  ;;  %6672 = vrot.lane.b32.xlu2 %v8615_v16, %s7545_s30  ;;  %v8775_v49 = vpop.permute.xlu2 %6517 }
 0x5d3   :  { %6712 = vrot.lane.b32.xlu1 %v8699_v48, %s7545_s30 }
 0x5d4   :  { %6697 = vrot.lane.b32.xlu0 %v8635_v11, %s7538_s1  ;;  %6687 = vrot.lane.b32.xlu2 %v8551_v55, %s7538_s1 }
 0x5d6   :  { %v8787_v1 = vpop.permute.xlu2 %6527 }
 0x5d7   :  { %v12456_v36 = vunpack.i.h.bf16 %v8787_v1  ;;  %v12466_v34 = vunpack.i.l.bf16 %v8787_v1 }
 0x5db   :  { %6717 = vrot.lane.b32.xlu1 %v8575_v29, %s7538_s1 }
 0x5dc   :  { %6722 = vrot.lane.b32.xlu0 %v8611_v63, %s7538_s1  ;;  %6702 = vrot.lane.b32.xlu2 %v8711_v59, %s7545_s30 }
 0x5de   :  { %v8800_v7 = vpop.permute.xlu0 %6507  ;;  %v8802_v9 = vpop.permute.xlu2 %6532 }
 0x5df   :  { %v12457_v37 = vunpack.i.h.bf16 %v8802_v9  ;;  %v12467_v3 = vunpack.i.l.bf16 %v8802_v9  ;;  %v12470_v6 = vunpack.i.h.bf16 %v8800_v7  ;;  %v12645_v31 = vunpack.i.h.bf16 %v8802_v9 }
 0x5e1   :  { %v2174_v0 = vsel %vm2142_vm13, %v12457_v37, %v12456_v36  ;;  %v2173_v41 = vsel %vm2142_vm13, %v12467_v3, %v12466_v34  ;;  %v12479_v3 = vunpack.i.l.bf16 %v8800_v7 }
 0x5e2   :  { %2199 = vmatpush.msrb.mxu0 %v2174_v0 }
 0x5e3   :  { %6742 = vrot.lane.b32.xlu1 %v8653_v45, %s7538_s1 }
 0x5e4   :  { %6732 = vrot.lane.b32.xlu0 %v8567_v25, %s7538_s1  ;;  %6707 = vrot.lane.b32.xlu2 %v8671_v39, %s7538_s1 }
 0x5e5   :  { %v8827_v36 = vpop.permute.xlu1 %6522  ;;  %2200 = vmatpush.msrb.mxu0 %v2173_v41 }
 0x5e6   :  { %v8829_v0 = vpop.permute.xlu0 %6512  ;;  %v8831_v37 = vpop.permute.xlu2 %6537  ;;  %v6525_v62 = vunpack.i.h.bf16 %v8827_v36  ;;  %v6524_v56 = vunpack.i.l.bf16 %v8827_v36  ;;  %v12649_v36 = vunpack.i.l.bf16 %v8787_v1 }
 0x5e7   :  { %v6515_v12 = vunpack.i.h.bf16 %v8829_v0  ;;  %v12480_v17 = vunpack.i.l.bf16 %v8829_v0 }
 0x5e9   :  { %v2172_v35 = vsel %vm2142_vm13, %v6515_v12, %v12470_v6  ;;  %v2148_v13 = vsel %vm2142_vm13, %v6525_v62, %v6515_v12  ;;  %v12648_v12 = vunpack.i.l.bf16 %v8829_v0 }
 0x5ea   :  { %2201 = vmatpush.msrb.mxu0 %v2172_v35  ;;  %v2171_v35 = vsel %vm2142_vm13, %v12480_v17, %v12479_v3  ;;  %v12486_v3 = vunpack.i.h.bf16 %v8739_v54  ;;  %v12643_v17 = vunpack.i.l.bf16 %v8798_v46 }
 0x5eb   :  { %6752 = vrot.lane.b32.xlu1 %v8615_v16, %s7538_s1  ;;  %v2147_v32 = vsel %vm2142_vm13, %v6524_v56, %v12648_v12 }
 0x5ec   :  { %6762 = vrot.lane.b32.xlu0 %v8699_v48, %s7538_s1  ;;  %6727 = vrot.lane.b32.xlu2 %v8647_v19, %s7538_s1  ;;  %v2169_v34 = vsel %vm2142_vm13, %v12643_v17, %v12487_v20 }
 0x5ed   :  { %v8856_v6 = vpop.permute.xlu1 %6552  ;;  %2202 = vmatpush.msrb.mxu0 %v2171_v35  ;;  %v12488_v35 = vunpack.i.l.bf16 %v8751_v38 }
 0x5ee   :  { %v8860_v41 = vpop.permute.xlu0 %6542  ;;  %v8862_v28 = vpop.permute.xlu2 %6547 }
 0x5ef   :  { %2203 = vmatpush.msrb.mxu0 %v2170_v60  ;;  %v2168_v60 = vsel %vm2142_vm13, %v12644_v51, %v12486_v3 }
 0x5f1   :  { %2204 = vmatpush.msrb.mxu0 %v2169_v34  ;;  %v2167_v34 = vsel %vm2142_vm13, %v12488_v35, %v12485_v23 }
 0x5f3   :  { %6757 = vrot.lane.b32.xlu1 %v8711_v59, %s7538_s1  ;;  %2205 = vmatpush.msrb.mxu0 %v2168_v60  ;;  %v8915_v60 = vld [vmem:[%s12433_s10 + $0x8] sm:$0xff] }
 0x5f4   :  { %6767 = vrot.lane.b32.xlu0 %v8659_v4, %s7538_s1  ;;  %6737 = vrot.lane.b32.xlu2 %v8607_v61, %s7538_s1 }
 0x5f5   :  { %v8902_v17 = vpop.permute.xlu1 %6562  ;;  %2206 = vmatpush.msrb.mxu0 %v2167_v34 }
 0x5f6   :  { %v8904_v51 = vpop.permute.xlu0 %6567  ;;  %v8906_v15 = vpop.permute.xlu2 %6557  ;;  %6044 = vmatmul.msk.f32.vlgmr.msrb.gmra.mxu0 %vm563_vm10, %v8890_v24 }
 0x5fb   :  { %6777 = vrot.lane.b32.xlu1 %v8551_v55, %s7539_s20 }
 0x5fc   :  { %6782 = vrot.lane.b32.xlu0 %v8593_v30, %s7539_s20  ;;  %6747 = vrot.lane.b32.xlu2 %v8571_v44, %s7538_s1 }
 0x5fd   :  { %v8921_v34 = vpop.permute.xlu1 %6572 }
 0x5fe   :  { %v6588_v23 = vpop.permute.xlu0 %6587  ;;  %v8923_v3 = vpop.permute.xlu2 %6597  ;;  %6045 = vmatmul.msk.f32.gmra.mxu0 %vm563_vm10, %v8915_v60 }
 0x5ff   :  { %v6590_v20 = vunpack.i.h.bf16 %v6588_v23  ;;  %v6589_v35 = vunpack.i.l.bf16 %v6588_v23  ;;  %v12646_v23 = vunpack.i.l.bf16 %v8802_v9  ;;  %v12647_v9 = vunpack.i.h.bf16 %v8787_v1 }
 0x600   :  { %v6480_v1 = vunpack.i.h.bf16 %v8757_v21 }
 0x601   :  { %v2150_v47 = vsel %vm2142_vm13, %v6590_v20, %v12645_v31 }
 0x602   :  { %2286 = vmatpush.msra.mxu3 %v2150_v47  ;;  %v2149_v47 = vsel %vm2142_vm13, %v6589_v35, %v12646_v23 }
 0x603   :  { %6792 = vrot.lane.b32.xlu1 %v8671_v39, %s7539_s20 }
 0x604   :  { %6797 = vrot.lane.b32.xlu0 %v8575_v29, %s7539_s20  ;;  %6772 = vrot.lane.b32.xlu2 %v8685_v57, %s7538_s1 }
 0x605   :  { %v6578_v31 = vpop.permute.xlu1 %6577  ;;  %2287 = vmatpush.msra.mxu3 %v2149_v47 }
 0x606   :  { %v6580_v42 = vunpack.i.h.bf16 %v6578_v31  ;;  %v6579_v10 = vunpack.i.l.bf16 %v6578_v31  ;;  %v8947_v33 = vpop.permute.xlu0 %6592  ;;  %v8949_v52 = vpop.permute.xlu2 %6612  ;;  %6046 = vmatmul.msk.f32.gmra.mxu0 %vm563_vm10, %v8936_v26  ;;  %v6505_v31 = vunpack.i.h.bf16 %v8763_v14 }
 0x607   :  { %2288 = vmatpush.msra.mxu3 %v2148_v13 }
 0x608   :  { %v2166_v23 = vsel %vm2142_vm13, %v12647_v9, %v6580_v42  ;;  %v2158_v47 = vsel %vm2142_vm13, %v6580_v42, %v6590_v20  ;;  %v2165_v13 = vsel %vm2142_vm13, %v12649_v36, %v6579_v10  ;;  %v6520_v9 = vunpack.i.h.bf16 %v8775_v49 }
 0x609   :  { %2228 = vmatpush.msra.mxu0 %v2166_v23  ;;  %2257 = vmatpush.msra.mxu2 %v2158_v47  ;;  %v2157_v20 = vsel %vm2142_vm13, %v6579_v10, %v6589_v35  ;;  %v12650_v42 = vunpack.i.h.bf16 %v8798_v46  ;;  %v8985_v23 = vld [vmem:[%s12433_s10 + $0x18] sm:$0xff]  ;;  %v6500_v47 = vunpack.i.h.bf16 %v8785_v8  ;;  %v6519_v10 = vunpack.i.l.bf16 %v8775_v49 }
 0x60a   :  { %2289 = vmatpush.msra.mxu3 %v2147_v32  ;;  %v6504_v32 = vunpack.i.l.bf16 %v8763_v14  ;;  %v12651_v14 = vunpack.i.h.bf16 %v8800_v7  ;;  %v2156_v36 = vsel %vm2142_vm13, %v6520_v9, %v6525_v62  ;;  %v12652_v49 = vunpack.i.l.bf16 %v8798_v46 }
 0x60b   :  { %6807 = vrot.lane.b32.xlu1 %v8647_v19, %s7539_s20  ;;  %2229 = vmatpush.msra.mxu0 %v2165_v13  ;;  %v2146_v0 = vsel %vm2142_vm13, %v6505_v31, %v12650_v42  ;;  %v6479_v13 = vunpack.i.l.bf16 %v8757_v21  ;;  %v2155_v21 = vsel %vm2142_vm13, %v6519_v10, %v6524_v56  ;;  %v12654_v46 = vunpack.i.h.bf16 %v8751_v38 }
 0x60c   :  { %2258 = vmatpush.msra.mxu2 %v2157_v20  ;;  %2290 = vmatpush.msra.mxu3 %v2146_v0  ;;  %v2164_v12 = vsel %vm2142_vm13, %v12651_v14, %v6520_v9  ;;  %v2145_v20 = vsel %vm2142_vm13, %v6504_v32, %v12652_v49  ;;  %v12653_v14 = vunpack.i.l.bf16 %v8800_v7  ;;  %v6475_v8 = vunpack.i.h.bf16 %v8765_v53 }
 0x60d   :  { %6822 = vrot.lane.b32.xlu0 %v8653_v45, %s7539_s20  ;;  %v8991_v35 = vpop.permute.xlu1 %6582  ;;  %6787 = vrot.lane.b32.xlu2 %v8635_v11, %s7539_s20  ;;  %v2144_v9 = vsel %vm2142_vm13, %v6480_v1, %v12654_v46  ;;  %v12655_v7 = vunpack.i.h.bf16 %v8777_v18  ;;  %v2154_v56 = vsel %vm2142_vm13, %v6500_v47, %v6505_v31  ;;  %v2153_v31 = vsel %vm2142_vm13, %v6499_v27, %v6504_v32 }
 0x60e   :  { %2230 = vmatpush.msra.mxu0 %v2164_v12  ;;  %2259 = vmatpush.msra.mxu2 %v2156_v36  ;;  %v9006_v42 = vpop.permute.xlu0 %6607  ;;  %v9008_v0 = vpop.permute.xlu2 %6627  ;;  %v2163_v62 = vsel %vm2142_vm13, %v12653_v14, %v6519_v10  ;;  %v6474_v10 = vunpack.i.l.bf16 %v8765_v53  ;;  %v12656_v36 = vunpack.i.l.bf16 %v8751_v38  ;;  %v12658_v53 = vunpack.i.h.bf16 %v8739_v54 }
 0x60f   :  { %2291 = vmatpush.msra.mxu3 %v2145_v20  ;;  %6047 = vmatmul.msk.f32.gmra.mxu0 %vm563_vm10, %v8985_v23  ;;  %v2162_v12 = vsel %vm2142_vm13, %v12655_v7, %v6500_v47  ;;  %v12657_v20 = vunpack.i.l.bf16 %v8777_v18  ;;  %v2152_v47 = vsel %vm2142_vm13, %v6475_v8, %v6480_v1  ;;  %v12659_v46 = vunpack.i.l.bf16 %v8739_v54 }
 0x610   :  { %2231 = vmatpush.msra.mxu0 %v2163_v62  ;;  %2260 = vmatpush.msra.mxu2 %v2155_v21  ;;  %v2143_v49 = vsel %vm2142_vm13, %v6479_v13, %v12656_v36  ;;  %v2160_v18 = vsel %vm2142_vm13, %v12658_v53, %v6475_v8  ;;  %v6575_v62 = vunpack.i.h.bf16 %v8921_v34  ;;  %v2151_v7 = vsel %vm2142_vm13, %v6474_v10, %v6479_v13 }
 0x611   :  { %2292 = vmatpush.msra.mxu3 %v2144_v9  ;;  %v2161_v14 = vsel %vm2142_vm13, %v12657_v20, %v6499_v27  ;;  %v2159_v9 = vsel %vm2142_vm13, %v12659_v46, %v6474_v10  ;;  %v6600_v36 = vunpack.i.h.bf16 %v8923_v3  ;;  %v6540_v10 = vunpack.i.h.bf16 %v8831_v37 }
 0x612   :  { %2232 = vmatpush.msra.mxu0 %v2162_v12  ;;  %2261 = vmatpush.msra.mxu2 %v2154_v56  ;;  %v6574_v56 = vunpack.i.l.bf16 %v8921_v34  ;;  %v6599_v20 = vunpack.i.l.bf16 %v8923_v3  ;;  %v6569_v3 = vunpack.i.l.bf16 %v8904_v51  ;;  %v6554_v34 = vunpack.i.l.bf16 %v8856_v6 }
 0x613   :  { %2293 = vmatpush.msra.mxu3 %v2143_v49  ;;  %6817 = vrot.lane.b32.xlu1 %v8607_v61, %s7539_s20  ;;  %v6570_v49 = vunpack.i.h.bf16 %v8904_v51 }
 0x614   :  { %2233 = vmatpush.msra.mxu0 %v2161_v14  ;;  %2262 = vmatpush.msra.mxu2 %v2153_v31  ;;  %v6595_v31 = vunpack.i.h.bf16 %v8947_v33 }
 0x615   :  { %6832 = vrot.lane.b32.xlu0 %v8615_v16, %s7539_s20  ;;  %v6603_v38 = vpop.permute.xlu1 %6602  ;;  %6802 = vrot.lane.b32.xlu2 %v8611_v63, %s7539_s20 }
 0x616   :  { %v6605_v27 = vunpack.i.h.bf16 %v6603_v38  ;;  %2234 = vmatpush.msra.mxu0 %v2160_v18  ;;  %2263 = vmatpush.msra.mxu2 %v2152_v47  ;;  %v9054_v32 = vpop.permute.xlu0 %6622  ;;  %v9056_v21 = vpop.permute.xlu2 %6657  ;;  %v6604_v12 = vunpack.i.l.bf16 %v6603_v38  ;;  %v6539_v38 = vunpack.i.l.bf16 %v8831_v37  ;;  %v2427_v18 = vsel %vm2397_vm14, %v6600_v36, %v6540_v10 }
 0x617   :  { %v6660_v1 = vunpack.i.h.bf16 %v9056_v21  ;;  %v6659_v8 = vunpack.i.l.bf16 %v9056_v21  ;;  %6056 = vmatmul.msk.f32.vlgmr.msra.gmra.mxu3 %vm563_vm10, %v8890_v24  ;;  %v2403_v47 = vsel %vm2397_vm14, %v6570_v49, %v6600_v36  ;;  %v2402_v36 = vsel %vm2397_vm14, %v6569_v3, %v6599_v20 }
 0x618   :  { %2235 = vmatpush.msra.mxu0 %v2159_v9  ;;  %2264 = vmatpush.msra.mxu2 %v2151_v7  ;;  %v2429_v54 = vsel %vm2397_vm14, %v6605_v27, %v6575_v62  ;;  %v2428_v14 = vsel %vm2397_vm14, %v6604_v12, %v6574_v56  ;;  %v6594_v7 = vunpack.i.l.bf16 %v8947_v33 }
 0x619   :  { %6048 = vmatmul.msk.f32.vlgmr.msra.gmra.mxu0 %vm563_vm10, %v8890_v24  ;;  %6052 = vmatmul.msk.f32.vlgmr.msra.gmra.mxu2 %vm563_vm10, %v8890_v24  ;;  %v2405_v13 = vsel %vm2397_vm14, %v6660_v1, %v6605_v27  ;;  %v2404_v24 = vsel %vm2397_vm14, %v6659_v8, %v6604_v12  ;;  %v6495_v27 = vunpack.i.h.bf16 %v8769_v58 }
 0x61a   :  { %2455 = vmatpush.msra.mxu1 %v2429_v54  ;;  %2542 = vmatpush.msrb.mxu3 %v2405_v13  ;;  %v2426_v54 = vsel %vm2397_vm14, %v6599_v20, %v6539_v38  ;;  %v6494_v13 = vunpack.i.l.bf16 %v8769_v58  ;;  %v6061_v58 = vld [vmem:[%s12433_s10 + $0x28] sm:$0xff] }
 0x61b   :  { %6827 = vrot.lane.b32.xlu1 %v8571_v44, %s7539_s20  ;;  %v2425_v33 = vsel %vm2397_vm14, %v6595_v31, %v6495_v27 }
 0x61c   :  { %2456 = vmatpush.msra.mxu1 %v2428_v14  ;;  %2543 = vmatpush.msrb.mxu3 %v2404_v24  ;;  %v6565_v14 = vunpack.i.h.bf16 %v8902_v17  ;;  %v6585_v24 = vunpack.i.h.bf16 %v8991_v35 }
 0x61d   :  { %6847 = vrot.lane.b32.xlu0 %v8551_v55, %s7546_s4  ;;  %v9097_v53 = vpop.permute.xlu1 %6617  ;;  %6812 = vrot.lane.b32.xlu2 %v8567_v25, %s7539_s20 }
 0x61e   :  { %2457 = vmatpush.msra.mxu1 %v2427_v18  ;;  %v6638_v46 = vpop.permute.xlu0 %6637  ;;  %v9110_v9 = vpop.permute.xlu2 %6662  ;;  %2544 = vmatpush.msrb.mxu3 %v2403_v47 }
 0x61f   :  { %v6640_v12 = vunpack.i.h.bf16 %v6638_v46  ;;  %6057 = vmatmul.msk.f32.gmra.mxu3 %vm563_vm10, %v8915_v60  ;;  %v6639_v18 = vunpack.i.l.bf16 %v6638_v46  ;;  %v6584_v46 = vunpack.i.l.bf16 %v8991_v35  ;;  %v6469_v35 = vunpack.i.l.bf16 %v8753_v50 }
 0x620   :  { %2458 = vmatpush.msra.mxu1 %v2426_v54  ;;  %2545 = vmatpush.msrb.mxu3 %v2402_v36  ;;  %v12513_v54 = vunpack.i.h.bf16 %v8753_v50  ;;  %v6555_v36 = vunpack.i.h.bf16 %v8856_v6 }
 0x621   :  { %6049 = vmatmul.msk.f32.gmra.mxu0 %vm563_vm10, %v8915_v60  ;;  %6053 = vmatmul.msk.f32.gmra.mxu2 %vm563_vm10, %v8915_v60  ;;  %v2421_v20 = vsel %vm2397_vm14, %v6575_v62, %v6640_v12  ;;  %v2413_v47 = vsel %vm2397_vm14, %v6640_v12, %v6660_v1  ;;  %v2424_v60 = vsel %vm2397_vm14, %v6594_v7, %v6494_v13  ;;  %v6564_v1 = vunpack.i.l.bf16 %v8902_v17 }
 0x622   :  { %2459 = vmatpush.msra.mxu1 %v2425_v33  ;;  %2484 = vmatpush.msrb.mxu0 %v2421_v20  ;;  %v2401_v62 = vsel %vm2397_vm14, %v6565_v14, %v6595_v31  ;;  %v2423_v33 = vsel %vm2397_vm14, %v6585_v24, %v12513_v54  ;;  %v2420_v31 = vsel %vm2397_vm14, %v6574_v56, %v6639_v18  ;;  %v6560_v20 = vunpack.i.h.bf16 %v8906_v15 }
 0x623   :  { %6842 = vrot.lane.b32.xlu1 %v8685_v57, %s7539_s20  ;;  %2513 = vmatpush.msrb.mxu2 %v2413_v47  ;;  %v2412_v47 = vsel %vm2397_vm14, %v6639_v18, %v6659_v8  ;;  %v2422_v56 = vsel %vm2397_vm14, %v6584_v46, %v6469_v35  ;;  %v2419_v21 = vsel %vm2397_vm14, %v6540_v10, %v6555_v36  ;;  %v6550_v18 = vunpack.i.h.bf16 %v8862_v28 }
 0x624   :  { %2460 = vmatpush.msra.mxu1 %v2424_v60  ;;  %2546 = vmatpush.msrb.mxu3 %v2401_v62  ;;  %v2400_v60 = vsel %vm2397_vm14, %v6564_v1, %v6594_v7  ;;  %v2411_v8 = vsel %vm2397_vm14, %v6555_v36, %v6570_v49  ;;  %v2399_v6 = vsel %vm2397_vm14, %v6560_v20, %v6585_v24  ;;  %v9196_v7 = vld [vmem:[%s12433_s10 + $0x20] sm:$0xff]  ;;  %v6559_v10 = vunpack.i.l.bf16 %v8906_v15 }
 0x625   :  { %6862 = vrot.lane.b32.xlu0 %v8671_v39, %s7546_s4  ;;  %v9155_v12 = vpop.permute.xlu1 %6632  ;;  %6837 = vrot.lane.b32.xlu2 %v8659_v4, %s7539_s20  ;;  %v6549_v49 = vunpack.i.l.bf16 %v8862_v28  ;;  %v2418_v24 = vsel %vm2397_vm14, %v6539_v38, %v6554_v34  ;;  %v2410_v15 = vsel %vm2397_vm14, %v6554_v34, %v6569_v3  ;;  %v2417_v37 = vsel %vm2397_vm14, %v6495_v27, %v6550_v18 }
 0x626   :  { %2461 = vmatpush.msra.mxu1 %v2423_v33  ;;  %2485 = vmatpush.msrb.mxu0 %v2420_v31  ;;  %v9174_v62 = vpop.permute.xlu0 %6642  ;;  %v9176_v54 = vpop.permute.xlu2 %6672  ;;  %v2398_v28 = vsel %vm2397_vm14, %v6559_v10, %v6584_v46  ;;  %v2409_v51 = vsel %vm2397_vm14, %v6550_v18, %v6565_v14  ;;  %v6544_v14 = vunpack.i.l.bf16 %v8860_v41  ;;  %v12660_v46 = vunpack.i.h.bf16 %v8753_v50 }
 0x627   :  { %2514 = vmatpush.msrb.mxu2 %v2412_v47  ;;  %2547 = vmatpush.msrb.mxu3 %v2400_v60  ;;  %v2416_v17 = vsel %vm2397_vm14, %v6494_v13, %v6549_v49  ;;  %v2408_v27 = vsel %vm2397_vm14, %v6549_v49, %v6564_v1  ;;  %v6625_v47 = vunpack.i.h.bf16 %v9054_v32  ;;  %v9288_v60 = vld [vmem:[%s12433_s10 + $0x30] sm:$0xff] }
 0x628   :  { %2462 = vmatpush.msra.mxu1 %v2422_v56  ;;  %2486 = vmatpush.msrb.mxu0 %v2419_v21  ;;  %v2406_v13 = vsel %vm2397_vm14, %v6544_v14, %v6559_v10  ;;  %v6624_v56 = vunpack.i.l.bf16 %v9054_v32  ;;  %v6645_v21 = vunpack.i.h.bf16 %v9174_v62 }
 0x629   :  { %2515 = vmatpush.msrb.mxu2 %v2411_v8  ;;  %2548 = vmatpush.msrb.mxu3 %v2399_v6  ;;  %v6620_v8 = vunpack.i.h.bf16 %v9097_v53  ;;  %v6644_v6 = vunpack.i.l.bf16 %v9174_v62 }
 0x62a   :  { %6050 = vmatmul.msk.f32.gmra.mxu0 %vm563_vm10, %v8936_v26  ;;  %6054 = vmatmul.msk.f32.gmra.mxu2 %vm563_vm10, %v8936_v26 }
 0x62b   :  { %6058 = vmatmul.msk.f32.gmra.mxu3 %vm563_vm10, %v8936_v26  ;;  %6064 = vmatmul.msk.f32.vlgmr.msra.gmra.mxu1 %vm563_vm10, %v9196_v7  ;;  %v6545_v26 = vunpack.i.h.bf16 %v8860_v41  ;;  %v2414_v41 = vsel %vm2397_vm14, %v6469_v35, %v6544_v14 }
 0x62c   :  { %2487 = vmatpush.msrb.mxu0 %v2418_v24  ;;  %2516 = vmatpush.msrb.mxu2 %v2410_v15  ;;  %v2692_v15 = vsel %vm2670_vm15, %v6620_v8, %v6645_v21 }
 0x62d   :  { %2549 = vmatpush.msrb.mxu3 %v2398_v28  ;;  %6857 = vrot.lane.b32.xlu1 %v8635_v11, %s7546_s4  ;;  %v9230_v38 = vpop.permute.xlu1 %6647  ;;  %v2415_v33 = vsel %vm2397_vm14, %v12660_v46, %v6545_v26  ;;  %v2407_v31 = vsel %vm2397_vm14, %v6545_v26, %v6560_v20  ;;  %v6614_v46 = vunpack.i.l.bf16 %v8949_v52 }
 0x62e   :  { %2488 = vmatpush.msrb.mxu0 %v2417_v37  ;;  %2517 = vmatpush.msrb.mxu2 %v2409_v51  ;;  %v9232_v3 = vpop.permute.xlu0 %6652  ;;  %v9234_v36 = vpop.permute.xlu2 %6687  ;;  %v6615_v37 = vunpack.i.h.bf16 %v8949_v52  ;;  %v6634_v51 = vunpack.i.l.bf16 %v9155_v12  ;;  %v6629_v52 = vunpack.i.l.bf16 %v9008_v0  ;;  %v6650_v62 = vunpack.i.h.bf16 %v9230_v38 }
 0x62f   :  { %6877 = vrot.lane.b32.xlu0 %v8647_v19, %s7546_s4  ;;  %6852 = vrot.lane.b32.xlu2 %v8593_v30, %s7546_s4 }
 0x630   :  { %2489 = vmatpush.msrb.mxu0 %v2416_v17  ;;  %2518 = vmatpush.msrb.mxu2 %v2408_v27 }
 0x632   :  { %2490 = vmatpush.msrb.mxu0 %v2415_v33  ;;  %2519 = vmatpush.msrb.mxu2 %v2407_v31  ;;  %v6610_v33 = vunpack.i.h.bf16 %v9006_v42  ;;  %v6630_v31 = vunpack.i.h.bf16 %v9008_v0 }
 0x633   :  { %6051 = vmatmul.msk.f32.gmra.mxu0 %vm563_vm10, %v8985_v23  ;;  %6055 = vmatmul.msk.f32.gmra.mxu2 %vm563_vm10, %v8985_v23 }
 0x634   :  { %6059 = vmatmul.msk.f32.gmra.mxu3 %vm563_vm10, %v8985_v23  ;;  %6065 = vmatmul.msk.f32.gmra.mxu1 %vm563_vm10, %v6061_v58 }
 0x635   :  { %2491 = vmatpush.msrb.mxu0 %v2414_v41  ;;  %2520 = vmatpush.msrb.mxu2 %v2406_v13  ;;  %v9269_v1 = vpop.permute.xlu1 %6677 }
 0x636   :  { %6872 = vrot.lane.b32.xlu1 %v8611_v63, %s7546_s4  ;;  %v9273_v20 = vpop.permute.xlu0 %6667  ;;  %v9275_v23 = vpop.permute.xlu2 %6702  ;;  %v6680_v17 = vunpack.i.h.bf16 %v9269_v1  ;;  %v6679_v41 = vunpack.i.l.bf16 %v9269_v1  ;;  %v6081_v1 = vld [vmem:[%s12433_s10 + $0x40] sm:$0xff] }
 0x637   :  { %6887 = vrot.lane.b32.xlu0 %v8711_v59, %s7539_s20  ;;  %6867 = vrot.lane.b32.xlu2 %v8575_v29, %s7546_s4  ;;  %v6705_v50 = vunpack.i.h.bf16 %v9275_v23  ;;  %v6704_v35 = vunpack.i.l.bf16 %v9275_v23 }
 0x639   :  { %v2694_v34 = vsel %vm2670_vm15, %v6625_v47, %v6705_v50  ;;  %v2693_v32 = vsel %vm2670_vm15, %v6624_v56, %v6704_v35 }
 0x63a   :  { %2757 = vmatpush.msra.mxu0 %v2694_v34 }
 0x63b   :  { %6068 = vmatmul.msk.f32.vlgmr.msrb.gmra.mxu0 %vm563_vm10, %v9196_v7  ;;  %6072 = vmatmul.msk.f32.vlgmr.msrb.gmra.mxu2 %vm563_vm10, %v9196_v7 }
 0x63c   :  { %6066 = vmatmul.msk.f32.gmra.mxu1 %vm563_vm10, %v9288_v60  ;;  %6076 = vmatmul.msk.f32.vlgmr.msrb.gmra.mxu3 %vm563_vm10, %v9196_v7  ;;  %v6619_v7 = vunpack.i.l.bf16 %v9097_v53  ;;  %v9333_v53 = vld [vmem:[%s12433_s10 + $0x38] sm:$0xff] }
 0x63d   :  { %v9310_v18 = vpop.permute.xlu1 %6692  ;;  %2758 = vmatpush.msra.mxu0 %v2693_v32  ;;  %v2700_v32 = vsel %vm2670_vm15, %v6680_v17, %v6620_v8 }
 0x63e   :  { %6882 = vrot.lane.b32.xlu1 %v8567_v25, %s7546_s4  ;;  %v9314_v10 = vpop.permute.xlu0 %6682  ;;  %v9316_v49 = vpop.permute.xlu2 %6707  ;;  %v6635_v25 = vunpack.i.h.bf16 %v9155_v12  ;;  %v2699_v8 = vsel %vm2670_vm15, %v6679_v41, %v6619_v7  ;;  %v2680_v12 = vsel %vm2670_vm15, %v6630_v31, %v6650_v62 }
 0x63f   :  { %6892 = vrot.lane.b32.xlu0 %v8607_v61, %s7546_s4  ;;  %6897 = vrot.lane.b32.xlu2 %v8699_v48, %s7539_s20  ;;  %v6685_v24 = vunpack.i.h.bf16 %v9314_v10  ;;  %v6684_v28 = vunpack.i.l.bf16 %v9314_v10  ;;  %v2691_v61 = vsel %vm2670_vm15, %v6619_v7, %v6644_v6 }
 0x640   :  { %2759 = vmatpush.msra.mxu0 %v2692_v15  ;;  %v2690_v27 = vsel %vm2670_vm15, %v6615_v37, %v6635_v25  ;;  %v2688_v15 = vsel %vm2670_vm15, %v6610_v33, %v6630_v31 }
 0x641   :  { %v2702_v26 = vsel %vm2670_vm15, %v6685_v24, %v6625_v47  ;;  %v2701_v14 = vsel %vm2670_vm15, %v6684_v28, %v6624_v56  ;;  %v6609_v56 = vunpack.i.l.bf16 %v9006_v42  ;;  %v6675_v42 = vunpack.i.h.bf16 %v9176_v54 }
 0x642   :  { %2760 = vmatpush.msra.mxu0 %v2691_v61  ;;  %2728 = vmatpush.msrb.mxu1 %v2702_v26  ;;  %v6674_v61 = vunpack.i.l.bf16 %v9176_v54  ;;  %v6670_v26 = vunpack.i.h.bf16 %v9273_v20 }
 0x643   :  { %6069 = vmatmul.msk.f32.gmra.mxu0 %vm563_vm10, %v6061_v58  ;;  %6073 = vmatmul.msk.f32.gmra.mxu2 %vm563_vm10, %v6061_v58  ;;  %v2698_v7 = vsel %vm2670_vm15, %v6675_v42, %v6615_v37  ;;  %v6655_v37 = vunpack.i.h.bf16 %v9232_v3 }
 0x644   :  { %6067 = vmatmul.msk.f32.gmra.mxu1 %vm563_vm10, %v9333_v53  ;;  %6077 = vmatmul.msk.f32.gmra.mxu3 %vm563_vm10, %v6061_v58 }
 0x645   :  { %2761 = vmatpush.msra.mxu0 %v2690_v27  ;;  %v6713_v13 = vpop.permute.xlu1 %6712  ;;  %2729 = vmatpush.msrb.mxu1 %v2701_v14 }
 0x646   :  { %6917 = vrot.lane.b32.xlu1 %v8659_v4, %s7546_s4  ;;  %v6715_v58 = vunpack.i.h.bf16 %v6713_v13  ;;  %v9361_v47 = vpop.permute.xlu0 %6697  ;;  %v9363_v34 = vpop.permute.xlu2 %6727  ;;  %v2689_v4 = vsel %vm2670_vm15, %v6614_v46, %v6634_v51  ;;  %v6714_v10 = vunpack.i.l.bf16 %v6713_v13  ;;  %v6669_v13 = vunpack.i.l.bf16 %v9273_v20 }
 0x647   :  { %6907 = vrot.lane.b32.xlu0 %v8571_v44, %s7546_s4  ;;  %6902 = vrot.lane.b32.xlu2 %v8653_v45, %s7546_s4 }
 0x648   :  { %2762 = vmatpush.msra.mxu0 %v2689_v4  ;;  %2730 = vmatpush.msrb.mxu1 %v2700_v32  ;;  %v2686_v44 = vsel %vm2670_vm15, %v6705_v50, %v6715_v58  ;;  %v2678_v45 = vsel %vm2670_vm15, %v6715_v58, %v6685_v24  ;;  %v2687_v50 = vsel %vm2670_vm15, %v6609_v56, %v6629_v52  ;;  %v6665_v24 = vunpack.i.h.bf16 %v9110_v9 }
 0x649   :  { %2786 = vmatpush.msra.mxu2 %v2686_v44  ;;  %2815 = vmatpush.msra.mxu3 %v2678_v45  ;;  %v2685_v54 = vsel %vm2670_vm15, %v6704_v35, %v6714_v10  ;;  %v2677_v27 = vsel %vm2670_vm15, %v6714_v10, %v6684_v28  ;;  %v6664_v35 = vunpack.i.l.bf16 %v9110_v9  ;;  %v2697_v28 = vsel %vm2670_vm15, %v6674_v61, %v6614_v46 }
 0x64a   :  { %2763 = vmatpush.msra.mxu0 %v2688_v15  ;;  %2731 = vmatpush.msrb.mxu1 %v2699_v8  ;;  %v6981_v8 = vpack.i.bf16 %v8629_v5, %v8637_v22 }
 0x64b   :  { %6070 = vmatmul.msk.f32.gmra.mxu0 %vm563_vm10, %v9288_v60  ;;  %6074 = vmatmul.msk.f32.gmra.mxu2 %vm563_vm10, %v9288_v60  ;;  %v2683_v9 = vsel %vm2670_vm15, %v6644_v6, %v6664_v35  ;;  %v2675_v20 = vsel %vm2670_vm15, %v6664_v35, %v6679_v41  ;;  %v2682_v6 = vsel %vm2670_vm15, %v6635_v25, %v6655_v37 }
 0x64c   :  { %6078 = vmatmul.msk.f32.gmra.mxu3 %vm563_vm10, %v9288_v60  ;;  %2764 = vmatpush.msra.mxu0 %v2687_v50 }
 0x64d   :  { %2732 = vmatpush.msrb.mxu1 %v2698_v7  ;;  %2787 = vmatpush.msra.mxu2 %v2685_v54  ;;  %v9413_v14 = vpop.permute.xlu1 %6717  ;;  %v6700_v7 = vunpack.i.h.bf16 %v9361_v47 }
 0x64e   :  { %6932 = vrot.lane.b32.xlu1 %v8593_v30, %s7547_s25  ;;  %2816 = vmatpush.msra.mxu3 %v2677_v27  ;;  %v9417_v23 = vpop.permute.xlu0 %6722  ;;  %v9419_v60 = vpop.permute.xlu2 %6737  ;;  %v2684_v30 = vsel %vm2670_vm15, %v6645_v21, %v6665_v24  ;;  %v6654_v21 = vunpack.i.l.bf16 %v9232_v3  ;;  %v2695_v3 = vsel %vm2670_vm15, %v6669_v13, %v6609_v56  ;;  %v6710_v56 = vunpack.i.h.bf16 %v9316_v49 }
 0x64f   :  { %6922 = vrot.lane.b32.xlu0 %v8685_v57, %s7546_s4  ;;  %6912 = vrot.lane.b32.xlu2 %v8615_v16, %s7546_s4  ;;  %v2676_v57 = vsel %vm2670_vm15, %v6665_v24, %v6680_v17  ;;  %v2696_v16 = vsel %vm2670_vm15, %v6670_v26, %v6610_v33  ;;  %v2674_v17 = vsel %vm2670_vm15, %v6655_v37, %v6675_v42  ;;  %v6649_v33 = vunpack.i.l.bf16 %v9230_v38 }
 0x650   :  { %2733 = vmatpush.msrb.mxu1 %v2697_v28  ;;  %2788 = vmatpush.msra.mxu2 %v2684_v30  ;;  %v2673_v58 = vsel %vm2670_vm15, %v6654_v21, %v6674_v61  ;;  %v6709_v42 = vunpack.i.l.bf16 %v9316_v49  ;;  %v6730_v30 = vunpack.i.h.bf16 %v9363_v34 }
 0x651   :  { %2817 = vmatpush.msra.mxu3 %v2676_v57  ;;  %v2679_v38 = vsel %vm2670_vm15, %v6629_v52, %v6649_v33 }
 0x652   :  { %2734 = vmatpush.msrb.mxu1 %v2696_v16  ;;  %2789 = vmatpush.msra.mxu2 %v2683_v9  ;;  %v6084_v16 = vld [vmem:[%s12433_s10 + $0x58] sm:$0xff] }
 0x653   :  { %2818 = vmatpush.msra.mxu3 %v2675_v20  ;;  %6071 = vmatmul.msk.f32.gmra.mxu0 %vm563_vm10, %v9333_v53 }
 0x654   :  { %6075 = vmatmul.msk.f32.gmra.mxu2 %vm563_vm10, %v9333_v53  ;;  %6079 = vmatmul.msk.f32.gmra.mxu3 %vm563_vm10, %v9333_v53  ;;  %v2681_v53 = vsel %vm2670_vm15, %v6634_v51, %v6654_v21  ;;  %v6699_v21 = vunpack.i.l.bf16 %v9361_v47  ;;  %v2965_v47 = vsel %vm2943_vm0, %v6700_v7, %v6730_v30 }
 0x655   :  { %2735 = vmatpush.msrb.mxu1 %v2695_v3  ;;  %2790 = vmatpush.msra.mxu2 %v2682_v6  ;;  %v9465_v46 = vpop.permute.xlu1 %6742  ;;  %v12661_v3 = vld [vmem:[#allocation22_spill] sm:$0xff]  ;;  %v12662_v6 = vld [vmem:[#allocation20_spill] sm:$0xff] }
 0x656   :  { %2819 = vmatpush.msra.mxu3 %v2674_v17  ;;  %6085 = vmatmul.msk.f32.vlgmr.msrb.gmra.mxu1 %vm563_vm10, %v6081_v1  ;;  %v9473_v41 = vpop.permute.xlu0 %6732  ;;  %v9475_v25 = vpop.permute.xlu2 %6747  ;;  %v6745_v27 = vunpack.i.h.bf16 %v9465_v46  ;;  %v6991_v17 = vpack.i.bf16 %v12662_v6, %v12661_v3 }
 0x657   :  { %6952 = vrot.lane.b32.xlu1 %v8699_v48, %s7546_s4  ;;  %2791 = vmatpush.msra.mxu2 %v2681_v53  ;;  %v2672_v48 = vsel %vm2670_vm15, %v6650_v62, %v6670_v26  ;;  %v6744_v53 = vunpack.i.l.bf16 %v9465_v46 }
 0x658   :  { %2820 = vmatpush.msra.mxu3 %v2673_v58  ;;  %6937 = vrot.lane.b32.xlu0 %v8635_v11, %s7547_s25  ;;  %v2671_v11 = vsel %vm2670_vm15, %v6649_v33, %v6669_v13  ;;  %v12663_v58 = vld [vmem:[#allocation18_spill] sm:$0xff] }
 0x659   :  { %6927 = vrot.lane.b32.xlu2 %v8551_v55, %s7547_s25  ;;  %2792 = vmatpush.msra.mxu2 %v2680_v12  ;;  %v6082_v55 = vld [vmem:[%s12433_s10 + $0x48] sm:$0xff]  ;;  %v12664_v12 = vld [vmem:[#allocation16_spill] sm:$0xff] }
 0x65a   :  { %2821 = vmatpush.msra.mxu3 %v2672_v48 }
 0x65b   :  { %2793 = vmatpush.msra.mxu2 %v2679_v38  ;;  %6089 = vmatmul.msk.f32.vlgmr.msra.gmra.mxu0 %vm563_vm10, %v6081_v1 }
 0x65c   :  { %2822 = vmatpush.msra.mxu3 %v2671_v11  ;;  %6093 = vmatmul.msk.f32.vlgmr.msra.gmra.mxu2 %vm563_vm10, %v6081_v1  ;;  %v6695_v11 = vunpack.i.h.bf16 %v9310_v18 }
 0x65d   :  { %6097 = vmatmul.msk.f32.vlgmr.msra.gmra.mxu3 %vm563_vm10, %v6081_v1  ;;  %v9503_v51 = vpop.permute.xlu1 %6752  ;;  %v6729_v1 = vunpack.i.l.bf16 %v9363_v34  ;;  %v6996_v34 = vpack.i.bf16 %v12664_v12, %v12663_v58 }
 0x65e   :  { %6086 = vmatmul.msk.f32.gmra.mxu1 %vm563_vm10, %v6082_v55  ;;  %v6763_v0 = vpop.permute.xlu0 %6762  ;;  %v6773_v31 = vpop.permute.xlu2 %6772  ;;  %v6755_v62 = vunpack.i.h.bf16 %v9503_v51 }
 0x65f   :  { %6957 = vrot.lane.b32.xlu1 %v8575_v29, %s7547_s25  ;;  %v6765_v52 = vunpack.i.h.bf16 %v6763_v0  ;;  %v6775_v4 = vunpack.i.h.bf16 %v6773_v31  ;;  %v6774_v32 = vunpack.i.l.bf16 %v6773_v31  ;;  %v6764_v10 = vunpack.i.l.bf16 %v6763_v0 }
 0x660   :  { %6962 = vrot.lane.b32.xlu0 %v8611_v63, %s7547_s25  ;;  %v6083_v63 = vld [vmem:[%s12433_s10 + $0x50] sm:$0xff]  ;;  %v6740_v0 = vunpack.i.h.bf16 %v9419_v60  ;;  %v6754_v31 = vunpack.i.l.bf16 %v9503_v51  ;;  %v6694_v51 = vunpack.i.l.bf16 %v9310_v18  ;;  %v6735_v18 = vunpack.i.h.bf16 %v9473_v41 }
 0x661   :  { %6942 = vrot.lane.b32.xlu2 %v8671_v39, %s7547_s25  ;;  %v2975_v44 = vsel %vm2943_vm0, %v6775_v4, %v6710_v56  ;;  %v2951_v29 = vsel %vm2943_vm0, %v6765_v52, %v6775_v4  ;;  %v2974_v49 = vsel %vm2943_vm0, %v6774_v32, %v6709_v42  ;;  %v6976_v39 = vpack.i.bf16 %v8643_v40, %v8665_v2 }
 0x662   :  { %3001 = vmatpush.msra.mxu1 %v2975_v44  ;;  %3088 = vmatpush.msrb.mxu3 %v2951_v29  ;;  %v2950_v15 = vsel %vm2943_vm0, %v6764_v10, %v6774_v32  ;;  %v2971_v4 = vsel %vm2943_vm0, %v6755_v62, %v6695_v11  ;;  %v2964_v32 = vsel %vm2943_vm0, %v6699_v21, %v6729_v1  ;;  %v6724_v44 = vunpack.i.l.bf16 %v9417_v23 }
 0x663   :  { %6090 = vmatmul.msk.f32.gmra.mxu0 %vm563_vm10, %v6082_v55 }
 0x664   :  { %6094 = vmatmul.msk.f32.gmra.mxu2 %vm563_vm10, %v6082_v55  ;;  %3002 = vmatpush.msra.mxu1 %v2974_v49  ;;  %v2970_v49 = vsel %vm2943_vm0, %v6754_v31, %v6694_v51 }
 0x665   :  { %6098 = vmatmul.msk.f32.gmra.mxu3 %vm563_vm10, %v6082_v55  ;;  %v6758_v45 = vpop.permute.xlu1 %6757  ;;  %v2957_v55 = vsel %vm2943_vm0, %v6730_v30, %v6745_v27  ;;  %v6689_v30 = vunpack.i.l.bf16 %v9234_v36 }
 0x666   :  { %6087 = vmatmul.msk.f32.gmra.mxu1 %vm563_vm10, %v6083_v63  ;;  %v6760_v61 = vunpack.i.h.bf16 %v6758_v45  ;;  %3089 = vmatpush.msrb.mxu3 %v2950_v15  ;;  %v6768_v50 = vpop.permute.xlu0 %6767  ;;  %v6759_v54 = vunpack.i.l.bf16 %v6758_v45  ;;  %v6720_v15 = vunpack.i.h.bf16 %v9413_v14 }
 0x667   :  { %6977 = vrot.lane.b32.xlu1 %v6976_v39, %s7547_s25  ;;  %v6770_v24 = vunpack.i.h.bf16 %v6768_v50  ;;  %v9536_v26 = vpop.permute.xlu2 %6787  ;;  %v6769_v13 = vunpack.i.l.bf16 %v6768_v50  ;;  %v6690_v39 = vunpack.i.h.bf16 %v9234_v36 }
 0x668   :  { %6982 = vrot.lane.b32.xlu0 %v6981_v8, %s7547_s25  ;;  %v2967_v35 = vsel %vm2943_vm0, %v6710_v56, %v6760_v61  ;;  %v2959_v28 = vsel %vm2943_vm0, %v6760_v61, %v6765_v52  ;;  %v2966_v9 = vsel %vm2943_vm0, %v6709_v42, %v6759_v54  ;;  %v2958_v20 = vsel %vm2943_vm0, %v6759_v54, %v6764_v10 }
 0x669   :  { %6947 = vrot.lane.b32.xlu2 %v8711_v59, %s7546_s4  ;;  %3030 = vmatpush.msrb.mxu0 %v2967_v35  ;;  %v2973_v37 = vsel %vm2943_vm0, %v6770_v24, %v6700_v7  ;;  %v2949_v57 = vsel %vm2943_vm0, %v6745_v27, %v6770_v24  ;;  %v2972_v48 = vsel %vm2943_vm0, %v6769_v13, %v6699_v21  ;;  %v6725_v52 = vunpack.i.h.bf16 %v9417_v23  ;;  %v12666_v27 = vld [vmem:[#allocation32_spill] sm:$0xff] }
 0x66a   :  { %3059 = vmatpush.msrb.mxu2 %v2959_v28  ;;  %3003 = vmatpush.msra.mxu1 %v2973_v37  ;;  %v2948_v56 = vsel %vm2943_vm0, %v6744_v53, %v6769_v13  ;;  %v2956_v42 = vsel %vm2943_vm0, %v6729_v1, %v6744_v53  ;;  %v2947_v10 = vsel %vm2943_vm0, %v6740_v0, %v6755_v62  ;;  %v6749_v8 = vunpack.i.l.bf16 %v9475_v25  ;;  %v12667_v37 = vld [vmem:[#allocation33_spill] sm:$0xff] }
 0x66b   :  { %6091 = vmatmul.msk.f32.gmra.mxu0 %vm563_vm10, %v6083_v63  ;;  %3090 = vmatpush.msrb.mxu3 %v2949_v57  ;;  %v2963_v23 = vsel %vm2943_vm0, %v6695_v11, %v6725_v52  ;;  %v6734_v7 = vunpack.i.l.bf16 %v9473_v41  ;;  %v2962_v24 = vsel %vm2943_vm0, %v6694_v51, %v6724_v44  ;;  %v6971_v13 = vpack.i.bf16 %v12666_v27, %v12667_v37  ;;  %v12670_v11 = vld [vmem:[#allocation35_spill] sm:$0xff] }
 0x66c   :  { %6095 = vmatmul.msk.f32.gmra.mxu2 %vm563_vm10, %v6083_v63  ;;  %3031 = vmatpush.msrb.mxu0 %v2966_v9  ;;  %v6719_v57 = vunpack.i.l.bf16 %v9413_v14  ;;  %v2968_v36 = vsel %vm2943_vm0, %v6749_v8, %v6689_v30  ;;  %v6102_v9 = vld [vmem:[%s12433_s10 + $0x60] sm:$0xff]  ;;  %v2953_v14 = vsel %vm2943_vm0, %v6720_v15, %v6735_v18 }
 0x66d   :  { %6099 = vmatmul.msk.f32.gmra.mxu3 %vm563_vm10, %v6083_v63  ;;  %3060 = vmatpush.msrb.mxu2 %v2958_v20  ;;  %v9566_v33 = vpop.permute.xlu1 %6777  ;;  %v6739_v63 = vunpack.i.l.bf16 %v9419_v60  ;;  %v2955_v60 = vsel %vm2943_vm0, %v6725_v52, %v6740_v0  ;;  %v2944_v21 = vsel %vm2943_vm0, %v6734_v7, %v6749_v8  ;;  %v12672_v0 = vld [vmem:[#allocation34_spill] sm:$0xff]  ;;  %v12681_v8 = vld [vmem:[#allocation23_spill] sm:$0xff] }
 0x66e   :  { %6088 = vmatmul.msk.f32.gmra.mxu1 %vm563_vm10, %v6084_v16  ;;  %3032 = vmatpush.msrb.mxu0 %v2965_v47  ;;  %v9576_v38 = vpop.permute.xlu0 %6782  ;;  %v2960_v1 = vsel %vm2943_vm0, %v6689_v30, %v6719_v57 }
 0x66f   :  { %6992 = vrot.lane.b32.xlu1 %v6991_v17, %s7547_s25  ;;  %3004 = vmatpush.msra.mxu1 %v2972_v48  ;;  %v9582_v46 = vpop.permute.xlu2 %6802  ;;  %v2946_v61 = vsel %vm2943_vm0, %v6739_v63, %v6754_v31  ;;  %v2954_v41 = vsel %vm2943_vm0, %v6724_v44, %v6739_v63  ;;  %v2952_v17 = vsel %vm2943_vm0, %v6719_v57, %v6734_v7  ;;  %v12669_v48 = vld [vmem:[#allocation36_spill] sm:$0xff]  ;;  %v12673_v31 = vld [vmem:[#allocation26_spill] sm:$0xff]  ;;  %v12676_v44 = vld [vmem:[#allocation29_spill] sm:$0xff] }
 0x670   :  { %6997 = vrot.lane.b32.xlu0 %v6996_v34, %s7547_s25  ;;  %3061 = vmatpush.msrb.mxu2 %v2957_v55  ;;  %v12668_v34 = vld [vmem:[#allocation30_spill] sm:$0xff]  ;;  %v12671_v55 = vld [vmem:[#allocation28_spill] sm:$0xff]  ;;  %v12682_v7 = vld [vmem:[#allocation13_spill] sm:$0xff] }
 0x671   :  { %6967 = vrot.lane.b32.xlu2 %v8647_v19, %s7547_s25  ;;  %3091 = vmatpush.msrb.mxu3 %v2948_v56  ;;  %v6750_v19 = vunpack.i.h.bf16 %v9475_v25  ;;  %v12665_v25 = vld [vmem:[#allocation31_spill] sm:$0xff]  ;;  %v12674_v56 = vld [vmem:[#allocation25_spill] sm:$0xff]  ;;  %v12687_v57 = vld [vmem:[#allocation10_spill] sm:$0xff] }
 0x672   :  { %3005 = vmatpush.msra.mxu1 %v2971_v4  ;;  %3033 = vmatpush.msrb.mxu0 %v2964_v32  ;;  %v7006_v35 = vpack.i.bf16 %v12666_v27, %v12665_v25  ;;  %v7036_v52 = vpack.i.bf16 %v12674_v56, %v12673_v31  ;;  %v12675_v32 = vld [vmem:[#allocation12_spill] sm:$0xff] }
 0x673   :  { %3062 = vmatpush.msrb.mxu2 %v2956_v42  ;;  %3092 = vmatpush.msrb.mxu3 %v2947_v10  ;;  %v9603_v29 = vpop.f32.mrf.mxu0  ;;  %v2969_v54 = vsel %vm2943_vm0, %v6750_v19, %v6690_v39  ;;  %v7021_v51 = vpack.i.bf16 %v12670_v11, %v12675_v32  ;;  %v6103_v42 = vld [vmem:[%s12433_s10 + $0x68] sm:$0xff] }
 0x674   :  { %6092 = vmatmul.msk.f32.gmra.mxu0 %vm563_vm10, %v6084_v16  ;;  %6096 = vmatmul.msk.f32.gmra.mxu2 %vm563_vm10, %v6084_v16 }
 0x675   :  { %6100 = vmatmul.msk.f32.gmra.mxu3 %vm563_vm10, %v6084_v16  ;;  %3006 = vmatpush.msra.mxu1 %v2970_v49  ;;  %v9617_v45 = vpop.permute.xlu1 %6792  ;;  %v2961_v16 = vsel %vm2943_vm0, %v6690_v39, %v6720_v15  ;;  %v12678_v49 = vld [vmem:[#allocation21_spill] sm:$0xff]  ;;  %v12679_v39 = vld [vmem:[#allocation27_spill] sm:$0xff] }
 0x676   :  { %3034 = vmatpush.msrb.mxu0 %v2963_v23  ;;  %3063 = vmatpush.msrb.mxu2 %v2955_v60  ;;  %v9623_v50 = vpop.permute.xlu0 %6797  ;;  %v12680_v60 = vld [vmem:[#allocation17_spill] sm:$0xff] }
 0x677   :  { %3093 = vmatpush.msrb.mxu3 %v2946_v61  ;;  %7017 = vrot.lane.b32.xlu1 %v8711_v59, %s7547_s25  ;;  %v9634_v28 = vpop.permute.xlu2 %6812  ;;  %v2945_v59 = vsel %vm2943_vm0, %v6735_v18, %v6750_v19  ;;  %v12677_v19 = vld [vmem:[#allocation24_spill] sm:$0xff] }
 0x678   :  { %3007 = vmatpush.msra.mxu1 %v2969_v54  ;;  %3035 = vmatpush.msrb.mxu0 %v2962_v24  ;;  %v6986_v63 = vpack.i.bf16 %v12677_v19, %v12673_v31  ;;  %v7051_v54 = vpack.i.bf16 %v12662_v6, %v12679_v39  ;;  %v12683_v24 = vld [vmem:[#allocation19_spill] sm:$0xff] }
 0x679   :  { %3064 = vmatpush.msrb.mxu2 %v2954_v41  ;;  %3094 = vmatpush.msrb.mxu3 %v2945_v59  ;;  %v12685_v41 = vld [vmem:[#allocation9_spill] sm:$0xff]  ;;  %v12686_v59 = vld [vmem:[#allocation15_spill] sm:$0xff] }
 0x67a   :  { %7007 = vrot.lane.b32.xlu0 %v7006_v35, %s7548_s16  ;;  %6972 = vrot.lane.b32.xlu2 %v6971_v13, %s7547_s25  ;;  %v7026_v13 = vpack.i.bf16 %v12671_v55, %v8637_v22 }
 0x67b   :  { %3008 = vmatpush.msra.mxu1 %v2968_v36  ;;  %3036 = vmatpush.msrb.mxu0 %v2961_v16  ;;  %v9657_v20 = vpop.f32.mrf.mxu0  ;;  %v6104_v36 = vld [vmem:[%s12433_s10 + $0x70] sm:$0xff] }
 0x67c   :  { %3065 = vmatpush.msrb.mxu2 %v2953_v14  ;;  %3095 = vmatpush.msrb.mxu3 %v2944_v21 }
 0x67d   :  { %6106 = vmatmul.msk.f32.vlgmr.msra.gmra.mxu1 %vm563_vm10, %v6102_v9  ;;  %v9663_v62 = vpop.permute.xlu1 %6807  ;;  %3037 = vmatpush.msrb.mxu0 %v2960_v1 }
 0x67e   :  { %3264 = vmatpush.msra.mxu3 %v12667_v37  ;;  %3177 = vmatpush.msrb.mxu1 %v12665_v25 }
 0x67f   :  { %3066 = vmatpush.msrb.mxu2 %v2952_v17  ;;  %6110 = vmatmul.msk.f32.vlgmr.msrb.gmra.mxu0 %vm563_vm10, %v6102_v9  ;;  %v9669_v47 = vpop.permute.xlu0 %6822  ;;  %v9671_v53 = vpop.permute.xlu2 %6837 }
 0x680   :  { %6114 = vmatmul.msk.f32.vlgmr.msrb.gmra.mxu2 %vm563_vm10, %v6102_v9  ;;  %6118 = vmatmul.msk.f32.vlgmr.msrb.gmra.mxu3 %vm563_vm10, %v6102_v9 }
 0x681   :  { %3178 = vmatpush.msrb.mxu1 %v12668_v34  ;;  %3206 = vmatpush.msra.mxu0 %v12669_v48 }
 0x682   :  { %3235 = vmatpush.msra.mxu2 %v12670_v11  ;;  %3265 = vmatpush.msra.mxu3 %v8665_v2 }
 0x683   :  { %3179 = vmatpush.msrb.mxu1 %v12671_v55  ;;  %3207 = vmatpush.msra.mxu0 %v12672_v0  ;;  %v9683_v4 = vpop.f32.mrf.mxu0  ;;  %v6795_v55 = vunpack.i.h.bf16 %v9617_v45 }
 0x684   :  { %3236 = vmatpush.msra.mxu2 %v12666_v27  ;;  %3266 = vmatpush.msra.mxu3 %v8637_v22  ;;  %v12684_v27 = vld [vmem:[#allocation14_spill] sm:$0xff]  ;;  %v12688_v22 = vld [vmem:[#allocation11_spill] sm:$0xff] }
 0x685   :  { %7037 = vrot.lane.b32.xlu1 %v7036_v52, %s7548_s16  ;;  %3180 = vmatpush.msrb.mxu1 %v12674_v56  ;;  %v9694_v10 = vpop.permute.xlu1 %6817 }
 0x686   :  { %3208 = vmatpush.msra.mxu0 %v12676_v44  ;;  %3237 = vmatpush.msra.mxu2 %v8643_v40 }
 0x687   :  { %3267 = vmatpush.msra.mxu3 %v12673_v31  ;;  %7022 = vrot.lane.b32.xlu0 %v7021_v51, %s7547_s25  ;;  %v9702_v18 = vpop.permute.xlu0 %6832  ;;  %v7066_v31 = vpack.i.bf16 %v12667_v37, %v12670_v11  ;;  %v7041_v37 = vpack.i.bf16 %v12677_v19, %v12676_v44  ;;  %v7011_v11 = vpack.i.bf16 %v12668_v34, %v8665_v2  ;;  %v6790_v34 = vunpack.i.h.bf16 %v9536_v26 }
 0x688   :  { %6987 = vrot.lane.b32.xlu2 %v6986_v63, %s7547_s25  ;;  %6107 = vmatmul.msk.f32.gmra.mxu1 %vm563_vm10, %v6103_v42  ;;  %v6825_v44 = vunpack.i.h.bf16 %v9669_v47 }
 0x689   :  { %3181 = vmatpush.msrb.mxu1 %v12678_v49  ;;  %3209 = vmatpush.msra.mxu0 %v12679_v39  ;;  %v9708_v23 = vpop.permute.xlu2 %6852  ;;  %v6794_v39 = vunpack.i.l.bf16 %v9617_v45  ;;  %v6809_v45 = vunpack.i.l.bf16 %v9663_v62 }
 0x68a   :  { %3238 = vmatpush.msra.mxu2 %v8629_v5  ;;  %3268 = vmatpush.msra.mxu3 %v12661_v3 }
 0x68b   :  { %6111 = vmatmul.msk.f32.gmra.mxu0 %vm563_vm10, %v6103_v42  ;;  %6115 = vmatmul.msk.f32.gmra.mxu2 %vm563_vm10, %v6103_v42 }
 0x68c   :  { %6119 = vmatmul.msk.f32.gmra.mxu3 %vm563_vm10, %v6103_v42  ;;  %3182 = vmatpush.msrb.mxu1 %v12680_v60  ;;  %v9716_v15 = vpop.f32.mrf.mxu0 }
 0x68d   :  { %3210 = vmatpush.msra.mxu0 %v12681_v8  ;;  %3239 = vmatpush.msra.mxu2 %v12677_v19  ;;  %v9720_v61 = vpop.permute.xlu1 %6827  ;;  %v6839_v19 = vunpack.i.l.bf16 %v9671_v53 }
 0x68e   :  { %3269 = vmatpush.msra.mxu3 %v12663_v58  ;;  %3183 = vmatpush.msrb.mxu1 %v12682_v7 }
 0x68f   :  { %3211 = vmatpush.msra.mxu0 %v12683_v24  ;;  %3240 = vmatpush.msra.mxu2 %v12662_v6  ;;  %v9728_v25 = vpop.permute.xlu0 %6847  ;;  %v7001_v6 = vpack.i.bf16 %v12687_v57, %v12684_v27 }
 0x690   :  { %3270 = vmatpush.msra.mxu3 %v12684_v27  ;;  %7052 = vrot.lane.b32.xlu1 %v7051_v54, %s7548_s16  ;;  %v12517_v35 = vunpack.i.h.bf16 %v9728_v25  ;;  %v12516_v30 = vunpack.i.l.bf16 %v9728_v25  ;;  %v6105_v54 = vld [vmem:[%s12433_s10 + $0x78] sm:$0xff] }
 0x691   :  { %3184 = vmatpush.msrb.mxu1 %v12685_v41  ;;  %3212 = vmatpush.msra.mxu0 %v12686_v59  ;;  %v9743_v16 = vpop.permute.xlu2 %6867 }
 0x692   :  { %3241 = vmatpush.msra.mxu2 %v12664_v12  ;;  %3271 = vmatpush.msra.mxu3 %v12687_v57  ;;  %v12515_v9 = vunpack.i.h.bf16 %v9743_v16  ;;  %v12514_v14 = vunpack.i.l.bf16 %v9743_v16 }
 0x693   :  { %7027 = vrot.lane.b32.xlu0 %v7026_v13, %s7548_s16  ;;  %7002 = vrot.lane.b32.xlu2 %v7001_v6, %s7547_s25  ;;  %v6840_v6 = vunpack.i.h.bf16 %v9671_v53  ;;  %v7071_v53 = vpack.i.bf16 %v8643_v40, %v12669_v48  ;;  %v6835_v40 = vunpack.i.h.bf16 %v9702_v18 }
 0x694   :  { %6108 = vmatmul.msk.f32.gmra.mxu1 %vm563_vm10, %v6104_v36  ;;  %3213 = vmatpush.msra.mxu0 %v12688_v22  ;;  %v9760_v21 = vsel %vm3638_vm1, %v12517_v35, %v12515_v9  ;;  %v9768_v1 = vsel %vm3638_vm1, %v12516_v30, %v12514_v14  ;;  %v6834_v35 = vunpack.i.l.bf16 %v9702_v18 }
 0x695   :  { %3242 = vmatpush.msra.mxu2 %v12675_v32  ;;  %6112 = vmatmul.msk.f32.gmra.mxu0 %vm563_vm10, %v6104_v36  ;;  %v6843_v17 = vpop.permute.xlu1 %6842  ;;  %v3371_v48 = vsel %vm3365_vm2, %v6825_v44, %v6840_v6 }
 0x696   :  { %6116 = vmatmul.msk.f32.gmra.mxu2 %vm563_vm10, %v6104_v36  ;;  %6120 = vmatmul.msk.f32.gmra.mxu3 %vm563_vm10, %v6104_v36  ;;  %v6845_v56 = vunpack.i.h.bf16 %v6843_v17  ;;  %v9777_v52 = vpop.f32.mrf.mxu0  ;;  %v6844_v51 = vunpack.i.l.bf16 %v6843_v17 }
 0x697   :  { %v9779_v42 = vpop.permute.xlu0 %6862 }
 0x698   :  { %7067 = vrot.lane.b32.xlu1 %v7066_v31, %s7548_s16  ;;  %v3397_v63 = vsel %vm3365_vm2, %v6845_v56, %v6795_v55  ;;  %v3396_v2 = vsel %vm3365_vm2, %v6844_v51, %v6794_v39 }
 0x699   :  { %v9795_v13 = vpop.permute.xlu2 %6897  ;;  %3510 = vmatpush.msrb.mxu3 %v3397_v63 }
 0x69a   :  { %v6900_v36 = vunpack.i.h.bf16 %v9795_v13  ;;  %v6899_v17 = vunpack.i.l.bf16 %v9795_v13  ;;  %v9800_v31 = vpop.f32.mrf.mxu3  ;;  %v2074_v13 = vld [vmem:[%s12434_s11 + $0x10] sm:$0xff] }
 0x69b   :  { %7042 = vrot.lane.b32.xlu0 %v7041_v37, %s7548_s16  ;;  %7012 = vrot.lane.b32.xlu2 %v7011_v11, %s7548_s16  ;;  %v6789_v11 = vunpack.i.l.bf16 %v9536_v26  ;;  %v2075_v26 = vld [vmem:[%s12434_s11 + $0x18] sm:$0xff] }
 0x69c   :  { %6109 = vmatmul.msk.f32.gmra.mxu1 %vm563_vm10, %v6105_v54  ;;  %v9812_v63 = vpop.f32.mrf.mxu2  ;;  %v3373_v37 = vsel %vm3365_vm2, %v6900_v36, %v6845_v56  ;;  %3511 = vmatpush.msrb.mxu3 %v3396_v2  ;;  %v3372_v56 = vsel %vm3365_vm2, %v6899_v17, %v6844_v51  ;;  %v3395_v2 = vsel %vm3365_vm2, %v6840_v6, %v6790_v34  ;;  %v12518_v6 = vunpack.i.h.bf16 %v9576_v38 }
 0x69d   :  { %6113 = vmatmul.msk.f32.gmra.mxu0 %vm563_vm10, %v6105_v54  ;;  %3481 = vmatpush.msrb.mxu2 %v3373_v37  ;;  %v6824_v37 = vunpack.i.l.bf16 %v9669_v47  ;;  %v3394_v51 = vsel %vm3365_vm2, %v6839_v19, %v6789_v11 }
 0x69e   :  { %6117 = vmatmul.msk.f32.gmra.mxu2 %vm563_vm10, %v6105_v54  ;;  %6121 = vmatmul.msk.f32.gmra.mxu3 %vm563_vm10, %v6105_v54  ;;  %v9824_v14 = vpop.f32.mrf.mxu0  ;;  %v7056_v54 = vpack.i.bf16 %v12680_v60, %v12663_v58  ;;  %v12519_v58 = vunpack.i.l.bf16 %v9576_v38  ;;  %v6830_v60 = vunpack.i.h.bf16 %v9720_v61  ;;  %v3393_v18 = vsel %vm3365_vm2, %v6835_v40, %v12518_v6 }
 0x69f   :  { %v9835_v9 = vpop.permute.xlu1 %6857  ;;  %3482 = vmatpush.msrb.mxu2 %v3372_v56  ;;  %3512 = vmatpush.msrb.mxu3 %v3395_v2  ;;  %v7031_v56 = vpack.i.bf16 %v8629_v5, %v12672_v0  ;;  %v3370_v5 = vsel %vm3365_vm2, %v6824_v37, %v6839_v19  ;;  %v6820_v0 = vunpack.i.h.bf16 %v9694_v10  ;;  %v7076_v19 = vpack.i.bf16 %v12682_v7, %v12684_v27 }
 0x6a0   :  { %7072 = vrot.lane.b32.xlu1 %v7071_v53, %s7548_s16  ;;  %v6123_v53 = vld [vmem:[%s12433_s10 + $0x80] sm:$0xff]  ;;  %v3392_v6 = vsel %vm3365_vm2, %v6834_v35, %v12519_v58  ;;  %v6829_v27 = vunpack.i.l.bf16 %v9720_v61  ;;  %v7046_v61 = vpack.i.bf16 %v12678_v49, %v12661_v3 }
 0x6a1   :  { %v9854_v2 = vpop.permute.xlu0 %6877  ;;  %v9856_v30 = vpop.permute.xlu2 %6902  ;;  %3483 = vmatpush.msrb.mxu2 %v3371_v48  ;;  %3513 = vmatpush.msrb.mxu3 %v3394_v51 }
 0x6a2   :  { %v9876_v51 = vpop.f32.mrf.mxu3 }
 0x6a3   :  { %7057 = vrot.lane.b32.xlu0 %v7056_v54, %s7548_s16  ;;  %7032 = vrot.lane.b32.xlu2 %v7031_v56, %s7548_s16  ;;  %v12521_v54 = vunpack.i.h.bf16 %v9566_v33  ;;  %v12520_v56 = vunpack.i.l.bf16 %v9694_v10 }
 0x6a4   :  { %6127 = vmatmul.msk.f32.vlgmr.msrb.gmra.mxu1 %vm563_vm10, %v6123_v53  ;;  %3484 = vmatpush.msrb.mxu2 %v3370_v5  ;;  %v9874_v48 = vpop.f32.mrf.mxu2  ;;  %v3369_v5 = vsel %vm3365_vm2, %v6820_v0, %v6835_v40 }
 0x6a5   :  { %6131 = vmatmul.msk.f32.vlgmr.msra.gmra.mxu0 %vm563_vm10, %v6123_v53  ;;  %3514 = vmatpush.msrb.mxu3 %v3393_v18  ;;  %v3368_v40 = vsel %vm3365_vm2, %v12520_v56, %v6834_v35  ;;  %v6779_v56 = vunpack.i.l.bf16 %v9566_v33 }
 0x6a6   :  { %6135 = vmatmul.msk.f32.vlgmr.msra.gmra.mxu2 %vm563_vm10, %v6123_v53  ;;  %6139 = vmatmul.msk.f32.vlgmr.msra.gmra.mxu3 %vm563_vm10, %v6123_v53  ;;  %v3391_v53 = vsel %vm3365_vm2, %v6830_v60, %v12521_v54 }
 0x6a7   :  { %3485 = vmatpush.msrb.mxu2 %v3369_v5  ;;  %3515 = vmatpush.msrb.mxu3 %v3392_v6  ;;  %v9893_v7 = vpop.f32.mrf.mxu0  ;;  %v6815_v6 = vunpack.i.h.bf16 %v9634_v28  ;;  %v7081_v5 = vpack.i.bf16 %v12675_v32, %v12683_v24  ;;  %v6814_v32 = vunpack.i.l.bf16 %v9634_v28  ;;  %v3390_v24 = vsel %vm3365_vm2, %v6829_v27, %v6779_v56  ;;  %v6143_v28 = vld [vmem:[%s12433_s10 + $0xa0] sm:$0xff] }
 0x6a8   :  { %7077 = vrot.lane.b32.xlu1 %v7076_v19, %s7548_s16  ;;  %v9897_v18 = vpop.permute.xlu1 %6872  ;;  %v6124_v19 = vld [vmem:[%s12433_s10 + $0x88] sm:$0xff] }
 0x6a9   :  { %3486 = vmatpush.msrb.mxu2 %v3368_v40  ;;  %3516 = vmatpush.msrb.mxu3 %v3391_v53  ;;  %v6888_v35 = vpop.permute.xlu0 %6887  ;;  %v9915_v58 = vpop.permute.xlu2 %6912  ;;  %v3367_v3 = vsel %vm3365_vm2, %v6815_v6, %v6830_v60 }
 0x6aa   :  { %v6890_v54 = vunpack.i.h.bf16 %v6888_v35  ;;  %v6889_v49 = vunpack.i.l.bf16 %v6888_v35  ;;  %v6810_v35 = vunpack.i.h.bf16 %v9663_v62 }
 0x6ab   :  { %7082 = vrot.lane.b32.xlu0 %v7081_v5, %s7548_s16  ;;  %7047 = vrot.lane.b32.xlu2 %v7046_v61, %s7548_s16  ;;  %v7091_v5 = vpack.i.bf16 %v12688_v22, %v12686_v59 }
 0x6ac   :  { %6128 = vmatmul.msk.f32.gmra.mxu1 %vm563_vm10, %v6124_v19  ;;  %3487 = vmatpush.msrb.mxu2 %v3367_v3  ;;  %v3389_v40 = vsel %vm3365_vm2, %v6795_v55, %v6890_v54  ;;  %v3381_v53 = vsel %vm3365_vm2, %v6890_v54, %v6900_v36  ;;  %v3366_v55 = vsel %vm3365_vm2, %v6814_v32, %v6829_v27  ;;  %v2072_v36 = vld [vmem:[%s12434_s11] sm:$0xff]  ;;  %v6125_v3 = vld [vmem:[%s12433_s10 + $0x90] sm:$0xff] }
 0x6ad   :  { %6132 = vmatmul.msk.f32.gmra.mxu0 %vm563_vm10, %v6124_v19  ;;  %3517 = vmatpush.msrb.mxu3 %v3390_v24  ;;  %v9935_v60 = vpop.f32.mrf.mxu2  ;;  %v3388_v22 = vsel %vm3365_vm2, %v6794_v39, %v6889_v49  ;;  %v7061_v27 = vpack.i.bf16 %v12664_v12, %v12681_v8  ;;  %v3380_v24 = vsel %vm3365_vm2, %v6889_v49, %v6899_v17  ;;  %v6805_v39 = vunpack.i.h.bf16 %v9582_v46 }
 0x6ae   :  { %6136 = vmatmul.msk.f32.gmra.mxu2 %vm563_vm10, %v6124_v19  ;;  %6140 = vmatmul.msk.f32.gmra.mxu3 %vm563_vm10, %v6124_v19  ;;  %v9949_v61 = vpop.f32.mrf.mxu3  ;;  %v9966_v19 = vpop.f32.mrf.mxu1  ;;  %v3379_v8 = vsel %vm3365_vm2, %v6810_v35, %v6825_v44  ;;  %v3387_v62 = vsel %vm3365_vm2, %v6790_v34, %v6810_v35  ;;  %v3386_v17 = vsel %vm3365_vm2, %v6789_v11, %v6809_v45  ;;  %v12689_v11 = vunpack.i.h.bf16 %v9576_v38  ;;  %v6126_v35 = vld [vmem:[%s12433_s10 + $0x98] sm:$0xff] }
 0x6af   :  { %3488 = vmatpush.msrb.mxu2 %v3366_v55  ;;  %3423 = vmatpush.msra.mxu1 %v3389_v40  ;;  %v3378_v34 = vsel %vm3365_vm2, %v6809_v45, %v6824_v37  ;;  %v3377_v37 = vsel %vm3365_vm2, %v6805_v39, %v6820_v0 }
 0x6b0   :  { %7092 = vrot.lane.b32.xlu1 %v7091_v5, %s7548_s16  ;;  %3452 = vmatpush.msrb.mxu0 %v3381_v53  ;;  %v9956_v54 = vpop.permute.xlu1 %6882  ;;  %v9958_v59 = vpop.f32.mrf.mxu0  ;;  %v6804_v53 = vunpack.i.l.bf16 %v9582_v46  ;;  %v3385_v47 = vsel %vm3365_vm2, %v12689_v11, %v6805_v39  ;;  %v7086_v46 = vpack.i.bf16 %v12685_v41, %v12687_v57 }
 0x6b1   :  { %3424 = vmatpush.msra.mxu1 %v3388_v22  ;;  %v9975_v40 = vpop.permute.xlu0 %6892  ;;  %v6800_v22 = vunpack.i.h.bf16 %v9623_v50 }
 0x6b2   :  { %3453 = vmatpush.msrb.mxu0 %v3380_v24  ;;  %v12691_v24 = vunpack.i.l.bf16 %v9576_v38 }
 0x6b3   :  { %4395 = vperm.xlu0 %6295, %v2072_v36   ;;  %7062 = vrot.lane.b32.xlu2 %v7061_v27, %s7548_s16  ;;  %v9979_v12 = vpop.permute.xlu2 %6927  ;;  %v12690_v27 = vunpack.i.l.bf16 %v9694_v10  ;;  %v4431_v10 = vld [vmem:[%s12435_s12 + $0x10] sm:$0xff] }
 0x6b4   :  { %6129 = vmatmul.msk.f32.gmra.mxu1 %vm563_vm10, %v6125_v3  ;;  %3454 = vmatpush.msrb.mxu0 %v3379_v8  ;;  %v3384_v45 = vsel %vm3365_vm2, %v12691_v24, %v6804_v53  ;;  %v3375_v8 = vsel %vm3365_vm2, %v6800_v22, %v6815_v6 }
 0x6b5   :  { %6133 = vmatmul.msk.f32.gmra.mxu0 %vm563_vm10, %v6125_v3  ;;  %3425 = vmatpush.msra.mxu1 %v3387_v62  ;;  %v3376_v41 = vsel %vm3365_vm2, %v6804_v53, %v12690_v27 }
 0x6b6   :  { %6137 = vmatmul.msk.f32.gmra.mxu2 %vm563_vm10, %v6125_v3  ;;  %6141 = vmatmul.msk.f32.gmra.mxu3 %vm563_vm10, %v6125_v3  ;;  %v10005_v44 = vpop.f32.mrf.mxu2  ;;  %v10034_v0 = vpop.f32.mrf.mxu1  ;;  %v6799_v3 = vunpack.i.l.bf16 %v9623_v50  ;;  %v12692_v50 = vunpack.i.h.bf16 %v9566_v33 }
 0x6b7   :  { %3426 = vmatpush.msra.mxu1 %v3386_v17  ;;  %3455 = vmatpush.msrb.mxu0 %v3378_v34  ;;  %v10007_v49 = vpop.f32.mrf.mxu3  ;;  %v2073_v17 = vld [vmem:[%s12434_s11 + $0x8] sm:$0xff] }
 0x6b8   :  { %4405 = vperm.xlu1 %6293, %v2074_v13   ;;  %v10021_v5 = vpop.permute.xlu1 %6917  ;;  %v10023_v55 = vpop.f32.mrf.mxu0  ;;  %v3383_v38 = vsel %vm3365_vm2, %v12692_v50, %v6800_v22  ;;  %v4429_v13 = vld [vmem:[%s12435_s12] sm:$0xff]  ;;  %v3382_v6 = vsel %vm3365_vm2, %v6779_v56, %v6799_v3  ;;  %v3374_v34 = vsel %vm3365_vm2, %v6799_v3, %v6814_v32  ;;  %v6864_v56 = vunpack.i.l.bf16 %v9779_v42 }
 0x6b9   :  { %3427 = vmatpush.msra.mxu1 %v3385_v47  ;;  %3456 = vmatpush.msrb.mxu0 %v3377_v37  ;;  %v10030_v36 = vpop.permute.xlu0 %6907  ;;  %v6865_v47 = vunpack.i.h.bf16 %v9779_v42  ;;  %v6860_v3 = vunpack.i.h.bf16 %v9835_v9  ;;  %v12525_v50 = vunpack.i.l.bf16 %v10021_v5 }
 0x6bb   :  { %4410 = vperm.xlu0 %6295, %v2075_v26   ;;  %7087 = vrot.lane.b32.xlu2 %v7086_v46, %s7548_s16  ;;  %v10040_v57 = vpop.permute.xlu2 %6942  ;;  %v12524_v46 = vunpack.i.h.bf16 %v10021_v5 }
 0x6bc   :  { %6130 = vmatmul.msk.f32.gmra.mxu1 %vm563_vm10, %v6126_v35  ;;  %3457 = vmatpush.msrb.mxu0 %v3376_v41  ;;  %v4435_v41 = vld [vmem:[%s12436_s13 + $0x10] sm:$0xff] }
 0x6bd   :  { %6134 = vmatmul.msk.f32.gmra.mxu0 %vm563_vm10, %v6126_v35  ;;  %3428 = vmatpush.msra.mxu1 %v3384_v45 }
 0x6be   :  { %6138 = vmatmul.msk.f32.gmra.mxu2 %vm563_vm10, %v6126_v35  ;;  %6142 = vmatmul.msk.f32.gmra.mxu3 %vm563_vm10, %v6126_v35  ;;  %v10062_v39 = vpop.f32.mrf.mxu2  ;;  %v10101_v42 = vpop.f32.mrf.mxu1 }
 0x6bf   :  { %3429 = vmatpush.msra.mxu1 %v3383_v38  ;;  %3458 = vmatpush.msrb.mxu0 %v3375_v8  ;;  %v10064_v62 = vpop.f32.mrf.mxu3  ;;  %v12526_v8 = vunpack.i.h.bf16 %v9854_v2 }
 0x6c0   :  { %4596 = vperm.xlu1 %6293, %v4431_v10   ;;  %v10080_v53 = vpop.permute.xlu1 %6932  ;;  %v10082_v26 = vpop.f32.mrf.mxu0 }
 0x6c1   :  { %3430 = vmatpush.msra.mxu1 %v3382_v6  ;;  %3459 = vmatpush.msrb.mxu0 %v3374_v34  ;;  %v10084_v11 = vpop.permute.xlu0 %6922 }
 0x6c2   :  { %v6925_v33 = vunpack.i.h.bf16 %v10084_v11  ;;  %v12522_v37 = vunpack.i.l.bf16 %v10084_v11 }
 0x6c3   :  { %4586 = vperm.xlu0 %6295, %v4429_v13   ;;  %4400 = vperm.xlu2 %6294, %v2073_v17   ;;  %v10093_v32 = vpop.permute.xlu2 %6947  ;;  %v4432_v13 = vld [vmem:[%s12435_s12 + $0x18] sm:$0xff]  ;;  %v4430_v17 = vld [vmem:[%s12435_s12 + $0x8] sm:$0xff] }
 0x6c4   :  { %6147 = vmatmul.msk.f32.vlgmr.msra.gmra.mxu1 %vm563_vm10, %v6143_v28  ;;  %v6950_v35 = vunpack.i.h.bf16 %v10093_v32  ;;  %v12523_v22 = vunpack.i.l.bf16 %v10093_v32  ;;  %v3670_v27 = vsel %vm3638_vm1, %v6925_v33, %v6865_v47  ;;  %v3669_v10 = vsel %vm3638_vm1, %v12522_v37, %v6864_v56 }
 0x6c5   :  { %6151 = vmatmul.msk.f32.vlgmr.msrb.gmra.mxu0 %vm563_vm10, %v6143_v28  ;;  %3783 = vmatpush.msra.mxu3 %v3670_v27 }
 0x6c6   :  { %6155 = vmatmul.msk.f32.vlgmr.msrb.gmra.mxu2 %vm563_vm10, %v6143_v28  ;;  %6159 = vmatmul.msk.f32.vlgmr.msrb.gmra.mxu3 %vm563_vm10, %v6143_v28  ;;  %v10110_v24 = vpop.f32.mrf.mxu2  ;;  %v3662_v45 = vsel %vm3638_vm1, %v6865_v47, %v6950_v35  ;;  %v3661_v34 = vsel %vm3638_vm1, %v6864_v56, %v12523_v22  ;;  %v3668_v47 = vsel %vm3638_vm1, %v12524_v46, %v6860_v3  ;;  %v6859_v28 = vunpack.i.l.bf16 %v9835_v9  ;;  %v6144_v56 = vld [vmem:[%s12433_s10 + $0xa8] sm:$0xff] }
 0x6c7   :  { %v10119_v38 = vpop.f32.mrf.mxu3  ;;  %3696 = vmatpush.msrb.mxu1 %v3662_v45  ;;  %3784 = vmatpush.msra.mxu3 %v3669_v10  ;;  %v6855_v46 = vunpack.i.h.bf16 %v9708_v23 }
 0x6c8   :  { %4632 = vperm.xlu1 %6293, %v4435_v41   ;;  %v10128_v6 = vpop.f32.mrf.mxu0  ;;  %v12527_v41 = vunpack.i.l.bf16 %v9854_v2  ;;  %v3667_v9 = vsel %vm3638_vm1, %v12525_v50, %v6859_v28 }
 0x6c9   :  { %v6953_v27 = vpop.permute.xlu1 %6952  ;;  %3697 = vmatpush.msrb.mxu1 %v3661_v34  ;;  %3785 = vmatpush.msra.mxu3 %v3668_v47  ;;  %v6875_v34 = vunpack.i.h.bf16 %v9897_v18 }
 0x6ca   :  { %v6955_v45 = vunpack.i.h.bf16 %v6953_v27  ;;  %v10140_v10 = vpop.permute.xlu0 %6937  ;;  %v6954_v47 = vunpack.i.l.bf16 %v6953_v27  ;;  %v6854_v27 = vunpack.i.l.bf16 %v9708_v23  ;;  %v4433_v23 = vld [vmem:[%s12436_s13] sm:$0xff] }
 0x6cb   :  { %4601 = vperm.xlu0 %6295, %v4432_v13   ;;  %4591 = vperm.xlu2 %6294, %v4430_v17   ;;  %v10146_v22 = vpop.permute.xlu2 %6967  ;;  %v3660_v13 = vsel %vm3638_vm1, %v6860_v3, %v12526_v8  ;;  %v10175_v8 = vpop.f32.mrf.mxu1 }
 0x6cc   :  { %6148 = vmatmul.msk.f32.gmra.mxu1 %vm563_vm10, %v6144_v56  ;;  %v3654_v17 = vsel %vm3638_vm1, %v6950_v35, %v6955_v45  ;;  %3786 = vmatpush.msra.mxu3 %v3667_v9  ;;  %v3646_v50 = vsel %vm3638_vm1, %v6955_v45, %v6925_v33  ;;  %v3659_v35 = vsel %vm3638_vm1, %v6859_v28, %v12527_v41  ;;  %v6905_v9 = vunpack.i.h.bf16 %v9856_v30  ;;  %v4434_v28 = vld [vmem:[%s12436_s13 + $0x8] sm:$0xff] }
 0x6cd   :  { %6152 = vmatmul.msk.f32.gmra.mxu0 %vm563_vm10, %v6144_v56  ;;  %3698 = vmatpush.msrb.mxu1 %v3660_v13  ;;  %v12694_v45 = vunpack.i.h.bf16 %v9915_v58  ;;  %v12696_v13 = vunpack.i.l.bf16 %v10084_v11  ;;  %v6145_v11 = vld [vmem:[%s12433_s10 + $0xb0] sm:$0xff] }
 0x6ce   :  { %6156 = vmatmul.msk.f32.gmra.mxu2 %vm563_vm10, %v6144_v56  ;;  %6160 = vmatmul.msk.f32.gmra.mxu3 %vm563_vm10, %v6144_v56  ;;  %v10171_v3 = vpop.f32.mrf.mxu2 }
 0x6cf   :  { %3699 = vmatpush.msrb.mxu1 %v3659_v35  ;;  %3725 = vmatpush.msra.mxu0 %v3654_v17  ;;  %v10177_v33 = vpop.f32.mrf.mxu3  ;;  %v3666_v56 = vsel %vm3638_vm1, %v12694_v45, %v6855_v46  ;;  %v3658_v17 = vsel %vm3638_vm1, %v6855_v46, %v6875_v34  ;;  %v12695_v35 = vunpack.i.l.bf16 %v10093_v32 }
 0x6d0   :  { %12693 = vst [vmem:[#allocation22_spill] sm:$0xff] %v10177_v33  ;;  %3754 = vmatpush.msra.mxu2 %v3646_v50  ;;  %3787 = vmatpush.msra.mxu3 %v3666_v56  ;;  %v10198_v41 = vpop.f32.mrf.mxu0  ;;  %v3645_v50 = vsel %vm3638_vm1, %v6954_v47, %v12696_v13  ;;  %v12697_v33 = vunpack.i.l.bf16 %v9915_v58  ;;  %v6904_v56 = vunpack.i.l.bf16 %v9856_v30 }
 0x6d1   :  { %v3653_v45 = vsel %vm3638_vm1, %v12695_v35, %v6954_v47  ;;  %3700 = vmatpush.msrb.mxu1 %v3658_v17  ;;  %v10204_v37 = vpop.permute.xlu1 %6957  ;;  %v6910_v17 = vunpack.i.h.bf16 %v10030_v36  ;;  %v12698_v47 = vunpack.i.h.bf16 %v9854_v2 }
 0x6d2   :  { %3726 = vmatpush.msra.mxu0 %v3653_v45  ;;  %v3665_v32 = vsel %vm3638_vm1, %v12697_v33, %v6854_v27  ;;  %3755 = vmatpush.msra.mxu2 %v3645_v50  ;;  %v10210_v46 = vpop.permute.xlu0 %6962  ;;  %v12699_v33 = vunpack.i.l.bf16 %v9897_v18  ;;  %v12700_v45 = vunpack.i.h.bf16 %v10021_v5 }
 0x6d3   :  { %3788 = vmatpush.msra.mxu3 %v3665_v32  ;;  %4627 = vperm.xlu0 %6295, %v4434_v28   ;;  %v3652_v13 = vsel %vm3638_vm1, %v12698_v47, %v6905_v9  ;;  %v6895_v28 = vunpack.i.h.bf16 %v9975_v40  ;;  %v10238_v32 = vpop.f32.mrf.mxu1  ;;  %v12701_v47 = vunpack.i.l.bf16 %v9854_v2  ;;  %v12703_v2 = vunpack.i.l.bf16 %v10021_v5 }
 0x6d4   :  { %4622 = vperm.xlu2 %6294, %v4433_v23   ;;  %6149 = vmatmul.msk.f32.gmra.mxu1 %vm563_vm10, %v6145_v11  ;;  %v3657_v30 = vsel %vm3638_vm1, %v6854_v27, %v12699_v33  ;;  %v12528_v23 = vunpack.i.l.bf16 %v10030_v36  ;;  %v10229_v35 = vpop.permute.xlu2 %6972  ;;  %v3644_v50 = vsel %vm3638_vm1, %v6905_v9, %v12700_v45  ;;  %v6894_v27 = vunpack.i.l.bf16 %v9975_v40  ;;  %v4436_v40 = vld [vmem:[%s12436_s13 + $0x18] sm:$0xff] }
 0x6d5   :  { %3727 = vmatpush.msra.mxu0 %v3652_v13  ;;  %3701 = vmatpush.msrb.mxu1 %v3657_v30  ;;  %v3651_v13 = vsel %vm3638_vm1, %v12701_v47, %v6904_v56  ;;  %v12702_v33 = vunpack.i.h.bf16 %v9728_v25  ;;  %v3643_v30 = vsel %vm3638_vm1, %v6904_v56, %v12703_v2  ;;  %v3650_v47 = vsel %vm3638_vm1, %v6875_v34, %v6895_v28 }
 0x6d6   :  { %6153 = vmatmul.msk.f32.gmra.mxu0 %vm563_vm10, %v6145_v11  ;;  %6157 = vmatmul.msk.f32.gmra.mxu2 %vm563_vm10, %v6145_v11 }
 0x6d7   :  { %6161 = vmatmul.msk.f32.gmra.mxu3 %vm563_vm10, %v6145_v11  ;;  %3756 = vmatpush.msra.mxu2 %v3644_v50  ;;  %v3664_v11 = vsel %vm3638_vm1, %v6910_v17, %v12702_v33  ;;  %v10251_v9 = vpop.f32.mrf.mxu2  ;;  %v10261_v45 = vpop.f32.mrf.mxu3  ;;  %v6885_v33 = vunpack.i.h.bf16 %v9956_v54 }
 0x6d8   :  { %3702 = vmatpush.msrb.mxu1 %v9760_v21  ;;  %v12531_v21 = vunpack.i.l.bf16 %v10229_v35  ;;  %3728 = vmatpush.msra.mxu0 %v3651_v13  ;;  %v10263_v50 = vpop.f32.mrf.mxu0  ;;  %v12704_v13 = vunpack.i.l.bf16 %v9728_v25 }
 0x6d9   :  { %3789 = vmatpush.msra.mxu3 %v3664_v11  ;;  %3757 = vmatpush.msra.mxu2 %v3643_v30  ;;  %v10276_v56 = vpop.permute.xlu1 %6977  ;;  %v12535_v11 = vunpack.i.h.bf16 %v10040_v57  ;;  %v6884_v30 = vunpack.i.l.bf16 %v9956_v54  ;;  %v12707_v54 = vunpack.i.l.bf16 %v9915_v58 }
 0x6da   :  { %3703 = vmatpush.msrb.mxu1 %v9768_v1  ;;  %v3663_v5 = vsel %vm3638_vm1, %v12528_v23, %v12704_v13  ;;  %3729 = vmatpush.msra.mxu0 %v3650_v47  ;;  %v12705_v1 = vunpack.i.h.bf16 %v9915_v58  ;;  %v12529_v25 = vunpack.i.l.bf16 %v10276_v56  ;;  %v10285_v34 = vpop.permute.xlu0 %6982  ;;  %v6146_v13 = vld [vmem:[%s12433_s10 + $0xb8] sm:$0xff]  ;;  %v12706_v47 = vunpack.i.l.bf16 %v9897_v18 }
 0x6db   :  { %3790 = vmatpush.msra.mxu3 %v3663_v5  ;;  %v3943_v18 = vsel %vm3911_vm3, %v12531_v21, %v12535_v11  ;;  %v12530_v5 = vunpack.i.l.bf16 %v10285_v34  ;;  %v12708_v58 = vunpack.i.h.bf16 %v9743_v16 }
 0x6dc   :  { %v3642_v2 = vsel %vm3638_vm1, %v6895_v28, %v12705_v1  ;;  %4637 = vperm.xlu2 %6294, %v4436_v40   ;;  %v3649_v23 = vsel %vm3638_vm1, %v12706_v47, %v6894_v27  ;;  %v12534_v28 = vunpack.i.l.bf16 %v10040_v57  ;;  %6150 = vmatmul.msk.f32.gmra.mxu1 %vm563_vm10, %v6146_v13  ;;  %v3641_v40 = vsel %vm3638_vm1, %v6894_v27, %v12707_v54 }
 0x6dd   :  { %3758 = vmatpush.msra.mxu2 %v3642_v2  ;;  %3730 = vmatpush.msra.mxu0 %v3649_v23  ;;  %v12532_v1 = vunpack.i.h.bf16 %v10140_v10  ;;  %v3648_v23 = vsel %vm3638_vm1, %v12708_v58, %v6885_v33  ;;  %v3640_v2 = vsel %vm3638_vm1, %v6885_v33, %v6910_v17  ;;  %v12710_v47 = vunpack.i.l.bf16 %v9743_v16  ;;  %v10343_v17 = vpop.f32.mrf.mxu1 }
 0x6de   :  { %6154 = vmatmul.msk.f32.gmra.mxu0 %vm563_vm10, %v6146_v13  ;;  %6158 = vmatmul.msk.f32.gmra.mxu2 %vm563_vm10, %v6146_v13  ;;  %v3942_v27 = vsel %vm3911_vm3, %v12529_v25, %v12534_v28  ;;  %v12713_v33 = vunpack.i.l.bf16 %v10030_v36  ;;  %v6935_v36 = vunpack.i.h.bf16 %v10080_v53  ;;  %v6930_v28 = vunpack.i.h.bf16 %v9979_v12 }
 0x6df   :  { %3759 = vmatpush.msra.mxu2 %v3641_v40  ;;  %6162 = vmatmul.msk.f32.gmra.mxu3 %vm563_vm10, %v6146_v13  ;;  %v10327_v13 = vpop.f32.mrf.mxu2  ;;  %v3647_v54 = vsel %vm3638_vm1, %v12710_v47, %v6884_v30 }
 0x6e0   :  { %4056 = vmatpush.msrb.mxu3 %v3943_v18  ;;  %3731 = vmatpush.msra.mxu0 %v3648_v23  ;;  %12709 = vst [vmem:[#allocation20_spill] sm:$0xff] %v10327_v13  ;;  %v10333_v40 = vpop.f32.mrf.mxu3  ;;  %v3941_v18 = vsel %vm3911_vm3, %v12530_v5, %v12532_v1  ;;  %v10341_v58 = vpop.f32.mrf.mxu0  ;;  %v3639_v16 = vsel %vm3638_vm1, %v6884_v30, %v12713_v33  ;;  %v6939_v30 = vunpack.i.l.bf16 %v10140_v10  ;;  %v6934_v33 = vunpack.i.l.bf16 %v10080_v53 }
 0x6e1   :  { %3760 = vmatpush.msra.mxu2 %v3640_v2  ;;  %12711 = vst [vmem:[#allocation18_spill] sm:$0xff] %v10333_v40  ;;  %v10349_v23 = vpop.permute.xlu1 %6992  ;;  %v12722_v13 = vunpack.i.h.bf16 %v10140_v10 }
 0x6e2   :  { %12712 = vst [vmem:[#allocation16_spill] sm:$0xff] %v10341_v58  ;;  %3732 = vmatpush.msra.mxu0 %v3647_v54  ;;  %4057 = vmatpush.msrb.mxu3 %v3942_v27  ;;  %v10351_v2 = vpop.permute.xlu2 %6987  ;;  %v12536_v47 = vunpack.i.l.bf16 %v10349_v23  ;;  %v10354_v25 = vpop.permute.xlu0 %6997  ;;  %v6164_v54 = vld [vmem:[%s12433_s10 + $0xc0] sm:$0xff] }
 0x6e3   :  { %3761 = vmatpush.msra.mxu2 %v3639_v16  ;;  %v12533_v5 = vunpack.i.l.bf16 %v10351_v2  ;;  %v12537_v27 = vunpack.i.l.bf16 %v10354_v25 }
 0x6e4   :  { %4058 = vmatpush.msrb.mxu3 %v3941_v18  ;;  %6168 = vmatmul.msk.f32.vlgmr.msrb.gmra.mxu1 %vm563_vm10, %v6164_v54  ;;  %v3939_v16 = vsel %vm3911_vm3, %v12536_v47, %v6935_v36 }
 0x6e5   :  { %v3940_v18 = vsel %vm3911_vm3, %v12533_v5, %v6939_v30  ;;  %v3938_v53 = vsel %vm3911_vm3, %v12537_v27, %v6934_v33  ;;  %v10390_v47 = vpop.f32.mrf.mxu1 }
 0x6e6   :  { %6172 = vmatmul.msk.f32.vlgmr.msra.gmra.mxu0 %vm563_vm10, %v6164_v54  ;;  %6176 = vmatmul.msk.f32.vlgmr.msra.gmra.mxu2 %vm563_vm10, %v6164_v54  ;;  %12717 = vst [vmem:[#allocation30_spill] sm:$0xff] %v10390_v47 }
 0x6e7   :  { %6180 = vmatmul.msk.f32.vlgmr.msra.gmra.mxu3 %vm563_vm10, %v6164_v54  ;;  %v10376_v21 = vpop.f32.mrf.mxu2 }
 0x6e8   :  { %4059 = vmatpush.msrb.mxu3 %v3940_v18  ;;  %12714 = vst [vmem:[#allocation31_spill] sm:$0xff] %v10376_v21  ;;  %v10378_v1 = vpop.f32.mrf.mxu3  ;;  %v10388_v11 = vpop.f32.mrf.mxu0  ;;  %v6165_v18 = vld [vmem:[%s12433_s10 + $0xc8] sm:$0xff] }
 0x6e9   :  { %12715 = vst [vmem:[#allocation32_spill] sm:$0xff] %v10378_v1  ;;  %v10384_v54 = vpop.permute.xlu1 %7017 }
 0x6ea   :  { %4060 = vmatpush.msrb.mxu3 %v3939_v16  ;;  %v7020_v5 = vunpack.i.h.bf16 %v10384_v54  ;;  %12716 = vst [vmem:[#allocation33_spill] sm:$0xff] %v10388_v11  ;;  %v12718_v16 = vunpack.i.h.bf16 %v10040_v57  ;;  %v12719_v47 = vunpack.i.l.bf16 %v10384_v54 }
 0x6ec   :  { %4061 = vmatpush.msrb.mxu3 %v3938_v53  ;;  %6169 = vmatmul.msk.f32.gmra.mxu1 %vm563_vm10, %v6165_v18  ;;  %v3935_v27 = vsel %vm3911_vm3, %v12718_v16, %v7020_v5  ;;  %v12720_v16 = vunpack.i.l.bf16 %v10040_v57  ;;  %v10416_v40 = vpop.permute.xlu0 %7007 }
 0x6ed   :  { %v10402_v21 = vpop.permute.xlu2 %7002  ;;  %3969 = vmatpush.msra.mxu1 %v3935_v27  ;;  %v6929_v27 = vunpack.i.l.bf16 %v9979_v12 }
 0x6ee   :  { %6173 = vmatmul.msk.f32.gmra.mxu0 %vm563_vm10, %v6165_v18  ;;  %v12538_v1 = vunpack.i.l.bf16 %v10402_v21  ;;  %6177 = vmatmul.msk.f32.gmra.mxu2 %vm563_vm10, %v6165_v18  ;;  %v3934_v58 = vsel %vm3911_vm3, %v12720_v16, %v12719_v47 }
 0x6ef   :  { %6181 = vmatmul.msk.f32.gmra.mxu3 %vm563_vm10, %v6165_v18  ;;  %3970 = vmatpush.msra.mxu1 %v3934_v58  ;;  %v12721_v18 = vunpack.i.h.bf16 %v10146_v22  ;;  %v10430_v47 = vpop.f32.mrf.mxu2  ;;  %v12724_v58 = vunpack.i.h.bf16 %v10402_v21 }
 0x6f0   :  { %v3937_v53 = vsel %vm3911_vm3, %v12538_v1, %v6930_v28  ;;  %12723 = vst [vmem:[#allocation36_spill] sm:$0xff] %v10430_v47  ;;  %v10437_v11 = vpop.f32.mrf.mxu3  ;;  %v12726_v1 = vunpack.i.l.bf16 %v10146_v22 }
 0x6f1   :  { %v3933_v57 = vsel %vm3911_vm3, %v12722_v13, %v12721_v18  ;;  %4062 = vmatpush.msrb.mxu3 %v3937_v53  ;;  %v3936_v16 = vsel %vm3911_vm3, %v12724_v58, %v6929_v27  ;;  %12725 = vst [vmem:[#allocation35_spill] sm:$0xff] %v10437_v11  ;;  %v6166_v13 = vld [vmem:[%s12433_s10 + $0xd0] sm:$0xff]  ;;  %v12539_v53 = vunpack.i.h.bf16 %v10204_v37  ;;  %v10448_v18 = vpop.f32.mrf.mxu0  ;;  %v6985_v11 = vunpack.i.h.bf16 %v10285_v34 }
 0x6f2   :  { %3971 = vmatpush.msra.mxu1 %v3933_v57  ;;  %v3932_v10 = vsel %vm3911_vm3, %v6939_v30, %v12726_v1  ;;  %12727 = vst [vmem:[#allocation28_spill] sm:$0xff] %v10448_v18  ;;  %v12728_v57 = vunpack.i.h.bf16 %v10210_v46  ;;  %v10456_v1 = vpop.f32.mrf.mxu1 }
 0x6f3   :  { %4063 = vmatpush.msrb.mxu3 %v3936_v16  ;;  %12729 = vst [vmem:[#allocation34_spill] sm:$0xff] %v10456_v1  ;;  %v12730_v16 = vunpack.i.l.bf16 %v10210_v46 }
 0x6f4   :  { %3972 = vmatpush.msra.mxu1 %v3932_v10  ;;  %v3931_v58 = vsel %vm3911_vm3, %v6935_v36, %v12728_v57  ;;  %v3929_v57 = vsel %vm3911_vm3, %v6930_v28, %v12539_v53  ;;  %v12733_v53 = vunpack.i.l.bf16 %v10229_v35 }
 0x6f5   :  { %6170 = vmatmul.msk.f32.gmra.mxu1 %vm563_vm10, %v6166_v13  ;;  %v10454_v12 = vpop.permute.xlu2 %7012  ;;  %v3930_v10 = vsel %vm3911_vm3, %v6934_v33, %v12730_v16  ;;  %v6167_v33 = vld [vmem:[%s12433_s10 + $0xd8] sm:$0xff] }
 0x6f6   :  { %6174 = vmatmul.msk.f32.gmra.mxu0 %vm563_vm10, %v6166_v13  ;;  %3973 = vmatpush.msra.mxu1 %v3931_v58 }
 0x6f7   :  { %6178 = vmatmul.msk.f32.gmra.mxu2 %vm563_vm10, %v6166_v13  ;;  %6182 = vmatmul.msk.f32.gmra.mxu3 %vm563_vm10, %v6166_v13  ;;  %v10466_v36 = vpop.permute.xlu1 %7037  ;;  %v12731_v13 = vunpack.i.l.bf16 %v10204_v37  ;;  %v10482_v16 = vpop.f32.mrf.mxu2 }
 0x6f8   :  { %3974 = vmatpush.msra.mxu1 %v3930_v10  ;;  %12732 = vst [vmem:[#allocation26_spill] sm:$0xff] %v10482_v16  ;;  %v6975_v10 = vunpack.i.h.bf16 %v10229_v35  ;;  %v10486_v28 = vpop.f32.mrf.mxu3  ;;  %v12736_v35 = vunpack.i.l.bf16 %v10276_v56 }
 0x6f9   :  { %v10472_v58 = vpop.permute.xlu0 %7022  ;;  %v3928_v18 = vsel %vm3911_vm3, %v6929_v27, %v12731_v13 }
 0x6fa   :  { %3975 = vmatpush.msra.mxu1 %v3929_v57  ;;  %v7025_v30 = vunpack.i.h.bf16 %v10472_v58  ;;  %v10497_v16 = vpop.f32.mrf.mxu1 }
 0x6fb   :  { %12734 = vst [vmem:[#allocation25_spill] sm:$0xff] %v10497_v16  ;;  %v12738_v16 = vunpack.i.l.bf16 %v10285_v34  ;;  %v6185_v34 = vld [vmem:[%s12433_s10 + $0xe0] sm:$0xff] }
 0x6fc   :  { %3976 = vmatpush.msra.mxu1 %v3928_v18  ;;  %v3927_v57 = vsel %vm3911_vm3, %v7020_v5, %v7025_v30  ;;  %v3919_v27 = vsel %vm3911_vm3, %v7025_v30, %v12733_v53  ;;  %v6980_v18 = vunpack.i.h.bf16 %v10276_v56  ;;  %v10503_v5 = vpop.f32.mrf.mxu0  ;;  %v3918_v53 = vsel %vm3911_vm3, %v6975_v10, %v12736_v35 }
 0x6fd   :  { %6171 = vmatmul.msk.f32.gmra.mxu1 %vm563_vm10, %v6167_v33  ;;  %v10494_v13 = vpop.permute.xlu2 %7032  ;;  %4027 = vmatpush.msrb.mxu2 %v3919_v27  ;;  %12735 = vst [vmem:[#allocation12_spill] sm:$0xff] %v10503_v5  ;;  %v12737_v30 = vunpack.i.l.bf16 %v10384_v54  ;;  %v12739_v35 = vunpack.i.h.bf16 %v10146_v22  ;;  %v12740_v54 = vunpack.i.l.bf16 %v10351_v2 }
 0x6fe   :  { %6175 = vmatmul.msk.f32.gmra.mxu0 %vm563_vm10, %v6167_v33  ;;  %v3917_v47 = vsel %vm3911_vm3, %v6980_v18, %v12738_v16  ;;  %v7000_v16 = vunpack.i.h.bf16 %v10354_v25 }
 0x6ff   :  { %6179 = vmatmul.msk.f32.gmra.mxu2 %vm563_vm10, %v6167_v33  ;;  %6183 = vmatmul.msk.f32.gmra.mxu3 %vm563_vm10, %v6167_v33  ;;  %v3926_v27 = vsel %vm3911_vm3, %v12737_v30, %v6975_v10  ;;  %v6990_v33 = vunpack.i.h.bf16 %v10351_v2  ;;  %v3916_v10 = vsel %vm3911_vm3, %v6985_v11, %v12740_v54  ;;  %v12742_v2 = vunpack.i.l.bf16 %v10349_v23 }
 0x700   :  { %3998 = vmatpush.msrb.mxu0 %v3927_v57  ;;  %4028 = vmatpush.msrb.mxu2 %v3918_v53  ;;  %v3925_v57 = vsel %vm3911_vm3, %v12739_v35, %v6980_v18  ;;  %v12741_v53 = vunpack.i.l.bf16 %v10146_v22  ;;  %v12746_v54 = vunpack.i.l.bf16 %v10354_v25 }
 0x701   :  { %v3915_v30 = vsel %vm3911_vm3, %v6990_v33, %v12742_v2  ;;  %v12749_v2 = vunpack.i.l.bf16 %v10210_v46 }
 0x702   :  { %3999 = vmatpush.msrb.mxu0 %v3926_v27  ;;  %4029 = vmatpush.msrb.mxu2 %v3917_v47  ;;  %v10518_v56 = vpop.permute.xlu1 %7052  ;;  %v6995_v47 = vunpack.i.h.bf16 %v10349_v23  ;;  %v3924_v18 = vsel %vm3911_vm3, %v12741_v53, %v6985_v11  ;;  %v12745_v11 = vunpack.i.h.bf16 %v10210_v46 }
 0x703   :  { %v10544_v35 = vpop.f32.mrf.mxu2  ;;  %v10548_v22 = vpop.f32.mrf.mxu3 }
 0x704   :  { %4000 = vmatpush.msrb.mxu0 %v3925_v57  ;;  %4030 = vmatpush.msrb.mxu2 %v3916_v10  ;;  %12743 = vst [vmem:[#allocation29_spill] sm:$0xff] %v10544_v35  ;;  %v7024_v57 = vunpack.i.l.bf16 %v10472_v58  ;;  %v3923_v23 = vsel %vm3911_vm3, %v12745_v11, %v6990_v33  ;;  %v3914_v10 = vsel %vm3911_vm3, %v6995_v47, %v12746_v54  ;;  %v12750_v33 = vunpack.i.l.bf16 %v10402_v21 }
 0x705   :  { %6189 = vmatmul.msk.f32.vlgmr.msra.gmra.mxu1 %vm563_vm10, %v6185_v34  ;;  %v10542_v27 = vpop.permute.xlu0 %7027  ;;  %12744 = vst [vmem:[#allocation24_spill] sm:$0xff] %v10548_v22  ;;  %v10558_v53 = vpop.permute.xlu2 %7047  ;;  %v12751_v54 = vunpack.i.h.bf16 %v10204_v37 }
 0x706   :  { %4001 = vmatpush.msrb.mxu0 %v3924_v18  ;;  %4031 = vmatpush.msrb.mxu2 %v3915_v30  ;;  %v10560_v18 = vpop.f32.mrf.mxu1  ;;  %v3922_v30 = vsel %vm3911_vm3, %v12749_v2, %v6995_v47  ;;  %v3913_v25 = vsel %vm3911_vm3, %v7000_v16, %v12750_v33  ;;  %v7009_v47 = vunpack.i.l.bf16 %v10416_v40  ;;  %v7010_v33 = vunpack.i.h.bf16 %v10416_v40 }
 0x707   :  { %6201 = vmatmul.msk.f32.vlgmr.msrb.gmra.mxu3 %vm563_vm10, %v6185_v34  ;;  %12747 = vst [vmem:[#allocation21_spill] sm:$0xff] %v10560_v18  ;;  %v7054_v18 = vunpack.i.l.bf16 %v10518_v56 }
 0x708   :  { %4002 = vmatpush.msrb.mxu0 %v3923_v23  ;;  %4032 = vmatpush.msrb.mxu2 %v3914_v10  ;;  %v10562_v58 = vpop.f32.mrf.mxu0  ;;  %v3921_v23 = vsel %vm3911_vm3, %v12751_v54, %v7000_v16  ;;  %v12752_v10 = vunpack.i.h.bf16 %v10402_v21  ;;  %v7015_v16 = vunpack.i.h.bf16 %v10454_v12  ;;  %v7014_v21 = vunpack.i.l.bf16 %v10454_v12 }
 0x709   :  { %12748 = vst [vmem:[#allocation27_spill] sm:$0xff] %v10562_v58  ;;  %v7030_v12 = vunpack.i.h.bf16 %v10542_v27 }
 0x70a   :  { %4003 = vmatpush.msrb.mxu0 %v3922_v30  ;;  %4033 = vmatpush.msrb.mxu2 %v3913_v25  ;;  %v7068_v11 = vpop.permute.xlu1 %7067  ;;  %v3912_v46 = vsel %vm3911_vm3, %v7024_v57, %v12752_v10  ;;  %v6186_v30 = vld [vmem:[%s12433_s10 + $0xe8] sm:$0xff]  ;;  %v12753_v25 = vunpack.i.l.bf16 %v10204_v37  ;;  %v7029_v37 = vunpack.i.l.bf16 %v10542_v27  ;;  %v7040_v10 = vunpack.i.h.bf16 %v10466_v36 }
 0x70b   :  { %v7070_v2 = vunpack.i.h.bf16 %v7068_v11  ;;  %v7069_v58 = vunpack.i.l.bf16 %v7068_v11  ;;  %v4191_v27 = vsel %vm4184_vm4, %v7010_v33, %v7014_v21 }
 0x70c   :  { %4004 = vmatpush.msrb.mxu0 %v3921_v23  ;;  %4034 = vmatpush.msrb.mxu2 %v3912_v46  ;;  %v3920_v54 = vsel %vm3911_vm3, %v12753_v25, %v7024_v57  ;;  %v7039_v46 = vunpack.i.l.bf16 %v10466_v36  ;;  %v4214_v36 = vsel %vm4184_vm4, %v7029_v37, %v7030_v12 }
 0x70d   :  { %6190 = vmatmul.msk.f32.gmra.mxu1 %vm563_vm10, %v6186_v30  ;;  %6197 = vmatmul.msk.f32.vlgmr.msrb.gmra.mxu2 %vm563_vm10, %v6185_v34  ;;  %v10594_v11 = vpop.permute.xlu0 %7042  ;;  %v4216_v23 = vsel %vm4184_vm4, %v7070_v2, %v7009_v47  ;;  %v4192_v40 = vsel %vm4184_vm4, %v7069_v58, %v7070_v2  ;;  %v4215_v2 = vsel %vm4184_vm4, %v7014_v21, %v7015_v16  ;;  %v10627_v21 = vld [vmem:[%s12433_s10 + $0xf0] sm:$0xff] }
 0x70e   :  { %4005 = vmatpush.msrb.mxu0 %v3920_v54  ;;  %4329 = vmatpush.msra.mxu3 %v4216_v23  ;;  %v10604_v57 = vpop.f32.mrf.mxu2  ;;  %v10614_v54 = vpop.permute.xlu2 %7062  ;;  %v7044_v5 = vunpack.i.l.bf16 %v10594_v11 }
 0x70f   :  { %6202 = vmatmul.msk.f32.gmra.mxu3 %vm563_vm10, %v6186_v30  ;;  %6193 = vmatmul.msk.f32.vlgmr.msrb.gmra.mxu0 %vm563_vm10, %v6185_v34  ;;  %12754 = vst [vmem:[#allocation17_spill] sm:$0xff] %v10604_v57  ;;  %v10608_v25 = vpop.f32.mrf.mxu3 }
 0x710   :  { %4300 = vmatpush.msra.mxu2 %v4192_v40  ;;  %12755 = vst [vmem:[#allocation23_spill] sm:$0xff] %v10608_v25  ;;  %4330 = vmatpush.msra.mxu3 %v4215_v2  ;;  %v7050_v40 = vunpack.i.h.bf16 %v10558_v53  ;;  %v7049_v25 = vunpack.i.l.bf16 %v10558_v53  ;;  %v7034_v2 = vunpack.i.l.bf16 %v10494_v13  ;;  %v7035_v53 = vunpack.i.h.bf16 %v10494_v13 }
 0x711   :  { %v10616_v22 = vpop.f32.mrf.mxu1 }
 0x712   :  { %12756 = vst [vmem:[#allocation13_spill] sm:$0xff] %v10616_v22  ;;  %4301 = vmatpush.msra.mxu2 %v4191_v27  ;;  %v7073_v34 = vpop.permute.xlu1 %7072  ;;  %v10618_v23 = vpop.f32.mrf.mxu0  ;;  %4331 = vmatpush.msra.mxu3 %v4214_v36  ;;  %v4213_v27 = vsel %vm4184_vm4, %v7039_v46, %v7040_v10 }
 0x713   :  { %12757 = vst [vmem:[#allocation19_spill] sm:$0xff] %v10618_v23  ;;  %v7075_v57 = vunpack.i.h.bf16 %v7073_v34  ;;  %v7074_v35 = vunpack.i.l.bf16 %v7073_v34 }
 0x714   :  { %4332 = vmatpush.msra.mxu3 %v4213_v27 }
 0x715   :  { %6191 = vmatmul.msk.f32.gmra.mxu1 %vm563_vm10, %v10627_v21  ;;  %6198 = vmatmul.msk.f32.gmra.mxu2 %vm563_vm10, %v6186_v30  ;;  %v10636_v23 = vpop.permute.xlu0 %7057  ;;  %v4208_v34 = vsel %vm4184_vm4, %v7009_v47, %v7074_v35  ;;  %v4200_v36 = vsel %vm4184_vm4, %v7074_v35, %v7069_v58  ;;  %v4190_v22 = vsel %vm4184_vm4, %v7075_v57, %v7029_v37  ;;  %v7045_v47 = vunpack.i.h.bf16 %v10594_v11 }
 0x716   :  { %v7060_v1 = vunpack.i.h.bf16 %v10636_v23  ;;  %v7059_v13 = vunpack.i.l.bf16 %v10636_v23  ;;  %4242 = vmatpush.msrb.mxu1 %v4208_v34  ;;  %4271 = vmatpush.msra.mxu0 %v4200_v36  ;;  %v4212_v35 = vsel %vm4184_vm4, %v7049_v25, %v7050_v40  ;;  %v7064_v58 = vunpack.i.l.bf16 %v10614_v54 }
 0x717   :  { %6203 = vmatmul.msk.f32.gmra.mxu3 %vm563_vm10, %v10627_v21  ;;  %4302 = vmatpush.msra.mxu2 %v4190_v22  ;;  %v4207_v37 = vsel %vm4184_vm4, %v7015_v16, %v7034_v2  ;;  %v4199_v23 = vsel %vm4184_vm4, %v7034_v2, %v7010_v33  ;;  %v4189_v34 = vsel %vm4184_vm4, %v7035_v53, %v7039_v46 }
 0x718   :  { %4333 = vmatpush.msra.mxu3 %v4212_v35  ;;  %6194 = vmatmul.msk.f32.gmra.mxu0 %vm563_vm10, %v6186_v30  ;;  %v4211_v27 = vsel %vm4184_vm4, %v7059_v13, %v7060_v1  ;;  %v7055_v30 = vunpack.i.h.bf16 %v10518_v56  ;;  %v4206_v33 = vsel %vm4184_vm4, %v7030_v12, %v7044_v5  ;;  %v4198_v2 = vsel %vm4184_vm4, %v7044_v5, %v7075_v57  ;;  %v6188_v12 = vld [vmem:[%s12433_s10 + $0xf8] sm:$0xff] }
 0x719   :  { %v10661_v11 = vpop.f32.mrf.mxu1  ;;  %v10663_v22 = vpop.f32.mrf.mxu2  ;;  %4243 = vmatpush.msrb.mxu1 %v4207_v37  ;;  %4272 = vmatpush.msra.mxu0 %v4199_v23  ;;  %v4205_v35 = vsel %vm4184_vm4, %v7040_v10, %v7054_v18  ;;  %v7065_v37 = vunpack.i.h.bf16 %v10614_v54  ;;  %v4197_v5 = vsel %vm4184_vm4, %v7054_v18, %v7035_v53  ;;  %v4204_v57 = vsel %vm4184_vm4, %v7050_v40, %v7064_v58 }
 0x71a   :  { %12758 = vst [vmem:[#allocation14_spill] sm:$0xff] %v10663_v22  ;;  %v10668_v36 = vpop.f32.mrf.mxu3  ;;  %4303 = vmatpush.msra.mxu2 %v4189_v34  ;;  %4334 = vmatpush.msra.mxu3 %v4211_v27  ;;  %v7078_v16 = vpop.permute.xlu1 %7077  ;;  %v4188_v27 = vsel %vm4184_vm4, %v7045_v47, %v7049_v25  ;;  %v4196_v10 = vsel %vm4184_vm4, %v7064_v58, %v7045_v47 }
 0x71b   :  { %v7088_v23 = vpop.permute.xlu2 %7087  ;;  %v7080_v46 = vunpack.i.h.bf16 %v7078_v16  ;;  %v7079_v22 = vunpack.i.l.bf16 %v7078_v16  ;;  %v10677_v56 = vpop.f32.mrf.mxu0  ;;  %4244 = vmatpush.msrb.mxu1 %v4206_v33  ;;  %4273 = vmatpush.msra.mxu0 %v4198_v2  ;;  %v4187_v25 = vsel %vm4184_vm4, %v7055_v30, %v7059_v13 }
 0x71c   :  { %4304 = vmatpush.msra.mxu2 %v4188_v27  ;;  %v7090_v53 = vunpack.i.h.bf16 %v7088_v23  ;;  %v7089_v16 = vunpack.i.l.bf16 %v7088_v23 }
 0x71d   :  { %6192 = vmatmul.msk.f32.gmra.mxu1 %vm563_vm10, %v6188_v12  ;;  %v7083_v54 = vpop.permute.xlu0 %7082  ;;  %4274 = vmatpush.msra.mxu0 %v4197_v5  ;;  %v4186_v34 = vsel %vm4184_vm4, %v7065_v37, %v7079_v22  ;;  %v4210_v18 = vsel %vm4184_vm4, %v7079_v22, %v7080_v46 }
 0x71e   :  { %4245 = vmatpush.msrb.mxu1 %v4205_v35  ;;  %v7085_v40 = vunpack.i.h.bf16 %v7083_v54  ;;  %v7084_v33 = vunpack.i.l.bf16 %v7083_v54  ;;  %4305 = vmatpush.msra.mxu2 %v4187_v25 }
 0x71f   :  { %6204 = vmatmul.msk.f32.gmra.mxu3 %vm563_vm10, %v6188_v12  ;;  %4275 = vmatpush.msra.mxu0 %v4196_v10 }
 0x720   :  { %4246 = vmatpush.msrb.mxu1 %v4204_v57  ;;  %4306 = vmatpush.msra.mxu2 %v4186_v34  ;;  %v4203_v13 = vsel %vm4184_vm4, %v7060_v1, %v7084_v33  ;;  %v4195_v47 = vsel %vm4184_vm4, %v7084_v33, %v7055_v30  ;;  %v4185_v58 = vsel %vm4184_vm4, %v7085_v40, %v7089_v16 }
 0x721   :  { %4335 = vmatpush.msra.mxu3 %v4210_v18  ;;  %6195 = vmatmul.msk.f32.gmra.mxu0 %vm563_vm10, %v10627_v21  ;;  %v10708_v22 = vpop.f32.mrf.mxu2  ;;  %v10710_v2 = vpop.f32.mrf.mxu1  ;;  %v4209_v1 = vsel %vm4184_vm4, %v7089_v16, %v7090_v53 }
 0x722   :  { %6199 = vmatmul.msk.f32.gmra.mxu2 %vm563_vm10, %v10627_v21  ;;  %v10712_v35 = vpop.f32.mrf.mxu3  ;;  %4247 = vmatpush.msrb.mxu1 %v4203_v13  ;;  %v7093_v30 = vpop.permute.xlu1 %7092  ;;  %v6206_v21 = vld [vmem:[%s12433_s10 + $0x100] sm:$0xff]  ;;  %v6208_v13 = vld [vmem:[%s12433_s10 + $0x110] sm:$0xff] }
 0x723   :  { %4276 = vmatpush.msra.mxu0 %v4195_v47  ;;  %4307 = vmatpush.msra.mxu2 %v4185_v58  ;;  %v7095_v23 = vunpack.i.h.bf16 %v7093_v30  ;;  %v7094_v27 = vunpack.i.l.bf16 %v7093_v30  ;;  %v10716_v5 = vpop.f32.mrf.mxu0 }
 0x724   :  { %4336 = vmatpush.msra.mxu3 %v4209_v1 }
 0x725   :  { %v4202_v57 = vsel %vm4184_vm4, %v7080_v46, %v7094_v27  ;;  %v4194_v10 = vsel %vm4184_vm4, %v7094_v27, %v7065_v37  ;;  %v4201_v54 = vsel %vm4184_vm4, %v7090_v53, %v7095_v23  ;;  %v4193_v46 = vsel %vm4184_vm4, %v7095_v23, %v7085_v40  ;;  %v6207_v53 = vld [vmem:[%s12433_s10 + $0x108] sm:$0xff]  ;;  %v6209_v23 = vld [vmem:[%s12433_s10 + $0x118] sm:$0xff] }
 0x726   :  { %4248 = vmatpush.msrb.mxu1 %v4202_v57  ;;  %4277 = vmatpush.msra.mxu0 %v4194_v10 }
 0x727   :  { %6222 = vmatmul.msk.f32.vlgmr.msra.gmra.mxu3 %vm563_vm10, %v6206_v21 }
 0x728   :  { %4249 = vmatpush.msrb.mxu1 %v4201_v54  ;;  %4278 = vmatpush.msra.mxu0 %v4193_v46 }
 0x729   :  { %6196 = vmatmul.msk.f32.gmra.mxu0 %vm563_vm10, %v6188_v12  ;;  %v10730_v25 = vpop.f32.mrf.mxu1  ;;  %v10732_v34 = vpop.f32.mrf.mxu2  ;;  %6210 = vmatmul.msk.f32.vlgmr.msrb.gmra.mxu1 %vm563_vm10, %v6206_v21 }
 0x72a   :  { %6200 = vmatmul.msk.f32.gmra.mxu2 %vm563_vm10, %v6188_v12  ;;  %v10736_v37 = vpop.f32.mrf.mxu3 }
 0x72b   :  { %12759 = vst [vmem:[#allocation9_spill] sm:$0xff] %v10736_v37  ;;  %v10739_v18 = vpop.f32.mrf.mxu0 }
 0x72c   :  { %12760 = vst [vmem:[#allocation15_spill] sm:$0xff] %v10739_v18 }
 0x72f   :  { %6223 = vmatmul.msk.f32.gmra.mxu3 %vm563_vm10, %v6207_v53 }
 0x731   :  { %6214 = vmatmul.msk.f32.vlgmr.msra.gmra.mxu0 %vm563_vm10, %v6206_v21  ;;  %v10747_v12 = vpop.f32.mrf.mxu1  ;;  %v10749_v16 = vpop.f32.mrf.mxu2  ;;  %6211 = vmatmul.msk.f32.gmra.mxu1 %vm563_vm10, %v6207_v53 }
 0x732   :  { %6218 = vmatmul.msk.f32.vlgmr.msra.gmra.mxu2 %vm563_vm10, %v6206_v21  ;;  %12761 = vst [vmem:[#allocation10_spill] sm:$0xff] %v10747_v12  ;;  %v10751_v40 = vpop.f32.mrf.mxu3 }
 0x733   :  { %12762 = vst [vmem:[#allocation11_spill] sm:$0xff] %v10749_v16  ;;  %v10754_v33 = vpop.f32.mrf.mxu0 }
 0x734   :  { %12763 = vst [vmem:[#allocation38_spill] sm:$0xff] %v10751_v40 }
 0x735   :  { %12764 = vst [vmem:[#allocation39_spill] sm:$0xff] %v10754_v33 }
 0x737   :  { %6224 = vmatmul.msk.f32.gmra.mxu3 %vm563_vm10, %v6208_v13 }
 0x739   :  { %6215 = vmatmul.msk.f32.gmra.mxu0 %vm563_vm10, %v6207_v53  ;;  %v10762_v47 = vpop.f32.mrf.mxu1  ;;  %v10764_v58 = vpop.f32.mrf.mxu2  ;;  %6212 = vmatmul.msk.f32.gmra.mxu1 %vm563_vm10, %v6208_v13 }
 0x73a   :  { %6219 = vmatmul.msk.f32.gmra.mxu2 %vm563_vm10, %v6207_v53  ;;  %12765 = vst [vmem:[#allocation40_spill] sm:$0xff] %v10762_v47  ;;  %v10766_v1 = vpop.f32.mrf.mxu3 }
 0x73b   :  { %12766 = vst [vmem:[#allocation41_spill] sm:$0xff] %v10764_v58  ;;  %v10769_v30 = vpop.f32.mrf.mxu0 }
 0x73c   :  { %12767 = vst [vmem:[#allocation42_spill] sm:$0xff] %v10766_v1 }
 0x73d   :  { %12768 = vst [vmem:[#allocation43_spill] sm:$0xff] %v10769_v30 }
 0x73f   :  { %6225 = vmatmul.msk.f32.gmra.mxu3 %vm563_vm10, %v6209_v23 }
 0x741   :  { %6216 = vmatmul.msk.f32.gmra.mxu0 %vm563_vm10, %v6208_v13  ;;  %v10777_v27 = vpop.f32.mrf.mxu2  ;;  %v10779_v21 = vpop.f32.mrf.mxu1  ;;  %6213 = vmatmul.msk.f32.gmra.mxu1 %vm563_vm10, %v6209_v23 }
 0x742   :  { %6220 = vmatmul.msk.f32.gmra.mxu2 %vm563_vm10, %v6208_v13  ;;  %12769 = vst [vmem:[#allocation44_spill] sm:$0xff] %v10777_v27  ;;  %v3282_v57 = vpop.f32.mrf.mxu3 }
 0x743   :  { %12770 = vst [vmem:[#allocation45_spill] sm:$0xff] %v10779_v21  ;;  %v10782_v10 = vpop.f32.mrf.mxu0 }
 0x744   :  { %12771 = vst [vmem:[#allocation46_spill] sm:$0xff] %v10782_v10 }
 0x749   :  { %6217 = vmatmul.msk.f32.gmra.mxu0 %vm563_vm10, %v6209_v23  ;;  %v10786_v54 = vpop.f32.mrf.mxu2  ;;  %v10788_v46 = vpop.f32.mrf.mxu1 }
 0x74a   :  { %6221 = vmatmul.msk.f32.gmra.mxu2 %vm563_vm10, %v6209_v23  ;;  %12772 = vst [vmem:[#allocation47_spill] sm:$0xff] %v10786_v54  ;;  %v10790_v53 = vpop.f32.mrf.mxu3  ;;  %v6080_v23 = vld [vmem:[%s12440_s17 + $0x4] sm:$0xf]  ;;  %v10829_v54 = vld [vmem:[%s12440_s17 + $0xc] sm:$0xf] }
 0x74b   :  { %12773 = vst [vmem:[#allocation48_spill] sm:$0xff] %v10788_v46  ;;  %v10792_v13 = vpop.f32.mrf.mxu0  ;;  %v10805_v58 = vperm.slane %v6080_v23, 3  ;;  %v2307_v46 = vld [vmem:[%s12440_s17] sm:$0xf]  ;;  %v10838_v10 = vperm.slane %v10829_v54, 3 }
 0x74c   :  { %12774 = vst [vmem:[#allocation49_spill] sm:$0xff] %v10790_v53 }
 0x74d   :  { %12775 = vst [vmem:[#allocation50_spill] sm:$0xff] %v10792_v13 }
 0x74e   :  { %12780 = vst [vmem:[#allocation55_spill] sm:$0xff] %v10805_v58 }
 0x74f   :  { %12786 = vst [vmem:[#allocation61_spill] sm:$0xff] %v10838_v10 }
 0x751   :  { %v10794_v43 = vpop.f32.mrf.mxu2  ;;  %v10796_v27 = vpop.f32.mrf.mxu1 }
 0x752   :  { %12776 = vst [vmem:[#allocation51_spill] sm:$0xff] %v10794_v43  ;;  %v10798_v30 = vpop.f32.mrf.mxu3  ;;  %v10813_v43 = vld [vmem:[%s12440_s17 + $0x8] sm:$0xf] }
 0x753   :  { %12777 = vst [vmem:[#allocation52_spill] sm:$0xff] %v10796_v27  ;;  %v10800_v1 = vpop.f32.mrf.mxu0  ;;  %v10815_v27 = vperm.slane %v2307_v46, 3 }
 0x754   :  { %12778 = vst [vmem:[#allocation53_spill] sm:$0xff] %v10798_v30  ;;  %v10820_v30 = vperm.slane %v10813_v43, 3 }
 0x755   :  { %12779 = vst [vmem:[#allocation54_spill] sm:$0xff] %v10800_v1  ;;  %v2589_v1 = vmul.f32 %v10805_v58, %v10261_v45  ;;  %v2332_v33 = vmul.f32 %v10815_v27, %v10007_v49 }
 0x756   :  { %12781 = vst [vmem:[#allocation56_spill] sm:$0xff] %v10815_v27  ;;  %v2862_v45 = vmul.f32 %v10820_v30, %v10486_v28 }
 0x757   :  { %12782 = vst [vmem:[#allocation57_spill] sm:$0xff] %v10820_v30 }
 0x759   :  { %v10822_v13 = vpop.f32.mrf.mxu2  ;;  %v10824_v53 = vpop.f32.mrf.mxu1 }
 0x75a   :  { %12783 = vst [vmem:[#allocation58_spill] sm:$0xff] %v10822_v13  ;;  %v10831_v47 = vpop.f32.mrf.mxu3  ;;  %v2605_v13 = vadd.f32 %v2589_v1, %v2332_v33 }
 0x75b   :  { %12784 = vst [vmem:[#allocation59_spill] sm:$0xff] %v10824_v53  ;;  %v10840_v40 = vpop.f32.mrf.mxu0  ;;  %v3135_v53 = vmul.f32 %v10838_v10, %v10712_v35 }
 0x75c   :  { %12785 = vst [vmem:[#allocation60_spill] sm:$0xff] %v10831_v47  ;;  %v2878_v16 = vadd.f32 %v2862_v45, %v2605_v13  ;;  %v10847_v47 = vld [vmem:[%s12440_s17 + $0x14] sm:$0xf] }
 0x75d   :  { %12787 = vst [vmem:[#allocation62_spill] sm:$0xff] %v10840_v40  ;;  %v10850_v49 = vperm.slane %v10847_v47, 3 }
 0x75e   :  { %v3151_v12 = vadd.f32 %v3135_v53, %v2878_v16 }
 0x75f   :  { %12788 = vst [vmem:[#allocation63_spill] sm:$0xff] %v10850_v49 }
 0x760   :  { %v3300_v40 = vadd.f32 %v3282_v57, %v3151_v12 }
 0x761   :  { %v10852_v28 = vpop.f32.mrf.mxu2  ;;  %v10854_v21 = vpop.f32.mrf.mxu1 }
 0x762   :  { %12789 = vst [vmem:[#allocation64_spill] sm:$0xff] %v10852_v28  ;;  %v3528_v18 = vpop.f32.mrf.mxu3 }
 0x763   :  { %12790 = vst [vmem:[#allocation65_spill] sm:$0xff] %v10854_v21  ;;  %v3557_v33 = vmul.f32 %v10850_v49, %v3528_v18  ;;  %v10859_v35 = vpop.f32.mrf.mxu0 }
 0x765   :  { %v10857_v1 = vadd.f32 %v3557_v33, %v3300_v40  ;;  %v10883_v33 = vperm.slane %v2307_v46, 0 }
 0x767   :  { %12791 = vst [vmem:[#allocation66_spill] sm:$0xff] %v10857_v1  ;;  %v10885_v1 = vperm.slane %v6080_v23, 0 }
 0x768   :  { %12803 = vst [vmem:[#allocation78_spill] sm:$0xff] %v10883_v33 }
 0x769   :  { %v10861_v13 = vpop.f32.mrf.mxu1  ;;  %v10863_v45 = vpop.f32.mrf.mxu2  ;;  %12804 = vst [vmem:[#allocation79_spill] sm:$0xff] %v10885_v1 }
 0x76a   :  { %12792 = vst [vmem:[#allocation67_spill] sm:$0xff] %v10861_v13  ;;  %v10865_v16 = vpop.f32.mrf.mxu3 }
 0x76b   :  { %12793 = vst [vmem:[#allocation68_spill] sm:$0xff] %v10863_v45  ;;  %v10867_v53 = vpop.f32.mrf.mxu0 }
 0x76c   :  { %12794 = vst [vmem:[#allocation69_spill] sm:$0xff] %v10865_v16  ;;  %v10909_v16 = vperm.slane %v6080_v23, 1 }
 0x76d   :  { %12795 = vst [vmem:[#allocation70_spill] sm:$0xff] %v10867_v53  ;;  %v10889_v53 = vperm.slane %v2307_v46, 1 }
 0x76e   :  { %12810 = vst [vmem:[#allocation85_spill] sm:$0xff] %v10909_v16 }
 0x76f   :  { %12806 = vst [vmem:[#allocation81_spill] sm:$0xff] %v10889_v53 }
 0x771   :  { %v10873_v21 = vpop.f32.mrf.mxu2 }
 0x772   :  { %v10869_v37 = vpop.f32.mrf.mxu1  ;;  %v10871_v28 = vpop.f32.mrf.mxu3  ;;  %12798 = vst [vmem:[#allocation73_spill] sm:$0xff] %v10873_v21 }
 0x773   :  { %12796 = vst [vmem:[#allocation71_spill] sm:$0xff] %v10869_v37  ;;  %v10875_v12 = vpop.f32.mrf.mxu0  ;;  %v10891_v37 = vperm.slane %v2307_v46, 2  ;;  %v2329_v46 = vmul.f32 %v10883_v33, %v9716_v15 }
 0x774   :  { %12797 = vst [vmem:[#allocation72_spill] sm:$0xff] %v10871_v28 }
 0x775   :  { %12799 = vst [vmem:[#allocation74_spill] sm:$0xff] %v10875_v12  ;;  %v2325_v12 = vmul.f32 %v10883_v33, %v9683_v4  ;;  %v2322_v4 = vmul.f32 %v10889_v53, %v9824_v14  ;;  %v2323_v15 = vmul.f32 %v10891_v37, %v9874_v48  ;;  %v2331_v48 = vmul.f32 %v10891_v37, %v10005_v44 }
 0x776   :  { %12807 = vst [vmem:[#allocation82_spill] sm:$0xff] %v10891_v37  ;;  %v2586_v44 = vmul.f32 %v10885_v1, %v10175_v8  ;;  %v12817_v8 = vld [vmem:[#allocation22_spill] sm:$0xff] }
 0x77a   :  { %v10877_v18 = vpop.f32.mrf.mxu1  ;;  %v10879_v40 = vpop.f32.mrf.mxu3 }
 0x77b   :  { %12800 = vst [vmem:[#allocation75_spill] sm:$0xff] %v10877_v18  ;;  %v10881_v57 = vpop.f32.mrf.mxu2  ;;  %v10895_v21 = vpop.f32.mrf.mxu0  ;;  %v2317_v18 = vmul.f32 %v10883_v33, %v9603_v29  ;;  %v2318_v29 = vmul.f32 %v10889_v53, %v9777_v52  ;;  %v2326_v52 = vmul.f32 %v10889_v53, %v9893_v7  ;;  %v10940_v7 = vperm.slane %v10813_v43, 0 }
 0x77c   :  { %12801 = vst [vmem:[#allocation76_spill] sm:$0xff] %v10879_v40  ;;  %v2321_v40 = vmul.f32 %v10883_v33, %v9657_v20  ;;  %v2319_v20 = vmul.f32 %v10891_v37, %v9812_v63  ;;  %v2327_v63 = vmul.f32 %v10891_v37, %v9935_v60  ;;  %v2582_v60 = vmul.f32 %v10885_v1, %v10101_v42 }
 0x77d   :  { %12802 = vst [vmem:[#allocation77_spill] sm:$0xff] %v10881_v57  ;;  %v2574_v57 = vmul.f32 %v10885_v1, %v9966_v19  ;;  %v2320_v19 = vmul.f32 %v10815_v27, %v9800_v31  ;;  %v2328_v31 = vmul.f32 %v10815_v27, %v9949_v61  ;;  %v2585_v37 = vmul.f32 %v10805_v58, %v12817_v8 }
 0x77e   :  { %12809 = vst [vmem:[#allocation84_spill] sm:$0xff] %v10895_v21  ;;  %v10917_v21 = vperm.slane %v6080_v23, 2  ;;  %v2330_v23 = vmul.f32 %v10889_v53, %v9958_v59  ;;  %v2577_v59 = vmul.f32 %v10805_v58, %v10064_v62  ;;  %v10978_v53 = vperm.slane %v10813_v43, 2 }
 0x77f   :  { %v2590_v33 = vadd.f32 %v2574_v57, %v2317_v18  ;;  %12813 = vst [vmem:[#allocation88_spill] sm:$0xff] %v10940_v7  ;;  %v2583_v57 = vmul.f32 %v10909_v16, %v10128_v6  ;;  %v2598_v6 = vadd.f32 %v2582_v60, %v2325_v12  ;;  %v2602_v8 = vadd.f32 %v2586_v44, %v2329_v46  ;;  %v12819_v12 = vld [vmem:[#allocation20_spill] sm:$0xff]  ;;  %v12829_v44 = vld [vmem:[#allocation35_spill] sm:$0xff] }
 0x780   :  { %12811 = vst [vmem:[#allocation86_spill] sm:$0xff] %v10917_v21  ;;  %v2576_v61 = vmul.f32 %v10917_v21, %v10062_v39  ;;  %v2580_v42 = vmul.f32 %v10917_v21, %v10110_v24  ;;  %v2581_v39 = vmul.f32 %v10805_v58, %v10119_v38  ;;  %v2847_v38 = vmul.f32 %v10940_v7, %v10238_v32 }
 0x781   :  { %12818 = vst [vmem:[#allocation22_spill] sm:$0xff] %v10978_v53 }
 0x782   :  { %v10887_v13 = vpop.f32.mrf.mxu1  ;;  %v10893_v28 = vpop.f32.mrf.mxu3 }
 0x783   :  { %12805 = vst [vmem:[#allocation80_spill] sm:$0xff] %v10887_v13  ;;  %v10933_v14 = vpop.f32.mrf.mxu2 }
 0x784   :  { %12808 = vst [vmem:[#allocation83_spill] sm:$0xff] %v10893_v28  ;;  %v2578_v28 = vmul.f32 %v10885_v1, %v10034_v0  ;;  %v2324_v0 = vmul.f32 %v10815_v27, %v9876_v51  ;;  %v2575_v51 = vmul.f32 %v10909_v16, %v10023_v55  ;;  %v2579_v55 = vmul.f32 %v10909_v16, %v10082_v26 }
 0x785   :  { %12812 = vst [vmem:[#allocation87_spill] sm:$0xff] %v10933_v14  ;;  %v2584_v27 = vmul.f32 %v10917_v21, %v10171_v3  ;;  %v2587_v26 = vmul.f32 %v10909_v16, %v10198_v41  ;;  %v2588_v1 = vmul.f32 %v10917_v21, %v10251_v9  ;;  %v2592_v14 = vadd.f32 %v2576_v61, %v2319_v20  ;;  %v12828_v61 = vld [vmem:[#allocation36_spill] sm:$0xff] }
 0x786   :  { %v2594_v45 = vadd.f32 %v2578_v28, %v2321_v40  ;;  %v10949_v28 = vperm.slane %v10813_v43, 1  ;;  %v2591_v24 = vadd.f32 %v2575_v51, %v2318_v29  ;;  %v2595_v58 = vadd.f32 %v2579_v55, %v2322_v4  ;;  %v12821_v4 = vld [vmem:[#allocation16_spill] sm:$0xff] }
 0x787   :  { %v2597_v41 = vadd.f32 %v2581_v39, %v2324_v0  ;;  %v2599_v29 = vadd.f32 %v2583_v57, %v2326_v52  ;;  %v2600_v51 = vadd.f32 %v2584_v27, %v2327_v63  ;;  %v2601_v16 = vadd.f32 %v2585_v37, %v2328_v31  ;;  %v12822_v27 = vld [vmem:[#allocation30_spill] sm:$0xff]  ;;  %v12824_v52 = vld [vmem:[#allocation32_spill] sm:$0xff]  ;;  %v12825_v63 = vld [vmem:[#allocation33_spill] sm:$0xff] }
 0x788   :  { %12814 = vst [vmem:[#allocation89_spill] sm:$0xff] %v10949_v28  ;;  %v2848_v3 = vmul.f32 %v10949_v28, %v10263_v50  ;;  %v2603_v32 = vadd.f32 %v2587_v26, %v2330_v23  ;;  %v2863_v9 = vadd.f32 %v2847_v38, %v2590_v33  ;;  %v2604_v21 = vadd.f32 %v2588_v1, %v2331_v48  ;;  %v12820_v50 = vld [vmem:[#allocation18_spill] sm:$0xff]  ;;  %v12823_v33 = vld [vmem:[#allocation31_spill] sm:$0xff]  ;;  %v12831_v26 = vld [vmem:[#allocation28_spill] sm:$0xff] }
 0x789   :  { %v2851_v43 = vmul.f32 %v10940_v7, %v10343_v17  ;;  %v2849_v20 = vmul.f32 %v10978_v53, %v12819_v12  ;;  %v2850_v46 = vmul.f32 %v10820_v30, %v12820_v50  ;;  %v2855_v37 = vmul.f32 %v10940_v7, %v12822_v27  ;;  %v12827_v48 = vld [vmem:[#allocation34_spill] sm:$0xff] }
 0x78a   :  { %v10951_v18 = vpop.f32.mrf.mxu3  ;;  %v10961_v40 = vpop.f32.mrf.mxu1  ;;  %v2853_v1 = vmul.f32 %v10978_v53, %v12823_v33  ;;  %v2854_v17 = vmul.f32 %v10820_v30, %v12824_v52  ;;  %v2856_v31 = vmul.f32 %v10949_v28, %v12825_v63  ;;  %v11003_v23 = vperm.slane %v10829_v54, 0  ;;  %v12833_v33 = vld [vmem:[#allocation26_spill] sm:$0xff] }
 0x78b   :  { %12815 = vst [vmem:[#allocation90_spill] sm:$0xff] %v10951_v18  ;;  %v2596_v18 = vadd.f32 %v2580_v42, %v2323_v15  ;;  %v2852_v15 = vmul.f32 %v10949_v28, %v12821_v4  ;;  %v2859_v60 = vmul.f32 %v10940_v7, %v12827_v48  ;;  %v2858_v55 = vmul.f32 %v10820_v30, %v12829_v44  ;;  %v12835_v44 = vld [vmem:[#allocation12_spill] sm:$0xff]  ;;  %v12836_v7 = vld [vmem:[#allocation21_spill] sm:$0xff] }
 0x78c   :  { %12816 = vst [vmem:[#allocation91_spill] sm:$0xff] %v10961_v40  ;;  %v10963_v62 = vpop.f32.mrf.mxu0  ;;  %v2593_v40 = vadd.f32 %v2577_v59, %v2320_v19  ;;  %v2864_v19 = vadd.f32 %v2848_v3, %v2591_v24  ;;  %v2857_v59 = vmul.f32 %v10978_v53, %v12828_v61  ;;  %v11012_v42 = vperm.slane %v10829_v54, 1 }
 0x78d   :  { %12826 = vst [vmem:[#allocation20_spill] sm:$0xff] %v11003_v23  ;;  %v2867_v39 = vadd.f32 %v2851_v43, %v2594_v45  ;;  %v2865_v57 = vadd.f32 %v2849_v20, %v2592_v14  ;;  %v2860_v24 = vmul.f32 %v10949_v28, %v12831_v26  ;;  %v11017_v38 = vperm.slane %v10829_v54, 2  ;;  %v12834_v14 = vld [vmem:[#allocation25_spill] sm:$0xff] }
 0x78e   :  { %12830 = vst [vmem:[#allocation18_spill] sm:$0xff] %v11012_v42  ;;  %v2866_v50 = vadd.f32 %v2850_v46, %v2593_v40  ;;  %v2868_v4 = vadd.f32 %v2852_v15, %v2595_v58  ;;  %v2871_v27 = vadd.f32 %v2855_v37, %v2598_v6  ;;  %v2861_v52 = vmul.f32 %v10978_v53, %v12833_v33  ;;  %v12837_v40 = vld [vmem:[#allocation29_spill] sm:$0xff]  ;;  %v12838_v46 = vld [vmem:[#allocation24_spill] sm:$0xff]  ;;  %v12888_v53 = vld [vmem:[#allocation67_spill] sm:$0xff] }
 0x78f   :  { %12832 = vst [vmem:[#allocation16_spill] sm:$0xff] %v11017_v38  ;;  %v2869_v63 = vadd.f32 %v2853_v1, %v2596_v18  ;;  %v2870_v48 = vadd.f32 %v2854_v17, %v2597_v41  ;;  %v2872_v45 = vadd.f32 %v2856_v31, %v2599_v29  ;;  %v3120_v43 = vmul.f32 %v11003_v23, %v12834_v14  ;;  %v12839_v29 = vld [vmem:[#allocation27_spill] sm:$0xff] }
 0x790   :  { %v10982_v13 = vpop.f32.mrf.mxu2  ;;  %v2875_v20 = vadd.f32 %v2859_v60, %v2602_v8  ;;  %v2873_v61 = vadd.f32 %v2857_v59, %v2600_v51  ;;  %v2874_v54 = vadd.f32 %v2858_v55, %v2601_v16  ;;  %v3121_v26 = vmul.f32 %v11012_v42, %v12835_v44  ;;  %v12840_v8 = vld [vmem:[#allocation17_spill] sm:$0xff]  ;;  %v12841_v51 = vld [vmem:[#allocation23_spill] sm:$0xff]  ;;  %v12844_v55 = vld [vmem:[#allocation14_spill] sm:$0xff] }
 0x791   :  { %v2876_v30 = vadd.f32 %v2860_v24, %v2603_v32  ;;  %v3124_v58 = vmul.f32 %v11003_v23, %v12836_v7  ;;  %v3122_v6 = vmul.f32 %v11017_v38, %v12837_v40  ;;  %v3123_v18 = vmul.f32 %v10838_v10, %v12838_v46  ;;  %v12842_v7 = vld [vmem:[#allocation13_spill] sm:$0xff]  ;;  %v12843_v31 = vld [vmem:[#allocation19_spill] sm:$0xff] }
 0x792   :  { %v10994_v0 = vpop.f32.mrf.mxu3  ;;  %v11019_v3 = vpop.f32.mrf.mxu1  ;;  %v2877_v41 = vadd.f32 %v2861_v52, %v2604_v21  ;;  %v3125_v15 = vmul.f32 %v11012_v42, %v12839_v29  ;;  %v3126_v16 = vmul.f32 %v11017_v38, %v12840_v8  ;;  %v3127_v37 = vmul.f32 %v10838_v10, %v12841_v51 }
 0x793   :  { %v3128_v17 = vmul.f32 %v11003_v23, %v12842_v7  ;;  %v3129_v60 = vmul.f32 %v11012_v42, %v12843_v31  ;;  %v3132_v21 = vmul.f32 %v11003_v23, %v10661_v11  ;;  %v3136_v59 = vadd.f32 %v3120_v43, %v2863_v9 }
 0x794   :  { %v3130_v24 = vmul.f32 %v11017_v38, %v12844_v55  ;;  %v3131_v33 = vmul.f32 %v10838_v10, %v10668_v36  ;;  %v3133_v52 = vmul.f32 %v11012_v42, %v10677_v56  ;;  %v3137_v14 = vadd.f32 %v3121_v26, %v2864_v19 }
 0x795   :  { %v11021_v12 = vpop.f32.mrf.mxu0  ;;  %v3134_v44 = vmul.f32 %v11017_v38, %v10708_v22  ;;  %v3140_v40 = vadd.f32 %v3124_v58, %v2867_v39  ;;  %v3138_v46 = vadd.f32 %v3122_v6, %v2865_v57  ;;  %v3139_v29 = vadd.f32 %v3123_v18, %v2866_v50  ;;  %v12849_v58 = vld [vmem:[#allocation15_spill] sm:$0xff]  ;;  %v12850_v18 = vld [vmem:[#allocation45_spill] sm:$0xff] }
 0x796   :  { %v3141_v8 = vadd.f32 %v3125_v15, %v2868_v4  ;;  %v3142_v51 = vadd.f32 %v3126_v16, %v2869_v63  ;;  %v3143_v11 = vadd.f32 %v3127_v37, %v2870_v48  ;;  %v11060_v9 = vperm.slane %v10847_v47, 0  ;;  %v12855_v37 = vld [vmem:[#allocation39_spill] sm:$0xff] }
 0x797   :  { %v3144_v7 = vadd.f32 %v3128_v17, %v2871_v27  ;;  %v3145_v36 = vadd.f32 %v3129_v60, %v2872_v45  ;;  %v3148_v31 = vadd.f32 %v3132_v21, %v2875_v20  ;;  %v11065_v56 = vperm.slane %v10847_v47, 1  ;;  %v12848_v45 = vld [vmem:[#allocation9_spill] sm:$0xff]  ;;  %v12856_v60 = vld [vmem:[#allocation40_spill] sm:$0xff] }
 0x798   :  { %v11043_v1 = vpop.f32.mrf.mxu2  ;;  %12845 = vst [vmem:[#allocation30_spill] sm:$0xff] %v11060_v9  ;;  %v3285_v22 = vadd.f32 %v10710_v2, %v3136_v59  ;;  %v3146_v39 = vadd.f32 %v3130_v24, %v2873_v61  ;;  %v3147_v57 = vadd.f32 %v3131_v33, %v2874_v54  ;;  %v3149_v50 = vadd.f32 %v3133_v52, %v2876_v30  ;;  %v6184_v30 = vld [vmem:[%s12440_s17 + $0x18] sm:$0xf]  ;;  %v12857_v59 = vld [vmem:[#allocation41_spill] sm:$0xff]  ;;  %v12858_v24 = vld [vmem:[#allocation42_spill] sm:$0xff] }
 0x799   :  { %12846 = vst [vmem:[#allocation31_spill] sm:$0xff] %v11065_v56  ;;  %v3286_v4 = vadd.f32 %v10716_v5, %v3137_v14  ;;  %v3289_v63 = vadd.f32 %v10730_v25, %v3140_v40  ;;  %v3150_v48 = vadd.f32 %v3134_v44, %v2877_v41  ;;  %v11073_v26 = vperm.slane %v10847_v47, 2  ;;  %v12851_v25 = vld [vmem:[#allocation10_spill] sm:$0xff]  ;;  %v12852_v54 = vld [vmem:[#allocation11_spill] sm:$0xff]  ;;  %v12860_v40 = vld [vmem:[#allocation44_spill] sm:$0xff] }
 0x79a   :  { %v11041_v32 = vpop.f32.mrf.mxu3  ;;  %v11067_v19 = vpop.f32.mrf.mxu1  ;;  %v3287_v27 = vadd.f32 %v10732_v34, %v3138_v46  ;;  %v3288_v20 = vadd.f32 %v12848_v45, %v3139_v29  ;;  %v3290_v6 = vadd.f32 %v12849_v58, %v3141_v8  ;;  %v3542_v2 = vmul.f32 %v11060_v9, %v12850_v18  ;;  %v12853_v41 = vld [vmem:[#allocation38_spill] sm:$0xff]  ;;  %v12859_v14 = vld [vmem:[#allocation43_spill] sm:$0xff] }
 0x79b   :  { %12847 = vst [vmem:[#allocation32_spill] sm:$0xff] %v11073_v26  ;;  %v3293_v61 = vadd.f32 %v12851_v25, %v3144_v7  ;;  %v3291_v47 = vadd.f32 %v12852_v54, %v3142_v51  ;;  %v3292_v15 = vadd.f32 %v12853_v41, %v3143_v11  ;;  %v12854_v34 = vld [vmem:[#allocation46_spill] sm:$0xff]  ;;  %v3294_v17 = vadd.f32 %v12855_v37, %v3145_v36  ;;  %v12861_v29 = vld [vmem:[#allocation47_spill] sm:$0xff]  ;;  %v6205_v11 = vld [vmem:[%s12440_s17 + $0x1c] sm:$0xf] }
 0x79c   :  { %v3543_v16 = vmul.f32 %v11065_v56, %v12854_v34  ;;  %v11092_v21 = vadd.f32 %v12856_v60, %v3148_v31  ;;  %v11095_v55 = vadd.f32 %v12857_v59, %v3146_v39  ;;  %v11098_v33 = vadd.f32 %v12858_v24, %v3147_v57  ;;  %v12863_v36 = vld [vmem:[#allocation49_spill] sm:$0xff]  ;;  %v12864_v39 = vld [vmem:[#allocation48_spill] sm:$0xff]  ;;  %v12866_v58 = vld [vmem:[#allocation50_spill] sm:$0xff] }
 0x79d   :  { %v11103_v44 = vadd.f32 %v12859_v14, %v3149_v50  ;;  %v11106_v46 = vadd.f32 %v12860_v40, %v3150_v48  ;;  %v3544_v8 = vmul.f32 %v11073_v26, %v12861_v29  ;;  %v11110_v51 = vperm.slane %v6184_v30, 1  ;;  %v12867_v25 = vld [vmem:[#allocation51_spill] sm:$0xff]  ;;  %v12869_v34 = vld [vmem:[#allocation53_spill] sm:$0xff]  ;;  %v12870_v60 = vld [vmem:[#allocation52_spill] sm:$0xff] }
 0x79e   :  { %v11062_v43 = vpop.f32.mrf.mxu0  ;;  %v3558_v7 = vadd.f32 %v3542_v2, %v3285_v22  ;;  %v3545_v31 = vmul.f32 %v10850_v49, %v12863_v36  ;;  %v3546_v57 = vmul.f32 %v11060_v9, %v12864_v39  ;;  %v11119_v50 = vperm.slane %v6184_v30, 0  ;;  %v6226_v2 = vld [vmem:[%s12440_s17 + $0x20] sm:$0xf] }
 0x79f   :  { %12862 = vst [vmem:[#allocation33_spill] sm:$0xff] %v11110_v51  ;;  %v3559_v45 = vadd.f32 %v3543_v16, %v3286_v4  ;;  %v3547_v18 = vmul.f32 %v11065_v56, %v12866_v58  ;;  %v3548_v54 = vmul.f32 %v11073_v26, %v12867_v25  ;;  %v11127_v41 = vperm.slane %v6205_v11, 1  ;;  %v12871_v4 = vld [vmem:[#allocation54_spill] sm:$0xff]  ;;  %v12875_v25 = vld [vmem:[#allocation65_spill] sm:$0xff] }
 0x7a0   :  { %12865 = vst [vmem:[#allocation34_spill] sm:$0xff] %v11119_v50  ;;  %v3549_v37 = vmul.f32 %v10850_v49, %v12869_v34  ;;  %v3550_v59 = vmul.f32 %v11060_v9, %v12870_v60  ;;  %v3551_v16 = vmul.f32 %v11065_v56, %v12871_v4  ;;  %v11138_v24 = vperm.slane %v6205_v11, 0 }
 0x7a1   :  { %12868 = vst [vmem:[#allocation36_spill] sm:$0xff] %v11127_v41  ;;  %v3560_v14 = vadd.f32 %v3544_v8, %v3287_v27  ;;  %v3816_v40 = vmul.f32 %v11110_v51, %v10859_v35  ;;  %v11142_v29 = vperm.slane %v6184_v30, 2  ;;  %v11144_v36 = vperm.slane %v6184_v30, 3 }
 0x7a2   :  { %v11083_v5 = vpop.f32.mrf.mxu3  ;;  %12872 = vst [vmem:[#allocation35_spill] sm:$0xff] %v11138_v24  ;;  %v3561_v39 = vadd.f32 %v3545_v31, %v3288_v20  ;;  %v3562_v58 = vadd.f32 %v3546_v57, %v3289_v63  ;;  %v3815_v34 = vmul.f32 %v11119_v50, %v12875_v25  ;;  %v11148_v10 = vperm.slane %v6226_v2, 0  ;;  %v12878_v63 = vld [vmem:[#allocation80_spill] sm:$0xff]  ;;  %v12880_v25 = vld [vmem:[#allocation58_spill] sm:$0xff] }
 0x7a3   :  { %12873 = vst [vmem:[#allocation28_spill] sm:$0xff] %v11142_v29  ;;  %v3563_v23 = vadd.f32 %v3547_v18, %v3290_v6  ;;  %v11150_v4 = vadd.f32 %v3548_v54, %v3291_v47  ;;  %v4089_v27 = vmul.f32 %v11127_v41, %v10963_v62  ;;  %v11154_v8 = vperm.slane %v6226_v2, 1  ;;  %v12883_v54 = vld [vmem:[#allocation59_spill] sm:$0xff] }
 0x7a4   :  { %12874 = vst [vmem:[#allocation26_spill] sm:$0xff] %v11144_v36  ;;  %v11156_v35 = vadd.f32 %v3549_v37, %v3292_v15  ;;  %v11158_v30 = vadd.f32 %v3550_v59, %v3293_v61  ;;  %v11160_v20 = vadd.f32 %v3551_v16, %v3294_v17  ;;  %v4088_v31 = vmul.f32 %v11138_v24, %v12878_v63  ;;  %v12884_v37 = vld [vmem:[#allocation68_spill] sm:$0xff]  ;;  %v12885_v63 = vld [vmem:[#allocation69_spill] sm:$0xff] }
 0x7a5   :  { %v11100_v52 = vpop.f32.mrf.mxu2  ;;  %12876 = vst [vmem:[#allocation25_spill] sm:$0xff] %v11148_v10  ;;  %v3552_v6 = vmul.f32 %v11073_v26, %v12880_v25  ;;  %v3832_v47 = vadd.f32 %v3816_v40, %v3559_v45  ;;  %v11168_v18 = vperm.slane %v6205_v11, 3  ;;  %v11170_v62 = vperm.slane %v6205_v11, 2  ;;  %v12887_v11 = vld [vmem:[#allocation60_spill] sm:$0xff] }
 0x7a6   :  { %v11121_v48 = vpop.f32.mrf.mxu0  ;;  %v4251_v22 = vpop.f32.mrf.mxu1  ;;  %12877 = vst [vmem:[#allocation12_spill] sm:$0xff] %v11154_v8  ;;  %v3554_v15 = vmul.f32 %v11060_v9, %v12883_v54  ;;  %v3831_v61 = vadd.f32 %v3815_v34, %v3558_v7  ;;  %v3817_v17 = vmul.f32 %v11142_v29, %v12884_v37  ;;  %v3818_v38 = vmul.f32 %v11144_v36, %v12885_v63  ;;  %v12889_v34 = vld [vmem:[#allocation70_spill] sm:$0xff] }
 0x7a7   :  { %12881 = vst [vmem:[#allocation29_spill] sm:$0xff] %v11168_v18  ;;  %v4361_v59 = vmul.f32 %v11148_v10, %v4251_v22  ;;  %v4105_v42 = vadd.f32 %v4089_v27, %v3832_v47  ;;  %v11179_v25 = vperm.slane %v6226_v2, 3  ;;  %v3553_v40 = vmul.f32 %v10850_v49, %v12887_v11  ;;  %v12890_v9 = vld [vmem:[#allocation90_spill] sm:$0xff] }
 0x7a8   :  { %12882 = vst [vmem:[#allocation24_spill] sm:$0xff] %v11170_v62  ;;  %v3819_v7 = vmul.f32 %v11119_v50, %v12888_v53  ;;  %v3820_v54 = vmul.f32 %v11110_v51, %v12889_v34  ;;  %v4104_v37 = vadd.f32 %v4088_v31, %v3831_v61  ;;  %v4091_v28 = vmul.f32 %v11168_v18, %v12890_v9  ;;  %v4396_v61 = vpop.permute.xlu0 %4395  ;;  %v12892_v34 = vld [vmem:[#allocation62_spill] sm:$0xff] }
 0x7a9   :  { %12886 = vst [vmem:[#allocation27_spill] sm:$0xff] %v11179_v25  ;;  %v4090_v27 = vmul.f32 %v11170_v62, %v10982_v13  ;;  %v11192_v63 = vperm.slane %v6226_v2, 2  ;;  %v11198_v11 = vadd.f32 %v3554_v15, %v11092_v21  ;;  %v4093_v53 = vmul.f32 %v11127_v41, %v11021_v12 }
 0x7aa   :  { %v4338_v60 = vpop.f32.mrf.mxu3  ;;  %v4377_v31 = vadd.f32 %v4361_v59, %v4104_v37  ;;  %v3555_v9 = vmul.f32 %v11065_v56, %v12892_v34  ;;  %v3833_v49 = vadd.f32 %v3817_v17, %v3560_v14  ;;  %v3836_v2 = vadd.f32 %v3820_v54, %v3563_v23  ;;  %v12894_v14 = vld [vmem:[#allocation73_spill] sm:$0xff]  ;;  %v12897_v54 = vld [vmem:[#allocation74_spill] sm:$0xff] }
 0x7ab   :  { %12891 = vst [vmem:[#allocation17_spill] sm:$0xff] %v11192_v63  ;;  %v4364_v13 = vmul.f32 %v11179_v25, %v4338_v60 }
 0x7ac   :  { %v4106_v59 = vadd.f32 %v4090_v27, %v3833_v49  ;;  %v4109_v60 = vadd.f32 %v4093_v53, %v3836_v2  ;;  %v3824_v27 = vmul.f32 %v11110_v51, %v12897_v54  ;;  %v4094_v53 = vmul.f32 %v11170_v62, %v11043_v1  ;;  %v12900_v54 = vld [vmem:[#allocation75_spill] sm:$0xff] }
 0x7ad   :  { %v11164_v57 = vpop.f32.mrf.mxu2  ;;  %v3571_v2 = vadd.f32 %v3555_v9, %v11103_v44 }
 0x7ae   :  { %12879 = vst [vmem:[#allocation21_spill] sm:$0xff] %v11164_v57  ;;  %v4280_v16 = vpop.f32.mrf.mxu0  ;;  %v4254_v22 = vpop.f32.mrf.mxu1  ;;  %v3834_v57 = vadd.f32 %v3818_v38, %v3561_v39  ;;  %v3821_v38 = vmul.f32 %v11142_v29, %v12894_v14  ;;  %v12895_v39 = vld [vmem:[#allocation72_spill] sm:$0xff]  ;;  %v3840_v44 = vadd.f32 %v3824_v27, %v11160_v20  ;;  %v3827_v27 = vmul.f32 %v11119_v50, %v12900_v54 }
 0x7af   :  { %v4362_v45 = vmul.f32 %v11154_v8, %v4280_v16  ;;  %v11195_v16 = vadd.f32 %v3552_v6, %v11095_v55  ;;  %v3835_v55 = vadd.f32 %v3819_v7, %v3562_v58  ;;  %v12893_v6 = vld [vmem:[#allocation91_spill] sm:$0xff]  ;;  %v11217_v58 = vadd.f32 %v4396_v61, %v4377_v31  ;;  %v4401_v14 = vpop.permute.xlu2 %4400 }
 0x7b0   :  { %v4092_v21 = vmul.f32 %v11138_v24, %v12893_v6  ;;  %v4107_v12 = vadd.f32 %v4091_v28, %v3834_v57  ;;  %v12896_v28 = vld [vmem:[#allocation71_spill] sm:$0xff]  ;;  %v4095_v6 = vmul.f32 %v11168_v18, %v10994_v0 }
 0x7b1   :  { %v4378_v47 = vadd.f32 %v4362_v45, %v4105_v42  ;;  %v11206_v42 = vadd.f32 %v3553_v40, %v11098_v33  ;;  %v3822_v33 = vmul.f32 %v11144_v36, %v12895_v39  ;;  %v4365_v40 = vmul.f32 %v11148_v10, %v4254_v22 }
 0x7b2   :  { %v4341_v15 = vpop.f32.mrf.mxu3  ;;  %v4380_v17 = vadd.f32 %v4364_v13, %v4107_v12  ;;  %v3823_v57 = vmul.f32 %v11119_v50, %v12896_v28 }
 0x7b3   :  { %v11210_v37 = vadd.f32 %v4396_v61, %v4378_v47  ;;  %v4108_v47 = vadd.f32 %v4092_v21, %v3835_v55  ;;  %v3838_v12 = vadd.f32 %v3822_v33, %v11156_v35  ;;  %v4097_v55 = vmul.f32 %v11127_v41, %v11062_v43 }
 0x7b4   :  { %v11238_v0 = vadd.f32 %v4396_v61, %v4380_v17  ;;  %v4368_v1 = vmul.f32 %v11179_v25, %v4341_v15  ;;  %v3839_v39 = vadd.f32 %v3823_v57, %v11158_v30  ;;  %v12898_v15 = vld [vmem:[#allocation77_spill] sm:$0xff] }
 0x7b5   :  { %v4309_v45 = vpop.f32.mrf.mxu2  ;;  %v4437_v31 = vadd.f32 %v11210_v37, %v11217_v58  ;;  %v4111_v9 = vadd.f32 %v4095_v6, %v3838_v12  ;;  %v4113_v17 = vadd.f32 %v4097_v55, %v3840_v44  ;;  %v4406_v44 = vpop.permute.xlu1 %4405 }
 0x7b6   :  { %v4363_v34 = vmul.f32 %v11192_v63, %v4309_v45  ;;  %v4283_v23 = vpop.f32.mrf.mxu0  ;;  %v3837_v45 = vadd.f32 %v3821_v38, %v11150_v4  ;;  %v4257_v21 = vpop.f32.mrf.mxu1  ;;  %v4096_v4 = vmul.f32 %v11138_v24, %v11019_v3 }
 0x7b7   :  { %v4366_v49 = vmul.f32 %v11154_v8, %v4283_v23  ;;  %v12899_v23 = vld [vmem:[#allocation76_spill] sm:$0xff]  ;;  %v4369_v20 = vmul.f32 %v11148_v10, %v4257_v21 }
 0x7b8   :  { %v4379_v7 = vadd.f32 %v4363_v34, %v4106_v59  ;;  %v4381_v59 = vadd.f32 %v4365_v40, %v4108_v47  ;;  %v4110_v38 = vadd.f32 %v4094_v53, %v3837_v45  ;;  %v3826_v30 = vmul.f32 %v11144_v36, %v12899_v23  ;;  %v12901_v47 = vld [vmem:[#allocation84_spill] sm:$0xff] }
 0x7b9   :  { %v4382_v13 = vadd.f32 %v4366_v49, %v4109_v60  ;;  %v3825_v60 = vmul.f32 %v11142_v29, %v12898_v15  ;;  %v4384_v49 = vadd.f32 %v4368_v1, %v4111_v9  ;;  %v3828_v6 = vmul.f32 %v11110_v51, %v12901_v47  ;;  %v12902_v21 = vld [vmem:[#allocation64_spill] sm:$0xff] }
 0x7ba   :  { %v11231_v22 = vadd.f32 %v4396_v61, %v4379_v7  ;;  %v4344_v40 = vpop.f32.mrf.mxu3  ;;  %v11255_v3 = vadd.f32 %v4401_v14, %v4381_v59  ;;  %v4112_v53 = vadd.f32 %v4096_v4, %v3839_v39  ;;  %v3556_v59 = vmul.f32 %v11073_v26, %v12902_v21  ;;  %v12906_v21 = vld [vmem:[#allocation66_spill] sm:$0xff] }
 0x7bb   :  { %v11246_v43 = vadd.f32 %v4401_v14, %v4382_v13  ;;  %v4098_v13 = vmul.f32 %v11170_v62, %v11100_v52  ;;  %v3842_v1 = vadd.f32 %v3826_v30, %v11206_v42  ;;  %v11276_v9 = vadd.f32 %v4401_v14, %v4384_v49 }
 0x7bc   :  { %v4438_v34 = vadd.f32 %v4437_v31, %v11231_v22  ;;  %v4099_v31 = vmul.f32 %v11168_v18, %v11041_v32  ;;  %v4385_v39 = vadd.f32 %v4369_v20, %v4112_v53  ;;  %v3841_v32 = vadd.f32 %v3825_v60, %v11195_v16  ;;  %v12903_v60 = vld [vmem:[#allocation87_spill] sm:$0xff] }
 0x7bd   :  { %v4312_v35 = vpop.f32.mrf.mxu2  ;;  %v4442_v45 = vadd.f32 %v11246_v43, %v11255_v3  ;;  %v4372_v52 = vmul.f32 %v11179_v25, %v4344_v40  ;;  %v4100_v42 = vmul.f32 %v11138_v24, %v11067_v19  ;;  %v3829_v30 = vmul.f32 %v11142_v29, %v12903_v60 }
 0x7be   :  { %v4367_v61 = vmul.f32 %v11192_v63, %v4312_v35  ;;  %v4439_v33 = vadd.f32 %v4438_v34, %v11238_v0  ;;  %v4286_v7 = vpop.f32.mrf.mxu0  ;;  %v4101_v34 = vmul.f32 %v11127_v41, %v11121_v48  ;;  %v3843_v35 = vadd.f32 %v3827_v27, %v11198_v11 }
 0x7bf   :  { %v4370_v57 = vmul.f32 %v11154_v8, %v4286_v7  ;;  %v4114_v48 = vadd.f32 %v4098_v13, %v3841_v32  ;;  %v11291_v20 = vadd.f32 %v4406_v44, %v4385_v39  ;;  %v4103_v27 = vmul.f32 %v11168_v18, %v11083_v5  ;;  %v4411_v39 = vpop.permute.xlu0 %4410 }
 0x7c0   :  { %v4383_v28 = vadd.f32 %v4367_v61, %v4110_v38  ;;  %4440 = vadd.xlane.f32.xlu2 %v4439_v33  ;;  %v3844_v38 = vadd.f32 %v3828_v6, %v3571_v2  ;;  %v4115_v61 = vadd.f32 %v4099_v31, %v3842_v1  ;;  %v4260_v33 = vpop.f32.mrf.mxu1  ;;  %v4116_v54 = vadd.f32 %v4100_v42, %v3843_v35  ;;  %v12905_v6 = vld [vmem:[#allocation21_spill] sm:$0xff] }
 0x7c1   :  { %v4386_v55 = vadd.f32 %v4370_v57, %v4113_v17  ;;  %v12904_v17 = vld [vmem:[#allocation83_spill] sm:$0xff]  ;;  %v4373_v7 = vmul.f32 %v11148_v10, %v4260_v33  ;;  %v3572_v57 = vadd.f32 %v3556_v59, %v11106_v46  ;;  %v4102_v53 = vmul.f32 %v11170_v62, %v12905_v6 }
 0x7c2   :  { %v11268_v12 = vadd.f32 %v4401_v14, %v4383_v28  ;;  %v3830_v11 = vmul.f32 %v11144_v36, %v12904_v17  ;;  %v4117_v2 = vadd.f32 %v4101_v34, %v3844_v38  ;;  %v4388_v19 = vadd.f32 %v4372_v52, %v4115_v61  ;;  %v4347_v47 = vpop.f32.mrf.mxu3 }
 0x7c3   :  { %v11283_v23 = vadd.f32 %v4406_v44, %v4386_v55  ;;  %v3845_v55 = vadd.f32 %v3829_v30, %v3572_v57  ;;  %v4389_v46 = vadd.f32 %v4373_v7, %v4116_v54  ;;  %v4376_v59 = vmul.f32 %v11179_v25, %v4347_v47  ;;  %v11323_v30 = vpop.permute.xlu2 %4591 }
 0x7c4   :  { %v4443_v4 = vadd.f32 %v4442_v45, %v11268_v12  ;;  %v3846_v1 = vadd.f32 %v3830_v11, %v12906_v21  ;;  %v11305_v34 = vadd.f32 %v4406_v44, %v4388_v19  ;;  %v7549_v17 = vmov 512.0  }
 0x7c5   :  { %v4315_v15 = vpop.f32.mrf.mxu2  ;;  %v4447_v31 = vadd.f32 %v11283_v23, %v11291_v20  ;;  %v11313_v42 = vadd.f32 %v4411_v39, %v4389_v46  ;;  %7458 = vrcp.f32 %v7549_v17 }
 0x7c6   :  { %v4371_v16 = vmul.f32 %v11192_v63, %v4315_v15  ;;  %v4444_v14 = vadd.f32 %v4443_v4, %v11276_v9  ;;  %v4289_v40 = vpop.f32.mrf.mxu0  ;;  %v4119_v32 = vadd.f32 %v4103_v27, %v3846_v1  ;;  %v4118_v4 = vadd.f32 %v4102_v53, %v3845_v55 }
 0x7c7   :  { %v4374_v28 = vmul.f32 %v11154_v8, %v4289_v40  ;;  %v11327_v7 = vpop.permute.xlu0 %4586 }
 0x7c8   :  { %v4387_v49 = vadd.f32 %v4371_v16, %v4114_v48  ;;  %4445 = vadd.xlane.f32.xlu1 %v4444_v14  ;;  %v4392_v33 = vadd.f32 %v4376_v59, %v4119_v32 }
 0x7c9   :  { %v4390_v45 = vadd.f32 %v4374_v28, %v4117_v2 }
 0x7ca   :  { %v11302_v13 = vadd.f32 %v4406_v44, %v4387_v49  ;;  %v11319_v16 = vadd.f32 %v4411_v39, %v4392_v33  ;;  %v11329_v49 = vpop.permute.xlu1 %4596 }
 0x7cb   :  { %v11309_v35 = vadd.f32 %v4411_v39, %v4390_v45  ;;  %v7459_v11 = vpop.eup %7458  ;;  %v11325_v2 = vpop.permute.xlu2 %4622 }
 0x7cc   :  { %v4448_v5 = vadd.f32 %v4447_v31, %v11302_v13  ;;  %v4458_v40 = vmul.f32 512.0, %v7459_v11  ;;  %vm4462_vm10 = vweird.f32 %v7459_v11 }
 0x7cd   :  { %v4318_v52 = vpop.f32.mrf.mxu2  ;;  %v4452_v15 = vadd.f32 %v11309_v35, %v11313_v42 }
 0x7ce   :  { %v4375_v38 = vmul.f32 %v11192_v63, %v4318_v52  ;;  %v4449_v61 = vadd.f32 %v4448_v5, %v11305_v34  ;;  %v4459_v19 = vsub.f32 1.0, %v4458_v40 }
 0x7cf   :  { %v11333_v27 = vpop.permute.xlu0 %4601 }
 0x7d0   :  { %v4391_v44 = vadd.f32 %v4375_v38, %v4118_v4  ;;  %4450 = vadd.xlane.f32.xlu0 %v4449_v61  ;;  %v4460_v28 = vmul.f32 %v7459_v11, %v4459_v19 }
 0x7d2   :  { %v11317_v48 = vadd.f32 %v4411_v39, %v4391_v44  ;;  %v4461_v54 = vadd.f32 %v7459_v11, %v4460_v28  ;;  %v11337_v6 = vpop.permute.xlu1 %4632 }
 0x7d3   :  { %v11331_v57 = vpop.permute.xlu2 %4637 }
 0x7d4   :  { %v4453_v14 = vadd.f32 %v4452_v15, %v11317_v48  ;;  %v11335_v47 = vsel %vm4462_vm10, %v7459_v11, %v4461_v54 }
 0x7d6   :  { %v4454_v60 = vadd.f32 %v4453_v14, %v11319_v16 }
 0x7d7   :  { %v11358_v39 = vpop.permute.xlu0 %4627 }
 0x7d8   :  { %4455 = vadd.xlane.f32.xlu2 %v4454_v60 }
 0x833   :  { %v4441_v53 = vpop.xlane.xlu2 %4440 }
 0x834   :  { %v4464_v31 = vmul.f32 %v11335_v47, %v4441_v53 }
 0x836   :  { %v11341_v45 = vsub.f32 %v11217_v58, %v4464_v31  ;;  %v11344_v55 = vsub.f32 %v11210_v37, %v4464_v31  ;;  %v11347_v21 = vsub.f32 %v11231_v22, %v4464_v31  ;;  %v11350_v1 = vsub.f32 %v11238_v0, %v4464_v31 }
 0x838   :  { %v4484_v46 = vmul.f32 %v11341_v45, %v11341_v45  ;;  %v4485_v59 = vmul.f32 %v11344_v55, %v11344_v55  ;;  %v4486_v5 = vmul.f32 %v11347_v21, %v11347_v21  ;;  %v4487_v22 = vmul.f32 %v11350_v1, %v11350_v1 }
 0x83a   :  { %v4500_v58 = vadd.f32 %v4485_v59, %v4484_v46 }
 0x83b   :  { %v4446_v37 = vpop.xlane.xlu1 %4445 }
 0x83c   :  { %v4465_v32 = vmul.f32 %v11335_v47, %v4446_v37  ;;  %v4501_v0 = vadd.f32 %v4500_v58, %v4486_v5 }
 0x83e   :  { %v11364_v52 = vsub.f32 %v11255_v3, %v4465_v32  ;;  %v11367_v4 = vsub.f32 %v11246_v43, %v4465_v32  ;;  %v11370_v38 = vsub.f32 %v11268_v12, %v4465_v32  ;;  %v4502_v61 = vadd.f32 %v4501_v0, %v4487_v22 }
 0x83f   :  { %v11373_v33 = vsub.f32 %v11276_v9, %v4465_v32 }
 0x840   :  { %4503 = vadd.xlane.f32.xlu1 %v4502_v61  ;;  %v4488_v44 = vmul.f32 %v11364_v52, %v11364_v52  ;;  %v4489_v15 = vmul.f32 %v11367_v4, %v11367_v4  ;;  %v4490_v3 = vmul.f32 %v11370_v38, %v11370_v38 }
 0x841   :  { %v4491_v12 = vmul.f32 %v11373_v33, %v11373_v33 }
 0x842   :  { %v4505_v14 = vadd.f32 %v4489_v15, %v4488_v44 }
 0x843   :  { %v4451_v43 = vpop.xlane.xlu0 %4450 }
 0x844   :  { %v4466_v60 = vmul.f32 %v11335_v47, %v4451_v43  ;;  %v4506_v17 = vadd.f32 %v4505_v14, %v4490_v3 }
 0x846   :  { %v11385_v9 = vsub.f32 %v11291_v20, %v4466_v60  ;;  %v11388_v11 = vsub.f32 %v11283_v23, %v4466_v60  ;;  %v11391_v40 = vsub.f32 %v11302_v13, %v4466_v60  ;;  %v4507_v19 = vadd.f32 %v4506_v17, %v4491_v12 }
 0x847   :  { %v11394_v28 = vsub.f32 %v11305_v34, %v4466_v60 }
 0x848   :  { %4508 = vadd.xlane.f32.xlu0 %v4507_v19  ;;  %v4492_v54 = vmul.f32 %v11385_v9, %v11385_v9  ;;  %v4493_v53 = vmul.f32 %v11388_v11, %v11388_v11  ;;  %v4494_v20 = vmul.f32 %v11391_v40, %v11391_v40 }
 0x849   :  { %v4495_v13 = vmul.f32 %v11394_v28, %v11394_v28 }
 0x84a   :  { %v4510_v31 = vadd.f32 %v4493_v53, %v4492_v54 }
 0x84b   :  { %v4456_v23 = vpop.xlane.xlu2 %4455 }
 0x84c   :  { %v4467_v46 = vmul.f32 %v11335_v47, %v4456_v23  ;;  %v4511_v59 = vadd.f32 %v4510_v31, %v4494_v20 }
 0x84e   :  { %v11406_v34 = vsub.f32 %v11313_v42, %v4467_v46  ;;  %v11409_v5 = vsub.f32 %v11309_v35, %v4467_v46  ;;  %v11412_v58 = vsub.f32 %v11317_v48, %v4467_v46  ;;  %v4512_v37 = vadd.f32 %v4511_v59, %v4495_v13 }
 0x84f   :  { %v11415_v32 = vsub.f32 %v11319_v16, %v4467_v46 }
 0x850   :  { %4513 = vadd.xlane.f32.xlu2 %v4512_v37  ;;  %v4496_v22 = vmul.f32 %v11406_v34, %v11406_v34  ;;  %v4497_v0 = vmul.f32 %v11409_v5, %v11409_v5  ;;  %v4498_v42 = vmul.f32 %v11412_v58, %v11412_v58 }
 0x851   :  { %v4499_v35 = vmul.f32 %v11415_v32, %v11415_v32 }
 0x852   :  { %v4515_v61 = vadd.f32 %v4497_v0, %v4496_v22 }
 0x854   :  { %v4516_v48 = vadd.f32 %v4515_v61, %v4498_v42 }
 0x856   :  { %v4517_v44 = vadd.f32 %v4516_v48, %v4499_v35 }
 0x858   :  { %4518 = vadd.xlane.f32.xlu1 %v4517_v44 }
 0x8b3   :  { %v4504_v15 = vpop.xlane.xlu1 %4503 }
 0x8b4   :  { %v4520_v16 = vmul.f32 %v4504_v15, %v11335_v47 }
 0x8b6   :  { %v4524_v3 = vadd.f32 0.8, %v4520_v16 }
 0x8b8   :  { %7460 = vrsqrt.f32 %v4524_v3  ;;  %vm4534_vm6 = vweird.f32 %v4524_v3 }
 0x8bb   :  { %v4509_v14 = vpop.xlane.xlu0 %4508 }
 0x8bc   :  { %v4521_v43 = vmul.f32 %v4509_v14, %v11335_v47 }
 0x8be   :  { %v7461_v60 = vpop.eup %7460  ;;  %v4525_v12 = vadd.f32 0.8, %v4521_v43 }
 0x8bf   :  { %v4529_v17 = vmul.f32 %v7461_v60, %v4524_v3  ;;  %vm4535_vm5 = vweird.f32 %v7461_v60 }
 0x8c0   :  { %7462 = vrsqrt.f32 %v4525_v12  ;;  %vm4536_vm7 = vmor %vm4534_vm6, %vm4535_vm5  ;;  %vm4544_vm9 = vweird.f32 %v4525_v12 }
 0x8c1   :  { %v4530_v19 = vmul.f32 %v7461_v60, %v4529_v17 }
 0x8c3   :  { %v4531_v54 = vmul.f32 0.5, %v4530_v19  ;;  %v4514_v31 = vpop.xlane.xlu2 %4513 }
 0x8c4   :  { %v4522_v37 = vmul.f32 %v4514_v31, %v11335_v47 }
 0x8c5   :  { %v4532_v53 = vsub.f32 1.5, %v4531_v54 }
 0x8c6   :  { %v7463_v20 = vpop.eup %7462  ;;  %v11432_v44 = vadd.f32 0.8, %v4522_v37 }
 0x8c7   :  { %v4533_v23 = vmul.f32 %v7461_v60, %v4532_v53  ;;  %v4539_v46 = vmul.f32 %v7463_v20, %v4525_v12  ;;  %vm4545_vm8 = vweird.f32 %v7463_v20 }
 0x8c8   :  { %vm4546_vm11 = vmor %vm4544_vm9, %vm4545_vm8  ;;  %7464 = vrsqrt.f32 %v11432_v44 }
 0x8c9   :  { %v4537_v13 = vsel %vm4536_vm7, %v7461_v60, %v4533_v23  ;;  %v4540_v59 = vmul.f32 %v7463_v20, %v4539_v46 }
 0x8ca   :  { %v4568_v22 = vmul.f32 %v4537_v13, %v11341_v45  ;;  %v4569_v0 = vmul.f32 %v4537_v13, %v11344_v55  ;;  %v4570_v42 = vmul.f32 %v4537_v13, %v11347_v21  ;;  %v4571_v45 = vmul.f32 %v4537_v13, %v11350_v1 }
 0x8cb   :  { %v4541_v61 = vmul.f32 0.5, %v4540_v59  ;;  %v4519_v46 = vpop.xlane.xlu1 %4518 }
 0x8cc   :  { %v4604_v35 = vmul.f32 %v11327_v7, %v4568_v22  ;;  %v4605_v15 = vmul.f32 %v11327_v7, %v4569_v0  ;;  %v4606_v16 = vmul.f32 %v11327_v7, %v4570_v42  ;;  %v4523_v0 = vmul.f32 %v4519_v46, %v11335_v47 }
 0x8cd   :  { %v4542_v48 = vsub.f32 1.5, %v4541_v61 }
 0x8ce   :  { %v4640_v55 = vadd.f32 %v11325_v2, %v4604_v35  ;;  %v4641_v17 = vadd.f32 %v11325_v2, %v4605_v15  ;;  %v4642_v19 = vadd.f32 %v11325_v2, %v4606_v16 }
 0x8cf   :  { %v4543_v3 = vmul.f32 %v7463_v20, %v4542_v48 }
 0x8d0   :  { %vm4656_vm12 = vcmp.gt.f32.partialorder %v4640_v55, 0.0  ;;  %vm4657_vm10 = vcmp.gt.f32.partialorder %v4641_v17, 0.0  ;;  %v4673_v13 = vmul.f32 0.2, %v4641_v17  ;;  %v4674_v59 = vmul.f32 0.2, %v4642_v19 }
 0x8d1   :  { %v4547_v14 = vsel %vm4546_vm11, %v7463_v20, %v4543_v3  ;;  %v4607_v20 = vmul.f32 %v11327_v7, %v4571_v45  ;;  %vm4658_vm8 = vcmp.gt.f32.partialorder %v4642_v19, 0.0 }
 0x8d2   :  { %v4572_v21 = vmul.f32 %v4547_v14, %v11364_v52  ;;  %v4573_v43 = vmul.f32 %v4547_v14, %v11367_v4  ;;  %v4574_v60 = vmul.f32 %v4547_v14, %v11370_v38  ;;  %v4575_v12 = vmul.f32 %v4547_v14, %v11373_v33  ;;  %v7465_v33 = vpop.eup %7464 }
 0x8d3   :  { %v4672_v4 = vmul.f32 0.2, %v4640_v55  ;;  %v4643_v42 = vadd.f32 %v11325_v2, %v4607_v20  ;;  %v4549_v48 = vmul.f32 %v7465_v33, %v11432_v44  ;;  %v11471_v47 = vsel %vm4658_vm8, %v4642_v19, %v4674_v59 }
 0x8d4   :  { %v4608_v54 = vmul.f32 %v11323_v30, %v4572_v21  ;;  %v4609_v1 = vmul.f32 %v11323_v30, %v4573_v43  ;;  %v4610_v53 = vmul.f32 %v11323_v30, %v4574_v60  ;;  %v4611_v52 = vmul.f32 %v11323_v30, %v4575_v12  ;;  %12908 = vst [vmem:[#allocation13_spill] sm:$0xff] %v11471_v47 }
 0x8d5   :  { %v11457_v61 = vsel %vm4656_vm12, %v4640_v55, %v4672_v4  ;;  %v4527_v55 = vadd.f32 0.8, %v4523_v0  ;;  %v4675_v21 = vmul.f32 0.2, %v4643_v42  ;;  %v4550_v43 = vmul.f32 %v7465_v33, %v4549_v48 }
 0x8d6   :  { %v4644_v38 = vadd.f32 %v11358_v39, %v4608_v54  ;;  %v4645_v31 = vadd.f32 %v11358_v39, %v4609_v1  ;;  %v4646_v23 = vadd.f32 %v11358_v39, %v4610_v53  ;;  %v4647_v37 = vadd.f32 %v11358_v39, %v4611_v52 }
 0x8d7   :  { %v11463_v39 = vsel %vm4657_vm10, %v4641_v17, %v4673_v13  ;;  %vm4659_vm11 = vcmp.gt.f32.partialorder %v4643_v42, 0.0  ;;  %7466 = vrsqrt.f32 %v4527_v55  ;;  %v4551_v19 = vmul.f32 0.5, %v4550_v43 }
 0x8d8   :  { %vm4660_vm5 = vcmp.gt.f32.partialorder %v4644_v38, 0.0  ;;  %vm4661_vm6 = vcmp.gt.f32.partialorder %v4645_v31, 0.0  ;;  %vm4662_vm7 = vcmp.gt.f32.partialorder %v4646_v23, 0.0  ;;  %v4676_v7 = vmul.f32 0.2, %v4644_v38 }
 0x8d9   :  { %v4677_v30 = vmul.f32 0.2, %v4645_v31  ;;  %v4678_v22 = vmul.f32 0.2, %v4646_v23  ;;  %v4679_v2 = vmul.f32 0.2, %v4647_v37  ;;  %v11482_v17 = vsel %vm4659_vm11, %v4643_v42, %v4675_v21 }
 0x8da   :  { %v11459_v35 = vsel %vm4660_vm5, %v4644_v38, %v4676_v7  ;;  %vm4663_vm9 = vcmp.gt.f32.partialorder %v4647_v37, 0.0  ;;  %12910 = vst [vmem:[#allocation14_spill] sm:$0xff] %v11482_v17  ;;  %v4552_v54 = vsub.f32 1.5, %v4551_v19  ;;  %vm4555_vm12 = vweird.f32 %v7465_v33 }
 0x8db   :  { %v11465_v15 = vsel %vm4661_vm6, %v4645_v31, %v4677_v30  ;;  %v11467_v16 = vsel %vm4662_vm7, %v4646_v23, %v4678_v22  ;;  %v7096_v3 = vpack.i.bf16 %v11459_v35, %v11457_v61  ;;  %v11480_v60 = vsel %vm4663_vm9, %v4647_v37, %v4679_v2 }
 0x8dc   :  { %12907 = vst [vmem:[#allocation23_spill] sm:$0xff] %v11467_v16  ;;  %v7101_v45 = vpack.i.bf16 %v11465_v15, %v11463_v39  ;;  %v7106_v14 = vpack.i.bf16 %v11467_v16, %v11471_v47  ;;  %v7111_v12 = vpack.i.bf16 %v11480_v60, %v11482_v17  ;;  %v4553_v53 = vmul.f32 %v7465_v33, %v4552_v54 }
 0x8dd   :  { %7097 = vrot.lane.b32.xlu0 %v7096_v3, %s7543_s8  ;;  %12909 = vst [vmem:[#allocation19_spill] sm:$0xff] %v11480_v60  ;;  %v7467_v1 = vpop.eup %7466  ;;  %vm4554_vm10 = vweird.f32 %v11432_v44  ;;  %vm4564_vm7 = vweird.f32 %v4527_v55  ;;  %v11505_v7 = vpack.i.bf16 %v11465_v15, %v11457_v61 }
 0x8de   :  { %7102 = vrot.lane.b32.xlu2 %v7101_v45, %s7543_s8  ;;  %7107 = vrot.lane.b32.xlu1 %v7106_v14, %s7543_s8  ;;  %v4559_v20 = vmul.f32 %v7467_v1, %v4527_v55  ;;  %vm4556_vm5 = vmor %vm4554_vm10, %vm4555_vm12  ;;  %vm4565_vm6 = vweird.f32 %v7467_v1 }
 0x8df   :  { %v4557_v52 = vsel %vm4556_vm5, %v7465_v33, %v4553_v53  ;;  %vm4566_vm8 = vmor %vm4564_vm7, %vm4565_vm6 }
 0x8e0   :  { %v4560_v4 = vmul.f32 %v7467_v1, %v4559_v20  ;;  %v4577_v38 = vmul.f32 %v4557_v52, %v11388_v11  ;;  %v4578_v44 = vmul.f32 %v4557_v52, %v11391_v40  ;;  %v4579_v33 = vmul.f32 %v4557_v52, %v11394_v28 }
 0x8e1   :  { %v7161_v40 = vpack.i.bf16 %v11480_v60, %v11467_v16 }
 0x8e2   :  { %v4561_v31 = vmul.f32 0.5, %v4560_v4  ;;  %v4613_v23 = vmul.f32 %v11329_v49, %v4577_v38  ;;  %v4614_v11 = vmul.f32 %v11329_v49, %v4578_v44  ;;  %v4615_v37 = vmul.f32 %v11329_v49, %v4579_v33 }
 0x8e4   :  { %v4562_v46 = vsub.f32 1.5, %v4561_v31  ;;  %v4649_v13 = vadd.f32 %v11337_v6, %v4613_v23  ;;  %v4650_v22 = vadd.f32 %v11337_v6, %v4614_v11  ;;  %v4651_v0 = vadd.f32 %v11337_v6, %v4615_v37 }
 0x8e5   :  { %7112 = vrot.lane.b32.xlu0 %v7111_v12, %s7543_s8  ;;  %v4576_v31 = vmul.f32 %v4557_v52, %v11385_v9 }
 0x8e6   :  { %7117 = vrot.lane.b32.xlu2 %v7096_v3, %s7544_s5  ;;  %7122 = vrot.lane.b32.xlu1 %v7101_v45, %s7544_s5  ;;  %v4563_v59 = vmul.f32 %v7467_v1, %v4562_v46  ;;  %v4681_v30 = vmul.f32 0.2, %v4649_v13  ;;  %vm4665_vm9 = vcmp.gt.f32.partialorder %v4649_v13, 0.0  ;;  %v4682_v2 = vmul.f32 0.2, %v4650_v22 }
 0x8e7   :  { %vm4666_vm11 = vcmp.gt.f32.partialorder %v4650_v22, 0.0  ;;  %vm4667_vm12 = vcmp.gt.f32.partialorder %v4651_v0, 0.0  ;;  %v4612_v9 = vmul.f32 %v11329_v49, %v4576_v31 }
 0x8e8   :  { %v4567_v28 = vsel %vm4566_vm8, %v7467_v1, %v4563_v59  ;;  %v11515_v42 = vsel %vm4665_vm9, %v4649_v13, %v4681_v30  ;;  %v11543_v1 = vpack.i.bf16 %v11471_v47, %v11467_v16  ;;  %vm4754_vm9 = vcmask 261120  }
 0x8e9   :  { %v4582_v48 = vmul.f32 %v4567_v28, %v11412_v58  ;;  %v11530_v58 = vsel %vm4666_vm11, %v4650_v22, %v4682_v2  ;;  %v4581_v53 = vmul.f32 %v4567_v28, %v11409_v5  ;;  %v4580_v4 = vmul.f32 %v4567_v28, %v11406_v34 }
 0x8ea   :  { %12911 = vst [vmem:[#allocation9_spill] sm:$0xff] %v11530_v58  ;;  %v7191_v38 = vpack.i.bf16 %v11515_v42, %v11482_v17  ;;  %v4583_v52 = vmul.f32 %v4567_v28, %v11415_v32  ;;  %v4648_v13 = vadd.f32 %v11337_v6, %v4612_v9 }
 0x8eb   :  { %v4618_v55 = vmul.f32 %v11333_v27, %v4582_v48  ;;  %v4617_v23 = vmul.f32 %v11333_v27, %v4581_v53  ;;  %v4616_v5 = vmul.f32 %v11333_v27, %v4580_v4 }
 0x8ec   :  { %v4619_v11 = vmul.f32 %v11333_v27, %v4583_v52  ;;  %v4680_v49 = vmul.f32 0.2, %v4648_v13  ;;  %vm4664_vm7 = vcmp.gt.f32.partialorder %v4648_v13, 0.0 }
 0x8ed   :  { %7127 = vrot.lane.b32.xlu0 %v7106_v14, %s7544_s5  ;;  %v4654_v43 = vadd.f32 %v11331_v57, %v4618_v55  ;;  %v4653_v34 = vadd.f32 %v11331_v57, %v4617_v23  ;;  %v4652_v33 = vadd.f32 %v11331_v57, %v4616_v5 }
 0x8ee   :  { %7132 = vrot.lane.b32.xlu2 %v7111_v12, %s7544_s5  ;;  %7137 = vrot.lane.b32.xlu1 %v7096_v3, %s7545_s30  ;;  %v4655_v6 = vadd.f32 %v11331_v57, %v4619_v11  ;;  %v11588_v27 = vsel %vm4664_vm7, %v4648_v13, %v4680_v49 }
 0x8ef   :  { %v4686_v54 = vmul.f32 0.2, %v4654_v43  ;;  %vm4670_vm10 = vcmp.gt.f32.partialorder %v4654_v43, 0.0  ;;  %v4685_v59 = vmul.f32 0.2, %v4653_v34  ;;  %vm4669_vm5 = vcmp.gt.f32.partialorder %v4653_v34, 0.0 }
 0x8f0   :  { %v4684_v37 = vmul.f32 0.2, %v4652_v33  ;;  %vm4668_vm6 = vcmp.gt.f32.partialorder %v4652_v33, 0.0  ;;  %v4687_v22 = vmul.f32 0.2, %v4655_v6  ;;  %vm4671_vm8 = vcmp.gt.f32.partialorder %v4655_v6, 0.0 }
 0x8f1   :  { %v11551_v20 = vsel %vm4670_vm10, %v4654_v43, %v4686_v54  ;;  %v11581_v32 = vsel %vm4669_vm5, %v4653_v34, %v4685_v59 }
 0x8f2   :  { %v7231_v46 = vpack.i.bf16 %v11551_v20, %v11530_v58  ;;  %v11584_v30 = vsel %vm4668_vm6, %v4652_v33, %v4684_v37  ;;  %v7331_v31 = vpack.i.bf16 %v11471_v47, %v11581_v32 }
 0x8f3   :  { %v7221_v28 = vpack.i.bf16 %v11584_v30, %v11588_v27 }
 0x8f5   :  { %7142 = vrot.lane.b32.xlu0 %v7101_v45, %s7545_s30  ;;  %v11520_v45 = vpack.i.bf16 %v11480_v60, %v11515_v42 }
 0x8f6   :  { %7147 = vrot.lane.b32.xlu2 %v7106_v14, %s7545_s30  ;;  %7152 = vrot.lane.b32.xlu1 %v7111_v12, %s7545_s30  ;;  %v7166_v14 = vpack.i.bf16 %v11463_v39, %v11465_v15  ;;  %v11539_v12 = vpack.i.bf16 %v11530_v58, %v11463_v39 }
 0x8fd   :  { %7157 = vrot.lane.b32.xlu0 %v7096_v3, %s7538_s1  ;;  %v4683_v3 = vmul.f32 0.2, %v4651_v0 }
 0x8fe   :  { %7182 = vrot.lane.b32.xlu2 %v11505_v7, %s7546_s4  ;;  %7162 = vrot.lane.b32.xlu1 %v7161_v40, %s7538_s1  ;;  %v7226_v40 = vpack.i.bf16 %v11581_v32, %v11515_v42 }
 0x8ff   :  { %v11532_v21 = vsel %vm4667_vm12, %v4651_v0, %v4683_v3  ;;  %v11595_v0 = vsel %vm4671_vm8, %v4655_v6, %v4687_v22 }
 0x900   :  { %12912 = vst [vmem:[#allocation15_spill] sm:$0xff] %v11532_v21  ;;  %v7186_v19 = vpack.i.bf16 %v11532_v21, %v11530_v58  ;;  %v11562_v44 = vpack.i.bf16 %v11459_v35, %v11532_v21  ;;  %v7236_v57 = vpack.i.bf16 %v11595_v0, %v11532_v21  ;;  %v7326_v3 = vpack.i.bf16 %v11595_v0, %v11551_v20 }
 0x901   :  { %v7336_v49 = vpack.i.bf16 %v11595_v0, %v11584_v30 }
 0x905   :  { %7172 = vrot.lane.b32.xlu0 %v11505_v7, %s7539_s20 }
 0x906   :  { %7202 = vrot.lane.b32.xlu2 %v11520_v45, %s7539_s20  ;;  %7167 = vrot.lane.b32.xlu1 %v7166_v14, %s7538_s1 }
 0x90d   :  { %7187 = vrot.lane.b32.xlu0 %v7186_v19, %s7538_s1 }
 0x90e   :  { %7207 = vrot.lane.b32.xlu2 %v11539_v12, %s7539_s20  ;;  %7177 = vrot.lane.b32.xlu1 %v11543_v1, %s7539_s20 }
 0x915   :  { %7192 = vrot.lane.b32.xlu0 %v7191_v38, %s7538_s1 }
 0x916   :  { %7232 = vrot.lane.b32.xlu2 %v7231_v46, %s7543_s8  ;;  %7197 = vrot.lane.b32.xlu1 %v11562_v44, %s7539_s20 }
 0x91d   :  { %7212 = vrot.lane.b32.xlu0 %v11562_v44, %s7546_s4 }
 0x91e   :  { %7252 = vrot.lane.b32.xlu2 %v11562_v44, %s7547_s25  ;;  %7217 = vrot.lane.b32.xlu1 %v11520_v45, %s7546_s4 }
 0x925   :  { %7227 = vrot.lane.b32.xlu0 %v7226_v40, %s7543_s8 }
 0x926   :  { %7262 = vrot.lane.b32.xlu2 %v7226_v40, %s7544_s5  ;;  %7222 = vrot.lane.b32.xlu1 %v7221_v28, %s7543_s8 }
 0x92d   :  { %7247 = vrot.lane.b32.xlu0 %v11543_v1, %s7546_s4 }
 0x92e   :  { %7282 = vrot.lane.b32.xlu2 %v7221_v28, %s7545_s30  ;;  %7237 = vrot.lane.b32.xlu1 %v7236_v57, %s7543_s8 }
 0x935   :  { %7257 = vrot.lane.b32.xlu0 %v7221_v28, %s7544_s5 }
 0x936   :  { %7297 = vrot.lane.b32.xlu2 %v7236_v57, %s7545_s30  ;;  %7242 = vrot.lane.b32.xlu1 %v11539_v12, %s7546_s4 }
 0x938   :  { %v7103_v48 = vpop.permute.xlu2 %7102 }
 0x939   :  { %v7105_v5 = vunpack.i.h.bf16 %v7103_v48  ;;  %v7104_v9 = vunpack.i.l.bf16 %v7103_v48 }
 0x93d   :  { %7272 = vrot.lane.b32.xlu0 %v7236_v57, %s7544_s5 }
 0x93e   :  { %7317 = vrot.lane.b32.xlu2 %v11543_v1, %s7547_s25  ;;  %7267 = vrot.lane.b32.xlu1 %v7231_v46, %s7544_s5 }
 0x940   :  { %v7118_v2 = vpop.permute.xlu2 %7117 }
 0x941   :  { %v7120_v14 = vunpack.i.h.bf16 %v7118_v2  ;;  %v7119_v43 = vunpack.i.l.bf16 %v7118_v2 }
 0x945   :  { %7277 = vrot.lane.b32.xlu0 %v11520_v45, %s7547_s25 }
 0x946   :  { %7327 = vrot.lane.b32.xlu2 %v7326_v3, %s7538_s1  ;;  %7287 = vrot.lane.b32.xlu1 %v7226_v40, %s7545_s30 }
 0x948   :  { %v7133_v55 = vpop.permute.xlu2 %7132 }
 0x949   :  { %v7135_v19 = vunpack.i.h.bf16 %v7133_v55  ;;  %v7134_v54 = vunpack.i.l.bf16 %v7133_v55 }
 0x94b   :  { %v11619_v4 = vsel %vm2397_vm14, %v7135_v19, %v7120_v14  ;;  %v11623_v38 = vsel %vm2397_vm14, %v7134_v54, %v7119_v43 }
 0x94d   :  { %7292 = vrot.lane.b32.xlu0 %v7231_v46, %s7545_s30 }
 0x94e   :  { %7332 = vrot.lane.b32.xlu2 %v7331_v31, %s7538_s1  ;;  %7302 = vrot.lane.b32.xlu1 %v7221_v28, %s7538_s1 }
 0x94f   :  { %v7098_v23 = vpop.permute.xlu0 %7097 }
 0x950   :  { %v7100_v34 = vunpack.i.h.bf16 %v7098_v23  ;;  %v7099_v52 = vunpack.i.l.bf16 %v7098_v23  ;;  %v11630_v33 = vpop.permute.xlu2 %7147  ;;  %v7108_v13 = vpop.permute.xlu1 %7107 }
 0x951   :  { %v7110_v59 = vunpack.i.h.bf16 %v7108_v13  ;;  %v7109_v11 = vunpack.i.l.bf16 %v7108_v13  ;;  %v12566_v25 = vunpack.i.h.bf16 %v11630_v33 }
 0x952   :  { %v11634_v37 = vsel %vm2142_vm13, %v7100_v34, %v7105_v5  ;;  %v11638_v46 = vsel %vm2142_vm13, %v7099_v52, %v7104_v9 }
 0x953   :  { %v11644_v6 = vsel %vm2142_vm13, %v7105_v5, %v7110_v59  ;;  %v11648_v40 = vsel %vm2142_vm13, %v7104_v9, %v7109_v11  ;;  %v7341_v5 = vpack.i.bf16 %v11581_v32, %v11588_v27 }
 0x955   :  { %7312 = vrot.lane.b32.xlu0 %v11539_v12, %s7547_s25 }
 0x956   :  { %7337 = vrot.lane.b32.xlu2 %v7336_v49, %s7539_s20  ;;  %7307 = vrot.lane.b32.xlu1 %v11505_v7, %s7547_s25 }
 0x957   :  { %v7113_v28 = vpop.permute.xlu0 %7112 }
 0x958   :  { %v7115_v22 = vunpack.i.h.bf16 %v7113_v28  ;;  %v7114_v57 = vunpack.i.l.bf16 %v7113_v28  ;;  %v11655_v48 = vpop.permute.xlu2 %7182  ;;  %v7123_v2 = vpop.permute.xlu1 %7122 }
 0x959   :  { %12914 = vst [vmem:[#allocation45_spill] sm:$0xff] %v11655_v48  ;;  %v7125_v3 = vunpack.i.h.bf16 %v7123_v2  ;;  %v7124_v55 = vunpack.i.l.bf16 %v7123_v2 }
 0x95a   :  { %v11659_v31 = vsel %vm2142_vm13, %v7115_v22, %v7100_v34  ;;  %v11663_v23 = vsel %vm2142_vm13, %v7110_v59, %v7115_v22  ;;  %v11669_v9 = vsel %vm2142_vm13, %v7114_v57, %v7099_v52  ;;  %v11673_v13 = vsel %vm2142_vm13, %v7109_v11, %v7114_v57 }
 0x95b   :  { %v11677_v28 = vsel %vm2397_vm14, %v7120_v14, %v7125_v3  ;;  %v11681_v34 = vsel %vm2397_vm14, %v7119_v43, %v7124_v55 }
 0x95d   :  { %7342 = vrot.lane.b32.xlu0 %v7341_v5, %s7539_s20 }
 0x95e   :  { %7357 = vrot.lane.b32.xlu2 %v7341_v5, %s7546_s4  ;;  %7322 = vrot.lane.b32.xlu1 %v11562_v44, %s7548_s16 }
 0x95f   :  { %v7128_v52 = vpop.permute.xlu0 %7127 }
 0x960   :  { %v7130_v59 = vunpack.i.h.bf16 %v7128_v52  ;;  %v7129_v22 = vunpack.i.l.bf16 %v7128_v52  ;;  %v11687_v11 = vpop.permute.xlu2 %7202  ;;  %v11689_v57 = vpop.permute.xlu1 %7137  ;;  %v7346_v52 = vpack.i.bf16 %v11482_v17, %v11551_v20 }
 0x961   :  { %12915 = vst [vmem:[#allocation10_spill] sm:$0xff] %v11687_v11 }
 0x962   :  { %v11693_v14 = vsel %vm2397_vm14, %v7130_v59, %v7135_v19  ;;  %v11697_v43 = vsel %vm2397_vm14, %v7129_v22, %v7134_v54  ;;  %v11701_v2 = vsel %vm2397_vm14, %v7125_v3, %v7130_v59  ;;  %v11705_v44 = vsel %vm2397_vm14, %v7124_v55, %v7129_v22 }
 0x963   :  { %v12569_v55 = vunpack.i.l.bf16 %v11630_v33  ;;  %v12571_v22 = vunpack.i.l.bf16 %v11687_v11 }
 0x965   :  { %7352 = vrot.lane.b32.xlu0 %v7336_v49, %s7546_s4 }
 0x966   :  { %7367 = vrot.lane.b32.xlu2 %v7336_v49, %s7547_s25  ;;  %7347 = vrot.lane.b32.xlu1 %v7346_v52, %s7539_s20 }
 0x967   :  { %v11712_v19 = vpop.permute.xlu0 %7142 }
 0x968   :  { %v12567_v54 = vunpack.i.h.bf16 %v11712_v19  ;;  %v12570_v3 = vunpack.i.l.bf16 %v11712_v19  ;;  %v7208_v59 = vpop.permute.xlu2 %7207  ;;  %v11719_v10 = vpop.permute.xlu1 %7152 }
 0x969   :  { %v7210_v18 = vunpack.i.h.bf16 %v7208_v59  ;;  %v7209_v41 = vunpack.i.l.bf16 %v7208_v59 }
 0x96a   :  { %v11727_v63 = vsel %vm2670_vm15, %v12567_v54, %v12566_v25  ;;  %v11735_v8 = vsel %vm2670_vm15, %v12570_v3, %v12569_v55 }
 0x96b   :  { %v11741_v36 = vsel %vm3365_vm2, %v12571_v22, %v7210_v18 }
 0x96c   :  { %12916 = vst [vmem:[#allocation11_spill] sm:$0xff] %v11741_v36 }
 0x96d   :  { %7362 = vrot.lane.b32.xlu0 %v7346_v52, %s7546_s4 }
 0x96e   :  { %7377 = vrot.lane.b32.xlu2 %v7346_v52, %s7547_s25  ;;  %7372 = vrot.lane.b32.xlu1 %v7341_v5, %s7547_s25 }
 0x96f   :  { %v11746_v25 = vpop.permute.xlu0 %7157 }
 0x970   :  { %v7160_v54 = vunpack.i.h.bf16 %v11746_v25  ;;  %v11749_v24 = vpop.permute.xlu2 %7232  ;;  %v11751_v55 = vpop.permute.xlu1 %7162  ;;  %v12583_v51 = vunpack.i.l.bf16 %v11746_v25 }
 0x971   :  { %v12578_v3 = vunpack.i.h.bf16 %v11751_v55  ;;  %v7235_v58 = vunpack.i.h.bf16 %v11749_v24 }
 0x973   :  { %v11758_v22 = vsel %vm2943_vm0, %v12578_v3, %v7160_v54  ;;  %v12584_v3 = vunpack.i.l.bf16 %v11751_v55 }
 0x975   :  { %7387 = vrot.lane.b32.xlu0 %v11505_v7, %s7548_s16 }
 0x976   :  { %7382 = vrot.lane.b32.xlu2 %v11520_v45, %s7548_s16  ;;  %7392 = vrot.lane.b32.xlu1 %v7336_v49, %s7548_s16 }
 0x977   :  { %v11765_v62 = vpop.permute.xlu0 %7172 }
 0x978   :  { %12917 = vst [vmem:[#allocation38_spill] sm:$0xff] %v11765_v62  ;;  %v12581_v50 = vunpack.i.l.bf16 %v11765_v62  ;;  %v11768_v29 = vpop.permute.xlu2 %7252  ;;  %v11771_v26 = vpop.permute.xlu1 %7167 }
 0x979   :  { %12918 = vst [vmem:[#allocation46_spill] sm:$0xff] %v11768_v29  ;;  %v12582_v7 = vunpack.i.h.bf16 %v11771_v26  ;;  %v7169_v56 = vunpack.i.l.bf16 %v11771_v26 }
 0x97a   :  { %v11780_v45 = vsel %vm3365_vm2, %v12581_v50, %v7209_v41 }
 0x97b   :  { %12919 = vst [vmem:[#allocation39_spill] sm:$0xff] %v11780_v45  ;;  %v11784_v49 = vsel %vm2943_vm0, %v7160_v54, %v7169_v56  ;;  %v11792_v59 = vsel %vm2943_vm0, %v12583_v51, %v12582_v7  ;;  %v11798_v29 = vsel %vm2943_vm0, %v7169_v56, %v12584_v3  ;;  %v7205_v7 = vunpack.i.h.bf16 %v11687_v11 }
 0x97c   :  { %v7175_v51 = vunpack.i.h.bf16 %v11765_v62  ;;  %v12602_v11 = vunpack.i.l.bf16 %v11689_v57 }
 0x97d   :  { %7397 = vrot.lane.b32.xlu0 %v7341_v5, %s7548_s16  ;;  %v4704_v5 = vld [vmem:[#allocation2] sm:$0x1] }
 0x97e   :  { %7407 = vrot.lane.b32.xlu2 %v11539_v12, %s7548_s16  ;;  %7402 = vrot.lane.b32.xlu1 %v7346_v52, %s7548_s16 }
 0x97f   :  { %v11804_v54 = vpop.permute.xlu0 %7187 }
 0x980   :  { %v11806_v50 = vpop.permute.xlu2 %7262  ;;  %v11808_v36 = vpop.permute.xlu1 %7177 }
 0x981   :  { %12920 = vst [vmem:[#allocation40_spill] sm:$0xff] %v11808_v36  ;;  %v12589_v56 = vunpack.i.h.bf16 %v11808_v36  ;;  %v7179_v3 = vunpack.i.l.bf16 %v11808_v36 }
 0x983   :  { %v11816_v12 = vsel %vm3365_vm2, %v7175_v51, %v7179_v3  ;;  %v11820_v52 = vsel %vm3365_vm2, %v7179_v3, %v7205_v7  ;;  %v11826_v45 = vsel %vm3365_vm2, %v7209_v41, %v12589_v56  ;;  %v7185_v56 = vunpack.i.h.bf16 %v11655_v48 }
 0x984   :  { %12921 = vst [vmem:[#allocation41_spill] sm:$0xff] %v11816_v12 }
 0x985   :  { %12922 = vst [vmem:[#allocation42_spill] sm:$0xff] %v11820_v52  ;;  %7412 = vrot.lane.b32.xlu0 %v11543_v1, %s7548_s16 }
 0x986   :  { %12923 = vst [vmem:[#allocation43_spill] sm:$0xff] %v11826_v45  ;;  %5920 = vperm.xlu1 %6293, %v4704_v5  }
 0x987   :  { %v11830_v62 = vpop.permute.xlu0 %7192 }
 0x988   :  { %v11832_v17 = vpop.permute.xlu2 %7282  ;;  %v11834_v47 = vpop.permute.xlu1 %7197 }
 0x989   :  { %12924 = vst [vmem:[#allocation44_spill] sm:$0xff] %v11834_v47  ;;  %v7200_v12 = vunpack.i.h.bf16 %v11834_v47  ;;  %v12590_v3 = vunpack.i.l.bf16 %v11834_v47  ;;  %v12597_v48 = vunpack.i.l.bf16 %v11832_v17  ;;  %v12600_v47 = vunpack.i.h.bf16 %v11689_v57 }
 0x98b   :  { %v11840_v36 = vsel %vm3365_vm2, %v7200_v12, %v7175_v51  ;;  %v11844_v41 = vsel %vm3365_vm2, %v7205_v7, %v7200_v12  ;;  %v11850_v1 = vsel %vm3365_vm2, %v7210_v18, %v12590_v3  ;;  %v12596_v51 = vunpack.i.h.bf16 %v11832_v17 }
 0x98c   :  { %12925 = vst [vmem:[#allocation47_spill] sm:$0xff] %v11840_v36 }
 0x98d   :  { %12926 = vst [vmem:[#allocation49_spill] sm:$0xff] %v11844_v41 }
 0x98e   :  { %12927 = vst [vmem:[#allocation48_spill] sm:$0xff] %v11850_v1 }
 0x98f   :  { %v11852_v5 = vpop.permute.xlu0 %7212 }
 0x990   :  { %v7215_v45 = vunpack.i.h.bf16 %v11852_v5  ;;  %v11856_v52 = vpop.permute.xlu2 %7297  ;;  %v11859_v36 = vpop.permute.xlu1 %7217 }
 0x991   :  { %v12595_v7 = vunpack.i.h.bf16 %v11856_v52  ;;  %v7220_v41 = vunpack.i.h.bf16 %v11859_v36  ;;  %v12930_v3 = vunpack.i.l.bf16 %v11856_v52 }
 0x992   :  { %v11866_v18 = vsel %vm3638_vm1, %v7215_v45, %v7185_v56 }
 0x993   :  { %12928 = vst [vmem:[#allocation50_spill] sm:$0xff] %v11866_v18  ;;  %v5030_v1 = vsel %vm2670_vm15, %v12595_v7, %v12596_v51  ;;  %v11878_v12 = vsel %vm3638_vm1, %v7220_v41, %v7215_v45  ;;  %v5029_v60 = vsel %vm2670_vm15, %v12930_v3, %v12597_v48  ;;  %v12931_v45 = vunpack.i.h.bf16 %v11719_v10 }
 0x994   :  { %5048 = vmatpush.msrb.mxu3 %v5030_v1  ;;  %12929 = vst [vmem:[#allocation51_spill] sm:$0xff] %v11878_v12  ;;  %v12932_v3 = vunpack.i.l.bf16 %v11719_v10 }
 0x995   :  { %v5028_v1 = vsel %vm2670_vm15, %v12931_v45, %v12600_v47 }
 0x996   :  { %5049 = vmatpush.msrb.mxu3 %v5029_v60  ;;  %v5027_v60 = vsel %vm2670_vm15, %v12932_v3, %v12602_v11  ;;  %v7234_v11 = vunpack.i.l.bf16 %v11749_v24 }
 0x997   :  { %v11889_v7 = vpop.permute.xlu0 %7227 }
 0x998   :  { %v7230_v51 = vunpack.i.h.bf16 %v11889_v7  ;;  %5050 = vmatpush.msrb.mxu3 %v5028_v1  ;;  %v7223_v18 = vpop.permute.xlu1 %7222  ;;  %v7229_v48 = vunpack.i.l.bf16 %v11889_v7  ;;  %v4753_v7 = vld [vmem:[%s12437_s14] sm:$0x1] }
 0x999   :  { %v7225_v12 = vunpack.i.h.bf16 %v7223_v18  ;;  %v7224_v16 = vunpack.i.l.bf16 %v7223_v18 }
 0x99a   :  { %5051 = vmatpush.msrb.mxu3 %v5027_v60 }
 0x99b   :  { %v4748_v21 = vsel %vm2142_vm13, %v7225_v12, %v7230_v51  ;;  %v4747_v45 = vsel %vm2142_vm13, %v7224_v16, %v7229_v48 }
 0x99c   :  { %4790 = vmatpush.msrb.mxu0 %v4748_v21 }
 0x99e   :  { %4791 = vmatpush.msrb.mxu0 %v4747_v45 }
 0x99f   :  { %v11909_v1 = vpop.permute.xlu0 %7247 }
 0x9a0   :  { %12933 = vst [vmem:[#allocation53_spill] sm:$0xff] %v11909_v1  ;;  %v7249_v47 = vunpack.i.l.bf16 %v11909_v1  ;;  %v7238_v3 = vpop.permute.xlu1 %7237  ;;  %4792 = vmatpush.msrb.mxu0 %v11634_v37 }
 0x9a1   :  { %v7240_v18 = vunpack.i.h.bf16 %v7238_v3  ;;  %v7239_v21 = vunpack.i.l.bf16 %v7238_v3 }
 0x9a2   :  { %v11919_v60 = vsel %vm3638_vm1, %v7185_v56, %v7249_v47  ;;  %v11923_v45 = vsel %vm3638_vm1, %v7249_v47, %v7220_v41  ;;  %4793 = vmatpush.msrb.mxu0 %v11638_v46  ;;  %v11935_v56 = vld [vmem:[%s12437_s14 + $0x2] sm:$0x1]  ;;  %v7265_v41 = vunpack.i.h.bf16 %v11806_v50 }
 0x9a3   :  { %v4752_v37 = vsel %vm2142_vm13, %v7240_v18, %v7225_v12  ;;  %v4740_v1 = vsel %vm2142_vm13, %v7235_v58, %v7240_v18  ;;  %6228 = vmatmul.msk.f32.vlgmr.msrb.gmra.mxu0 %vm4754_vm9, %v4753_v7  ;;  %v4751_v47 = vsel %vm2142_vm13, %v7239_v21, %v7224_v16  ;;  %v4739_v24 = vsel %vm2142_vm13, %v7234_v11, %v7239_v21  ;;  %v11944_v12 = vpop.permute.xlu2 %7317 }
 0x9a4   :  { %4770 = vmatpush.msra.mxu1 %v4752_v37  ;;  %4830 = vmatpush.msra.mxu0 %v4740_v1  ;;  %v12605_v16 = vunpack.i.l.bf16 %v11859_v36  ;;  %v12604_v1 = vunpack.i.l.bf16 %v11852_v5 }
 0x9a5   :  { %6237 = vmatmul.msk.f32.vlgmr.msrb.gmra.mxu3 %vm4754_vm9, %v11935_v56 }
 0x9a6   :  { %4771 = vmatpush.msra.mxu1 %v4751_v47  ;;  %4831 = vmatpush.msra.mxu0 %v4739_v24  ;;  %v7264_v24 = vunpack.i.l.bf16 %v11806_v50 }
 0x9a7   :  { %v7258_v46 = vpop.permute.xlu0 %7257 }
 0x9a8   :  { %v7260_v3 = vunpack.i.h.bf16 %v7258_v46  ;;  %v7259_v18 = vunpack.i.l.bf16 %v7258_v46  ;;  %v11946_v37 = vpop.permute.xlu1 %7242  ;;  %4772 = vmatpush.msra.mxu1 %v11659_v31  ;;  %4832 = vmatpush.msra.mxu0 %v11663_v23  ;;  %v4744_v31 = vsel %vm2142_vm13, %v7230_v51, %v7235_v58  ;;  %v4743_v58 = vsel %vm2142_vm13, %v7229_v48, %v7234_v11  ;;  %v6231_v48 = vld [vmem:[%s12437_s14 + $0x1] sm:$0x1] }
 0x9a9   :  { %v7245_v21 = vunpack.i.h.bf16 %v11946_v37  ;;  %vm5939_vm13 = vcmask 1040384  }
 0x9aa   :  { %v4885_v47 = vsel %vm2397_vm14, %v7260_v3, %v7265_v41  ;;  %4773 = vmatpush.msra.mxu1 %v11669_v9  ;;  %4833 = vmatpush.msra.mxu0 %v11673_v13  ;;  %v4884_v9 = vsel %vm2397_vm14, %v7259_v18, %v7264_v24 }
 0x9ab   :  { %6227 = vmatmul.msk.f32.vlgmr.msra.gmra.mxu1 %vm4754_vm9, %v4753_v7  ;;  %v11965_v23 = vsel %vm3638_vm1, %v12605_v16, %v7245_v21  ;;  %v11971_v50 = vsel %vm3638_vm1, %v7245_v21, %v12604_v1  ;;  %6230 = vmatmul.msk.f32.vlgmr.msra.gmra.mxu0 %vm4754_vm9, %v4753_v7  ;;  %v11980_v21 = vpop.permute.xlu2 %7327 }
 0x9ac   :  { %4927 = vmatpush.msrb.mxu0 %v4885_v47  ;;  %4810 = vmatpush.msrb.mxu1 %v4744_v31 }
 0x9ae   :  { %4928 = vmatpush.msrb.mxu0 %v4884_v9  ;;  %4811 = vmatpush.msrb.mxu1 %v4743_v58  ;;  %v12934_v9 = vunpack.i.h.bf16 %v11832_v17 }
 0x9af   :  { %v7273_v13 = vpop.permute.xlu0 %7272 }
 0x9b0   :  { %v7275_v51 = vunpack.i.h.bf16 %v7273_v13  ;;  %4929 = vmatpush.msrb.mxu0 %v11677_v28  ;;  %4812 = vmatpush.msrb.mxu1 %v11644_v6  ;;  %v7268_v46 = vpop.permute.xlu1 %7267  ;;  %v7274_v47 = vunpack.i.l.bf16 %v7273_v13  ;;  %v12936_v13 = vunpack.i.h.bf16 %v11712_v19 }
 0x9b1   :  { %v7270_v31 = vunpack.i.h.bf16 %v7268_v46  ;;  %v7269_v1 = vunpack.i.l.bf16 %v7268_v46 }
 0x9b2   :  { %4930 = vmatpush.msrb.mxu0 %v11681_v34  ;;  %v4889_v16 = vsel %vm2397_vm14, %v7275_v51, %v7260_v3  ;;  %4813 = vmatpush.msrb.mxu1 %v11648_v40  ;;  %v4888_v28 = vsel %vm2397_vm14, %v7274_v47, %v7259_v18 }
 0x9b3   :  { %6229 = vmatmul.msk.f32.vlgmr.msrb.gmra.mxu1 %vm4754_vm9, %v4753_v7  ;;  %v4877_v6 = vsel %vm2397_vm14, %v7270_v31, %v7275_v51  ;;  %v4876_v34 = vsel %vm2397_vm14, %v7269_v1, %v7274_v47  ;;  %6233 = vmatmul.msk.f32.vlgmr.msrb.gmra.mxu0 %vm4754_vm9, %v6231_v48  ;;  %v12003_v18 = vpop.permute.xlu2 %7332  ;;  %v12937_v51 = vunpack.i.h.bf16 %v11689_v57  ;;  %v7330_v47 = vunpack.i.h.bf16 %v11980_v21 }
 0x9b4   :  { %4907 = vmatpush.msra.mxu1 %v4889_v16  ;;  %4967 = vmatpush.msrb.mxu2 %v4877_v6  ;;  %v4881_v16 = vsel %vm2397_vm14, %v7265_v41, %v7270_v31  ;;  %v12938_v31 = vunpack.i.l.bf16 %v11712_v19  ;;  %v12939_v6 = vunpack.i.l.bf16 %v11689_v57  ;;  %v7190_v19 = vunpack.i.h.bf16 %v11804_v54 }
 0x9b5   :  { %v5024_v46 = vsel %vm2670_vm15, %v12937_v51, %v12936_v13  ;;  %v12942_v13 = vunpack.i.h.bf16 %v11719_v10 }
 0x9b6   :  { %4908 = vmatpush.msra.mxu1 %v4888_v28  ;;  %4968 = vmatpush.msrb.mxu2 %v4876_v34  ;;  %v5023_v28 = vsel %vm2670_vm15, %v12939_v6, %v12938_v31  ;;  %v7329_v31 = vunpack.i.l.bf16 %v11980_v21  ;;  %v12946_v6 = vunpack.i.l.bf16 %v11746_v25  ;;  %v12948_v21 = vunpack.i.l.bf16 %v11751_v55 }
 0x9b7   :  { %v11997_v40 = vpop.permute.xlu0 %7277 }
 0x9b8   :  { %v7288_v11 = vpop.permute.xlu1 %7287  ;;  %4909 = vmatpush.msra.mxu1 %v11619_v4  ;;  %4969 = vmatpush.msrb.mxu2 %v11693_v14  ;;  %v12935_v14 = vunpack.i.l.bf16 %v11832_v17  ;;  %v5159_v25 = vsel %vm2943_vm0, %v7329_v31, %v7330_v47 }
 0x9b9   :  { %v7290_v7 = vunpack.i.h.bf16 %v7288_v11  ;;  %v7289_v3 = vunpack.i.l.bf16 %v7288_v11 }
 0x9ba   :  { %4910 = vmatpush.msra.mxu1 %v11623_v38  ;;  %4970 = vmatpush.msrb.mxu2 %v11697_v43  ;;  %v4880_v38 = vsel %vm2397_vm14, %v7264_v24, %v7269_v1  ;;  %v7334_v1 = vunpack.i.l.bf16 %v12003_v18  ;;  %vm5941_vm14 = vcmask 1042434  }
 0x9bb   :  { %6232 = vmatmul.msk.f32.vlgmr.msra.gmra.mxu1 %vm4754_vm9, %v6231_v48  ;;  %v5026_v4 = vsel %vm2670_vm15, %v12934_v9, %v7290_v7  ;;  %6235 = vmatmul.msk.f32.vlgmr.msrb.gmra.mxu2 %vm4754_vm9, %v6231_v48  ;;  %v5025_v43 = vsel %vm2670_vm15, %v12935_v14, %v7289_v3  ;;  %v12940_v9 = vunpack.i.h.bf16 %v11856_v52  ;;  %v7194_v14 = vunpack.i.l.bf16 %v11830_v62 }
 0x9bc   :  { %4947 = vmatpush.msrb.mxu1 %v4881_v16  ;;  %5068 = vmatpush.msra.mxu0 %v5026_v4 }
 0x9be   :  { %4948 = vmatpush.msrb.mxu1 %v4880_v38  ;;  %5069 = vmatpush.msra.mxu0 %v5025_v43  ;;  %v12941_v38 = vunpack.i.l.bf16 %v11856_v52  ;;  %v12053_v43 = vpop.permute.xlu2 %7337 }
 0x9bf   :  { %v7293_v41 = vpop.permute.xlu0 %7292 }
 0x9c0   :  { %v7295_v58 = vunpack.i.h.bf16 %v7293_v41  ;;  %4949 = vmatpush.msrb.mxu1 %v11701_v2  ;;  %v7294_v17 = vunpack.i.l.bf16 %v7293_v41  ;;  %v7303_v24 = vpop.permute.xlu1 %7302  ;;  %5070 = vmatpush.msra.mxu0 %v5024_v46  ;;  %v12944_v46 = vunpack.i.l.bf16 %v11719_v10  ;;  %v6241_v10 = vld [vmem:[%s12437_s14 + $0x3] sm:$0x1] }
 0x9c1   :  { %v7305_v34 = vunpack.i.h.bf16 %v7303_v24  ;;  %v7304_v11 = vunpack.i.l.bf16 %v7303_v24 }
 0x9c2   :  { %v5022_v16 = vsel %vm2670_vm15, %v7290_v7, %v7295_v58  ;;  %v5018_v2 = vsel %vm2670_vm15, %v7295_v58, %v12940_v9  ;;  %4950 = vmatpush.msrb.mxu1 %v11705_v44  ;;  %5071 = vmatpush.msra.mxu0 %v5023_v28  ;;  %v7195_v7 = vunpack.i.h.bf16 %v11830_v62  ;;  %v5017_v44 = vsel %vm2670_vm15, %v7294_v17, %v12941_v38 }
 0x9c3   :  { %6234 = vmatmul.msk.f32.vlgmr.msrb.gmra.mxu1 %vm4754_vm9, %v6231_v48  ;;  %5108 = vmatpush.msra.mxu2 %v5018_v2  ;;  %v5171_v57 = vsel %vm2943_vm0, %v7330_v47, %v7305_v34  ;;  %v5167_v4 = vsel %vm2943_vm0, %v7305_v34, %v7334_v1  ;;  %v5021_v48 = vsel %vm2670_vm15, %v7289_v3, %v7294_v17  ;;  %v12943_v62 = vunpack.i.h.bf16 %v11630_v33 }
 0x9c4   :  { %5088 = vmatpush.msra.mxu1 %v5022_v16  ;;  %5189 = vmatpush.msra.mxu3 %v5171_v57  ;;  %v5170_v41 = vsel %vm2943_vm0, %v7190_v19, %v7304_v11  ;;  %v5166_v52 = vsel %vm2943_vm0, %v7304_v11, %v7195_v7  ;;  %v12945_v17 = vunpack.i.l.bf16 %v11630_v33  ;;  %v5168_v28 = vsel %vm2943_vm0, %v7194_v14, %v12946_v6  ;;  %v12952_v11 = vld [vmem:[#allocation23_spill] sm:$0xff]  ;;  %v12953_v16 = vld [vmem:[#allocation10_spill] sm:$0xff] }
 0x9c5   :  { %5209 = vmatpush.msrb.mxu0 %v5167_v4  ;;  %5109 = vmatpush.msra.mxu2 %v5017_v44  ;;  %v5016_v51 = vsel %vm2670_vm15, %v12943_v62, %v12942_v13  ;;  %v7335_v33 = vunpack.i.h.bf16 %v12003_v18  ;;  %v12954_v9 = vunpack.i.l.bf16 %v12953_v16  ;;  %v12957_v44 = vld [vmem:[#allocation14_spill] sm:$0xff]  ;;  %v12959_v62 = vld [vmem:[#allocation39_spill] sm:$0xff] }
 0x9c6   :  { %5089 = vmatpush.msra.mxu1 %v5021_v48  ;;  %5190 = vmatpush.msra.mxu3 %v5170_v41  ;;  %v5015_v24 = vsel %vm2670_vm15, %v12945_v17, %v12944_v46  ;;  %v6251_v48 = vld [vmem:[%s12437_s14 + $0x5] sm:$0x1]  ;;  %v12960_v17 = vld [vmem:[#allocation44_spill] sm:$0xff]  ;;  %vm5943_vm15 = vcmask 1041408  }
 0x9c7   :  { %v12061_v58 = vpop.permute.xlu0 %7312  ;;  %5210 = vmatpush.msrb.mxu0 %v5166_v52  ;;  %5110 = vmatpush.msra.mxu2 %v5016_v51 }
 0x9c8   :  { %v12069_v3 = vpop.permute.xlu1 %7307  ;;  %5090 = vmatpush.msra.mxu1 %v11727_v63  ;;  %5191 = vmatpush.msra.mxu3 %v11758_v22  ;;  %v7189_v63 = vunpack.i.l.bf16 %v11804_v54 }
 0x9c9   :  { %5211 = vmatpush.msrb.mxu0 %v11784_v49  ;;  %5111 = vmatpush.msra.mxu2 %v5015_v24  ;;  %v12961_v24 = vunpack.i.l.bf16 %v12960_v17 }
 0x9ca   :  { %5091 = vmatpush.msra.mxu1 %v11735_v8  ;;  %5192 = vmatpush.msra.mxu3 %v5168_v28  ;;  %v5163_v8 = vsel %vm2943_vm0, %v7334_v1, %v7329_v31  ;;  %v5162_v22 = vsel %vm2943_vm0, %v7195_v7, %v7189_v63  ;;  %v5158_v54 = vsel %vm2943_vm0, %v7189_v63, %v7190_v19  ;;  %v12955_v19 = vld [vmem:[#allocation19_spill] sm:$0xff]  ;;  %v12956_v7 = vld [vmem:[#allocation13_spill] sm:$0xff]  ;;  %v7244_v63 = vunpack.i.l.bf16 %v11946_v37 }
 0x9cb   :  { %5212 = vmatpush.msrb.mxu0 %v11792_v59  ;;  %6239 = vmatmul.msk.f32.vlgmr.msra.gmra.mxu1 %vm4754_vm9, %v11935_v56  ;;  %v12108_v59 = vpop.permute.xlu2 %7357  ;;  %v6261_v37 = vld [vmem:[%s12437_s14 + $0x7] sm:$0x1] }
 0x9cc   :  { %6238 = vmatmul.msk.f32.vlgmr.msra.gmra.mxu0 %vm4754_vm9, %v11935_v56  ;;  %6240 = vmatmul.msk.f32.vlgmr.msra.gmra.mxu2 %vm4754_vm9, %v11935_v56  ;;  %v7360_v38 = vunpack.i.h.bf16 %v12108_v59  ;;  %v7359_v13 = vunpack.i.l.bf16 %v12108_v59  ;;  %v12966_v59 = vld [vmem:[#allocation38_spill] sm:$0xff] }
 0x9cd   :  { %6242 = vmatmul.msk.f32.vlgmr.msra.gmra.mxu3 %vm4754_vm9, %v6241_v10  ;;  %5229 = vmatpush.msrb.mxu1 %v5163_v8 }
 0x9ce   :  { %5249 = vmatpush.msrb.mxu2 %v5159_v25  ;;  %5282 = vmatpush.msrb.mxu3 %v11584_v30  ;;  %v12947_v30 = vunpack.i.h.bf16 %v11751_v55  ;;  %v12963_v25 = vld [vmem:[#allocation49_spill] sm:$0xff] }
 0x9cf   :  { %v12106_v49 = vpop.permute.xlu0 %7342  ;;  %5302 = vmatpush.msra.mxu0 %v11581_v32  ;;  %5230 = vmatpush.msrb.mxu1 %v5162_v22  ;;  %v12965_v22 = vunpack.i.l.bf16 %v11859_v36 }
 0x9d0   :  { %5250 = vmatpush.msrb.mxu2 %v5158_v54  ;;  %5283 = vmatpush.msrb.mxu3 %v11588_v27  ;;  %v12114_v56 = vpop.permute.xlu1 %7322  ;;  %v5157_v32 = vsel %vm2943_vm0, %v12948_v21, %v12947_v30  ;;  %v7345_v18 = vunpack.i.h.bf16 %v12106_v49  ;;  %v12949_v27 = vunpack.i.h.bf16 %v11771_v26  ;;  %v6246_v26 = vld [vmem:[%s12437_s14 + $0x4] sm:$0x1]  ;;  %v12967_v54 = vunpack.i.l.bf16 %v12966_v59 }
 0x9d1   :  { %5303 = vmatpush.msra.mxu0 %v11515_v42  ;;  %5231 = vmatpush.msrb.mxu1 %v11798_v29  ;;  %v5156_v29 = vsel %vm2943_vm0, %v7335_v33, %v7194_v14  ;;  %v7339_v42 = vunpack.i.l.bf16 %v12053_v43  ;;  %v12958_v14 = vld [vmem:[#allocation47_spill] sm:$0xff] }
 0x9d2   :  { %5251 = vmatpush.msrb.mxu2 %v5157_v32  ;;  %5284 = vmatpush.msrb.mxu3 %v11459_v35  ;;  %v5160_v47 = vsel %vm2943_vm0, %v12949_v27, %v7335_v33  ;;  %v7344_v35 = vunpack.i.l.bf16 %v12106_v49  ;;  %v12964_v33 = vld [vmem:[#allocation48_spill] sm:$0xff]  ;;  %v5537_v49 = vsel %vm3638_vm1, %v7359_v13, %v12965_v22  ;;  %v12968_v32 = vld [vmem:[#allocation41_spill] sm:$0xff] }
 0x9d3   :  { %5304 = vmatpush.msra.mxu0 %v11465_v15  ;;  %5232 = vmatpush.msrb.mxu1 %v5160_v47  ;;  %v5397_v15 = vsel %vm3365_vm2, %v7339_v42, %v7345_v18  ;;  %v12152_v1 = vpop.permute.xlu2 %7367 }
 0x9d4   :  { %5252 = vmatpush.msrb.mxu2 %v5156_v29  ;;  %5285 = vmatpush.msrb.mxu3 %v11457_v61  ;;  %v12950_v61 = vld [vmem:[#allocation9_spill] sm:$0xff]  ;;  %v5396_v2 = vsel %vm3365_vm2, %v7344_v35, %v12954_v9  ;;  %v5400_v31 = vsel %vm3365_vm2, %v12961_v24, %v7344_v35  ;;  %v12970_v29 = vld [vmem:[#allocation42_spill] sm:$0xff] }
 0x9d5   :  { %5305 = vmatpush.msra.mxu0 %v11463_v39  ;;  %5322 = vmatpush.msra.mxu1 %v11551_v20  ;;  %v7340_v20 = vunpack.i.h.bf16 %v12053_v43 }
 0x9d6   :  { %5342 = vmatpush.msra.mxu2 %v11595_v0  ;;  %6243 = vmatmul.msk.f32.vlgmr.msrb.gmra.mxu0 %vm4754_vm9, %v6241_v10  ;;  %v12951_v0 = vld [vmem:[#allocation15_spill] sm:$0xff] }
 0x9d7   :  { %v12145_v55 = vpop.permute.xlu0 %7352  ;;  %6244 = vmatmul.msk.f32.vlgmr.msrb.gmra.mxu1 %vm4754_vm9, %v6241_v10  ;;  %6245 = vmatmul.msk.f32.vlgmr.msrb.gmra.mxu2 %vm4754_vm9, %v6241_v10  ;;  %v5401_v43 = vsel %vm3365_vm2, %v7340_v20, %v7339_v42  ;;  %v12962_v10 = vld [vmem:[#allocation11_spill] sm:$0xff]  ;;  %v12971_v42 = vld [vmem:[#allocation50_spill] sm:$0xff] }
 0x9d8   :  { %6247 = vmatmul.msk.f32.vlgmr.msrb.gmra.mxu3 %vm4754_vm9, %v6246_v26  ;;  %5323 = vmatpush.msra.mxu1 %v12950_v61  ;;  %v7348_v39 = vpop.permute.xlu1 %7347  ;;  %v7354_v57 = vunpack.i.l.bf16 %v12145_v55  ;;  %v7355_v28 = vunpack.i.h.bf16 %v12145_v55  ;;  %v7369_v61 = vunpack.i.l.bf16 %v12152_v1 }
 0x9d9   :  { %5343 = vmatpush.msra.mxu2 %v12951_v0  ;;  %5419 = vmatpush.msra.mxu3 %v5397_v15  ;;  %v7349_v34 = vunpack.i.l.bf16 %v7348_v39  ;;  %v7350_v46 = vunpack.i.h.bf16 %v7348_v39  ;;  %v12974_v39 = vld [vmem:[#allocation43_spill] sm:$0xff]  ;;  %v12975_v0 = vunpack.i.l.bf16 %v11852_v5 }
 0x9da   :  { %5324 = vmatpush.msra.mxu1 %v12952_v11  ;;  %v5538_v51 = vsel %vm3638_vm1, %v7354_v57, %v7360_v38  ;;  %v5542_v36 = vsel %vm3638_vm1, %v7355_v28, %v7354_v57  ;;  %v6256_v11 = vld [vmem:[%s12437_s14 + $0x6] sm:$0x1]  ;;  %v7370_v57 = vunpack.i.h.bf16 %v12152_v1  ;;  %v7309_v1 = vunpack.i.l.bf16 %v12069_v3 }
 0x9db   :  { %5344 = vmatpush.msra.mxu2 %v12955_v19  ;;  %5420 = vmatpush.msra.mxu3 %v5396_v2  ;;  %v5393_v4 = vsel %vm3365_vm2, %v7345_v18, %v7349_v34  ;;  %v5389_v41 = vsel %vm3365_vm2, %v7349_v34, %v7340_v20  ;;  %v12194_v8 = vpop.permute.xlu2 %7377  ;;  %v5398_v30 = vsel %vm3365_vm2, %v7350_v46, %v12967_v54  ;;  %v12969_v18 = vld [vmem:[#allocation45_spill] sm:$0xff] }
 0x9dc   :  { %5325 = vmatpush.msra.mxu1 %v12956_v7  ;;  %5439 = vmatpush.msrb.mxu0 %v5393_v4  ;;  %v7184_v27 = vunpack.i.l.bf16 %v12969_v18  ;;  %v5541_v34 = vsel %vm3638_vm1, %v12975_v0, %v7359_v13  ;;  %v7279_v7 = vunpack.i.l.bf16 %v11997_v40  ;;  %v5683_v17 = vsel %vm3911_vm3, %v7370_v57, %v7369_v61 }
 0x9dd   :  { %5345 = vmatpush.msra.mxu2 %v12957_v44  ;;  %5421 = vmatpush.msra.mxu3 %v12958_v14  ;;  %v12976_v44 = vld [vmem:[#allocation46_spill] sm:$0xff] }
 0x9de   :  { %6248 = vmatmul.msk.f32.vlgmr.msra.gmra.mxu0 %vm4754_vm9, %v6246_v26  ;;  %5459 = vmatpush.msrb.mxu1 %v5389_v41  ;;  %v5535_v20 = vsel %vm3638_vm1, %v7184_v27, %v7244_v63  ;;  %v7255_v14 = vunpack.i.h.bf16 %v12976_v44  ;;  %v7314_v41 = vunpack.i.l.bf16 %v12061_v58 }
 0x9df   :  { %5479 = vmatpush.msrb.mxu2 %v5401_v43  ;;  %v12176_v52 = vpop.permute.xlu0 %7362  ;;  %5422 = vmatpush.msra.mxu3 %v12959_v62  ;;  %v12977_v43 = vld [vmem:[#allocation51_spill] sm:$0xff]  ;;  %v7254_v62 = vunpack.i.l.bf16 %v12976_v44  ;;  %v6266_v44 = vld [vmem:[%s12437_s14 + $0x8] sm:$0x1] }
 0x9e0   :  { %6249 = vmatmul.msk.f32.vlgmr.msra.gmra.mxu1 %vm4754_vm9, %v6246_v26  ;;  %6250 = vmatmul.msk.f32.vlgmr.msra.gmra.mxu2 %vm4754_vm9, %v6246_v26  ;;  %v12189_v6 = vpop.permute.xlu1 %7372  ;;  %v7364_v21 = vunpack.i.l.bf16 %v12176_v52  ;;  %v12972_v26 = vld [vmem:[#allocation40_spill] sm:$0xff]  ;;  %v7365_v2 = vunpack.i.h.bf16 %v12176_v52 }
 0x9e1   :  { %6252 = vmatmul.msk.f32.vlgmr.msra.gmra.mxu3 %vm4754_vm9, %v6251_v48  ;;  %5480 = vmatpush.msrb.mxu2 %v5400_v31  ;;  %v7375_v47 = vunpack.i.h.bf16 %v12189_v6  ;;  %v12973_v35 = vunpack.i.h.bf16 %v12972_v26  ;;  %v7374_v19 = vunpack.i.l.bf16 %v12189_v6  ;;  %v7379_v31 = vunpack.i.l.bf16 %v12194_v8 }
 0x9e2   :  { %5560 = vmatpush.msrb.mxu3 %v5538_v51  ;;  %5440 = vmatpush.msrb.mxu0 %v12962_v10  ;;  %v5534_v16 = vsel %vm3638_vm1, %v7360_v38, %v7364_v21  ;;  %v5530_v9 = vsel %vm3638_vm1, %v7364_v21, %v7355_v28  ;;  %v7310_v38 = vunpack.i.h.bf16 %v12069_v3  ;;  %v5539_v52 = vsel %vm3638_vm1, %v7365_v2, %v7184_v27  ;;  %v12978_v51 = vld [vmem:[#allocation53_spill] sm:$0xff] }
 0x9e3   :  { %5481 = vmatpush.msrb.mxu2 %v12963_v25  ;;  %5460 = vmatpush.msrb.mxu1 %v12964_v33  ;;  %v5386_v15 = vsel %vm3365_vm2, %v12973_v35, %v7350_v46  ;;  %v5679_v5 = vsel %vm3911_vm3, %v7369_v61, %v7375_v47  ;;  %v5678_v13 = vsel %vm3911_vm3, %v7374_v19, %v7279_v7  ;;  %v7250_v46 = vunpack.i.h.bf16 %v12978_v51 }
 0x9e4   :  { %5561 = vmatpush.msrb.mxu3 %v5537_v49  ;;  %5441 = vmatpush.msrb.mxu0 %v12968_v32  ;;  %v5682_v28 = vsel %vm3911_vm3, %v7254_v62, %v7374_v19  ;;  %v7280_v10 = vunpack.i.h.bf16 %v11997_v40  ;;  %v7380_v40 = vunpack.i.h.bf16 %v12194_v8  ;;  %v5675_v8 = vsel %vm3911_vm3, %v7375_v47, %v7379_v31 }
 0x9e5   :  { %5482 = vmatpush.msrb.mxu2 %v5398_v30  ;;  %5461 = vmatpush.msrb.mxu1 %v12970_v29  ;;  %v5527_v33 = vsel %vm3638_vm1, %v7250_v46, %v7365_v2  ;;  %v5671_v54 = vsel %vm3911_vm3, %v7379_v31, %v7370_v57  ;;  %v7319_v27 = vunpack.i.l.bf16 %v11944_v12  ;;  %v7324_v6 = vunpack.i.l.bf16 %v12114_v56 }
 0x9e6   :  { %5562 = vmatpush.msrb.mxu3 %v12971_v42  ;;  %5442 = vmatpush.msrb.mxu0 %v12974_v39  ;;  %v5681_v18 = vsel %vm3911_vm3, %v7280_v10, %v7255_v14  ;;  %v5680_v26 = vsel %vm3911_vm3, %v7380_v40, %v7309_v1  ;;  %v7320_v61 = vunpack.i.h.bf16 %v11944_v12 }
 0x9e7   :  { %5620 = vmatpush.msra.mxu2 %v5542_v36  ;;  %v12218_v55 = vpop.permute.xlu0 %7387  ;;  %5462 = vmatpush.msrb.mxu1 %v5386_v15  ;;  %v7325_v36 = vunpack.i.h.bf16 %v12114_v56  ;;  %v5673_v56 = vsel %vm3911_vm3, %v7310_v38, %v7319_v27 }
 0x9e8   :  { %5563 = vmatpush.msrb.mxu3 %v5535_v20  ;;  %6253 = vmatmul.msk.f32.vlgmr.msrb.gmra.mxu0 %vm4754_vm9, %v6251_v48  ;;  %v12248_v4 = vpop.permute.xlu1 %7392  ;;  %v7390_v32 = vunpack.i.h.bf16 %v12218_v55  ;;  %v7389_v3 = vunpack.i.l.bf16 %v12218_v55  ;;  %v5668_v2 = vsel %vm3911_vm3, %v7320_v61, %v7380_v40 }
 0x9e9   :  { %5621 = vmatpush.msra.mxu2 %v5541_v34  ;;  %6254 = vmatmul.msk.f32.vlgmr.msrb.gmra.mxu1 %vm4754_vm9, %v6251_v48  ;;  %v7394_v25 = vunpack.i.l.bf16 %v12248_v4  ;;  %v7395_v59 = vunpack.i.h.bf16 %v12248_v4  ;;  %v5669_v34 = vsel %vm3911_vm3, %v7319_v27, %v7280_v10  ;;  %v12979_v27 = vld [vmem:[#allocation81_spill] sm:$0xff] }
 0x9ea   :  { %6255 = vmatmul.msk.f32.vlgmr.msrb.gmra.mxu2 %vm4754_vm9, %v6251_v48  ;;  %6257 = vmatmul.msk.f32.vlgmr.msrb.gmra.mxu3 %vm4754_vm9, %v6256_v11  ;;  %v12256_v48 = vpop.permute.xlu2 %7382  ;;  %v5818_v12 = vsel %vm4184_vm4, %v7325_v36, %v7390_v32 }
 0x9eb   :  { %5580 = vmatpush.msra.mxu0 %v5534_v16  ;;  %5600 = vmatpush.msra.mxu1 %v5530_v9  ;;  %v7384_v21 = vunpack.i.l.bf16 %v12256_v48  ;;  %v5824_v39 = vsel %vm4184_vm4, %v7395_v59, %v7394_v25  ;;  %v5672_v9 = vsel %vm3911_vm3, %v7314_v41, %v7320_v61 }
 0x9ec   :  { %5622 = vmatpush.msra.mxu2 %v12977_v43  ;;  %5701 = vmatpush.msra.mxu3 %v5679_v5 }
 0x9ed   :  { %5581 = vmatpush.msra.mxu0 %v11965_v23  ;;  %5601 = vmatpush.msra.mxu1 %v11971_v50  ;;  %v5677_v23 = vsel %vm3911_vm3, %v7255_v14, %v7310_v38 }
 0x9ee   :  { %5623 = vmatpush.msra.mxu2 %v5539_v52  ;;  %5702 = vmatpush.msra.mxu3 %v5678_v13 }
 0x9ef   :  { %v12268_v24 = vpop.permute.xlu0 %7397  ;;  %5582 = vmatpush.msra.mxu0 %v11919_v60  ;;  %5602 = vmatpush.msra.mxu1 %v11923_v45  ;;  %v5531_v60 = vsel %vm3638_vm1, %v7244_v63, %v7250_v46  ;;  %v5676_v45 = vsel %vm3911_vm3, %v7309_v1, %v7314_v41  ;;  %v7315_v63 = vunpack.i.h.bf16 %v12061_v58 }
 0x9f0   :  { %5761 = vmatpush.msrb.mxu2 %v5683_v17  ;;  %v7400_v50 = vunpack.i.h.bf16 %v12268_v24  ;;  %5703 = vmatpush.msra.mxu3 %v5677_v23  ;;  %v7399_v22 = vunpack.i.l.bf16 %v12268_v24  ;;  %v12313_v30 = vpop.permute.xlu1 %7402 }
 0x9f1   :  { %5583 = vmatpush.msra.mxu0 %v5531_v60  ;;  %5603 = vmatpush.msra.mxu1 %v5527_v33  ;;  %v5674_v47 = vsel %vm3911_vm3, %v7279_v7, %v7315_v63  ;;  %v5670_v29 = vsel %vm3911_vm3, %v7315_v63, %v7254_v62  ;;  %v7404_v35 = vunpack.i.l.bf16 %v12313_v30  ;;  %v7405_v58 = vunpack.i.h.bf16 %v12313_v30 }
 0x9f2   :  { %5762 = vmatpush.msrb.mxu2 %v5682_v28  ;;  %5704 = vmatpush.msra.mxu3 %v5676_v45  ;;  %v5820_v49 = vsel %vm4184_vm4, %v7394_v25, %v7400_v50  ;;  %v7408_v42 = vpop.permute.xlu2 %7407  ;;  %v5819_v15 = vsel %vm4184_vm4, %v7399_v22, %v7384_v21  ;;  %v5823_v20 = vsel %vm4184_vm4, %v7324_v6, %v7399_v22 }
 0x9f3   :  { %6258 = vmatmul.msk.f32.vlgmr.msra.gmra.mxu0 %vm4754_vm9, %v6256_v11  ;;  %6259 = vmatmul.msk.f32.vlgmr.msra.gmra.mxu1 %vm4754_vm9, %v6256_v11  ;;  %v7410_v16 = vunpack.i.h.bf16 %v7408_v42  ;;  %v5816_v19 = vsel %vm4184_vm4, %v7400_v50, %v7404_v35  ;;  %v5812_v5 = vsel %vm4184_vm4, %v7404_v35, %v7395_v59  ;;  %v7409_v57 = vunpack.i.l.bf16 %v7408_v42 }
 0x9f4   :  { %6260 = vmatmul.msk.f32.vlgmr.msra.gmra.mxu2 %vm4754_vm9, %v6256_v11  ;;  %6262 = vmatmul.msk.f32.vlgmr.msra.gmra.mxu3 %vm4754_vm9, %v6261_v37  ;;  %v7385_v11 = vunpack.i.h.bf16 %v12256_v48  ;;  %v5821_v48 = vsel %vm4184_vm4, %v7405_v58, %v7389_v3 }
 0x9f5   :  { %5721 = vmatpush.msrb.mxu0 %v5675_v8  ;;  %5741 = vmatpush.msrb.mxu1 %v5671_v54  ;;  %v5815_v4 = vsel %vm4184_vm4, %v7384_v21, %v7410_v16  ;;  %v5817_v38 = vsel %vm4184_vm4, %v7389_v3, %v7409_v57  ;;  %v5811_v14 = vsel %vm4184_vm4, %v7410_v16, %v7324_v6  ;;  %v12987_v3 = vld [vmem:[#allocation88_spill] sm:$0xff] }
 0x9f6   :  { %5763 = vmatpush.msrb.mxu2 %v5681_v18  ;;  %5842 = vmatpush.msrb.mxu3 %v5820_v49  ;;  %v5822_v7 = vsel %vm4184_vm4, %v7385_v11, %v7325_v36  ;;  %v12981_v36 = vld [vmem:[#allocation85_spill] sm:$0xff] }
 0x9f7   :  { %5722 = vmatpush.msrb.mxu0 %v5674_v47  ;;  %5742 = vmatpush.msrb.mxu1 %v5670_v29  ;;  %v7413_v0 = vpop.permute.xlu0 %7412  ;;  %v12980_v47 = vld [vmem:[#allocation79_spill] sm:$0xff] }
 0x9f8   :  { %5764 = vmatpush.msrb.mxu2 %v5680_v26  ;;  %5843 = vmatpush.msrb.mxu3 %v5819_v15  ;;  %v7414_v55 = vunpack.i.l.bf16 %v7413_v0  ;;  %v7415_v43 = vunpack.i.h.bf16 %v7413_v0  ;;  %v12982_v26 = vld [vmem:[#allocation86_spill] sm:$0xff] }
 0x9f9   :  { %5723 = vmatpush.msrb.mxu0 %v5673_v56  ;;  %5743 = vmatpush.msrb.mxu1 %v5669_v34  ;;  %v12983_v15 = vld [vmem:[#allocation78_spill] sm:$0xff] }
 0x9fa   :  { %5902 = vmatpush.msra.mxu2 %v5824_v39  ;;  %5844 = vmatpush.msrb.mxu3 %v5818_v12  ;;  %v5814_v41 = vsel %vm4184_vm4, %v7390_v32, %v7414_v55  ;;  %v5810_v1 = vsel %vm4184_vm4, %v7414_v55, %v7385_v11  ;;  %v5813_v52 = vsel %vm4184_vm4, %v7409_v57, %v7415_v43  ;;  %v12984_v39 = vld [vmem:[#allocation89_spill] sm:$0xff]  ;;  %v12986_v34 = vld [vmem:[#allocation22_spill] sm:$0xff]  ;;  %v12989_v55 = vld [vmem:[#allocation56_spill] sm:$0xff] }
 0x9fb   :  { %5724 = vmatpush.msrb.mxu0 %v5672_v9  ;;  %5744 = vmatpush.msrb.mxu1 %v5668_v2  ;;  %v5809_v13 = vsel %vm4184_vm4, %v7415_v43, %v7405_v58  ;;  %v12988_v2 = vld [vmem:[#allocation18_spill] sm:$0xff]  ;;  %v12992_v43 = vld [vmem:[#allocation20_spill] sm:$0xff] }
 0x9fc   :  { %5903 = vmatpush.msra.mxu2 %v5823_v20  ;;  %6263 = vmatmul.msk.f32.vlgmr.msrb.gmra.mxu0 %vm4754_vm9, %v6261_v37  ;;  %v12985_v20 = vld [vmem:[#allocation82_spill] sm:$0xff] }
 0x9fd   :  { %6264 = vmatmul.msk.f32.vlgmr.msrb.gmra.mxu1 %vm4754_vm9, %v6261_v37  ;;  %6265 = vmatmul.msk.f32.vlgmr.msrb.gmra.mxu2 %vm4754_vm9, %v6261_v37 }
 0x9fe   :  { %5862 = vmatpush.msra.mxu0 %v5816_v19  ;;  %5882 = vmatpush.msra.mxu1 %v5812_v5 }
 0x9ff   :  { %5904 = vmatpush.msra.mxu2 %v5822_v7  ;;  %5845 = vmatpush.msrb.mxu3 %v5817_v38  ;;  %v12991_v38 = vld [vmem:[#allocation16_spill] sm:$0xff] }
 0xa00   :  { %5863 = vmatpush.msra.mxu0 %v5815_v4  ;;  %5883 = vmatpush.msra.mxu1 %v5811_v14  ;;  %v12990_v4 = vld [vmem:[#allocation55_spill] sm:$0xff] }
 0xa01   :  { %5905 = vmatpush.msra.mxu2 %v5821_v48  ;;  %6267 = vmatmul.msk.f32.vlgmr.msrb.gmra.mxu3 %vm4754_vm9, %v6266_v44  ;;  %v12993_v48 = vld [vmem:[#allocation57_spill] sm:$0xff] }
 0xa02   :  { %5864 = vmatpush.msra.mxu0 %v5814_v41  ;;  %5884 = vmatpush.msra.mxu1 %v5810_v1 }
 0xa04   :  { %5865 = vmatpush.msra.mxu0 %v5813_v52  ;;  %5885 = vmatpush.msra.mxu1 %v5809_v13 }
 0xa05   :  { %6270 = vmatmul.msk.f32.vlgmr.msra.gmra.mxu2 %vm4754_vm9, %v6266_v44  ;;  %6268 = vmatmul.msk.f32.vlgmr.msra.gmra.mxu0 %vm4754_vm9, %v6266_v44 }
 0xa06   :  { %6269 = vmatmul.msk.f32.vlgmr.msra.gmra.mxu1 %vm4754_vm9, %v6266_v44 }
 0xa20   :  { %v4795_v51 = vpop.f32.mrf.mxu0 }
 0xa21   :  { %v4839_v6 = vmul.f32 %v4795_v51, %v12979_v27 }
 0xa28   :  { %v4775_v62 = vpop.f32.mrf.mxu1  ;;  %v4835_v17 = vpop.f32.mrf.mxu0 }
 0xa29   :  { %v5053_v53 = vpop.f32.mrf.mxu3  ;;  %v4838_v61 = vmul.f32 %v4775_v62, %v12983_v15  ;;  %v4841_v57 = vmul.f32 %v4835_v17, %v12989_v55  ;;  %v13000_v15 = vld [vmem:[#allocation34_spill] sm:$0xff]  ;;  %v13006_v55 = vld [vmem:[#allocation12_spill] sm:$0xff] }
 0xa2a   :  { %v5116_v9 = vmul.f32 %v5053_v53, %v12987_v3  ;;  %v12996_v53 = vld [vmem:[#allocation32_spill] sm:$0xff] }
 0xa30   :  { %v4815_v46 = vpop.f32.mrf.mxu1  ;;  %v4932_v50 = vpop.f32.mrf.mxu0 }
 0xa31   :  { %v4976_v42 = vmul.f32 %v4932_v50, %v12981_v36  ;;  %v4840_v0 = vmul.f32 %v4815_v46, %v12985_v20  ;;  %v12994_v46 = vld [vmem:[#allocation31_spill] sm:$0xff] }
 0xa33   :  { %v4980_v16 = vadd.f32 %v4976_v42, %v4839_v6  ;;  %v12997_v6 = vld [vmem:[#allocation30_spill] sm:$0xff]  ;;  %v12999_v42 = vld [vmem:[#allocation28_spill] sm:$0xff] }
 0xa38   :  { %v4912_v24 = vpop.f32.mrf.mxu1 }
 0xa39   :  { %v4975_v29 = vmul.f32 %v4912_v24, %v12980_v47  ;;  %v12998_v47 = vld [vmem:[#allocation33_spill] sm:$0xff] }
 0xa3b   :  { %v4979_v11 = vadd.f32 %v4975_v29, %v4838_v61 }
 0xa3d   :  { %v5120_v62 = vadd.f32 %v5116_v9, %v4979_v11 }
 0xa3e   :  { %v4972_v31 = vpop.f32.mrf.mxu2 }
 0xa3f   :  { %v4978_v7 = vmul.f32 %v4972_v31, %v12990_v4 }
 0xa40   :  { %v4952_v23 = vpop.f32.mrf.mxu1 }
 0xa41   :  { %v4977_v35 = vmul.f32 %v4952_v23, %v12982_v26  ;;  %v4982_v50 = vadd.f32 %v4978_v7, %v4841_v57 }
 0xa43   :  { %v4981_v58 = vadd.f32 %v4977_v35, %v4840_v0 }
 0xa48   :  { %v5093_v60 = vpop.f32.mrf.mxu1 }
 0xa49   :  { %v5073_v28 = vpop.f32.mrf.mxu0  ;;  %v5118_v12 = vmul.f32 %v5093_v60, %v12986_v34  ;;  %v13003_v34 = vld [vmem:[#allocation24_spill] sm:$0xff] }
 0xa4a   :  { %v5117_v56 = vmul.f32 %v5073_v28, %v12984_v39  ;;  %v12995_v28 = vld [vmem:[#allocation61_spill] sm:$0xff]  ;;  %v13001_v39 = vld [vmem:[#allocation36_spill] sm:$0xff] }
 0xa4b   :  { %v5122_v1 = vadd.f32 %v5118_v12, %v4981_v58 }
 0xa4c   :  { %v5121_v14 = vadd.f32 %v5117_v56, %v4980_v16  ;;  %v13004_v16 = vld [vmem:[#allocation35_spill] sm:$0xff] }
 0xa4f   :  { %v5113_v10 = vpop.f32.mrf.mxu2 }
 0xa50   :  { %v5194_v25 = vpop.f32.mrf.mxu3  ;;  %v5119_v52 = vmul.f32 %v5113_v10, %v12993_v48 }
 0xa51   :  { %v5257_v41 = vmul.f32 %v5194_v25, %v12992_v43 }
 0xa52   :  { %v5123_v10 = vadd.f32 %v5119_v52, %v4982_v50  ;;  %v13010_v50 = vld [vmem:[#allocation27_spill] sm:$0xff] }
 0xa53   :  { %v5214_v33 = vpop.f32.mrf.mxu0 }
 0xa54   :  { %v5234_v45 = vpop.f32.mrf.mxu1  ;;  %v5258_v19 = vmul.f32 %v5214_v33, %v12988_v2  ;;  %v13005_v2 = vld [vmem:[#allocation26_spill] sm:$0xff] }
 0xa55   :  { %v5259_v44 = vmul.f32 %v5234_v45, %v12991_v38  ;;  %v5261_v45 = vadd.f32 %v5257_v41, %v5120_v62  ;;  %v13007_v38 = vld [vmem:[#allocation17_spill] sm:$0xff] }
 0xa56   :  { %v5262_v51 = vadd.f32 %v5258_v19, %v5121_v14  ;;  %v13008_v41 = vld [vmem:[#allocation29_spill] sm:$0xff] }
 0xa57   :  { %v5263_v60 = vadd.f32 %v5259_v44, %v5122_v1 }
 0xa5a   :  { %v5254_v37 = vpop.f32.mrf.mxu2 }
 0xa5b   :  { %v5287_v40 = vpop.f32.mrf.mxu3  ;;  %v5307_v22 = vpop.f32.mrf.mxu0  ;;  %v5260_v17 = vmul.f32 %v5254_v37, %v12995_v28 }
 0xa5c   :  { %v5351_v27 = vadd.f32 %v5307_v22, %v5262_v51  ;;  %v5350_v35 = vadd.f32 %v5287_v40, %v5261_v45 }
 0xa5d   :  { %v5327_v63 = vpop.f32.mrf.mxu1  ;;  %v5264_v56 = vadd.f32 %v5260_v17, %v5123_v10 }
 0xa5e   :  { %v5352_v36 = vadd.f32 %v5327_v63, %v5263_v60 }
 0xa63   :  { %v5347_v49 = vpop.f32.mrf.mxu2 }
 0xa64   :  { %v5424_v54 = vpop.f32.mrf.mxu3  ;;  %v5353_v3 = vadd.f32 %v5347_v49, %v5264_v56  ;;  %v13009_v49 = vld [vmem:[#allocation25_spill] sm:$0xff] }
 0xa65   :  { %v5444_v59 = vpop.f32.mrf.mxu0  ;;  %v5487_v25 = vmul.f32 %v5424_v54, %v12997_v6  ;;  %v5921_v54 = vpop.permute.xlu1 %5920 }
 0xa66   :  { %v5464_v8 = vpop.f32.mrf.mxu1  ;;  %v5488_v24 = vmul.f32 %v5444_v59, %v12994_v46  ;;  %v5923_v4 = vperm.slane %v5921_v54, 0 }
 0xa67   :  { %v5489_v31 = vmul.f32 %v5464_v8, %v12996_v53  ;;  %v13002_v8 = vld [vmem:[#allocation63_spill] sm:$0xff]  ;;  %v5491_v11 = vadd.f32 %v5487_v25, %v5350_v35 }
 0xa68   :  { %v5492_v59 = vadd.f32 %v5488_v24, %v5351_v27 }
 0xa69   :  { %v5493_v20 = vadd.f32 %v5489_v31, %v5352_v36 }
 0xa6d   :  { %v5484_v30 = vpop.f32.mrf.mxu2  ;;  %v5565_v18 = vpop.f32.mrf.mxu3 }
 0xa6e   :  { %v5628_v61 = vmul.f32 %v5565_v18, %v13000_v15  ;;  %v5490_v0 = vmul.f32 %v5484_v30, %v13002_v8 }
 0xa70   :  { %v5585_v21 = vpop.f32.mrf.mxu0  ;;  %v5605_v32 = vpop.f32.mrf.mxu1  ;;  %v5632_v9 = vadd.f32 %v5628_v61, %v5491_v11  ;;  %v5494_v30 = vadd.f32 %v5490_v0, %v5353_v3 }
 0xa71   :  { %v5629_v29 = vmul.f32 %v5585_v21, %v12998_v47  ;;  %v5630_v26 = vmul.f32 %v5605_v32, %v12999_v42 }
 0xa73   :  { %v5633_v21 = vadd.f32 %v5629_v29, %v5492_v59  ;;  %v5634_v32 = vadd.f32 %v5630_v26, %v5493_v20  ;;  %v13011_v29 = vlaneseq }
 0xa75   :  { %vm5948_vm0 = vcmp.lt.s32.totalorder %v13011_v29, 512 }
 0xa77   :  { %v5625_v5 = vpop.f32.mrf.mxu2  ;;  %v5706_v33 = vpop.f32.mrf.mxu3 }
 0xa78   :  { %v5769_v63 = vmul.f32 %v5706_v33, %v13004_v16  ;;  %v5631_v18 = vmul.f32 %v5625_v5, %v13005_v2 }
 0xa79   :  { %v5726_v13 = vpop.f32.mrf.mxu0 }
 0xa7a   :  { %v5746_v23 = vpop.f32.mrf.mxu1  ;;  %v5770_v37 = vmul.f32 %v5726_v13, %v13001_v39  ;;  %v5773_v43 = vadd.f32 %v5769_v63, %v5632_v9  ;;  %v5635_v62 = vadd.f32 %v5631_v18, %v5494_v30 }
 0xa7b   :  { %v5771_v22 = vmul.f32 %v5746_v23, %v13003_v34 }
 0xa7c   :  { %v5774_v19 = vadd.f32 %v5770_v37, %v5633_v21 }
 0xa7d   :  { %v5775_v7 = vadd.f32 %v5771_v22, %v5634_v32 }
 0xa80   :  { %v5766_v12 = vpop.f32.mrf.mxu2 }
 0xa81   :  { %v5772_v1 = vmul.f32 %v5766_v12, %v13008_v41 }
 0xa82   :  { %v5867_v40 = vpop.f32.mrf.mxu0 }
 0xa83   :  { %v5911_v57 = vmul.f32 %v5867_v40, %v13006_v55  ;;  %v5887_v58 = vpop.f32.mrf.mxu1  ;;  %v5776_v24 = vadd.f32 %v5772_v1, %v5635_v62 }
 0xa84   :  { %v5912_v44 = vmul.f32 %v5887_v58, %v13007_v38  ;;  %v5847_v14 = vpop.f32.mrf.mxu3 }
 0xa85   :  { %v5915_v48 = vadd.f32 %v5911_v57, %v5774_v19  ;;  %v5910_v52 = vmul.f32 %v5847_v14, %v13009_v49 }
 0xa86   :  { %v5916_v13 = vadd.f32 %v5912_v44, %v5775_v7 }
 0xa87   :  { %v5925_v51 = vadd.f32 %v5923_v4, %v5915_v48  ;;  %v5914_v5 = vadd.f32 %v5910_v52, %v5773_v43 }
 0xa88   :  { %v5907_v46 = vpop.f32.mrf.mxu2  ;;  %v5926_v23 = vadd.f32 %v5923_v4, %v5916_v13 }
 0xa89   :  { %v5913_v28 = vmul.f32 %v5907_v46, %v13010_v50  ;;  %v5924_v17 = vadd.f32 %v5923_v4, %v5914_v5  ;;  %7468 = vtanh.f32 %v5925_v51 }
 0xa8a   :  { %7470 = vtanh.f32 %v5926_v23 }
 0xa8b   :  { %v5917_v60 = vadd.f32 %v5913_v28, %v5776_v24  ;;  %7472 = vtanh.f32 %v5924_v17 }
 0xa8d   :  { %v5927_v53 = vadd.f32 %v5923_v4, %v5917_v60 }
 0xa8f   :  { %7474 = vtanh.f32 %v5927_v53  ;;  %v7469_v31 = vpop.eup %7468 }
 0xa90   :  { %v7471_v33 = vpop.eup %7470  ;;  %v5936_v27 = vrot.slane %v7469_v31, 7 }
 0xa91   :  { %v7473_v45 = vpop.eup %7472  ;;  %v5937_v25 = vrot.slane %v7471_v33, 6 }
 0xa92   :  { %v5940_v10 = vsel %vm5939_vm13, %v7473_v45, %v5936_v27 }
 0xa95   :  { %v7475_v6 = vpop.eup %7474 }
 0xa96   :  { %v5938_v47 = vrot.slane %v7475_v6, 5 }
 0xa98   :  { %v5942_v36 = vsel %vm5941_vm14, %v5937_v25, %v5938_v47 }
 0xa99   :  { %v5944_v42 = vsel %vm5943_vm15, %v5940_v10, %v5942_v36 }
 0xa9a   :  { %5950 = vst.msk [vmem:[%s12441_s18] sm:$0xf] %vm5948_vm0, %v5944_v42 }
 0xa9b   :  { %5955 = vsyncpa [#allocation4], 1 }
 0xa9c   :  { %5956 = vsyncpa [#allocation6], 1 }

</bundles_post_ra>
